<compile_context>
chip_gen: v5e
topology: v5e:2x2
jax: 0.10.0
libtpu: 0.0.40
codegen_flags: <defaults>
</compile_context>

<pallas_src>
import functools
import math

import jax
import jax.numpy as jnp
from jax.experimental import pallas as pl
from jax.experimental.pallas import tpu as pltpu

STFT_EPS = 1e-8
FFT_SIZES = (1024, 2048, 512)
HOP_SIZES = (120, 240, 50)
WIN_LENGTHS = (600, 1200, 240)
BIN_TILE = 128          # bins per matmul slab (fused [cos|sin] width = 256)
MAX_FRAME_TILE = 128    # frames per grid step (MXU M dimension)
LOG2 = math.log(2.0)


def _round_up(v, m):
    return ((v + m - 1) // m) * m


# --------------------------------------------------------------------------
# log-cosh loss kernel: large lane-dense tiles, per-block partial sums
# --------------------------------------------------------------------------
def _logcosh_kernel(x_ref, y_ref, o_ref):
    d = x_ref[...] - y_ref[...]
    ad = jnp.abs(d)
    # log(cosh(d) + 1e-8) == log(cosh(d)) in f32 (cosh>=1, ulp(1)>1e-8);
    # stable identity avoids exp overflow and uses only 2 EUP ops.
    lc = ad + jnp.log1p(jnp.exp(-2.0 * ad)) - jnp.float32(LOG2)
    # zero padding contributes exactly 0, so no masking is needed.
    o_ref[0] = lc.reshape(-1, 8, 128).sum(axis=0)


def log_cosh_loss(x, y):
    # x, y: (N, T) float32
    nt = x.size
    lanes = 128
    rows = pl.cdiv(nt, lanes)
    tile_r = min(1024, _round_up(rows, 8))
    rows_pad = _round_up(rows, tile_r)

    def prep(a):
        a = a.reshape(-1).astype(jnp.float32)
        a = jnp.pad(a, (0, rows_pad * lanes - nt))
        return a.reshape(rows_pad, lanes)

    xb, yb = prep(x), prep(y)
    grid = rows_pad // tile_r

    partials = pl.pallas_call(
        _logcosh_kernel,
        out_shape=jax.ShapeDtypeStruct((grid, 8, 128), jnp.float32),
        grid_spec=pltpu.PrefetchScalarGridSpec(
            num_scalar_prefetch=0,
            grid=(grid,),
            in_specs=[
                pl.BlockSpec((tile_r, lanes), lambda i: (i, 0)),
                pl.BlockSpec((tile_r, lanes), lambda i: (i, 0)),
            ],
            out_specs=pl.BlockSpec((1, 8, 128), lambda i: (i, 0, 0)),
        ),
        compiler_params=pltpu.CompilerParams(
            dimension_semantics=("parallel",)),
    )(xb, yb)
    return jnp.sum(partials) / jnp.float32(nt)


# --------------------------------------------------------------------------
# STFT-statistics kernel: bf16 DFT matmuls on the MXU + VMEM partial sums
# Per item the (revisited) output block accumulates three (8,128) partials:
#   [0] sum (y_mag - x_mag)^2   [1] sum y_mag^2   [2] sum |log x - log y|
# --------------------------------------------------------------------------
def _stft_stats_kernel(fx_ref, fy_ref, w_ref, o_ref, *, b_tile):
    ft = pl.program_id(1)
    b = pl.program_id(2)

    @pl.when(jnp.logical_and(ft == 0, b == 0))
    def _():
        o_ref[...] = jnp.zeros_like(o_ref)

    fx = fx_ref[0]                 # (frame_tile, n_fft) bf16
    fy = fy_ref[0]
    w = w_ref[...]                 # (n_fft, 2*b_tile) bf16 : [cos_b | sin_b]

    xs = jnp.dot(fx, w, preferred_element_type=jnp.float32)   # (FT, 2*b_tile)
    ys = jnp.dot(fy, w, preferred_element_type=jnp.float32)

    xr, xi = xs[:, :b_tile], xs[:, b_tile:]
    yr, yi = ys[:, :b_tile], ys[:, b_tile:]

    x_mag = jnp.sqrt(jnp.maximum(xr * xr + xi * xi, STFT_EPS))
    y_mag = jnp.sqrt(jnp.maximum(yr * yr + yi * yi, STFT_EPS))

    # No masking: zero-padded frames / zero DFT columns give x_mag == y_mag
    # == sqrt(eps) exactly, so the first and third statistics get exactly 0
    # and the second gets exactly eps per padded cell (corrected host-side).
    diff = y_mag - x_mag
    d2 = (diff * diff).reshape(-1, 8, 128).sum(axis=0)
    ysq = (y_mag * y_mag).reshape(-1, 8, 128).sum(axis=0)
    ld = jnp.abs(jnp.log(x_mag) - jnp.log(y_mag)).reshape(-1, 8, 128).sum(axis=0)

    o_ref[0] += d2
    o_ref[1] += ysq
    o_ref[2] += ld


# ---------------------------- JAX glue ------------------------------------
def _frame(x, n_fft, hop):
    # torch.stft(center=True, pad_mode='reflect'): frames of length n_fft
    pad = n_fft // 2
    xp = jnp.pad(x, ((0, 0), (pad, pad)), mode="reflect")
    num_frames = 1 + (xp.shape[1] - n_fft) // hop
    idx = jnp.arange(num_frames)[:, None] * hop + jnp.arange(n_fft)[None, :]
    return xp[:, idx], num_frames        # (N, num_frames, n_fft)


def _padded_hann(win_length, n_fft):
    # torch.hann_window (periodic), zero-padded centered to n_fft
    k = jnp.arange(win_length, dtype=jnp.float32)
    w = 0.5 - 0.5 * jnp.cos(2.0 * math.pi * k / win_length)
    left = (n_fft - win_length) // 2
    return jnp.pad(w, (left, n_fft - win_length - left))


def _fused_dft_matrix(n_fft, win_length, b_tile):
    # Window-folded one-sided DFT basis; bins zero-padded to a multiple of
    # b_tile and laid out as interleaved [cos_j | sin_j] slabs of width
    # 2*b_tile so each bf16 matmul slab yields real+imag of the same bins.
    n_bins = n_fft // 2 + 1
    nbp = _round_up(n_bins, b_tile)
    n = jnp.arange(n_fft, dtype=jnp.int32)[:, None]
    f = jnp.arange(n_bins, dtype=jnp.int32)[None, :]
    phase = (2.0 * math.pi / n_fft) * ((n * f) % n_fft).astype(jnp.float32)
    win = _padded_hann(win_length, n_fft)[:, None]
    wcos = jnp.pad(win * jnp.cos(phase), ((0, 0), (0, nbp - n_bins)))
    wsin = jnp.pad(win * jnp.sin(phase), ((0, 0), (0, nbp - n_bins)))
    num_b = nbp // b_tile
    wc = wcos.reshape(n_fft, num_b, b_tile)
    ws = wsin.reshape(n_fft, num_b, b_tile)
    fused = jnp.concatenate([wc, ws], axis=2).reshape(n_fft, num_b * 2 * b_tile)
    return fused.astype(jnp.bfloat16), n_bins, nbp, num_b


def stft_resolution_loss(x, y, n_fft, hop, win_length):
    # x, y: (N, T) float32 (N = batch * channels, as in auraloss STFTLoss)
    N = x.shape[0]
    b_tile = BIN_TILE

    frames_x, num_frames = _frame(x, n_fft, hop)
    frames_y, _ = _frame(y, n_fft, hop)

    # frame tile: up to 128 MXU rows; multiple of 16 for bf16 sublane packing
    frame_tile = min(MAX_FRAME_TILE, _round_up(num_frames, 16))
    f_pad = _round_up(num_frames, frame_tile)

    def prep(fr):
        fr = jnp.pad(fr, ((0, 0), (0, f_pad - num_frames), (0, 0)))
        return fr.astype(jnp.bfloat16)

    frames_x = prep(frames_x)
    frames_y = prep(frames_y)

    w_fused, n_bins, nbp, num_b = _fused_dft_matrix(n_fft, win_length, b_tile)

    kernel = functools.partial(_stft_stats_kernel, b_tile=b_tile)
    stats = pl.pallas_call(
        kernel,
        out_shape=jax.ShapeDtypeStruct((N * 3, 8, 128), jnp.float32),
        grid_spec=pltpu.PrefetchScalarGridSpec(
            num_scalar_prefetch=0,
            grid=(N, f_pad // frame_tile, num_b),
            in_specs=[
                pl.BlockSpec((1, frame_tile, n_fft), lambda n, ft, b: (n, ft, 0)),
                pl.BlockSpec((1, frame_tile, n_fft), lambda n, ft, b: (n, ft, 0)),
                pl.BlockSpec((n_fft, 2 * b_tile), lambda n, ft, b: (0, b)),
            ],
            out_specs=pl.BlockSpec((3, 8, 128), lambda n, ft, b: (n, 0, 0)),
        ),
        compiler_params=pltpu.CompilerParams(
            dimension_semantics=("parallel", "arbitrary", "arbitrary"),
            vmem_limit_bytes=48 * 1024 * 1024),
    )(frames_x, frames_y, w_fused)

    stats = stats.reshape(N, 3, 8, 128).sum(axis=(2, 3))     # (N, 3)
    diff_sq = stats[:, 0]                                    # ||Y - X||_F^2
    # padded frames / padded bins each add exactly STFT_EPS to ||Y||^2
    pad_cells = f_pad * nbp - num_frames * n_bins
    y_sq = jnp.maximum(stats[:, 1] - jnp.float32(STFT_EPS * pad_cells),
                       jnp.float32(STFT_EPS))
    abs_logdiff = stats[:, 2]

    # per-item Frobenius norms then mean (current auraloss behaviour)
    sc_loss = jnp.mean(jnp.sqrt(diff_sq) / jnp.sqrt(y_sq))
    log_mag_loss = jnp.sum(abs_logdiff) / jnp.float32(N * num_frames * n_bins)
    return sc_loss + log_mag_loss          # w_sc = w_log_mag = 1.0 (defaults)


def loss_function(inp, tgt):
    # inp, tgt: (B, C, T) audio, as expected by auraloss MR-STFT
    b, c, t = inp.shape
    x = inp.reshape(b * c, t).astype(jnp.float32)
    y = tgt.reshape(b * c, t).astype(jnp.float32)

    lc = log_cosh_loss(x, y)

    mr = jnp.float32(0.0)
    for n_fft, hop, win in zip(FFT_SIZES, HOP_SIZES, WIN_LENGTHS):
        mr = mr + stft_resolution_loss(x, y, n_fft, hop, win)
    mr = mr / jnp.float32(len(FFT_SIZES))

    return lc * 0.25 + mr * 0.75


if __name__ == "__main__":
    key = jax.random.PRNGKey(0)
    k1, k2 = jax.random.split(key)
    # T must exceed n_fft//2 (=1024) for torch-style reflect padding to be valid
    B, C, T = 2, 1, 4096
    inp = 0.1 * jax.random.normal(k1, (B, C, T), jnp.float32)
    tgt = inp + 0.05 * jax.random.normal(k2, (B, C, T), jnp.float32)

    loss = jax.jit(loss_function)(inp, tgt)
    jax.block_until_ready(loss)
    print("KERNEL_OK")
</pallas_src>

<mosaic_0001>
module attributes {stable_mosaic.version = 11 : i64} {
  func.func @_stft_stats_kernel(%arg0: i32, %arg1: i32, %arg2: i32, %arg3: memref<1x32x2048xbf16, #tpu.memory_space<vmem>>, %arg4: memref<1x32x2048xbf16, #tpu.memory_space<vmem>>, %arg5: memref<2048x256xbf16, #tpu.memory_space<vmem>>, %arg6: memref<3x8x128xf32, #tpu.memory_space<vmem>>) attributes {dimension_semantics = [#tpu.dimension_semantics<parallel>, #tpu.dimension_semantics<arbitrary>, #tpu.dimension_semantics<arbitrary>], iteration_bounds = array<i64: 2, 1, 9>, scalar_prefetch = 0 : i64, scratch_operands = 0 : i64, tpu.core_type = #tpu.core_type<tc>, window_params = [{transform_indices = @transform_0, window_bounds = array<i64: 1, 32, 2048>}, {transform_indices = @transform_1, window_bounds = array<i64: 1, 32, 2048>}, {transform_indices = @transform_2, window_bounds = array<i64: 2048, 256>}, {transform_indices = @transform_3, window_bounds = array<i64: 3, 8, 128>}]} {
    %c0_i32 = arith.constant 0 : i32
    %0 = arith.cmpi eq, %arg1, %c0_i32 : i32
    %c0_i32_0 = arith.constant 0 : i32
    %1 = arith.cmpi eq, %arg2, %c0_i32_0 : i32
    %2 = arith.andi %0, %1 : i1
    %3 = arith.extui %2 : i1 to i32
    %c0_i32_1 = arith.constant 0 : i32
    %4 = arith.cmpi ne, %3, %c0_i32_1 : i32
    scf.if %4 {
      %cst_31 = arith.constant 0.000000e+00 : f32
      %59 = vector.broadcast %cst_31 : f32 to vector<3x8x128xf32>
      %c0_32 = arith.constant 0 : index
      %c0_33 = arith.constant 0 : index
      %c0_34 = arith.constant 0 : index
      %60 = vector.load %arg6[%c0_32, %c0_33, %c0_34] : memref<3x8x128xf32, #tpu.memory_space<vmem>>, vector<3x8x128xf32>
      tpu.vector_store %arg6[%c0_32, %c0_33, %c0_34], %59 {strides = array<i32>} : memref<3x8x128xf32, #tpu.memory_space<vmem>>, vector<3x8x128xf32>,
    } else {
    }
    %c0 = arith.constant 0 : index
    %c0_2 = arith.constant 0 : index
    %c0_3 = arith.constant 0 : index
    %5 = vector.load %arg3[%c0, %c0_2, %c0_3] : memref<1x32x2048xbf16, #tpu.memory_space<vmem>>, vector<1x32x2048xbf16>
    %6 = vector.shape_cast %5 : vector<1x32x2048xbf16> to vector<32x2048xbf16>
    %c0_4 = arith.constant 0 : index
    %c0_5 = arith.constant 0 : index
    %c0_6 = arith.constant 0 : index
    %7 = vector.load %arg4[%c0_4, %c0_5, %c0_6] : memref<1x32x2048xbf16, #tpu.memory_space<vmem>>, vector<1x32x2048xbf16>
    %8 = vector.shape_cast %7 : vector<1x32x2048xbf16> to vector<32x2048xbf16>
    %c0_7 = arith.constant 0 : index
    %c0_8 = arith.constant 0 : index
    %9 = vector.load %arg5[%c0_7, %c0_8] : memref<2048x256xbf16, #tpu.memory_space<vmem>>, vector<2048x256xbf16>
    %cst = arith.constant dense<0.000000e+00> : vector<32x256xf32>
    %10 = tpu.matmul %6, %9, %cst {dimension_numbers = #tpu.dot_dimension_numbers<[1], [0], [0], [1], [0, 0, 1, 1], [], []>} : vector<32x2048xbf16>, vector<2048x256xbf16>, vector<32x256xf32> -> vector<32x256xf32>
    %cst_9 = arith.constant dense<0.000000e+00> : vector<32x256xf32>
    %11 = tpu.matmul %8, %9, %cst_9 {dimension_numbers = #tpu.dot_dimension_numbers<[1], [0], [0], [1], [0, 0, 1, 1], [], []>} : vector<32x2048xbf16>, vector<2048x256xbf16>, vector<32x256xf32> -> vector<32x256xf32>
    %12 = vector.extract_strided_slice %10 {offsets = [0, 0], sizes = [32, 128], strides = [1, 1]} : vector<32x256xf32> to vector<32x128xf32>
    %13 = vector.extract_strided_slice %10 {offsets = [0, 128], sizes = [32, 128], strides = [1, 1]} : vector<32x256xf32> to vector<32x128xf32>
    %14 = vector.extract_strided_slice %11 {offsets = [0, 0], sizes = [32, 128], strides = [1, 1]} : vector<32x256xf32> to vector<32x128xf32>
    %15 = vector.extract_strided_slice %11 {offsets = [0, 128], sizes = [32, 128], strides = [1, 1]} : vector<32x256xf32> to vector<32x128xf32>
    %16 = arith.mulf %12, %12 : vector<32x128xf32>
    %17 = arith.mulf %13, %13 : vector<32x128xf32>
    %18 = arith.addf %16, %17 : vector<32x128xf32>
    %cst_10 = arith.constant 9.99999993E-9 : f32
    %19 = vector.broadcast %cst_10 : f32 to vector<32x128xf32>
    %20 = arith.maximumf %18, %19 : vector<32x128xf32>
    %21 = math.sqrt %20 : vector<32x128xf32>
    %22 = arith.mulf %14, %14 : vector<32x128xf32>
    %23 = arith.mulf %15, %15 : vector<32x128xf32>
    %24 = arith.addf %22, %23 : vector<32x128xf32>
    %cst_11 = arith.constant 9.99999993E-9 : f32
    %25 = vector.broadcast %cst_11 : f32 to vector<32x128xf32>
    %26 = arith.maximumf %24, %25 : vector<32x128xf32>
    %27 = math.sqrt %26 : vector<32x128xf32>
    %28 = arith.subf %27, %21 : vector<32x128xf32>
    %29 = arith.mulf %28, %28 : vector<32x128xf32>
    %30 = vector.shape_cast %29 : vector<32x128xf32> to vector<4x8x128xf32>
    %cst_12 = arith.constant dense<0.000000e+00> : vector<8x128xf32>
    %31 = vector.multi_reduction <add>, %30, %cst_12 [0] : vector<4x8x128xf32> to vector<8x128xf32>
    %32 = arith.mulf %27, %27 : vector<32x128xf32>
    %33 = vector.shape_cast %32 : vector<32x128xf32> to vector<4x8x128xf32>
    %cst_13 = arith.constant dense<0.000000e+00> : vector<8x128xf32>
    %34 = vector.multi_reduction <add>, %33, %cst_13 [0] : vector<4x8x128xf32> to vector<8x128xf32>
    %35 = math.log %21 : vector<32x128xf32>
    %36 = math.log %27 : vector<32x128xf32>
    %37 = arith.subf %35, %36 : vector<32x128xf32>
    %38 = math.absf %37 : vector<32x128xf32>
    %39 = vector.shape_cast %38 : vector<32x128xf32> to vector<4x8x128xf32>
    %cst_14 = arith.constant dense<0.000000e+00> : vector<8x128xf32>
    %40 = vector.multi_reduction <add>, %39, %cst_14 [0] : vector<4x8x128xf32> to vector<8x128xf32>
    %c0_15 = arith.constant 0 : index
    %c0_16 = arith.constant 0 : index
    %c0_17 = arith.constant 0 : index
    %41 = vector.load %arg6[%c0_15, %c0_16, %c0_17] : memref<3x8x128xf32, #tpu.memory_space<vmem>>, vector<1x8x128xf32>
    %42 = vector.shape_cast %41 : vector<1x8x128xf32> to vector<8x128xf32>
    %43 = arith.addf %42, %31 : vector<8x128xf32>
    %c0_18 = arith.constant 0 : index
    %c0_19 = arith.constant 0 : index
    %c0_20 = arith.constant 0 : index
    %44 = vector.load %arg6[%c0_18, %c0_19, %c0_20] : memref<3x8x128xf32, #tpu.memory_space<vmem>>, vector<1x8x128xf32>
    %45 = vector.shape_cast %44 : vector<1x8x128xf32> to vector<8x128xf32>
    %46 = vector.shape_cast %43 : vector<8x128xf32> to vector<1x8x128xf32>
    tpu.vector_store %arg6[%c0_18, %c0_19, %c0_20], %46 {strides = array<i32>} : memref<3x8x128xf32, #tpu.memory_space<vmem>>, vector<1x8x128xf32>,
    %c1 = arith.constant 1 : index
    %c0_21 = arith.constant 0 : index
    %c0_22 = arith.constant 0 : index
    %47 = vector.load %arg6[%c1, %c0_21, %c0_22] : memref<3x8x128xf32, #tpu.memory_space<vmem>>, vector<1x8x128xf32>
    %48 = vector.shape_cast %47 : vector<1x8x128xf32> to vector<8x128xf32>
    %49 = arith.addf %48, %34 : vector<8x128xf32>
    %c1_23 = arith.constant 1 : index
    %c0_24 = arith.constant 0 : index
    %c0_25 = arith.constant 0 : index
    %50 = vector.load %arg6[%c1_23, %c0_24, %c0_25] : memref<3x8x128xf32, #tpu.memory_space<vmem>>, vector<1x8x128xf32>
    %51 = vector.shape_cast %50 : vector<1x8x128xf32> to vector<8x128xf32>
    %52 = vector.shape_cast %49 : vector<8x128xf32> to vector<1x8x128xf32>
    tpu.vector_store %arg6[%c1_23, %c0_24, %c0_25], %52 {strides = array<i32>} : memref<3x8x128xf32, #tpu.memory_space<vmem>>, vector<1x8x128xf32>,
    %c2 = arith.constant 2 : index
    %c0_26 = arith.constant 0 : index
    %c0_27 = arith.constant 0 : index
    %53 = vector.load %arg6[%c2, %c0_26, %c0_27] : memref<3x8x128xf32, #tpu.memory_space<vmem>>, vector<1x8x128xf32>
    %54 = vector.shape_cast %53 : vector<1x8x128xf32> to vector<8x128xf32>
    %55 = arith.addf %54, %40 : vector<8x128xf32>
    %c2_28 = arith.constant 2 : index
    %c0_29 = arith.constant 0 : index
    %c0_30 = arith.constant 0 : index
    %56 = vector.load %arg6[%c2_28, %c0_29, %c0_30] : memref<3x8x128xf32, #tpu.memory_space<vmem>>, vector<1x8x128xf32>
    %57 = vector.shape_cast %56 : vector<1x8x128xf32> to vector<8x128xf32>
    %58 = vector.shape_cast %55 : vector<8x128xf32> to vector<1x8x128xf32>
    tpu.vector_store %arg6[%c2_28, %c0_29, %c0_30], %58 {strides = array<i32>} : memref<3x8x128xf32, #tpu.memory_space<vmem>>, vector<1x8x128xf32>,
    return
  }
  func.func @transform_0(%arg0: i32, %arg1: i32, %arg2: i32) -> (i32, i32, i32) {
    %c0_i32 = arith.constant 0 : i32
    %c0_i32_0 = arith.constant 0 : i32
    return %arg0, %arg1, %c0_i32 : i32, i32, i32
  }
  func.func @transform_1(%arg0: i32, %arg1: i32, %arg2: i32) -> (i32, i32, i32) {
    %c0_i32 = arith.constant 0 : i32
    %c0_i32_0 = arith.constant 0 : i32
    return %arg0, %arg1, %c0_i32 : i32, i32, i32
  }
  func.func @transform_2(%arg0: i32, %arg1: i32, %arg2: i32) -> (i32, i32) {
    %c0_i32 = arith.constant 0 : i32
    %c0_i32_0 = arith.constant 0 : i32
    return %c0_i32, %arg2 : i32, i32
  }
  func.func @transform_3(%arg0: i32, %arg1: i32, %arg2: i32) -> (i32, i32, i32) {
    %c0_i32 = arith.constant 0 : i32
    %c0_i32_0 = arith.constant 0 : i32
    %c0_i32_1 = arith.constant 0 : i32
    return %arg0, %c0_i32, %c0_i32_0 : i32, i32, i32
  }
}

module attributes {stable_mosaic.version = 11 : i64} {
  func.func @_stft_stats_kernel(%arg0: i32, %arg1: i32, %arg2: i32, %arg3: memref<1x48x1024xbf16, #tpu.memory_space<vmem>>, %arg4: memref<1x48x1024xbf16, #tpu.memory_space<vmem>>, %arg5: memref<1024x256xbf16, #tpu.memory_space<vmem>>, %arg6: memref<3x8x128xf32, #tpu.memory_space<vmem>>) attributes {dimension_semantics = [#tpu.dimension_semantics<parallel>, #tpu.dimension_semantics<arbitrary>, #tpu.dimension_semantics<arbitrary>], iteration_bounds = array<i64: 2, 1, 5>, scalar_prefetch = 0 : i64, scratch_operands = 0 : i64, tpu.core_type = #tpu.core_type<tc>, window_params = [{transform_indices = @transform_0, window_bounds = array<i64: 1, 48, 1024>}, {transform_indices = @transform_1, window_bounds = array<i64: 1, 48, 1024>}, {transform_indices = @transform_2, window_bounds = array<i64: 1024, 256>}, {transform_indices = @transform_3, window_bounds = array<i64: 3, 8, 128>}]} {
    %c0_i32 = arith.constant 0 : i32
    %0 = arith.cmpi eq, %arg1, %c0_i32 : i32
    %c0_i32_0 = arith.constant 0 : i32
    %1 = arith.cmpi eq, %arg2, %c0_i32_0 : i32
    %2 = arith.andi %0, %1 : i1
    %3 = arith.extui %2 : i1 to i32
    %c0_i32_1 = arith.constant 0 : i32
    %4 = arith.cmpi ne, %3, %c0_i32_1 : i32
    scf.if %4 {
      %cst_31 = arith.constant 0.000000e+00 : f32
      %59 = vector.broadcast %cst_31 : f32 to vector<3x8x128xf32>
      %c0_32 = arith.constant 0 : index
      %c0_33 = arith.constant 0 : index
      %c0_34 = arith.constant 0 : index
      %60 = vector.load %arg6[%c0_32, %c0_33, %c0_34] : memref<3x8x128xf32, #tpu.memory_space<vmem>>, vector<3x8x128xf32>
      tpu.vector_store %arg6[%c0_32, %c0_33, %c0_34], %59 {strides = array<i32>} : memref<3x8x128xf32, #tpu.memory_space<vmem>>, vector<3x8x128xf32>,
    } else {
    }
    %c0 = arith.constant 0 : index
    %c0_2 = arith.constant 0 : index
    %c0_3 = arith.constant 0 : index
    %5 = vector.load %arg3[%c0, %c0_2, %c0_3] : memref<1x48x1024xbf16, #tpu.memory_space<vmem>>, vector<1x48x1024xbf16>
    %6 = vector.shape_cast %5 : vector<1x48x1024xbf16> to vector<48x1024xbf16>
    %c0_4 = arith.constant 0 : index
    %c0_5 = arith.constant 0 : index
    %c0_6 = arith.constant 0 : index
    %7 = vector.load %arg4[%c0_4, %c0_5, %c0_6] : memref<1x48x1024xbf16, #tpu.memory_space<vmem>>, vector<1x48x1024xbf16>
    %8 = vector.shape_cast %7 : vector<1x48x1024xbf16> to vector<48x1024xbf16>
    %c0_7 = arith.constant 0 : index
    %c0_8 = arith.constant 0 : index
    %9 = vector.load %arg5[%c0_7, %c0_8] : memref<1024x256xbf16, #tpu.memory_space<vmem>>, vector<1024x256xbf16>
    %cst = arith.constant dense<0.000000e+00> : vector<48x256xf32>
    %10 = tpu.matmul %6, %9, %cst {dimension_numbers = #tpu.dot_dimension_numbers<[1], [0], [0], [1], [0, 0, 1, 1], [], []>} : vector<48x1024xbf16>, vector<1024x256xbf16>, vector<48x256xf32> -> vector<48x256xf32>
    %cst_9 = arith.constant dense<0.000000e+00> : vector<48x256xf32>
    %11 = tpu.matmul %8, %9, %cst_9 {dimension_numbers = #tpu.dot_dimension_numbers<[1], [0], [0], [1], [0, 0, 1, 1], [], []>} : vector<48x1024xbf16>, vector<1024x256xbf16>, vector<48x256xf32> -> vector<48x256xf32>
    %12 = vector.extract_strided_slice %10 {offsets = [0, 0], sizes = [48, 128], strides = [1, 1]} : vector<48x256xf32> to vector<48x128xf32>
    %13 = vector.extract_strided_slice %10 {offsets = [0, 128], sizes = [48, 128], strides = [1, 1]} : vector<48x256xf32> to vector<48x128xf32>
    %14 = vector.extract_strided_slice %11 {offsets = [0, 0], sizes = [48, 128], strides = [1, 1]} : vector<48x256xf32> to vector<48x128xf32>
    %15 = vector.extract_strided_slice %11 {offsets = [0, 128], sizes = [48, 128], strides = [1, 1]} : vector<48x256xf32> to vector<48x128xf32>
    %16 = arith.mulf %12, %12 : vector<48x128xf32>
    %17 = arith.mulf %13, %13 : vector<48x128xf32>
    %18 = arith.addf %16, %17 : vector<48x128xf32>
    %cst_10 = arith.constant 9.99999993E-9 : f32
    %19 = vector.broadcast %cst_10 : f32 to vector<48x128xf32>
    %20 = arith.maximumf %18, %19 : vector<48x128xf32>
    %21 = math.sqrt %20 : vector<48x128xf32>
    %22 = arith.mulf %14, %14 : vector<48x128xf32>
    %23 = arith.mulf %15, %15 : vector<48x128xf32>
    %24 = arith.addf %22, %23 : vector<48x128xf32>
    %cst_11 = arith.constant 9.99999993E-9 : f32
    %25 = vector.broadcast %cst_11 : f32 to vector<48x128xf32>
    %26 = arith.maximumf %24, %25 : vector<48x128xf32>
    %27 = math.sqrt %26 : vector<48x128xf32>
    %28 = arith.subf %27, %21 : vector<48x128xf32>
    %29 = arith.mulf %28, %28 : vector<48x128xf32>
    %30 = vector.shape_cast %29 : vector<48x128xf32> to vector<6x8x128xf32>
    %cst_12 = arith.constant dense<0.000000e+00> : vector<8x128xf32>
    %31 = vector.multi_reduction <add>, %30, %cst_12 [0] : vector<6x8x128xf32> to vector<8x128xf32>
    %32 = arith.mulf %27, %27 : vector<48x128xf32>
    %33 = vector.shape_cast %32 : vector<48x128xf32> to vector<6x8x128xf32>
    %cst_13 = arith.constant dense<0.000000e+00> : vector<8x128xf32>
    %34 = vector.multi_reduction <add>, %33, %cst_13 [0] : vector<6x8x128xf32> to vector<8x128xf32>
    %35 = math.log %21 : vector<48x128xf32>
    %36 = math.log %27 : vector<48x128xf32>
    %37 = arith.subf %35, %36 : vector<48x128xf32>
    %38 = math.absf %37 : vector<48x128xf32>
    %39 = vector.shape_cast %38 : vector<48x128xf32> to vector<6x8x128xf32>
    %cst_14 = arith.constant dense<0.000000e+00> : vector<8x128xf32>
    %40 = vector.multi_reduction <add>, %39, %cst_14 [0] : vector<6x8x128xf32> to vector<8x128xf32>
    %c0_15 = arith.constant 0 : index
    %c0_16 = arith.constant 0 : index
    %c0_17 = arith.constant 0 : index
    %41 = vector.load %arg6[%c0_15, %c0_16, %c0_17] : memref<3x8x128xf32, #tpu.memory_space<vmem>>, vector<1x8x128xf32>
    %42 = vector.shape_cast %41 : vector<1x8x128xf32> to vector<8x128xf32>
    %43 = arith.addf %42, %31 : vector<8x128xf32>
    %c0_18 = arith.constant 0 : index
    %c0_19 = arith.constant 0 : index
    %c0_20 = arith.constant 0 : index
    %44 = vector.load %arg6[%c0_18, %c0_19, %c0_20] : memref<3x8x128xf32, #tpu.memory_space<vmem>>, vector<1x8x128xf32>
    %45 = vector.shape_cast %44 : vector<1x8x128xf32> to vector<8x128xf32>
    %46 = vector.shape_cast %43 : vector<8x128xf32> to vector<1x8x128xf32>
    tpu.vector_store %arg6[%c0_18, %c0_19, %c0_20], %46 {strides = array<i32>} : memref<3x8x128xf32, #tpu.memory_space<vmem>>, vector<1x8x128xf32>,
    %c1 = arith.constant 1 : index
    %c0_21 = arith.constant 0 : index
    %c0_22 = arith.constant 0 : index
    %47 = vector.load %arg6[%c1, %c0_21, %c0_22] : memref<3x8x128xf32, #tpu.memory_space<vmem>>, vector<1x8x128xf32>
    %48 = vector.shape_cast %47 : vector<1x8x128xf32> to vector<8x128xf32>
    %49 = arith.addf %48, %34 : vector<8x128xf32>
    %c1_23 = arith.constant 1 : index
    %c0_24 = arith.constant 0 : index
    %c0_25 = arith.constant 0 : index
    %50 = vector.load %arg6[%c1_23, %c0_24, %c0_25] : memref<3x8x128xf32, #tpu.memory_space<vmem>>, vector<1x8x128xf32>
    %51 = vector.shape_cast %50 : vector<1x8x128xf32> to vector<8x128xf32>
    %52 = vector.shape_cast %49 : vector<8x128xf32> to vector<1x8x128xf32>
    tpu.vector_store %arg6[%c1_23, %c0_24, %c0_25], %52 {strides = array<i32>} : memref<3x8x128xf32, #tpu.memory_space<vmem>>, vector<1x8x128xf32>,
    %c2 = arith.constant 2 : index
    %c0_26 = arith.constant 0 : index
    %c0_27 = arith.constant 0 : index
    %53 = vector.load %arg6[%c2, %c0_26, %c0_27] : memref<3x8x128xf32, #tpu.memory_space<vmem>>, vector<1x8x128xf32>
    %54 = vector.shape_cast %53 : vector<1x8x128xf32> to vector<8x128xf32>
    %55 = arith.addf %54, %40 : vector<8x128xf32>
    %c2_28 = arith.constant 2 : index
    %c0_29 = arith.constant 0 : index
    %c0_30 = arith.constant 0 : index
    %56 = vector.load %arg6[%c2_28, %c0_29, %c0_30] : memref<3x8x128xf32, #tpu.memory_space<vmem>>, vector<1x8x128xf32>
    %57 = vector.shape_cast %56 : vector<1x8x128xf32> to vector<8x128xf32>
    %58 = vector.shape_cast %55 : vector<8x128xf32> to vector<1x8x128xf32>
    tpu.vector_store %arg6[%c2_28, %c0_29, %c0_30], %58 {strides = array<i32>} : memref<3x8x128xf32, #tpu.memory_space<vmem>>, vector<1x8x128xf32>,
    return
  }
  func.func @transform_0(%arg0: i32, %arg1: i32, %arg2: i32) -> (i32, i32, i32) {
    %c0_i32 = arith.constant 0 : i32
    %c0_i32_0 = arith.constant 0 : i32
    return %arg0, %arg1, %c0_i32 : i32, i32, i32
  }
  func.func @transform_1(%arg0: i32, %arg1: i32, %arg2: i32) -> (i32, i32, i32) {
    %c0_i32 = arith.constant 0 : i32
    %c0_i32_0 = arith.constant 0 : i32
    return %arg0, %arg1, %c0_i32 : i32, i32, i32
  }
  func.func @transform_2(%arg0: i32, %arg1: i32, %arg2: i32) -> (i32, i32) {
    %c0_i32 = arith.constant 0 : i32
    %c0_i32_0 = arith.constant 0 : i32
    return %c0_i32, %arg2 : i32, i32
  }
  func.func @transform_3(%arg0: i32, %arg1: i32, %arg2: i32) -> (i32, i32, i32) {
    %c0_i32 = arith.constant 0 : i32
    %c0_i32_0 = arith.constant 0 : i32
    %c0_i32_1 = arith.constant 0 : i32
    return %arg0, %c0_i32, %c0_i32_0 : i32, i32, i32
  }
}

module attributes {stable_mosaic.version = 11 : i64} {
  func.func @_stft_stats_kernel(%arg0: i32, %arg1: i32, %arg2: i32, %arg3: memref<1x96x512xbf16, #tpu.memory_space<vmem>>, %arg4: memref<1x96x512xbf16, #tpu.memory_space<vmem>>, %arg5: memref<512x256xbf16, #tpu.memory_space<vmem>>, %arg6: memref<3x8x128xf32, #tpu.memory_space<vmem>>) attributes {dimension_semantics = [#tpu.dimension_semantics<parallel>, #tpu.dimension_semantics<arbitrary>, #tpu.dimension_semantics<arbitrary>], iteration_bounds = array<i64: 2, 1, 3>, scalar_prefetch = 0 : i64, scratch_operands = 0 : i64, tpu.core_type = #tpu.core_type<tc>, window_params = [{transform_indices = @transform_0, window_bounds = array<i64: 1, 96, 512>}, {transform_indices = @transform_1, window_bounds = array<i64: 1, 96, 512>}, {transform_indices = @transform_2, window_bounds = array<i64: 512, 256>}, {transform_indices = @transform_3, window_bounds = array<i64: 3, 8, 128>}]} {
    %c0_i32 = arith.constant 0 : i32
    %0 = arith.cmpi eq, %arg1, %c0_i32 : i32
    %c0_i32_0 = arith.constant 0 : i32
    %1 = arith.cmpi eq, %arg2, %c0_i32_0 : i32
    %2 = arith.andi %0, %1 : i1
    %3 = arith.extui %2 : i1 to i32
    %c0_i32_1 = arith.constant 0 : i32
    %4 = arith.cmpi ne, %3, %c0_i32_1 : i32
    scf.if %4 {
      %cst_31 = arith.constant 0.000000e+00 : f32
      %59 = vector.broadcast %cst_31 : f32 to vector<3x8x128xf32>
      %c0_32 = arith.constant 0 : index
      %c0_33 = arith.constant 0 : index
      %c0_34 = arith.constant 0 : index
      %60 = vector.load %arg6[%c0_32, %c0_33, %c0_34] : memref<3x8x128xf32, #tpu.memory_space<vmem>>, vector<3x8x128xf32>
      tpu.vector_store %arg6[%c0_32, %c0_33, %c0_34], %59 {strides = array<i32>} : memref<3x8x128xf32, #tpu.memory_space<vmem>>, vector<3x8x128xf32>,
    } else {
    }
    %c0 = arith.constant 0 : index
    %c0_2 = arith.constant 0 : index
    %c0_3 = arith.constant 0 : index
    %5 = vector.load %arg3[%c0, %c0_2, %c0_3] : memref<1x96x512xbf16, #tpu.memory_space<vmem>>, vector<1x96x512xbf16>
    %6 = vector.shape_cast %5 : vector<1x96x512xbf16> to vector<96x512xbf16>
    %c0_4 = arith.constant 0 : index
    %c0_5 = arith.constant 0 : index
    %c0_6 = arith.constant 0 : index
    %7 = vector.load %arg4[%c0_4, %c0_5, %c0_6] : memref<1x96x512xbf16, #tpu.memory_space<vmem>>, vector<1x96x512xbf16>
    %8 = vector.shape_cast %7 : vector<1x96x512xbf16> to vector<96x512xbf16>
    %c0_7 = arith.constant 0 : index
    %c0_8 = arith.constant 0 : index
    %9 = vector.load %arg5[%c0_7, %c0_8] : memref<512x256xbf16, #tpu.memory_space<vmem>>, vector<512x256xbf16>
    %cst = arith.constant dense<0.000000e+00> : vector<96x256xf32>
    %10 = tpu.matmul %6, %9, %cst {dimension_numbers = #tpu.dot_dimension_numbers<[1], [0], [0], [1], [0, 0, 1, 1], [], []>} : vector<96x512xbf16>, vector<512x256xbf16>, vector<96x256xf32> -> vector<96x256xf32>
    %cst_9 = arith.constant dense<0.000000e+00> : vector<96x256xf32>
    %11 = tpu.matmul %8, %9, %cst_9 {dimension_numbers = #tpu.dot_dimension_numbers<[1], [0], [0], [1], [0, 0, 1, 1], [], []>} : vector<96x512xbf16>, vector<512x256xbf16>, vector<96x256xf32> -> vector<96x256xf32>
    %12 = vector.extract_strided_slice %10 {offsets = [0, 0], sizes = [96, 128], strides = [1, 1]} : vector<96x256xf32> to vector<96x128xf32>
    %13 = vector.extract_strided_slice %10 {offsets = [0, 128], sizes = [96, 128], strides = [1, 1]} : vector<96x256xf32> to vector<96x128xf32>
    %14 = vector.extract_strided_slice %11 {offsets = [0, 0], sizes = [96, 128], strides = [1, 1]} : vector<96x256xf32> to vector<96x128xf32>
    %15 = vector.extract_strided_slice %11 {offsets = [0, 128], sizes = [96, 128], strides = [1, 1]} : vector<96x256xf32> to vector<96x128xf32>
    %16 = arith.mulf %12, %12 : vector<96x128xf32>
    %17 = arith.mulf %13, %13 : vector<96x128xf32>
    %18 = arith.addf %16, %17 : vector<96x128xf32>
    %cst_10 = arith.constant 9.99999993E-9 : f32
    %19 = vector.broadcast %cst_10 : f32 to vector<96x128xf32>
    %20 = arith.maximumf %18, %19 : vector<96x128xf32>
    %21 = math.sqrt %20 : vector<96x128xf32>
    %22 = arith.mulf %14, %14 : vector<96x128xf32>
    %23 = arith.mulf %15, %15 : vector<96x128xf32>
    %24 = arith.addf %22, %23 : vector<96x128xf32>
    %cst_11 = arith.constant 9.99999993E-9 : f32
    %25 = vector.broadcast %cst_11 : f32 to vector<96x128xf32>
    %26 = arith.maximumf %24, %25 : vector<96x128xf32>
    %27 = math.sqrt %26 : vector<96x128xf32>
    %28 = arith.subf %27, %21 : vector<96x128xf32>
    %29 = arith.mulf %28, %28 : vector<96x128xf32>
    %30 = vector.shape_cast %29 : vector<96x128xf32> to vector<12x8x128xf32>
    %cst_12 = arith.constant dense<0.000000e+00> : vector<8x128xf32>
    %31 = vector.multi_reduction <add>, %30, %cst_12 [0] : vector<12x8x128xf32> to vector<8x128xf32>
    %32 = arith.mulf %27, %27 : vector<96x128xf32>
    %33 = vector.shape_cast %32 : vector<96x128xf32> to vector<12x8x128xf32>
    %cst_13 = arith.constant dense<0.000000e+00> : vector<8x128xf32>
    %34 = vector.multi_reduction <add>, %33, %cst_13 [0] : vector<12x8x128xf32> to vector<8x128xf32>
    %35 = math.log %21 : vector<96x128xf32>
    %36 = math.log %27 : vector<96x128xf32>
    %37 = arith.subf %35, %36 : vector<96x128xf32>
    %38 = math.absf %37 : vector<96x128xf32>
    %39 = vector.shape_cast %38 : vector<96x128xf32> to vector<12x8x128xf32>
    %cst_14 = arith.constant dense<0.000000e+00> : vector<8x128xf32>
    %40 = vector.multi_reduction <add>, %39, %cst_14 [0] : vector<12x8x128xf32> to vector<8x128xf32>
    %c0_15 = arith.constant 0 : index
    %c0_16 = arith.constant 0 : index
    %c0_17 = arith.constant 0 : index
    %41 = vector.load %arg6[%c0_15, %c0_16, %c0_17] : memref<3x8x128xf32, #tpu.memory_space<vmem>>, vector<1x8x128xf32>
    %42 = vector.shape_cast %41 : vector<1x8x128xf32> to vector<8x128xf32>
    %43 = arith.addf %42, %31 : vector<8x128xf32>
    %c0_18 = arith.constant 0 : index
    %c0_19 = arith.constant 0 : index
    %c0_20 = arith.constant 0 : index
    %44 = vector.load %arg6[%c0_18, %c0_19, %c0_20] : memref<3x8x128xf32, #tpu.memory_space<vmem>>, vector<1x8x128xf32>
    %45 = vector.shape_cast %44 : vector<1x8x128xf32> to vector<8x128xf32>
    %46 = vector.shape_cast %43 : vector<8x128xf32> to vector<1x8x128xf32>
    tpu.vector_store %arg6[%c0_18, %c0_19, %c0_20], %46 {strides = array<i32>} : memref<3x8x128xf32, #tpu.memory_space<vmem>>, vector<1x8x128xf32>,
    %c1 = arith.constant 1 : index
    %c0_21 = arith.constant 0 : index
    %c0_22 = arith.constant 0 : index
    %47 = vector.load %arg6[%c1, %c0_21, %c0_22] : memref<3x8x128xf32, #tpu.memory_space<vmem>>, vector<1x8x128xf32>
    %48 = vector.shape_cast %47 : vector<1x8x128xf32> to vector<8x128xf32>
    %49 = arith.addf %48, %34 : vector<8x128xf32>
    %c1_23 = arith.constant 1 : index
    %c0_24 = arith.constant 0 : index
    %c0_25 = arith.constant 0 : index
    %50 = vector.load %arg6[%c1_23, %c0_24, %c0_25] : memref<3x8x128xf32, #tpu.memory_space<vmem>>, vector<1x8x128xf32>
    %51 = vector.shape_cast %50 : vector<1x8x128xf32> to vector<8x128xf32>
    %52 = vector.shape_cast %49 : vector<8x128xf32> to vector<1x8x128xf32>
    tpu.vector_store %arg6[%c1_23, %c0_24, %c0_25], %52 {strides = array<i32>} : memref<3x8x128xf32, #tpu.memory_space<vmem>>, vector<1x8x128xf32>,
    %c2 = arith.constant 2 : index
    %c0_26 = arith.constant 0 : index
    %c0_27 = arith.constant 0 : index
    %53 = vector.load %arg6[%c2, %c0_26, %c0_27] : memref<3x8x128xf32, #tpu.memory_space<vmem>>, vector<1x8x128xf32>
    %54 = vector.shape_cast %53 : vector<1x8x128xf32> to vector<8x128xf32>
    %55 = arith.addf %54, %40 : vector<8x128xf32>
    %c2_28 = arith.constant 2 : index
    %c0_29 = arith.constant 0 : index
    %c0_30 = arith.constant 0 : index
    %56 = vector.load %arg6[%c2_28, %c0_29, %c0_30] : memref<3x8x128xf32, #tpu.memory_space<vmem>>, vector<1x8x128xf32>
    %57 = vector.shape_cast %56 : vector<1x8x128xf32> to vector<8x128xf32>
    %58 = vector.shape_cast %55 : vector<8x128xf32> to vector<1x8x128xf32>
    tpu.vector_store %arg6[%c2_28, %c0_29, %c0_30], %58 {strides = array<i32>} : memref<3x8x128xf32, #tpu.memory_space<vmem>>, vector<1x8x128xf32>,
    return
  }
  func.func @transform_0(%arg0: i32, %arg1: i32, %arg2: i32) -> (i32, i32, i32) {
    %c0_i32 = arith.constant 0 : i32
    %c0_i32_0 = arith.constant 0 : i32
    return %arg0, %arg1, %c0_i32 : i32, i32, i32
  }
  func.func @transform_1(%arg0: i32, %arg1: i32, %arg2: i32) -> (i32, i32, i32) {
    %c0_i32 = arith.constant 0 : i32
    %c0_i32_0 = arith.constant 0 : i32
    return %arg0, %arg1, %c0_i32 : i32, i32, i32
  }
  func.func @transform_2(%arg0: i32, %arg1: i32, %arg2: i32) -> (i32, i32) {
    %c0_i32 = arith.constant 0 : i32
    %c0_i32_0 = arith.constant 0 : i32
    return %c0_i32, %arg2 : i32, i32
  }
  func.func @transform_3(%arg0: i32, %arg1: i32, %arg2: i32) -> (i32, i32, i32) {
    %c0_i32 = arith.constant 0 : i32
    %c0_i32_0 = arith.constant 0 : i32
    %c0_i32_1 = arith.constant 0 : i32
    return %arg0, %c0_i32, %c0_i32_0 : i32, i32, i32
  }
}

module attributes {stable_mosaic.version = 11 : i64} {
  func.func @_logcosh_kernel(%arg0: i32, %arg1: memref<64x128xf32, #tpu.memory_space<vmem>>, %arg2: memref<64x128xf32, #tpu.memory_space<vmem>>, %arg3: memref<1x8x128xf32, #tpu.memory_space<vmem>>) attributes {dimension_semantics = [#tpu.dimension_semantics<parallel>], iteration_bounds = array<i64: 1>, scalar_prefetch = 0 : i64, scratch_operands = 0 : i64, tpu.core_type = #tpu.core_type<tc>, window_params = [{transform_indices = @transform_0, window_bounds = array<i64: 64, 128>}, {transform_indices = @transform_1, window_bounds = array<i64: 64, 128>}, {transform_indices = @transform_2, window_bounds = array<i64: 1, 8, 128>}]} {
    %c0 = arith.constant 0 : index
    %c0_0 = arith.constant 0 : index
    %0 = vector.load %arg1[%c0, %c0_0] : memref<64x128xf32, #tpu.memory_space<vmem>>, vector<64x128xf32>
    %c0_1 = arith.constant 0 : index
    %c0_2 = arith.constant 0 : index
    %1 = vector.load %arg2[%c0_1, %c0_2] : memref<64x128xf32, #tpu.memory_space<vmem>>, vector<64x128xf32>
    %2 = arith.subf %0, %1 : vector<64x128xf32>
    %3 = math.absf %2 : vector<64x128xf32>
    %cst = arith.constant -2.000000e+00 : f32
    %4 = vector.broadcast %cst : f32 to vector<64x128xf32>
    %5 = arith.mulf %4, %3 : vector<64x128xf32>
    %6 = math.exp %5 : vector<64x128xf32>
    %7 = math.log1p %6 : vector<64x128xf32>
    %8 = arith.addf %3, %7 : vector<64x128xf32>
    %cst_3 = arith.constant 0.693147182 : f32
    %9 = vector.broadcast %cst_3 : f32 to vector<64x128xf32>
    %10 = arith.subf %8, %9 : vector<64x128xf32>
    %11 = vector.shape_cast %10 : vector<64x128xf32> to vector<8x8x128xf32>
    %cst_4 = arith.constant dense<0.000000e+00> : vector<8x128xf32>
    %12 = vector.multi_reduction <add>, %11, %cst_4 [0] : vector<8x8x128xf32> to vector<8x128xf32>
    %c0_5 = arith.constant 0 : index
    %c0_6 = arith.constant 0 : index
    %c0_7 = arith.constant 0 : index
    %13 = vector.load %arg3[%c0_5, %c0_6, %c0_7] : memref<1x8x128xf32, #tpu.memory_space<vmem>>, vector<1x8x128xf32>
    %14 = vector.shape_cast %13 : vector<1x8x128xf32> to vector<8x128xf32>
    %15 = vector.shape_cast %12 : vector<8x128xf32> to vector<1x8x128xf32>
    tpu.vector_store %arg3[%c0_5, %c0_6, %c0_7], %15 {strides = array<i32>} : memref<1x8x128xf32, #tpu.memory_space<vmem>>, vector<1x8x128xf32>,
    return
  }
  func.func @transform_0(%arg0: i32) -> (i32, i32) {
    %c0_i32 = arith.constant 0 : i32
    %c0_i32_0 = arith.constant 0 : i32
    return %arg0, %c0_i32 : i32, i32
  }
  func.func @transform_1(%arg0: i32) -> (i32, i32) {
    %c0_i32 = arith.constant 0 : i32
    %c0_i32_0 = arith.constant 0 : i32
    return %arg0, %c0_i32 : i32, i32
  }
  func.func @transform_2(%arg0: i32) -> (i32, i32, i32) {
    %c0_i32 = arith.constant 0 : i32
    %c0_i32_0 = arith.constant 0 : i32
    %c0_i32_1 = arith.constant 0 : i32
    return %arg0, %c0_i32, %c0_i32_0 : i32, i32, i32
  }
}

</mosaic_0001>

<bundles_post_ra>
// kernel: loss_function.6
= control target key start
LH: loop header
LB: loop body
LE: loop exit
PB: predicated region body
PF: predicated region fallthrough
CT: control target
= control target key end

     0   :  { %s7634_s12 = smov 0   ;;  %s7636_s13 = smov 0   ;;  %s10376_s0 = inlined_call_operand.vmem [shape: bf16[2,32,2048], index: 0, kind: input, shape index: {}]   ;;  %s10377_s1 = inlined_call_operand.vmem [shape: bf16[2,32,2048], index: 1, kind: input, shape index: {}]   ;;  %s10378_s2 = inlined_call_operand.vmem [shape: bf16[2048,2304], index: 2, kind: input, shape index: {}]   ;;  %s10379_s3 = inlined_call_operand.vmem [shape: f32[6,8,128], index: 3, kind: output, shape index: {}]  }
   0x1   :  { %s7638_s14 = smov 0   ;;  %s7640_s15 = smov 0  }
   0x2   :  { %s7642_s16 = smov 0   ;;  %s7644_s17 = smov 0  }
   0x3   :  { %s7646_s18 = smov 0  }
   0x4 LB: > { %s25_s19 = sadd.s32 1, %s7603_s16  ;;  %s32_s20 = sadd.s32 1, %s7607_s17  ;;  %s7611_s18 = sphi %s7646_s18, %s13_s18   ;;  %s7607_s17 = sphi %s7644_s17, %s11114_s17   ;;  %s7603_s16 = sphi %s7642_s16, %s11113_s16   ;;  %s7599_s15 = sphi %s7640_s15, %s11112_s15   ;;  %s7595_s14 = sphi %s7638_s14, %s11111_s14   ;;  %s7591_s13 = sphi %s7636_s13, %s11110_s13   ;;  %s7587_s12 = sphi %s7634_s12, %s11109_s12  }
   0x5   : > { %p26_p0 = scmp.ge.s32.totalorder %s25_s19, 9  ;;  %s95_s21 = sadd.s32 1, %s7591_s13 }
   0x6   : > { %p102_p1 = scmp.ne.s32.totalorder %s7591_s13, %s7587_s12  ;;  %p103_p2 = scmp.eq.s32.totalorder %s7611_s18, 0 }
   0x7   : > { %s11116_s19 = smov (%p26_p0, %s25_s19), 0  ;;  %s11118_s20 = smov (!%p26_p0, %s32_s20), %s7607_s17 }
   0x8   : > { %s92_s22 = ssub.s32 %s7603_s16, %s11116_s19  ;;  %p104_p3 = por %p103_p2, %p102_p1 }
   0x9   : > { %p34_p4 = scmp.ge.s32.totalorder %s11118_s20, 2  ;;  %p93_p5 = scmp.eq.s32.totalorder %s92_s22, 0 }
   0xa   : > { %p5846_p6 = scmp.ge.s32.totalorder %s7611_s18, 18 }
   0xb   : > { %s11120_s20 = smov (%p34_p4, %s11118_s20), 0 }
   0xc   : > { %s7683_s23 = scalar_select %p93_p5, %s7591_s13, %s95_s21  }
   0xd   : > { %154 = sbr.rel (%p5846_p6) target bundleno = 278 (0x116), region = 16 }
  0x12   : > { %185 = sbr.rel (!%p104_p3) target bundleno = 278 (0x116), region = 28  ;;  %s187_s24 = sand.u32 (%p104_p3), 1, %s7591_s13  }
  0x13   : > { %s7144_s25 = sshll.u32 (%p104_p3), %s7603_s16, 3  ;;  %s5847_s26 = sshll.u32 (%p104_p3), %s187_s24, 11 }
  0x14   : > { %s7691_s29 = scalar_lea.vmem (%p104_p3), %s10378_s2, %s7144_s25  ;;  %s7696_s30 = scalar_lea.vmem (%p104_p3), [#allocation2], %s5847_s26 }
  0x15   : > { %v732_v0 = vld [vmem:[%s7691_s29] sm:$0xff] (%p104_p3)  ;;  %v734_v1 = vld [vmem:[%s7691_s29 + $0x48] sm:$0xff] (%p104_p3)  ;;  %v736_v2 = vld [vmem:[%s7691_s29 + $0x90] sm:$0xff] (%p104_p3) }
  0x16   : > { %733 = vst [vmem:[%s7696_s30] sm:$0xff] (%p104_p3), %v732_v0  ;;  %v738_v3 = vld [vmem:[%s7691_s29 + $0xd8] sm:$0xff] (%p104_p3)  ;;  %v740_v4 = vld [vmem:[%s7691_s29 + $0x120] sm:$0xff] (%p104_p3)  ;;  %v742_v5 = vld [vmem:[%s7691_s29 + $0x168] sm:$0xff] (%p104_p3) }
  0x17   : > { %735 = vst [vmem:[%s7696_s30 + $0x8] sm:$0xff] %v734_v1  ;;  %v744_v6 = vld [vmem:[%s7691_s29 + $0x1b0] sm:$0xff]  ;;  %v746_v7 = vld [vmem:[%s7691_s29 + $0x1f8] sm:$0xff]  ;;  %v748_v8 = vld [vmem:[%s7691_s29 + $0x240] sm:$0xff] }
  0x18   : > { %737 = vst [vmem:[%s7696_s30 + $0x10] sm:$0xff] %v736_v2  ;;  %v750_v9 = vld [vmem:[%s7691_s29 + $0x288] sm:$0xff]  ;;  %v752_v10 = vld [vmem:[%s7691_s29 + $0x2d0] sm:$0xff]  ;;  %v754_v11 = vld [vmem:[%s7691_s29 + $0x318] sm:$0xff] }
  0x19   : > { %739 = vst [vmem:[%s7696_s30 + $0x18] sm:$0xff] %v738_v3  ;;  %v756_v12 = vld [vmem:[%s7691_s29 + $0x360] sm:$0xff]  ;;  %v758_v13 = vld [vmem:[%s7691_s29 + $0x3a8] sm:$0xff]  ;;  %v760_v14 = vld [vmem:[%s7691_s29 + $0x3f0] sm:$0xff] }
  0x1a   : > { %741 = vst [vmem:[%s7696_s30 + $0x20] sm:$0xff] %v740_v4  ;;  %v762_v15 = vld [vmem:[%s7691_s29 + $0x438] sm:$0xff]  ;;  %v764_v16 = vld [vmem:[%s7691_s29 + $0x480] sm:$0xff]  ;;  %v766_v17 = vld [vmem:[%s7691_s29 + $0x4c8] sm:$0xff] }
  0x1b   : > { %743 = vst [vmem:[%s7696_s30 + $0x28] sm:$0xff] %v742_v5  ;;  %v768_v18 = vld [vmem:[%s7691_s29 + $0x510] sm:$0xff]  ;;  %v770_v19 = vld [vmem:[%s7691_s29 + $0x558] sm:$0xff]  ;;  %v772_v20 = vld [vmem:[%s7691_s29 + $0x5a0] sm:$0xff] }
  0x1c   : > { %745 = vst [vmem:[%s7696_s30 + $0x30] sm:$0xff] %v744_v6  ;;  %v774_v21 = vld [vmem:[%s7691_s29 + $0x5e8] sm:$0xff]  ;;  %v776_v22 = vld [vmem:[%s7691_s29 + $0x630] sm:$0xff]  ;;  %v778_v23 = vld [vmem:[%s7691_s29 + $0x678] sm:$0xff] }
  0x1d   : > { %747 = vst [vmem:[%s7696_s30 + $0x38] sm:$0xff] %v746_v7  ;;  %v780_v24 = vld [vmem:[%s7691_s29 + $0x6c0] sm:$0xff]  ;;  %v782_v25 = vld [vmem:[%s7691_s29 + $0x708] sm:$0xff]  ;;  %v784_v26 = vld [vmem:[%s7691_s29 + $0x750] sm:$0xff] }
  0x1e   : > { %749 = vst [vmem:[%s7696_s30 + $0x40] sm:$0xff] %v748_v8  ;;  %v786_v27 = vld [vmem:[%s7691_s29 + $0x798] sm:$0xff]  ;;  %v788_v28 = vld [vmem:[%s7691_s29 + $0x7e0] sm:$0xff]  ;;  %v790_v29 = vld [vmem:[%s7691_s29 + $0x828] sm:$0xff] }
  0x1f   : > { %751 = vst [vmem:[%s7696_s30 + $0x48] sm:$0xff] %v750_v9  ;;  %v792_v30 = vld [vmem:[%s7691_s29 + $0x870] sm:$0xff]  ;;  %v794_v31 = vld [vmem:[%s7691_s29 + $0x8b8] sm:$0xff]  ;;  %v796_v32 = vld [vmem:[%s7691_s29 + $0x900] sm:$0xff] }
  0x20   : > { %753 = vst [vmem:[%s7696_s30 + $0x50] sm:$0xff] %v752_v10  ;;  %v798_v33 = vld [vmem:[%s7691_s29 + $0x948] sm:$0xff]  ;;  %v800_v34 = vld [vmem:[%s7691_s29 + $0x990] sm:$0xff]  ;;  %v802_v35 = vld [vmem:[%s7691_s29 + $0x9d8] sm:$0xff] }
  0x21   : > { %755 = vst [vmem:[%s7696_s30 + $0x58] sm:$0xff] %v754_v11  ;;  %v804_v36 = vld [vmem:[%s7691_s29 + $0xa20] sm:$0xff]  ;;  %v806_v37 = vld [vmem:[%s7691_s29 + $0xa68] sm:$0xff]  ;;  %v808_v38 = vld [vmem:[%s7691_s29 + $0xab0] sm:$0xff] }
  0x22   : > { %757 = vst [vmem:[%s7696_s30 + $0x60] sm:$0xff] %v756_v12  ;;  %v810_v39 = vld [vmem:[%s7691_s29 + $0xaf8] sm:$0xff]  ;;  %v812_v40 = vld [vmem:[%s7691_s29 + $0xb40] sm:$0xff]  ;;  %v814_v41 = vld [vmem:[%s7691_s29 + $0xb88] sm:$0xff] }
  0x23   : > { %759 = vst [vmem:[%s7696_s30 + $0x68] sm:$0xff] %v758_v13  ;;  %v816_v42 = vld [vmem:[%s7691_s29 + $0xbd0] sm:$0xff]  ;;  %v818_v43 = vld [vmem:[%s7691_s29 + $0xc18] sm:$0xff]  ;;  %v820_v44 = vld [vmem:[%s7691_s29 + $0xc60] sm:$0xff] }
  0x24   : > { %761 = vst [vmem:[%s7696_s30 + $0x70] sm:$0xff] %v760_v14  ;;  %v822_v45 = vld [vmem:[%s7691_s29 + $0xca8] sm:$0xff]  ;;  %v824_v46 = vld [vmem:[%s7691_s29 + $0xcf0] sm:$0xff]  ;;  %v826_v47 = vld [vmem:[%s7691_s29 + $0xd38] sm:$0xff] }
  0x25   : > { %763 = vst [vmem:[%s7696_s30 + $0x78] sm:$0xff] %v762_v15  ;;  %v828_v48 = vld [vmem:[%s7691_s29 + $0xd80] sm:$0xff]  ;;  %v830_v49 = vld [vmem:[%s7691_s29 + $0xdc8] sm:$0xff]  ;;  %v832_v50 = vld [vmem:[%s7691_s29 + $0xe10] sm:$0xff] }
  0x26   : > { %765 = vst [vmem:[%s7696_s30 + $0x80] sm:$0xff] %v764_v16  ;;  %v834_v51 = vld [vmem:[%s7691_s29 + $0xe58] sm:$0xff]  ;;  %v836_v52 = vld [vmem:[%s7691_s29 + $0xea0] sm:$0xff]  ;;  %v838_v53 = vld [vmem:[%s7691_s29 + $0xee8] sm:$0xff] }
  0x27   : > { %767 = vst [vmem:[%s7696_s30 + $0x88] sm:$0xff] %v766_v17  ;;  %v840_v54 = vld [vmem:[%s7691_s29 + $0xf30] sm:$0xff]  ;;  %v842_v55 = vld [vmem:[%s7691_s29 + $0xf78] sm:$0xff]  ;;  %v844_v56 = vld [vmem:[%s7691_s29 + $0xfc0] sm:$0xff] }
  0x28   : > { %769 = vst [vmem:[%s7696_s30 + $0x90] sm:$0xff] %v768_v18  ;;  %v846_v57 = vld [vmem:[%s7691_s29 + $0x1008] sm:$0xff]  ;;  %v848_v58 = vld [vmem:[%s7691_s29 + $0x1050] sm:$0xff]  ;;  %v850_v59 = vld [vmem:[%s7691_s29 + $0x1098] sm:$0xff] }
  0x29   : > { %771 = vst [vmem:[%s7696_s30 + $0x98] sm:$0xff] %v770_v19  ;;  %v852_v60 = vld [vmem:[%s7691_s29 + $0x10e0] sm:$0xff]  ;;  %v854_v61 = vld [vmem:[%s7691_s29 + $0x1128] sm:$0xff]  ;;  %v856_v62 = vld [vmem:[%s7691_s29 + $0x1170] sm:$0xff] }
  0x2a   : > { %773 = vst [vmem:[%s7696_s30 + $0xa0] sm:$0xff] %v772_v20  ;;  %v858_v63 = vld [vmem:[%s7691_s29 + $0x11b8] sm:$0xff]  ;;  %v860_v0 = vld [vmem:[%s7691_s29 + $0x1200] sm:$0xff]  ;;  %v862_v1 = vld [vmem:[%s7691_s29 + $0x1248] sm:$0xff] }
  0x2b   : > { %775 = vst [vmem:[%s7696_s30 + $0xa8] sm:$0xff] %v774_v21  ;;  %v864_v2 = vld [vmem:[%s7691_s29 + $0x1290] sm:$0xff]  ;;  %v866_v3 = vld [vmem:[%s7691_s29 + $0x12d8] sm:$0xff]  ;;  %v868_v4 = vld [vmem:[%s7691_s29 + $0x1320] sm:$0xff] }
  0x2c   : > { %777 = vst [vmem:[%s7696_s30 + $0xb0] sm:$0xff] %v776_v22  ;;  %v870_v5 = vld [vmem:[%s7691_s29 + $0x1368] sm:$0xff]  ;;  %v872_v6 = vld [vmem:[%s7691_s29 + $0x13b0] sm:$0xff]  ;;  %v874_v7 = vld [vmem:[%s7691_s29 + $0x13f8] sm:$0xff] }
  0x2d   : > { %779 = vst [vmem:[%s7696_s30 + $0xb8] sm:$0xff] %v778_v23  ;;  %v876_v8 = vld [vmem:[%s7691_s29 + $0x1440] sm:$0xff]  ;;  %v878_v9 = vld [vmem:[%s7691_s29 + $0x1488] sm:$0xff]  ;;  %v880_v10 = vld [vmem:[%s7691_s29 + $0x14d0] sm:$0xff] }
  0x2e   : > { %781 = vst [vmem:[%s7696_s30 + $0xc0] sm:$0xff] %v780_v24  ;;  %v882_v11 = vld [vmem:[%s7691_s29 + $0x1518] sm:$0xff]  ;;  %v884_v12 = vld [vmem:[%s7691_s29 + $0x1560] sm:$0xff]  ;;  %v886_v13 = vld [vmem:[%s7691_s29 + $0x15a8] sm:$0xff] }
  0x2f   : > { %783 = vst [vmem:[%s7696_s30 + $0xc8] sm:$0xff] %v782_v25  ;;  %v888_v14 = vld [vmem:[%s7691_s29 + $0x15f0] sm:$0xff]  ;;  %v890_v15 = vld [vmem:[%s7691_s29 + $0x1638] sm:$0xff]  ;;  %v892_v16 = vld [vmem:[%s7691_s29 + $0x1680] sm:$0xff] }
  0x30   : > { %785 = vst [vmem:[%s7696_s30 + $0xd0] sm:$0xff] %v784_v26  ;;  %v894_v17 = vld [vmem:[%s7691_s29 + $0x16c8] sm:$0xff]  ;;  %v896_v18 = vld [vmem:[%s7691_s29 + $0x1710] sm:$0xff]  ;;  %v898_v19 = vld [vmem:[%s7691_s29 + $0x1758] sm:$0xff] }
  0x31   : > { %787 = vst [vmem:[%s7696_s30 + $0xd8] sm:$0xff] %v786_v27  ;;  %v900_v20 = vld [vmem:[%s7691_s29 + $0x17a0] sm:$0xff]  ;;  %v902_v21 = vld [vmem:[%s7691_s29 + $0x17e8] sm:$0xff]  ;;  %v904_v22 = vld [vmem:[%s7691_s29 + $0x1830] sm:$0xff] }
  0x32   : > { %789 = vst [vmem:[%s7696_s30 + $0xe0] sm:$0xff] %v788_v28  ;;  %v906_v23 = vld [vmem:[%s7691_s29 + $0x1878] sm:$0xff]  ;;  %v908_v24 = vld [vmem:[%s7691_s29 + $0x18c0] sm:$0xff]  ;;  %v910_v25 = vld [vmem:[%s7691_s29 + $0x1908] sm:$0xff] }
  0x33   : > { %791 = vst [vmem:[%s7696_s30 + $0xe8] sm:$0xff] %v790_v29  ;;  %v912_v26 = vld [vmem:[%s7691_s29 + $0x1950] sm:$0xff]  ;;  %v914_v27 = vld [vmem:[%s7691_s29 + $0x1998] sm:$0xff]  ;;  %v916_v28 = vld [vmem:[%s7691_s29 + $0x19e0] sm:$0xff] }
  0x34   : > { %793 = vst [vmem:[%s7696_s30 + $0xf0] sm:$0xff] %v792_v30  ;;  %v918_v29 = vld [vmem:[%s7691_s29 + $0x1a28] sm:$0xff]  ;;  %v920_v30 = vld [vmem:[%s7691_s29 + $0x1a70] sm:$0xff] }
  0x35   : > { %795 = vst [vmem:[%s7696_s30 + $0xf8] sm:$0xff] %v794_v31  ;;  %v922_v31 = vld [vmem:[%s7691_s29 + $0x1ab8] sm:$0xff] }
  0x36   : > { %797 = vst [vmem:[%s7696_s30 + $0x100] sm:$0xff] %v796_v32  ;;  %v924_v32 = vld [vmem:[%s7691_s29 + $0x1b00] sm:$0xff] }
  0x37   : > { %799 = vst [vmem:[%s7696_s30 + $0x108] sm:$0xff] %v798_v33  ;;  %v926_v33 = vld [vmem:[%s7691_s29 + $0x1b48] sm:$0xff] }
  0x38   : > { %801 = vst [vmem:[%s7696_s30 + $0x110] sm:$0xff] %v800_v34  ;;  %v928_v34 = vld [vmem:[%s7691_s29 + $0x1b90] sm:$0xff] }
  0x39   : > { %803 = vst [vmem:[%s7696_s30 + $0x118] sm:$0xff] %v802_v35  ;;  %v930_v35 = vld [vmem:[%s7691_s29 + $0x1bd8] sm:$0xff] }
  0x3a   : > { %805 = vst [vmem:[%s7696_s30 + $0x120] sm:$0xff] %v804_v36  ;;  %v932_v36 = vld [vmem:[%s7691_s29 + $0x1c20] sm:$0xff] }
  0x3b   : > { %807 = vst [vmem:[%s7696_s30 + $0x128] sm:$0xff] %v806_v37  ;;  %v934_v37 = vld [vmem:[%s7691_s29 + $0x1c68] sm:$0xff] }
  0x3c   : > { %809 = vst [vmem:[%s7696_s30 + $0x130] sm:$0xff] %v808_v38  ;;  %v936_v38 = vld [vmem:[%s7691_s29 + $0x1cb0] sm:$0xff] }
  0x3d   : > { %811 = vst [vmem:[%s7696_s30 + $0x138] sm:$0xff] %v810_v39  ;;  %v938_v39 = vld [vmem:[%s7691_s29 + $0x1cf8] sm:$0xff] }
  0x3e   : > { %813 = vst [vmem:[%s7696_s30 + $0x140] sm:$0xff] %v812_v40  ;;  %v940_v40 = vld [vmem:[%s7691_s29 + $0x1d40] sm:$0xff] }
  0x3f   : > { %815 = vst [vmem:[%s7696_s30 + $0x148] sm:$0xff] %v814_v41  ;;  %v942_v41 = vld [vmem:[%s7691_s29 + $0x1d88] sm:$0xff] }
  0x40   : > { %817 = vst [vmem:[%s7696_s30 + $0x150] sm:$0xff] %v816_v42  ;;  %v944_v42 = vld [vmem:[%s7691_s29 + $0x1dd0] sm:$0xff] }
  0x41   : > { %819 = vst [vmem:[%s7696_s30 + $0x158] sm:$0xff] %v818_v43  ;;  %v946_v43 = vld [vmem:[%s7691_s29 + $0x1e18] sm:$0xff] }
  0x42   : > { %821 = vst [vmem:[%s7696_s30 + $0x160] sm:$0xff] %v820_v44  ;;  %v948_v44 = vld [vmem:[%s7691_s29 + $0x1e60] sm:$0xff] }
  0x43   : > { %823 = vst [vmem:[%s7696_s30 + $0x168] sm:$0xff] %v822_v45  ;;  %v950_v45 = vld [vmem:[%s7691_s29 + $0x1ea8] sm:$0xff] }
  0x44   : > { %825 = vst [vmem:[%s7696_s30 + $0x170] sm:$0xff] %v824_v46  ;;  %v952_v46 = vld [vmem:[%s7691_s29 + $0x1ef0] sm:$0xff] }
  0x45   : > { %827 = vst [vmem:[%s7696_s30 + $0x178] sm:$0xff] %v826_v47  ;;  %v954_v47 = vld [vmem:[%s7691_s29 + $0x1f38] sm:$0xff] }
  0x46   : > { %829 = vst [vmem:[%s7696_s30 + $0x180] sm:$0xff] %v828_v48  ;;  %v956_v48 = vld [vmem:[%s7691_s29 + $0x1f80] sm:$0xff] }
  0x47   : > { %831 = vst [vmem:[%s7696_s30 + $0x188] sm:$0xff] %v830_v49  ;;  %v958_v49 = vld [vmem:[%s7691_s29 + $0x1fc8] sm:$0xff] }
  0x48   : > { %833 = vst [vmem:[%s7696_s30 + $0x190] sm:$0xff] %v832_v50  ;;  %v960_v50 = vld [vmem:[%s7691_s29 + $0x2010] sm:$0xff] }
  0x49   : > { %835 = vst [vmem:[%s7696_s30 + $0x198] sm:$0xff] %v834_v51  ;;  %v962_v51 = vld [vmem:[%s7691_s29 + $0x2058] sm:$0xff] }
  0x4a   : > { %837 = vst [vmem:[%s7696_s30 + $0x1a0] sm:$0xff] %v836_v52  ;;  %v964_v52 = vld [vmem:[%s7691_s29 + $0x20a0] sm:$0xff] }
  0x4b   : > { %839 = vst [vmem:[%s7696_s30 + $0x1a8] sm:$0xff] %v838_v53  ;;  %v966_v53 = vld [vmem:[%s7691_s29 + $0x20e8] sm:$0xff] }
  0x4c   : > { %841 = vst [vmem:[%s7696_s30 + $0x1b0] sm:$0xff] %v840_v54  ;;  %v968_v54 = vld [vmem:[%s7691_s29 + $0x2130] sm:$0xff] }
  0x4d   : > { %843 = vst [vmem:[%s7696_s30 + $0x1b8] sm:$0xff] %v842_v55  ;;  %v970_v55 = vld [vmem:[%s7691_s29 + $0x2178] sm:$0xff] }
  0x4e   : > { %845 = vst [vmem:[%s7696_s30 + $0x1c0] sm:$0xff] %v844_v56  ;;  %v972_v56 = vld [vmem:[%s7691_s29 + $0x21c0] sm:$0xff] }
  0x4f   : > { %847 = vst [vmem:[%s7696_s30 + $0x1c8] sm:$0xff] %v846_v57  ;;  %v974_v57 = vld [vmem:[%s7691_s29 + $0x2208] sm:$0xff] }
  0x50   : > { %849 = vst [vmem:[%s7696_s30 + $0x1d0] sm:$0xff] %v848_v58  ;;  %v976_v58 = vld [vmem:[%s7691_s29 + $0x2250] sm:$0xff] }
  0x51   : > { %851 = vst [vmem:[%s7696_s30 + $0x1d8] sm:$0xff] %v850_v59  ;;  %v978_v59 = vld [vmem:[%s7691_s29 + $0x2298] sm:$0xff] }
  0x52   : > { %853 = vst [vmem:[%s7696_s30 + $0x1e0] sm:$0xff] %v852_v60  ;;  %v980_v60 = vld [vmem:[%s7691_s29 + $0x22e0] sm:$0xff] }
  0x53   : > { %855 = vst [vmem:[%s7696_s30 + $0x1e8] sm:$0xff] %v854_v61  ;;  %v982_v61 = vld [vmem:[%s7691_s29 + $0x2328] sm:$0xff] }
  0x54   : > { %857 = vst [vmem:[%s7696_s30 + $0x1f0] sm:$0xff] %v856_v62  ;;  %v984_v62 = vld [vmem:[%s7691_s29 + $0x2370] sm:$0xff] }
  0x55   : > { %859 = vst [vmem:[%s7696_s30 + $0x1f8] sm:$0xff] %v858_v63  ;;  %v986_v63 = vld [vmem:[%s7691_s29 + $0x23b8] sm:$0xff] }
  0x56   : > { %861 = vst [vmem:[%s7696_s30 + $0x200] sm:$0xff] %v860_v0  ;;  %v988_v0 = vld [vmem:[%s7691_s29 + $0x2400] sm:$0xff] }
  0x57   : > { %863 = vst [vmem:[%s7696_s30 + $0x208] sm:$0xff] %v862_v1  ;;  %v990_v1 = vld [vmem:[%s7691_s29 + $0x2448] sm:$0xff] }
  0x58   : > { %865 = vst [vmem:[%s7696_s30 + $0x210] sm:$0xff] %v864_v2  ;;  %v992_v2 = vld [vmem:[%s7691_s29 + $0x2490] sm:$0xff] }
  0x59   : > { %867 = vst [vmem:[%s7696_s30 + $0x218] sm:$0xff] %v866_v3  ;;  %v994_v3 = vld [vmem:[%s7691_s29 + $0x24d8] sm:$0xff] }
  0x5a   : > { %869 = vst [vmem:[%s7696_s30 + $0x220] sm:$0xff] %v868_v4  ;;  %v996_v4 = vld [vmem:[%s7691_s29 + $0x2520] sm:$0xff] }
  0x5b   : > { %871 = vst [vmem:[%s7696_s30 + $0x228] sm:$0xff] %v870_v5  ;;  %v998_v5 = vld [vmem:[%s7691_s29 + $0x2568] sm:$0xff] }
  0x5c   : > { %873 = vst [vmem:[%s7696_s30 + $0x230] sm:$0xff] %v872_v6  ;;  %v1000_v6 = vld [vmem:[%s7691_s29 + $0x25b0] sm:$0xff] }
  0x5d   : > { %875 = vst [vmem:[%s7696_s30 + $0x238] sm:$0xff] %v874_v7  ;;  %v1002_v7 = vld [vmem:[%s7691_s29 + $0x25f8] sm:$0xff] }
  0x5e   : > { %877 = vst [vmem:[%s7696_s30 + $0x240] sm:$0xff] %v876_v8  ;;  %v1004_v8 = vld [vmem:[%s7691_s29 + $0x2640] sm:$0xff] }
  0x5f   : > { %879 = vst [vmem:[%s7696_s30 + $0x248] sm:$0xff] %v878_v9  ;;  %v1006_v9 = vld [vmem:[%s7691_s29 + $0x2688] sm:$0xff] }
  0x60   : > { %881 = vst [vmem:[%s7696_s30 + $0x250] sm:$0xff] %v880_v10  ;;  %v1008_v10 = vld [vmem:[%s7691_s29 + $0x26d0] sm:$0xff] }
  0x61   : > { %883 = vst [vmem:[%s7696_s30 + $0x258] sm:$0xff] %v882_v11  ;;  %v1010_v11 = vld [vmem:[%s7691_s29 + $0x2718] sm:$0xff] }
  0x62   : > { %885 = vst [vmem:[%s7696_s30 + $0x260] sm:$0xff] %v884_v12  ;;  %v1012_v12 = vld [vmem:[%s7691_s29 + $0x2760] sm:$0xff] }
  0x63   : > { %887 = vst [vmem:[%s7696_s30 + $0x268] sm:$0xff] %v886_v13  ;;  %v1014_v13 = vld [vmem:[%s7691_s29 + $0x27a8] sm:$0xff] }
  0x64   : > { %889 = vst [vmem:[%s7696_s30 + $0x270] sm:$0xff] %v888_v14  ;;  %v1016_v14 = vld [vmem:[%s7691_s29 + $0x27f0] sm:$0xff] }
  0x65   : > { %891 = vst [vmem:[%s7696_s30 + $0x278] sm:$0xff] %v890_v15  ;;  %v1018_v15 = vld [vmem:[%s7691_s29 + $0x2838] sm:$0xff] }
  0x66   : > { %893 = vst [vmem:[%s7696_s30 + $0x280] sm:$0xff] %v892_v16  ;;  %v1020_v16 = vld [vmem:[%s7691_s29 + $0x2880] sm:$0xff] }
  0x67   : > { %895 = vst [vmem:[%s7696_s30 + $0x288] sm:$0xff] %v894_v17  ;;  %v1022_v17 = vld [vmem:[%s7691_s29 + $0x28c8] sm:$0xff] }
  0x68   : > { %897 = vst [vmem:[%s7696_s30 + $0x290] sm:$0xff] %v896_v18  ;;  %v1024_v18 = vld [vmem:[%s7691_s29 + $0x2910] sm:$0xff] }
  0x69   : > { %899 = vst [vmem:[%s7696_s30 + $0x298] sm:$0xff] %v898_v19  ;;  %v1026_v19 = vld [vmem:[%s7691_s29 + $0x2958] sm:$0xff] }
  0x6a   : > { %901 = vst [vmem:[%s7696_s30 + $0x2a0] sm:$0xff] %v900_v20  ;;  %v1028_v20 = vld [vmem:[%s7691_s29 + $0x29a0] sm:$0xff] }
  0x6b   : > { %903 = vst [vmem:[%s7696_s30 + $0x2a8] sm:$0xff] %v902_v21  ;;  %v1030_v21 = vld [vmem:[%s7691_s29 + $0x29e8] sm:$0xff] }
  0x6c   : > { %905 = vst [vmem:[%s7696_s30 + $0x2b0] sm:$0xff] %v904_v22  ;;  %v1032_v22 = vld [vmem:[%s7691_s29 + $0x2a30] sm:$0xff] }
  0x6d   : > { %907 = vst [vmem:[%s7696_s30 + $0x2b8] sm:$0xff] %v906_v23  ;;  %v1034_v23 = vld [vmem:[%s7691_s29 + $0x2a78] sm:$0xff] }
  0x6e   : > { %909 = vst [vmem:[%s7696_s30 + $0x2c0] sm:$0xff] %v908_v24  ;;  %v1036_v24 = vld [vmem:[%s7691_s29 + $0x2ac0] sm:$0xff] }
  0x6f   : > { %911 = vst [vmem:[%s7696_s30 + $0x2c8] sm:$0xff] %v910_v25  ;;  %v1038_v25 = vld [vmem:[%s7691_s29 + $0x2b08] sm:$0xff] }
  0x70   : > { %913 = vst [vmem:[%s7696_s30 + $0x2d0] sm:$0xff] %v912_v26  ;;  %v1040_v26 = vld [vmem:[%s7691_s29 + $0x2b50] sm:$0xff] }
  0x71   : > { %915 = vst [vmem:[%s7696_s30 + $0x2d8] sm:$0xff] %v914_v27  ;;  %v1042_v27 = vld [vmem:[%s7691_s29 + $0x2b98] sm:$0xff] }
  0x72   : > { %917 = vst [vmem:[%s7696_s30 + $0x2e0] sm:$0xff] %v916_v28  ;;  %v1044_v28 = vld [vmem:[%s7691_s29 + $0x2be0] sm:$0xff] }
  0x73   : > { %919 = vst [vmem:[%s7696_s30 + $0x2e8] sm:$0xff] %v918_v29  ;;  %v1046_v29 = vld [vmem:[%s7691_s29 + $0x2c28] sm:$0xff] }
  0x74   : > { %921 = vst [vmem:[%s7696_s30 + $0x2f0] sm:$0xff] %v920_v30  ;;  %v1048_v30 = vld [vmem:[%s7691_s29 + $0x2c70] sm:$0xff] }
  0x75   : > { %923 = vst [vmem:[%s7696_s30 + $0x2f8] sm:$0xff] %v922_v31  ;;  %v1050_v31 = vld [vmem:[%s7691_s29 + $0x2cb8] sm:$0xff] }
  0x76   : > { %925 = vst [vmem:[%s7696_s30 + $0x300] sm:$0xff] %v924_v32  ;;  %v1052_v32 = vld [vmem:[%s7691_s29 + $0x2d00] sm:$0xff] }
  0x77   : > { %927 = vst [vmem:[%s7696_s30 + $0x308] sm:$0xff] %v926_v33  ;;  %v1054_v33 = vld [vmem:[%s7691_s29 + $0x2d48] sm:$0xff] }
  0x78   : > { %929 = vst [vmem:[%s7696_s30 + $0x310] sm:$0xff] %v928_v34  ;;  %v1056_v34 = vld [vmem:[%s7691_s29 + $0x2d90] sm:$0xff] }
  0x79   : > { %931 = vst [vmem:[%s7696_s30 + $0x318] sm:$0xff] %v930_v35  ;;  %v1058_v35 = vld [vmem:[%s7691_s29 + $0x2dd8] sm:$0xff] }
  0x7a   : > { %933 = vst [vmem:[%s7696_s30 + $0x320] sm:$0xff] %v932_v36  ;;  %v1060_v36 = vld [vmem:[%s7691_s29 + $0x2e20] sm:$0xff] }
  0x7b   : > { %935 = vst [vmem:[%s7696_s30 + $0x328] sm:$0xff] %v934_v37  ;;  %v1062_v37 = vld [vmem:[%s7691_s29 + $0x2e68] sm:$0xff] }
  0x7c   : > { %937 = vst [vmem:[%s7696_s30 + $0x330] sm:$0xff] %v936_v38  ;;  %v1064_v38 = vld [vmem:[%s7691_s29 + $0x2eb0] sm:$0xff] }
  0x7d   : > { %939 = vst [vmem:[%s7696_s30 + $0x338] sm:$0xff] %v938_v39  ;;  %v1066_v39 = vld [vmem:[%s7691_s29 + $0x2ef8] sm:$0xff] }
  0x7e   : > { %941 = vst [vmem:[%s7696_s30 + $0x340] sm:$0xff] %v940_v40  ;;  %v1068_v40 = vld [vmem:[%s7691_s29 + $0x2f40] sm:$0xff] }
  0x7f   : > { %943 = vst [vmem:[%s7696_s30 + $0x348] sm:$0xff] %v942_v41  ;;  %v1070_v41 = vld [vmem:[%s7691_s29 + $0x2f88] sm:$0xff] }
  0x80   : > { %945 = vst [vmem:[%s7696_s30 + $0x350] sm:$0xff] %v944_v42  ;;  %v1072_v42 = vld [vmem:[%s7691_s29 + $0x2fd0] sm:$0xff] }
  0x81   : > { %947 = vst [vmem:[%s7696_s30 + $0x358] sm:$0xff] %v946_v43  ;;  %v1074_v43 = vld [vmem:[%s7691_s29 + $0x3018] sm:$0xff] }
  0x82   : > { %949 = vst [vmem:[%s7696_s30 + $0x360] sm:$0xff] %v948_v44  ;;  %v1076_v44 = vld [vmem:[%s7691_s29 + $0x3060] sm:$0xff] }
  0x83   : > { %951 = vst [vmem:[%s7696_s30 + $0x368] sm:$0xff] %v950_v45  ;;  %v1078_v45 = vld [vmem:[%s7691_s29 + $0x30a8] sm:$0xff] }
  0x84   : > { %953 = vst [vmem:[%s7696_s30 + $0x370] sm:$0xff] %v952_v46  ;;  %v1080_v46 = vld [vmem:[%s7691_s29 + $0x30f0] sm:$0xff] }
  0x85   : > { %955 = vst [vmem:[%s7696_s30 + $0x378] sm:$0xff] %v954_v47  ;;  %v1082_v47 = vld [vmem:[%s7691_s29 + $0x3138] sm:$0xff] }
  0x86   : > { %957 = vst [vmem:[%s7696_s30 + $0x380] sm:$0xff] %v956_v48  ;;  %v1084_v48 = vld [vmem:[%s7691_s29 + $0x3180] sm:$0xff] }
  0x87   : > { %959 = vst [vmem:[%s7696_s30 + $0x388] sm:$0xff] %v958_v49  ;;  %v1086_v49 = vld [vmem:[%s7691_s29 + $0x31c8] sm:$0xff] }
  0x88   : > { %961 = vst [vmem:[%s7696_s30 + $0x390] sm:$0xff] %v960_v50  ;;  %v1088_v50 = vld [vmem:[%s7691_s29 + $0x3210] sm:$0xff] }
  0x89   : > { %963 = vst [vmem:[%s7696_s30 + $0x398] sm:$0xff] %v962_v51  ;;  %v1090_v51 = vld [vmem:[%s7691_s29 + $0x3258] sm:$0xff] }
  0x8a   : > { %965 = vst [vmem:[%s7696_s30 + $0x3a0] sm:$0xff] %v964_v52  ;;  %v1092_v52 = vld [vmem:[%s7691_s29 + $0x32a0] sm:$0xff] }
  0x8b   : > { %967 = vst [vmem:[%s7696_s30 + $0x3a8] sm:$0xff] %v966_v53  ;;  %v1094_v53 = vld [vmem:[%s7691_s29 + $0x32e8] sm:$0xff] }
  0x8c   : > { %969 = vst [vmem:[%s7696_s30 + $0x3b0] sm:$0xff] %v968_v54  ;;  %v1096_v54 = vld [vmem:[%s7691_s29 + $0x3330] sm:$0xff] }
  0x8d   : > { %971 = vst [vmem:[%s7696_s30 + $0x3b8] sm:$0xff] %v970_v55  ;;  %v1098_v55 = vld [vmem:[%s7691_s29 + $0x3378] sm:$0xff] }
  0x8e   : > { %973 = vst [vmem:[%s7696_s30 + $0x3c0] sm:$0xff] %v972_v56  ;;  %v1100_v56 = vld [vmem:[%s7691_s29 + $0x33c0] sm:$0xff] }
  0x8f   : > { %975 = vst [vmem:[%s7696_s30 + $0x3c8] sm:$0xff] %v974_v57  ;;  %v1102_v57 = vld [vmem:[%s7691_s29 + $0x3408] sm:$0xff] }
  0x90   : > { %977 = vst [vmem:[%s7696_s30 + $0x3d0] sm:$0xff] %v976_v58  ;;  %v1104_v58 = vld [vmem:[%s7691_s29 + $0x3450] sm:$0xff] }
  0x91   : > { %979 = vst [vmem:[%s7696_s30 + $0x3d8] sm:$0xff] %v978_v59  ;;  %v1106_v59 = vld [vmem:[%s7691_s29 + $0x3498] sm:$0xff] }
  0x92   : > { %981 = vst [vmem:[%s7696_s30 + $0x3e0] sm:$0xff] %v980_v60  ;;  %v1108_v60 = vld [vmem:[%s7691_s29 + $0x34e0] sm:$0xff] }
  0x93   : > { %983 = vst [vmem:[%s7696_s30 + $0x3e8] sm:$0xff] %v982_v61  ;;  %v1110_v61 = vld [vmem:[%s7691_s29 + $0x3528] sm:$0xff] }
  0x94   : > { %985 = vst [vmem:[%s7696_s30 + $0x3f0] sm:$0xff] %v984_v62  ;;  %v1112_v62 = vld [vmem:[%s7691_s29 + $0x3570] sm:$0xff] }
  0x95   : > { %987 = vst [vmem:[%s7696_s30 + $0x3f8] sm:$0xff] %v986_v63  ;;  %v1114_v63 = vld [vmem:[%s7691_s29 + $0x35b8] sm:$0xff] }
  0x96   : > { %989 = vst [vmem:[%s7696_s30 + $0x400] sm:$0xff] %v988_v0  ;;  %v1116_v0 = vld [vmem:[%s7691_s29 + $0x3600] sm:$0xff] }
  0x97   : > { %991 = vst [vmem:[%s7696_s30 + $0x408] sm:$0xff] %v990_v1  ;;  %v1118_v1 = vld [vmem:[%s7691_s29 + $0x3648] sm:$0xff] }
  0x98   : > { %993 = vst [vmem:[%s7696_s30 + $0x410] sm:$0xff] %v992_v2  ;;  %v1120_v2 = vld [vmem:[%s7691_s29 + $0x3690] sm:$0xff] }
  0x99   : > { %995 = vst [vmem:[%s7696_s30 + $0x418] sm:$0xff] %v994_v3  ;;  %v1122_v3 = vld [vmem:[%s7691_s29 + $0x36d8] sm:$0xff] }
  0x9a   : > { %997 = vst [vmem:[%s7696_s30 + $0x420] sm:$0xff] %v996_v4  ;;  %v1124_v4 = vld [vmem:[%s7691_s29 + $0x3720] sm:$0xff] }
  0x9b   : > { %999 = vst [vmem:[%s7696_s30 + $0x428] sm:$0xff] %v998_v5  ;;  %v1126_v5 = vld [vmem:[%s7691_s29 + $0x3768] sm:$0xff] }
  0x9c   : > { %1001 = vst [vmem:[%s7696_s30 + $0x430] sm:$0xff] %v1000_v6  ;;  %v1128_v6 = vld [vmem:[%s7691_s29 + $0x37b0] sm:$0xff] }
  0x9d   : > { %1003 = vst [vmem:[%s7696_s30 + $0x438] sm:$0xff] %v1002_v7  ;;  %v1130_v7 = vld [vmem:[%s7691_s29 + $0x37f8] sm:$0xff] }
  0x9e   : > { %1005 = vst [vmem:[%s7696_s30 + $0x440] sm:$0xff] %v1004_v8  ;;  %v1132_v8 = vld [vmem:[%s7691_s29 + $0x3840] sm:$0xff] }
  0x9f   : > { %1007 = vst [vmem:[%s7696_s30 + $0x448] sm:$0xff] %v1006_v9  ;;  %v1134_v9 = vld [vmem:[%s7691_s29 + $0x3888] sm:$0xff] }
  0xa0   : > { %1009 = vst [vmem:[%s7696_s30 + $0x450] sm:$0xff] %v1008_v10  ;;  %v1136_v10 = vld [vmem:[%s7691_s29 + $0x38d0] sm:$0xff] }
  0xa1   : > { %1011 = vst [vmem:[%s7696_s30 + $0x458] sm:$0xff] %v1010_v11  ;;  %v1138_v11 = vld [vmem:[%s7691_s29 + $0x3918] sm:$0xff] }
  0xa2   : > { %1013 = vst [vmem:[%s7696_s30 + $0x460] sm:$0xff] %v1012_v12  ;;  %v1140_v12 = vld [vmem:[%s7691_s29 + $0x3960] sm:$0xff] }
  0xa3   : > { %1015 = vst [vmem:[%s7696_s30 + $0x468] sm:$0xff] %v1014_v13  ;;  %v1142_v13 = vld [vmem:[%s7691_s29 + $0x39a8] sm:$0xff] }
  0xa4   : > { %1017 = vst [vmem:[%s7696_s30 + $0x470] sm:$0xff] %v1016_v14  ;;  %v1144_v14 = vld [vmem:[%s7691_s29 + $0x39f0] sm:$0xff] }
  0xa5   : > { %1019 = vst [vmem:[%s7696_s30 + $0x478] sm:$0xff] %v1018_v15  ;;  %v1146_v15 = vld [vmem:[%s7691_s29 + $0x3a38] sm:$0xff] }
  0xa6   : > { %1021 = vst [vmem:[%s7696_s30 + $0x480] sm:$0xff] %v1020_v16  ;;  %v1148_v16 = vld [vmem:[%s7691_s29 + $0x3a80] sm:$0xff] }
  0xa7   : > { %1023 = vst [vmem:[%s7696_s30 + $0x488] sm:$0xff] %v1022_v17  ;;  %v1150_v17 = vld [vmem:[%s7691_s29 + $0x3ac8] sm:$0xff] }
  0xa8   : > { %1025 = vst [vmem:[%s7696_s30 + $0x490] sm:$0xff] %v1024_v18  ;;  %v1152_v18 = vld [vmem:[%s7691_s29 + $0x3b10] sm:$0xff] }
  0xa9   : > { %1027 = vst [vmem:[%s7696_s30 + $0x498] sm:$0xff] %v1026_v19  ;;  %v1154_v19 = vld [vmem:[%s7691_s29 + $0x3b58] sm:$0xff] }
  0xaa   : > { %1029 = vst [vmem:[%s7696_s30 + $0x4a0] sm:$0xff] %v1028_v20  ;;  %v1156_v20 = vld [vmem:[%s7691_s29 + $0x3ba0] sm:$0xff] }
  0xab   : > { %1031 = vst [vmem:[%s7696_s30 + $0x4a8] sm:$0xff] %v1030_v21  ;;  %v1158_v21 = vld [vmem:[%s7691_s29 + $0x3be8] sm:$0xff] }
  0xac   : > { %1033 = vst [vmem:[%s7696_s30 + $0x4b0] sm:$0xff] %v1032_v22  ;;  %v1160_v22 = vld [vmem:[%s7691_s29 + $0x3c30] sm:$0xff] }
  0xad   : > { %1035 = vst [vmem:[%s7696_s30 + $0x4b8] sm:$0xff] %v1034_v23  ;;  %v1162_v23 = vld [vmem:[%s7691_s29 + $0x3c78] sm:$0xff] }
  0xae   : > { %1037 = vst [vmem:[%s7696_s30 + $0x4c0] sm:$0xff] %v1036_v24  ;;  %v1164_v24 = vld [vmem:[%s7691_s29 + $0x3cc0] sm:$0xff] }
  0xaf   : > { %1039 = vst [vmem:[%s7696_s30 + $0x4c8] sm:$0xff] %v1038_v25  ;;  %v1166_v25 = vld [vmem:[%s7691_s29 + $0x3d08] sm:$0xff] }
  0xb0   : > { %1041 = vst [vmem:[%s7696_s30 + $0x4d0] sm:$0xff] %v1040_v26  ;;  %v1168_v26 = vld [vmem:[%s7691_s29 + $0x3d50] sm:$0xff] }
  0xb1   : > { %1043 = vst [vmem:[%s7696_s30 + $0x4d8] sm:$0xff] %v1042_v27  ;;  %v1170_v27 = vld [vmem:[%s7691_s29 + $0x3d98] sm:$0xff] }
  0xb2   : > { %1045 = vst [vmem:[%s7696_s30 + $0x4e0] sm:$0xff] %v1044_v28  ;;  %v1172_v28 = vld [vmem:[%s7691_s29 + $0x3de0] sm:$0xff] }
  0xb3   : > { %1047 = vst [vmem:[%s7696_s30 + $0x4e8] sm:$0xff] %v1046_v29  ;;  %v1174_v29 = vld [vmem:[%s7691_s29 + $0x3e28] sm:$0xff] }
  0xb4   : > { %1049 = vst [vmem:[%s7696_s30 + $0x4f0] sm:$0xff] %v1048_v30  ;;  %v1176_v30 = vld [vmem:[%s7691_s29 + $0x3e70] sm:$0xff] }
  0xb5   : > { %1051 = vst [vmem:[%s7696_s30 + $0x4f8] sm:$0xff] %v1050_v31  ;;  %v1178_v31 = vld [vmem:[%s7691_s29 + $0x3eb8] sm:$0xff] }
  0xb6   : > { %1053 = vst [vmem:[%s7696_s30 + $0x500] sm:$0xff] %v1052_v32  ;;  %v1180_v32 = vld [vmem:[%s7691_s29 + $0x3f00] sm:$0xff] }
  0xb7   : > { %1055 = vst [vmem:[%s7696_s30 + $0x508] sm:$0xff] %v1054_v33  ;;  %v1182_v33 = vld [vmem:[%s7691_s29 + $0x3f48] sm:$0xff] }
  0xb8   : > { %1057 = vst [vmem:[%s7696_s30 + $0x510] sm:$0xff] %v1056_v34  ;;  %v1184_v34 = vld [vmem:[%s7691_s29 + $0x3f90] sm:$0xff] }
  0xb9   : > { %1059 = vst [vmem:[%s7696_s30 + $0x518] sm:$0xff] %v1058_v35  ;;  %v1186_v35 = vld [vmem:[%s7691_s29 + $0x3fd8] sm:$0xff] }
  0xba   : > { %1061 = vst [vmem:[%s7696_s30 + $0x520] sm:$0xff] %v1060_v36  ;;  %v1188_v36 = vld [vmem:[%s7691_s29 + $0x4020] sm:$0xff] }
  0xbb   : > { %1063 = vst [vmem:[%s7696_s30 + $0x528] sm:$0xff] %v1062_v37  ;;  %v1190_v37 = vld [vmem:[%s7691_s29 + $0x4068] sm:$0xff] }
  0xbc   : > { %1065 = vst [vmem:[%s7696_s30 + $0x530] sm:$0xff] %v1064_v38  ;;  %v1192_v38 = vld [vmem:[%s7691_s29 + $0x40b0] sm:$0xff] }
  0xbd   : > { %1067 = vst [vmem:[%s7696_s30 + $0x538] sm:$0xff] %v1066_v39  ;;  %v1194_v39 = vld [vmem:[%s7691_s29 + $0x40f8] sm:$0xff] }
  0xbe   : > { %1069 = vst [vmem:[%s7696_s30 + $0x540] sm:$0xff] %v1068_v40  ;;  %v1196_v40 = vld [vmem:[%s7691_s29 + $0x4140] sm:$0xff] }
  0xbf   : > { %1071 = vst [vmem:[%s7696_s30 + $0x548] sm:$0xff] %v1070_v41  ;;  %v1198_v41 = vld [vmem:[%s7691_s29 + $0x4188] sm:$0xff] }
  0xc0   : > { %1073 = vst [vmem:[%s7696_s30 + $0x550] sm:$0xff] %v1072_v42  ;;  %v1200_v42 = vld [vmem:[%s7691_s29 + $0x41d0] sm:$0xff] }
  0xc1   : > { %1075 = vst [vmem:[%s7696_s30 + $0x558] sm:$0xff] %v1074_v43  ;;  %v1202_v43 = vld [vmem:[%s7691_s29 + $0x4218] sm:$0xff] }
  0xc2   : > { %1077 = vst [vmem:[%s7696_s30 + $0x560] sm:$0xff] %v1076_v44  ;;  %v1204_v44 = vld [vmem:[%s7691_s29 + $0x4260] sm:$0xff] }
  0xc3   : > { %1079 = vst [vmem:[%s7696_s30 + $0x568] sm:$0xff] %v1078_v45  ;;  %v1206_v45 = vld [vmem:[%s7691_s29 + $0x42a8] sm:$0xff] }
  0xc4   : > { %1081 = vst [vmem:[%s7696_s30 + $0x570] sm:$0xff] %v1080_v46  ;;  %v1208_v46 = vld [vmem:[%s7691_s29 + $0x42f0] sm:$0xff] }
  0xc5   : > { %1083 = vst [vmem:[%s7696_s30 + $0x578] sm:$0xff] %v1082_v47  ;;  %v1210_v47 = vld [vmem:[%s7691_s29 + $0x4338] sm:$0xff] }
  0xc6   : > { %1085 = vst [vmem:[%s7696_s30 + $0x580] sm:$0xff] %v1084_v48  ;;  %v1212_v48 = vld [vmem:[%s7691_s29 + $0x4380] sm:$0xff] }
  0xc7   : > { %1087 = vst [vmem:[%s7696_s30 + $0x588] sm:$0xff] %v1086_v49  ;;  %v1214_v49 = vld [vmem:[%s7691_s29 + $0x43c8] sm:$0xff] }
  0xc8   : > { %1089 = vst [vmem:[%s7696_s30 + $0x590] sm:$0xff] %v1088_v50  ;;  %v1216_v50 = vld [vmem:[%s7691_s29 + $0x4410] sm:$0xff] }
  0xc9   : > { %1091 = vst [vmem:[%s7696_s30 + $0x598] sm:$0xff] %v1090_v51  ;;  %v1218_v51 = vld [vmem:[%s7691_s29 + $0x4458] sm:$0xff] }
  0xca   : > { %1093 = vst [vmem:[%s7696_s30 + $0x5a0] sm:$0xff] %v1092_v52  ;;  %v1220_v52 = vld [vmem:[%s7691_s29 + $0x44a0] sm:$0xff] }
  0xcb   : > { %1095 = vst [vmem:[%s7696_s30 + $0x5a8] sm:$0xff] %v1094_v53  ;;  %v1222_v53 = vld [vmem:[%s7691_s29 + $0x44e8] sm:$0xff] }
  0xcc   : > { %1097 = vst [vmem:[%s7696_s30 + $0x5b0] sm:$0xff] %v1096_v54  ;;  %v1224_v54 = vld [vmem:[%s7691_s29 + $0x4530] sm:$0xff] }
  0xcd   : > { %1099 = vst [vmem:[%s7696_s30 + $0x5b8] sm:$0xff] %v1098_v55  ;;  %v1226_v55 = vld [vmem:[%s7691_s29 + $0x4578] sm:$0xff] }
  0xce   : > { %1101 = vst [vmem:[%s7696_s30 + $0x5c0] sm:$0xff] %v1100_v56  ;;  %v1228_v56 = vld [vmem:[%s7691_s29 + $0x45c0] sm:$0xff] }
  0xcf   : > { %1103 = vst [vmem:[%s7696_s30 + $0x5c8] sm:$0xff] %v1102_v57  ;;  %v1230_v57 = vld [vmem:[%s7691_s29 + $0x4608] sm:$0xff] }
  0xd0   : > { %1105 = vst [vmem:[%s7696_s30 + $0x5d0] sm:$0xff] %v1104_v58  ;;  %v1232_v58 = vld [vmem:[%s7691_s29 + $0x4650] sm:$0xff] }
  0xd1   : > { %1107 = vst [vmem:[%s7696_s30 + $0x5d8] sm:$0xff] %v1106_v59  ;;  %v1234_v59 = vld [vmem:[%s7691_s29 + $0x4698] sm:$0xff] }
  0xd2   : > { %1109 = vst [vmem:[%s7696_s30 + $0x5e0] sm:$0xff] %v1108_v60  ;;  %v1236_v60 = vld [vmem:[%s7691_s29 + $0x46e0] sm:$0xff] }
  0xd3   : > { %1111 = vst [vmem:[%s7696_s30 + $0x5e8] sm:$0xff] %v1110_v61  ;;  %v1238_v61 = vld [vmem:[%s7691_s29 + $0x4728] sm:$0xff] }
  0xd4   : > { %1113 = vst [vmem:[%s7696_s30 + $0x5f0] sm:$0xff] %v1112_v62  ;;  %v1240_v62 = vld [vmem:[%s7691_s29 + $0x4770] sm:$0xff] }
  0xd5   : > { %1115 = vst [vmem:[%s7696_s30 + $0x5f8] sm:$0xff] %v1114_v63  ;;  %v1242_v63 = vld [vmem:[%s7691_s29 + $0x47b8] sm:$0xff] }
  0xd6   : > { %1117 = vst [vmem:[%s7696_s30 + $0x600] sm:$0xff] %v1116_v0 }
  0xd7   : > { %1119 = vst [vmem:[%s7696_s30 + $0x608] sm:$0xff] %v1118_v1 }
  0xd8   : > { %1121 = vst [vmem:[%s7696_s30 + $0x610] sm:$0xff] %v1120_v2 }
  0xd9   : > { %1123 = vst [vmem:[%s7696_s30 + $0x618] sm:$0xff] %v1122_v3 }
  0xda   : > { %1125 = vst [vmem:[%s7696_s30 + $0x620] sm:$0xff] %v1124_v4 }
  0xdb   : > { %1127 = vst [vmem:[%s7696_s30 + $0x628] sm:$0xff] %v1126_v5 }
  0xdc   : > { %1129 = vst [vmem:[%s7696_s30 + $0x630] sm:$0xff] %v1128_v6 }
  0xdd   : > { %1131 = vst [vmem:[%s7696_s30 + $0x638] sm:$0xff] %v1130_v7 }
  0xde   : > { %1133 = vst [vmem:[%s7696_s30 + $0x640] sm:$0xff] %v1132_v8 }
  0xdf   : > { %1135 = vst [vmem:[%s7696_s30 + $0x648] sm:$0xff] %v1134_v9 }
  0xe0   : > { %1137 = vst [vmem:[%s7696_s30 + $0x650] sm:$0xff] %v1136_v10 }
  0xe1   : > { %1139 = vst [vmem:[%s7696_s30 + $0x658] sm:$0xff] %v1138_v11 }
  0xe2   : > { %1141 = vst [vmem:[%s7696_s30 + $0x660] sm:$0xff] %v1140_v12 }
  0xe3   : > { %1143 = vst [vmem:[%s7696_s30 + $0x668] sm:$0xff] %v1142_v13 }
  0xe4   : > { %1145 = vst [vmem:[%s7696_s30 + $0x670] sm:$0xff] %v1144_v14 }
  0xe5   : > { %1147 = vst [vmem:[%s7696_s30 + $0x678] sm:$0xff] %v1146_v15 }
  0xe6   : > { %1149 = vst [vmem:[%s7696_s30 + $0x680] sm:$0xff] %v1148_v16 }
  0xe7   : > { %1151 = vst [vmem:[%s7696_s30 + $0x688] sm:$0xff] %v1150_v17 }
  0xe8   : > { %1153 = vst [vmem:[%s7696_s30 + $0x690] sm:$0xff] %v1152_v18 }
  0xe9   : > { %1155 = vst [vmem:[%s7696_s30 + $0x698] sm:$0xff] %v1154_v19 }
  0xea   : > { %1157 = vst [vmem:[%s7696_s30 + $0x6a0] sm:$0xff] %v1156_v20 }
  0xeb   : > { %1159 = vst [vmem:[%s7696_s30 + $0x6a8] sm:$0xff] %v1158_v21 }
  0xec   : > { %1161 = vst [vmem:[%s7696_s30 + $0x6b0] sm:$0xff] %v1160_v22 }
  0xed   : > { %1163 = vst [vmem:[%s7696_s30 + $0x6b8] sm:$0xff] %v1162_v23 }
  0xee   : > { %1165 = vst [vmem:[%s7696_s30 + $0x6c0] sm:$0xff] %v1164_v24 }
  0xef   : > { %1167 = vst [vmem:[%s7696_s30 + $0x6c8] sm:$0xff] %v1166_v25 }
  0xf0   : > { %1169 = vst [vmem:[%s7696_s30 + $0x6d0] sm:$0xff] %v1168_v26 }
  0xf1   : > { %1171 = vst [vmem:[%s7696_s30 + $0x6d8] sm:$0xff] %v1170_v27 }
  0xf2   : > { %1173 = vst [vmem:[%s7696_s30 + $0x6e0] sm:$0xff] %v1172_v28 }
  0xf3   : > { %1175 = vst [vmem:[%s7696_s30 + $0x6e8] sm:$0xff] %v1174_v29 }
  0xf4   : > { %1177 = vst [vmem:[%s7696_s30 + $0x6f0] sm:$0xff] %v1176_v30 }
  0xf5   : > { %1179 = vst [vmem:[%s7696_s30 + $0x6f8] sm:$0xff] %v1178_v31 }
  0xf6   : > { %1181 = vst [vmem:[%s7696_s30 + $0x700] sm:$0xff] %v1180_v32 }
  0xf7   : > { %1183 = vst [vmem:[%s7696_s30 + $0x708] sm:$0xff] %v1182_v33 }
  0xf8   : > { %1185 = vst [vmem:[%s7696_s30 + $0x710] sm:$0xff] %v1184_v34 }
  0xf9   : > { %1187 = vst [vmem:[%s7696_s30 + $0x718] sm:$0xff] %v1186_v35 }
  0xfa   : > { %1189 = vst [vmem:[%s7696_s30 + $0x720] sm:$0xff] %v1188_v36 }
  0xfb   : > { %1191 = vst [vmem:[%s7696_s30 + $0x728] sm:$0xff] %v1190_v37 }
  0xfc   : > { %1193 = vst [vmem:[%s7696_s30 + $0x730] sm:$0xff] %v1192_v38 }
  0xfd   : > { %1195 = vst [vmem:[%s7696_s30 + $0x738] sm:$0xff] %v1194_v39 }
  0xfe   : > { %1197 = vst [vmem:[%s7696_s30 + $0x740] sm:$0xff] %v1196_v40 }
  0xff   : > { %1199 = vst [vmem:[%s7696_s30 + $0x748] sm:$0xff] %v1198_v41 }
 0x100   : > { %1201 = vst [vmem:[%s7696_s30 + $0x750] sm:$0xff] %v1200_v42 }
 0x101   : > { %1203 = vst [vmem:[%s7696_s30 + $0x758] sm:$0xff] %v1202_v43 }
 0x102   : > { %1205 = vst [vmem:[%s7696_s30 + $0x760] sm:$0xff] %v1204_v44 }
 0x103   : > { %1207 = vst [vmem:[%s7696_s30 + $0x768] sm:$0xff] %v1206_v45 }
 0x104   : > { %1209 = vst [vmem:[%s7696_s30 + $0x770] sm:$0xff] %v1208_v46 }
 0x105   : > { %1211 = vst [vmem:[%s7696_s30 + $0x778] sm:$0xff] %v1210_v47 }
 0x106   : > { %1213 = vst [vmem:[%s7696_s30 + $0x780] sm:$0xff] %v1212_v48 }
 0x107   : > { %1215 = vst [vmem:[%s7696_s30 + $0x788] sm:$0xff] %v1214_v49 }
 0x108   : > { %1217 = vst [vmem:[%s7696_s30 + $0x790] sm:$0xff] %v1216_v50 }
 0x109   : > { %1219 = vst [vmem:[%s7696_s30 + $0x798] sm:$0xff] %v1218_v51 }
 0x10a   : > { %1221 = vst [vmem:[%s7696_s30 + $0x7a0] sm:$0xff] %v1220_v52 }
 0x10b   : > { %1223 = vst [vmem:[%s7696_s30 + $0x7a8] sm:$0xff] %v1222_v53 }
 0x10c   : > { %1225 = vst [vmem:[%s7696_s30 + $0x7b0] sm:$0xff] %v1224_v54 }
 0x10d   : > { %1227 = vst [vmem:[%s7696_s30 + $0x7b8] sm:$0xff] %v1226_v55 }
 0x10e   : > { %1229 = vst [vmem:[%s7696_s30 + $0x7c0] sm:$0xff] %v1228_v56 }
 0x10f   : > { %1231 = vst [vmem:[%s7696_s30 + $0x7c8] sm:$0xff] %v1230_v57 }
 0x110   : > { %1233 = vst [vmem:[%s7696_s30 + $0x7d0] sm:$0xff] %v1232_v58 }
 0x111   : > { %1235 = vst [vmem:[%s7696_s30 + $0x7d8] sm:$0xff] %v1234_v59 }
 0x112   : > { %1237 = vst [vmem:[%s7696_s30 + $0x7e0] sm:$0xff] %v1236_v60 }
 0x113   : > { %1239 = vst [vmem:[%s7696_s30 + $0x7e8] sm:$0xff] %v1238_v61 }
 0x114   : > { %1241 = vst [vmem:[%s7696_s30 + $0x7f0] sm:$0xff] %v1240_v62 }
 0x115   : > { %1243 = vst [vmem:[%s7696_s30 + $0x7f8] sm:$0xff] %v1242_v63 }
 0x116 PF: > { %p5850_p7 = scmp.ge.s32.totalorder %s7611_s18, 1  ;;  %p2307_p8 = scmp.lt.s32.totalorder %s7611_s18, 19 }
 0x118   : > { %p2308_p9 = pnand %p5850_p7, %p2307_p8 }
 0x11a   : > { %2311 = sbr.rel (%p2308_p9) target bundleno = 1042 (0x412), region = 80 }
 0x11f   : > { %s2314_s4 = sand.u32 1, %s7587_s12   ;;  %p2358_p10 = scmp.lt.s32.totalorder %s7599_s15, 1 }
 0x120   : > { %s5851_s5 = sshll.u32 %s2314_s4, 11  ;;  %s2380_s6 = smul.u32 3, %s7599_s15 }
 0x121   : > { %p2387_p11 = scmp.eq.s32.totalorder %s7595_s14, 0  ;;  %s11122_s15 = smov (!%p2358_p10, %s7599_s15), 1 }
 0x122   : > { %p2381_p12 = scmp.lt.s32.totalorder %s2380_s6, 5  ;;  %s7145_s7 = sshll.u32 %s11122_s15, 8  ;;  %v7613_v0 = vmov (%p2387_p11), 0.0  }
 0x123   : > { %s8217_s10 = scalar_lea.vmem %s10376_s0, %s7145_s7  ;;  %s8222_s22 = scalar_lea.vmem %s10377_s1, %s7145_s7 }
 0x124   : > { %s11124_s6 = smov (!%p2381_p12, %s2380_s6), 5  ;;  %s8229_s14 = scalar_lea.vmem [#allocation2], %s5851_s5 }
 0x125   : > { %s5856_s24 = sshll.u32 %s11124_s6, 3  ;;  %2391 = sbr.rel (!%p2387_p11) target bundleno = 298 (0x12a), region = 88 }
 0x126   : > { %s8227_s26 = scalar_lea.vmem %s10379_s3, %s5856_s24 }
 0x127   : > { %2392 = vst [vmem:[%s8227_s26] sm:$0xff] (%p2387_p11), %v7613_v0 }
 0x128   : > { %2393 = vst [vmem:[%s8227_s26 + $0x8] sm:$0xff] (%p2387_p11), %v7613_v0 }
 0x129   : > { %2394 = vst [vmem:[%s8227_s26 + $0x10] sm:$0xff] (%p2387_p11), %v7613_v0 }
 0x12a PF: > { %v6044_v1 = vld [vmem:[%s8229_s14 + $0x70] sm:$0xf]  ;;  %v7227_v2 = vld [vmem:[%s8229_s14 + $0x74] sm:$0xf0]  ;;  %v6036_v12 = vld [vmem:[%s8229_s14 + $0x60] sm:$0xf] }
 0x12b   : > { %v6108_v3 = vld [vmem:[%s8229_s14 + $0xf0] sm:$0xf]  ;;  %v8237_v4 = vor.u32 %v7227_v2, %v6044_v1  ;;  %v7243_v5 = vld [vmem:[%s8229_s14 + $0xf4] sm:$0xf0]  ;;  %v7225_v14 = vld [vmem:[%s8229_s14 + $0x64] sm:$0xf0] }
 0x12c   : > { %v6172_v6 = vld [vmem:[%s8229_s14 + $0x170] sm:$0xf]  ;;  %v7259_v7 = vld [vmem:[%s8229_s14 + $0x174] sm:$0xf0]  ;;  %v8242_v8 = vor.u32 %v7243_v5, %v6108_v3  ;;  %v6100_v15 = vld [vmem:[%s8229_s14 + $0xe0] sm:$0xf]  ;;  %v8257_v17 = vor.u32 %v7225_v14, %v6036_v12 }
 0x12d   : > { %v8244_v9 = vor.u32 %v7259_v7, %v6172_v6  ;;  %v6236_v10 = vld [vmem:[%s8229_s14 + $0x1f0] sm:$0xf]  ;;  %v7275_v11 = vld [vmem:[%s8229_s14 + $0x1f4] sm:$0xf0]  ;;  %4155 = vmatpush.bf16.msra.mxu0 %v8237_v4  ;;  %v7241_v16 = vld [vmem:[%s8229_s14 + $0xe4] sm:$0xf0] }
 0x12e   : > { %v8250_v13 = vor.u32 %v7275_v11, %v6236_v10  ;;  %4174 = vmatpush.bf16.msra.mxu1 %v8242_v8  ;;  %v8259_v18 = vor.u32 %v7241_v16, %v6100_v15  ;;  %v6164_v19 = vld [vmem:[%s8229_s14 + $0x160] sm:$0xf]  ;;  %v7257_v20 = vld [vmem:[%s8229_s14 + $0x164] sm:$0xf0]  ;;  %v6028_v24 = vld [vmem:[%s8229_s14 + $0x50] sm:$0xf] }
 0x12f   : > { %4193 = vmatpush.bf16.msra.mxu2 %v8244_v9  ;;  %v6228_v21 = vld [vmem:[%s8229_s14 + $0x1e0] sm:$0xf]  ;;  %v8265_v22 = vor.u32 %v7257_v20, %v6164_v19  ;;  %v7273_v23 = vld [vmem:[%s8229_s14 + $0x1e4] sm:$0xf0]  ;;  %v7223_v25 = vld [vmem:[%s8229_s14 + $0x54] sm:$0xf0] }
 0x130   : > { %4212 = vmatpush.bf16.msra.mxu3 %v8250_v13  ;;  %v8270_v26 = vor.u32 %v7273_v23, %v6228_v21  ;;  %v6092_v27 = vld [vmem:[%s8229_s14 + $0xd0] sm:$0xf]  ;;  %v7239_v28 = vld [vmem:[%s8229_s14 + $0xd4] sm:$0xf0]  ;;  %v8276_v30 = vor.u32 %v7223_v25, %v6028_v24  ;;  %v6020_v36 = vld [vmem:[%s8229_s14 + $0x40] sm:$0xf] }
 0x131   : > { %v6156_v29 = vld [vmem:[%s8229_s14 + $0x150] sm:$0xf]  ;;  %4156 = vmatpush.bf16.msra.mxu0 %v8257_v17  ;;  %v7255_v31 = vld [vmem:[%s8229_s14 + $0x154] sm:$0xf0]  ;;  %v8283_v34 = vor.u32 %v7239_v28, %v6092_v27  ;;  %v7221_v37 = vld [vmem:[%s8229_s14 + $0x44] sm:$0xf0] }
 0x132   : > { %10623 = vst [vmem:[#allocation3_spill] sm:$0xff] %v8276_v30  ;;  %v6220_v32 = vld [vmem:[%s8229_s14 + $0x1d0] sm:$0xf]  ;;  %v7271_v33 = vld [vmem:[%s8229_s14 + $0x1d4] sm:$0xf0]  ;;  %4175 = vmatpush.bf16.msra.mxu1 %v8259_v18  ;;  %v8285_v35 = vor.u32 %v7255_v31, %v6156_v29  ;;  %v8299_v45 = vor.u32 %v7221_v37, %v6020_v36 }
 0x133   : > { %4194 = vmatpush.bf16.msra.mxu2 %v8265_v22  ;;  %10624 = vst [vmem:[#allocation4_spill] sm:$0xff] %v8283_v34  ;;  %v6084_v38 = vld [vmem:[%s8229_s14 + $0xc0] sm:$0xf]  ;;  %v8291_v39 = vor.u32 %v7271_v33, %v6220_v32  ;;  %v7237_v40 = vld [vmem:[%s8229_s14 + $0xc4] sm:$0xf0] }
 0x134   : > { %4213 = vmatpush.bf16.msra.mxu3 %v8270_v26  ;;  %v6148_v41 = vld [vmem:[%s8229_s14 + $0x140] sm:$0xf]  ;;  %v7253_v42 = vld [vmem:[%s8229_s14 + $0x144] sm:$0xf0]  ;;  %10626 = vst [vmem:[#allocation6_spill] sm:$0xff] %v8299_v45  ;;  %v8303_v46 = vor.u32 %v7237_v40, %v6084_v38 }
 0x135   : > { %10625 = vst [vmem:[#allocation5_spill] sm:$0xff] %v8291_v39  ;;  %v6212_v43 = vld [vmem:[%s8229_s14 + $0x1c0] sm:$0xf]  ;;  %v7269_v44 = vld [vmem:[%s8229_s14 + $0x1c4] sm:$0xf0]  ;;  %4157 = vmatpush.bf16.msra.mxu0 %v8276_v30  ;;  %v8305_v47 = vor.u32 %v7253_v42, %v6148_v41 }
 0x136   : > { %4176 = vmatpush.bf16.msra.mxu1 %v8283_v34  ;;  %10627 = vst [vmem:[#allocation7_spill] sm:$0xff] %v8303_v46  ;;  %v6012_v48 = vld [vmem:[%s8229_s14 + $0x30] sm:$0xf]  ;;  %v7219_v49 = vld [vmem:[%s8229_s14 + $0x34] sm:$0xf0]  ;;  %v8311_v51 = vor.u32 %v7269_v44, %v6212_v43 }
 0x137   : > { %4195 = vmatpush.bf16.msra.mxu2 %v8285_v35  ;;  %10628 = vst [vmem:[#allocation8_spill] sm:$0xff] %v8305_v47  ;;  %v6076_v50 = vld [vmem:[%s8229_s14 + $0xb0] sm:$0xf]  ;;  %v7235_v52 = vld [vmem:[%s8229_s14 + $0xb4] sm:$0xf0]  ;;  %v8319_v57 = vor.u32 %v7219_v49, %v6012_v48 }
 0x138   : > { %4214 = vmatpush.bf16.msra.mxu3 %v8291_v39  ;;  %10629 = vst [vmem:[#allocation9_spill] sm:$0xff] %v8311_v51  ;;  %v6140_v53 = vld [vmem:[%s8229_s14 + $0x130] sm:$0xf]  ;;  %v7251_v54 = vld [vmem:[%s8229_s14 + $0x134] sm:$0xf0]  ;;  %v8323_v58 = vor.u32 %v7235_v52, %v6076_v50 }
 0x139   : > { %v6204_v55 = vld [vmem:[%s8229_s14 + $0x1b0] sm:$0xf]  ;;  %v7267_v56 = vld [vmem:[%s8229_s14 + $0x1b4] sm:$0xf0]  ;;  %4158 = vmatpush.bf16.msra.mxu0 %v8299_v45  ;;  %10630 = vst [vmem:[#allocation10_spill] sm:$0xff] %v8319_v57  ;;  %v8325_v59 = vor.u32 %v7251_v54, %v6140_v53 }
 0x13a   : > { %4177 = vmatpush.bf16.msra.mxu1 %v8303_v46  ;;  %10631 = vst [vmem:[#allocation11_spill] sm:$0xff] %v8323_v58  ;;  %v6004_v60 = vld [vmem:[%s8229_s14 + $0x20] sm:$0xf]  ;;  %v7217_v61 = vld [vmem:[%s8229_s14 + $0x24] sm:$0xf0]  ;;  %v8331_v63 = vor.u32 %v7267_v56, %v6204_v55 }
 0x13b   : > { %4196 = vmatpush.bf16.msra.mxu2 %v8305_v47  ;;  %10632 = vst [vmem:[#allocation12_spill] sm:$0xff] %v8325_v59  ;;  %v6068_v62 = vld [vmem:[%s8229_s14 + $0xa0] sm:$0xf]  ;;  %v7233_v0 = vld [vmem:[%s8229_s14 + $0xa4] sm:$0xf0]  ;;  %v8339_v6 = vor.u32 %v7217_v61, %v6004_v60 }
 0x13c   : > { %4215 = vmatpush.bf16.msra.mxu3 %v8311_v51  ;;  %10633 = vst [vmem:[#allocation13_spill] sm:$0xff] %v8331_v63  ;;  %v6132_v1 = vld [vmem:[%s8229_s14 + $0x120] sm:$0xf]  ;;  %v7249_v2 = vld [vmem:[%s8229_s14 + $0x124] sm:$0xf0]  ;;  %v8343_v7 = vor.u32 %v7233_v0, %v6068_v62 }
 0x13d   : > { %v6196_v3 = vld [vmem:[%s8229_s14 + $0x1a0] sm:$0xf]  ;;  %v7265_v5 = vld [vmem:[%s8229_s14 + $0x1a4] sm:$0xf0]  ;;  %4159 = vmatpush.bf16.msra.mxu0 %v8319_v57  ;;  %10634 = vst [vmem:[#allocation14_spill] sm:$0xff] %v8339_v6  ;;  %v8345_v10 = vor.u32 %v7249_v2, %v6132_v1 }
 0x13e   : > { %4178 = vmatpush.bf16.msra.mxu1 %v8323_v58  ;;  %10635 = vst [vmem:[#allocation15_spill] sm:$0xff] %v8343_v7  ;;  %v5996_v11 = vld [vmem:[%s8229_s14 + $0x10] sm:$0xf]  ;;  %v7215_v12 = vld [vmem:[%s8229_s14 + $0x14] sm:$0xf0]  ;;  %v8351_v15 = vor.u32 %v7265_v5, %v6196_v3 }
 0x13f   : > { %4197 = vmatpush.bf16.msra.mxu2 %v8325_v59  ;;  %10636 = vst [vmem:[#allocation16_spill] sm:$0xff] %v8345_v10  ;;  %v6060_v14 = vld [vmem:[%s8229_s14 + $0x90] sm:$0xf]  ;;  %v7231_v16 = vld [vmem:[%s8229_s14 + $0x94] sm:$0xf0]  ;;  %v8360_v25 = vor.u32 %v7215_v12, %v5996_v11 }
 0x140   : > { %4216 = vmatpush.bf16.msra.mxu3 %v8331_v63  ;;  %10637 = vst [vmem:[#allocation17_spill] sm:$0xff] %v8351_v15  ;;  %v6124_v19 = vld [vmem:[%s8229_s14 + $0x110] sm:$0xf]  ;;  %v7247_v20 = vld [vmem:[%s8229_s14 + $0x114] sm:$0xf0]  ;;  %v8367_v31 = vor.u32 %v7231_v16, %v6060_v14 }
 0x141   : > { %v6188_v21 = vld [vmem:[%s8229_s14 + $0x190] sm:$0xf]  ;;  %v7263_v23 = vld [vmem:[%s8229_s14 + $0x194] sm:$0xf0]  ;;  %v5988_v24 = vld [vmem:[%s8229_s14] sm:$0xf]  ;;  %4160 = vmatpush.bf16.msra.mxu0 %v8339_v6  ;;  %v8369_v32 = vor.u32 %v7247_v20, %v6124_v19 }
 0x142   : > { %10638 = vst [vmem:[#allocation18_spill] sm:$0xff] %v8360_v25  ;;  %v7213_v27 = vld [vmem:[%s8229_s14 + $0x4] sm:$0xf0]  ;;  %v6052_v28 = vld [vmem:[%s8229_s14 + $0x80] sm:$0xf]  ;;  %4179 = vmatpush.bf16.msra.mxu1 %v8343_v7  ;;  %v8375_v38 = vor.u32 %v7263_v23, %v6188_v21 }
 0x143   : > { %v7229_v29 = vld [vmem:[%s8229_s14 + $0x84] sm:$0xf0]  ;;  %4198 = vmatpush.bf16.msra.mxu2 %v8345_v10  ;;  %10639 = vst [vmem:[#allocation19_spill] sm:$0xff] %v8367_v31  ;;  %v6116_v33 = vld [vmem:[%s8229_s14 + $0x100] sm:$0xf]  ;;  %v8385_v50 = vor.u32 %v7213_v27, %v5988_v24 }
 0x144   : > { %10640 = vst [vmem:[#allocation20_spill] sm:$0xff] %v8369_v32  ;;  %v7245_v36 = vld [vmem:[%s8229_s14 + $0x104] sm:$0xf0]  ;;  %v6180_v37 = vld [vmem:[%s8229_s14 + $0x180] sm:$0xf]  ;;  %4217 = vmatpush.bf16.msra.mxu3 %v8351_v15  ;;  %v8392_v55 = vor.u32 %v7229_v29, %v6052_v28 }
 0x145   : > { %10641 = vst [vmem:[#allocation21_spill] sm:$0xff] %v8375_v38  ;;  %v7261_v40 = vld [vmem:[%s8229_s14 + $0x184] sm:$0xf0]  ;;  %v5860_v41 = vld [vmem:[%s8217_s10] sm:$0xf]  ;;  %4161 = vmatpush.bf16.msra.mxu0 %v8360_v25  ;;  %v8394_v56 = vor.u32 %v7245_v36, %v6116_v33 }
 0x146   : > { %v7156_v42 = vld [vmem:[%s8217_s10 + $0x3c] sm:$0xf0]  ;;  %v7148_v43 = vld [vmem:[%s8217_s10 + $0x4] sm:$0xf]  ;;  %v6428_v48 = vld [vmem:[%s8229_s14 + $0x370] sm:$0xf]  ;;  %4180 = vmatpush.bf16.msra.mxu1 %v8367_v31  ;;  %v8400_v0 = vor.u32 %v7261_v40, %v6180_v37 }
 0x147   : > { %v5862_v44 = vld [vmem:[%s8217_s10 + $0x40] sm:$0xf0]  ;;  %v7323_v49 = vld [vmem:[%s8229_s14 + $0x374] sm:$0xf0]  ;;  %10642 = vst [vmem:[#allocation22_spill] sm:$0xff] %v8385_v50  ;;  %4199 = vmatpush.bf16.msra.mxu2 %v8369_v32  ;;  %v8407_v11 = vor.u32 %v7156_v42, %v5860_v41 }
 0x148   : > { %v5868_v52 = vld [vmem:[%s8217_s10 + $0x8] sm:$0xf]  ;;  %v6364_v53 = vld [vmem:[%s8229_s14 + $0x2f0] sm:$0xf]  ;;  %v7307_v54 = vld [vmem:[%s8229_s14 + $0x2f4] sm:$0xf0]  ;;  %4218 = vmatpush.bf16.msra.mxu3 %v8375_v38  ;;  %v8402_v1 = vor.u32 %v7323_v49, %v6428_v48  ;;  %v8415_v20 = vor.u32 %v7148_v43, %v5862_v44 }
 0x149   : > { %10643 = vst [vmem:[#allocation23_spill] sm:$0xff] %v8392_v55  ;;  %v7157_v60 = vld [vmem:[%s8217_s10 + $0x44] sm:$0xf0]  ;;  %v7149_v61 = vld [vmem:[%s8217_s10 + $0xc] sm:$0xf]  ;;  %v8409_v12 = vor.u32 %v7307_v54, %v6364_v53  ;;  %4162 = vmatpush.bf16.msra.mxu0 %v8385_v50 }
 0x14a   : > { %10644 = vst [vmem:[#allocation24_spill] sm:$0xff] %v8394_v56  ;;  %v5870_v62 = vld [vmem:[%s8217_s10 + $0x48] sm:$0xf0]  ;;  %v6300_v2 = vld [vmem:[%s8229_s14 + $0x270] sm:$0xf]  ;;  %v8417_v21 = vor.u32 %v7157_v60, %v5868_v52  ;;  %4181 = vmatpush.bf16.msra.mxu1 %v8392_v55 }
 0x14b   : > { %10645 = vst [vmem:[#allocation25_spill] sm:$0xff] %v8400_v0  ;;  %v7291_v3 = vld [vmem:[%s8229_s14 + $0x274] sm:$0xf0]  ;;  %v6492_v5 = vld [vmem:[%s8229_s14 + $0x3f0] sm:$0xf]  ;;  %4200 = vmatpush.bf16.msra.mxu2 %v8394_v56  ;;  %v8423_v27 = vor.u32 %v7149_v61, %v5870_v62 }
 0x14c   : > { %10646 = vst [vmem:[#allocation26_spill] sm:$0xff] %v8402_v1  ;;  %v7339_v14 = vld [vmem:[%s8229_s14 + $0x3f4] sm:$0xf0]  ;;  %v6420_v16 = vld [vmem:[%s8229_s14 + $0x360] sm:$0xf]  ;;  %v8425_v28 = vor.u32 %v7291_v3, %v6300_v2  ;;  %4219 = vmatpush.bf16.msra.mxu3 %v8400_v0  ;;  %4163 = vmatmul.bf16.vlgmr.msra.gmra.mxu0 %v8407_v11 }
 0x14d   : > { %10647 = vst [vmem:[#allocation27_spill] sm:$0xff] %v8409_v12  ;;  %v7321_v19 = vld [vmem:[%s8229_s14 + $0x364] sm:$0xf0]  ;;  %v6356_v23 = vld [vmem:[%s8229_s14 + $0x2e0] sm:$0xf]  ;;  %v8429_v29 = vor.u32 %v7339_v14, %v6492_v5  ;;  %4182 = vmatmul.bf16.vlgmr.msra.gmra.mxu1 %v8415_v20 }
 0x14e   : > { %v7305_v24 = vld [vmem:[%s8229_s14 + $0x2e4] sm:$0xf0]  ;;  %10648 = vst [vmem:[#allocation28_spill] sm:$0xff] %v8425_v28  ;;  %v8431_v33 = vor.u32 %v7321_v19, %v6420_v16  ;;  %v6292_v36 = vld [vmem:[%s8229_s14 + $0x260] sm:$0xf]  ;;  %4250 = vmatpush.bf16.msrb.mxu1 %v8409_v12  ;;  %4201 = vmatmul.bf16.vlgmr.msra.gmra.mxu2 %v8417_v21 }
 0x14f   : > { %4269 = vmatpush.bf16.msrb.mxu2 %v8402_v1  ;;  %10649 = vst [vmem:[#allocation29_spill] sm:$0xff] %v8429_v29  ;;  %v7289_v37 = vld [vmem:[%s8229_s14 + $0x264] sm:$0xf0]  ;;  %v6484_v40 = vld [vmem:[%s8229_s14 + $0x3e0] sm:$0xf]  ;;  %v8438_v41 = vor.u32 %v7305_v24, %v6356_v23  ;;  %4220 = vmatmul.bf16.vlgmr.msra.gmra.mxu3 %v8423_v27 }
 0x150   : > { %10650 = vst [vmem:[#allocation30_spill] sm:$0xff] %v8431_v33  ;;  %v7337_v42 = vld [vmem:[%s8229_s14 + $0x3e4] sm:$0xf0]  ;;  %v6412_v43 = vld [vmem:[%s8229_s14 + $0x350] sm:$0xf]  ;;  %4231 = vmatpush.bf16.msrb.mxu0 %v8425_v28  ;;  %v8449_v52 = vor.u32 %v7289_v37, %v6292_v36  ;;  %4288 = vmatpush.bf16.msrb.mxu3 %v8429_v29 }
 0x151   : > { %10651 = vst [vmem:[#allocation31_spill] sm:$0xff] %v8438_v41  ;;  %v7319_v44 = vld [vmem:[%s8229_s14 + $0x354] sm:$0xf0]  ;;  %v6348_v48 = vld [vmem:[%s8229_s14 + $0x2d0] sm:$0xf]  ;;  %v8453_v53 = vor.u32 %v7337_v42, %v6484_v40 }
 0x152   : > { %v7303_v49 = vld [vmem:[%s8229_s14 + $0x2d4] sm:$0xf0]  ;;  %10652 = vst [vmem:[#allocation32_spill] sm:$0xff] %v8449_v52  ;;  %v8455_v54 = vor.u32 %v7319_v44, %v6412_v43  ;;  %v6284_v60 = vld [vmem:[%s8229_s14 + $0x250] sm:$0xf]  ;;  %4251 = vmatpush.bf16.msrb.mxu1 %v8438_v41 }
 0x153   : > { %4270 = vmatpush.bf16.msrb.mxu2 %v8431_v33  ;;  %10653 = vst [vmem:[#allocation33_spill] sm:$0xff] %v8453_v53  ;;  %v7287_v61 = vld [vmem:[%s8229_s14 + $0x254] sm:$0xf0]  ;;  %v6476_v62 = vld [vmem:[%s8229_s14 + $0x3d0] sm:$0xf]  ;;  %v8461_v2 = vor.u32 %v7303_v49, %v6348_v48 }
 0x154   : > { %10654 = vst [vmem:[#allocation34_spill] sm:$0xff] %v8455_v54  ;;  %v7335_v3 = vld [vmem:[%s8229_s14 + $0x3d4] sm:$0xf0]  ;;  %v6404_v5 = vld [vmem:[%s8229_s14 + $0x340] sm:$0xf]  ;;  %4232 = vmatpush.bf16.msrb.mxu0 %v8449_v52  ;;  %v8469_v23 = vor.u32 %v7287_v61, %v6284_v60  ;;  %4289 = vmatpush.bf16.msrb.mxu3 %v8453_v53 }
 0x155   : > { %10655 = vst [vmem:[#allocation35_spill] sm:$0xff] %v8461_v2  ;;  %v7317_v14 = vld [vmem:[%s8229_s14 + $0x344] sm:$0xf0]  ;;  %v6340_v16 = vld [vmem:[%s8229_s14 + $0x2c0] sm:$0xf]  ;;  %v8476_v40 = vor.u32 %v7335_v3, %v6476_v62 }
 0x156   : > { %v7301_v19 = vld [vmem:[%s8229_s14 + $0x2c4] sm:$0xf0]  ;;  %10656 = vst [vmem:[#allocation36_spill] sm:$0xff] %v8469_v23  ;;  %v6276_v24 = vld [vmem:[%s8229_s14 + $0x240] sm:$0xf]  ;;  %v8478_v42 = vor.u32 %v7317_v14, %v6404_v5  ;;  %4252 = vmatpush.bf16.msrb.mxu1 %v8461_v2 }
 0x157   : > { %v7285_v36 = vld [vmem:[%s8229_s14 + $0x244] sm:$0xf0]  ;;  %v6468_v37 = vld [vmem:[%s8229_s14 + $0x3c0] sm:$0xf]  ;;  %4271 = vmatpush.bf16.msrb.mxu2 %v8455_v54  ;;  %10657 = vst [vmem:[#allocation37_spill] sm:$0xff] %v8476_v40  ;;  %v8484_v49 = vor.u32 %v7301_v19, %v6340_v16 }
 0x158   : > { %10658 = vst [vmem:[#allocation38_spill] sm:$0xff] %v8478_v42  ;;  %v7333_v43 = vld [vmem:[%s8229_s14 + $0x3c4] sm:$0xf0]  ;;  %v5924_v44 = vld [vmem:[%s8217_s10 + $0x80] sm:$0xf]  ;;  %4233 = vmatpush.bf16.msrb.mxu0 %v8469_v23  ;;  %v8494_v14 = vor.u32 %v7285_v36, %v6276_v24  ;;  %4290 = vmatpush.bf16.msrb.mxu3 %v8476_v40 }
 0x159   : > { %v7172_v48 = vld [vmem:[%s8217_s10 + $0xbc] sm:$0xf0]  ;;  %10659 = vst [vmem:[#allocation39_spill] sm:$0xff] %v8484_v49  ;;  %v7164_v60 = vld [vmem:[%s8217_s10 + $0x84] sm:$0xf]  ;;  %v8501_v41 = vor.u32 %v7333_v43, %v6468_v37 }
 0x15a   : > { %v5926_v61 = vld [vmem:[%s8217_s10 + $0xc0] sm:$0xf0]  ;;  %v6396_v53 = vld [vmem:[%s8229_s14 + $0x330] sm:$0xf]  ;;  %v7315_v62 = vld [vmem:[%s8229_s14 + $0x334] sm:$0xf0]  ;;  %4253 = vmatpush.bf16.msrb.mxu1 %v8484_v49  ;;  %v8509_v24 = vor.u32 %v7172_v48, %v5924_v44 }
 0x15b   : > { %v5932_v3 = vld [vmem:[%s8217_s10 + $0x88] sm:$0xf]  ;;  %v6332_v54 = vld [vmem:[%s8229_s14 + $0x2b0] sm:$0xf]  ;;  %v7299_v5 = vld [vmem:[%s8229_s14 + $0x2b4] sm:$0xf0]  ;;  %4272 = vmatpush.bf16.msrb.mxu2 %v8478_v42  ;;  %v8503_v52 = vor.u32 %v7315_v62, %v6396_v53  ;;  %v8516_v42 = vor.u32 %v7164_v60, %v5926_v61 }
 0x15c   : > { %10660 = vst [vmem:[#allocation40_spill] sm:$0xff] %v8494_v14  ;;  %v7173_v2 = vld [vmem:[%s8217_s10 + $0xc4] sm:$0xf0]  ;;  %v7165_v16 = vld [vmem:[%s8217_s10 + $0x8c] sm:$0xf]  ;;  %v8511_v36 = vor.u32 %v7299_v5, %v6332_v54  ;;  %4234 = vmatpush.bf16.msrb.mxu0 %v8494_v14  ;;  %4291 = vmatpush.bf16.msrb.mxu3 %v8501_v41 }
 0x15d   : > { %v5934_v19 = vld [vmem:[%s8217_s10 + $0xc8] sm:$0xf0]  ;;  %10661 = vst [vmem:[#allocation41_spill] sm:$0xff] %v8501_v41  ;;  %v6268_v33 = vld [vmem:[%s8229_s14 + $0x230] sm:$0xf]  ;;  %v8518_v37 = vor.u32 %v7173_v2, %v5932_v3  ;;  %4168 = vmatmul.bf16.gmra.mxu0 %v8509_v24  ;;  %4187 = vmatmul.bf16.gmra.mxu1 %v8516_v42 }
 0x15e   : > { %10662 = vst [vmem:[#allocation42_spill] sm:$0xff] %v8503_v52  ;;  %v7283_v29 = vld [vmem:[%s8229_s14 + $0x234] sm:$0xf0]  ;;  %v6460_v23 = vld [vmem:[%s8229_s14 + $0x3b0] sm:$0xf]  ;;  %v8523_v44 = vor.u32 %v7165_v16, %v5934_v19  ;;  %4254 = vmatpush.bf16.msrb.mxu1 %v8511_v36 }
 0x15f   : > { %10663 = vst [vmem:[#allocation43_spill] sm:$0xff] %v8511_v36  ;;  %v7331_v12 = vld [vmem:[%s8229_s14 + $0x3b4] sm:$0xf0]  ;;  %v6388_v40 = vld [vmem:[%s8229_s14 + $0x320] sm:$0xf]  ;;  %v8525_v54 = vor.u32 %v7283_v29, %v6268_v33  ;;  %4273 = vmatpush.bf16.msrb.mxu2 %v8503_v52 }
 0x160   : > { %v7313_v28 = vld [vmem:[%s8229_s14 + $0x324] sm:$0xf0]  ;;  %v6324_v53 = vld [vmem:[%s8229_s14 + $0x2a0] sm:$0xf]  ;;  %v8529_v48 = vor.u32 %v7331_v12, %v6460_v23  ;;  %v6380_v3 = vld [vmem:[%s8229_s14 + $0x310] sm:$0xf]  ;;  %4206 = vmatmul.bf16.gmra.mxu2 %v8518_v37  ;;  %4225 = vmatmul.bf16.gmra.mxu3 %v8523_v44 }
 0x161   : > { %v7297_v43 = vld [vmem:[%s8229_s14 + $0x2a4] sm:$0xf0]  ;;  %10664 = vst [vmem:[#allocation44_spill] sm:$0xff] %v8525_v54  ;;  %v8531_v2 = vor.u32 %v7313_v28, %v6388_v40  ;;  %v6260_v60 = vld [vmem:[%s8229_s14 + $0x220] sm:$0xf]  ;;  %4235 = vmatpush.bf16.msrb.mxu0 %v8525_v54 }
 0x162   : > { %10665 = vst [vmem:[#allocation45_spill] sm:$0xff] %v8529_v48  ;;  %v7281_v61 = vld [vmem:[%s8229_s14 + $0x224] sm:$0xf0]  ;;  %v6452_v62 = vld [vmem:[%s8229_s14 + $0x3a0] sm:$0xf]  ;;  %v8538_v29 = vor.u32 %v7297_v43, %v6324_v53  ;;  %4292 = vmatpush.bf16.msrb.mxu3 %v8529_v48 }
 0x163   : > { %10666 = vst [vmem:[#allocation46_spill] sm:$0xff] %v8531_v2  ;;  %v7329_v33 = vld [vmem:[%s8229_s14 + $0x3a4] sm:$0xf0]  ;;  %v7311_v5 = vld [vmem:[%s8229_s14 + $0x314] sm:$0xf0]  ;;  %v8549_v23 = vor.u32 %v7281_v61, %v6260_v60  ;;  %4274 = vmatpush.bf16.msrb.mxu2 %v8531_v2 }
 0x164   : > { %10667 = vst [vmem:[#allocation47_spill] sm:$0xff] %v8538_v29  ;;  %v6316_v12 = vld [vmem:[%s8229_s14 + $0x290] sm:$0xf]  ;;  %v7295_v28 = vld [vmem:[%s8229_s14 + $0x294] sm:$0xf0]  ;;  %v8554_v16 = vor.u32 %v7329_v33, %v6452_v62  ;;  %v8556_v19 = vor.u32 %v7311_v5, %v6380_v3  ;;  %4255 = vmatpush.bf16.msrb.mxu1 %v8538_v29 }
 0x165   : > { %10668 = vst [vmem:[#allocation48_spill] sm:$0xff] %v8549_v23  ;;  %v6252_v40 = vld [vmem:[%s8229_s14 + $0x210] sm:$0xf]  ;;  %v7279_v53 = vld [vmem:[%s8229_s14 + $0x214] sm:$0xf0]  ;;  %v8562_v60 = vor.u32 %v7295_v28, %v6316_v12  ;;  %4236 = vmatpush.bf16.msrb.mxu0 %v8549_v23 }
 0x166   : > { %10669 = vst [vmem:[#allocation49_spill] sm:$0xff] %v8554_v16  ;;  %v6444_v43 = vld [vmem:[%s8229_s14 + $0x390] sm:$0xf]  ;;  %v7327_v36 = vld [vmem:[%s8229_s14 + $0x394] sm:$0xf0]  ;;  %v8571_v3 = vor.u32 %v7279_v53, %v6252_v40  ;;  %4293 = vmatpush.bf16.msrb.mxu3 %v8554_v16 }
 0x167   : > { %10670 = vst [vmem:[#allocation50_spill] sm:$0xff] %v8556_v19  ;;  %v6372_v61 = vld [vmem:[%s8229_s14 + $0x300] sm:$0xf]  ;;  %v7309_v48 = vld [vmem:[%s8229_s14 + $0x304] sm:$0xf0]  ;;  %4275 = vmatpush.bf16.msrb.mxu2 %v8556_v19  ;;  %v8578_v29 = vor.u32 %v7327_v36, %v6444_v43 }
 0x168   : > { %10671 = vst [vmem:[#allocation51_spill] sm:$0xff] %v8562_v60  ;;  %v6308_v2 = vld [vmem:[%s8229_s14 + $0x280] sm:$0xf]  ;;  %v7293_v54 = vld [vmem:[%s8229_s14 + $0x284] sm:$0xf0]  ;;  %v8580_v52 = vor.u32 %v7309_v48, %v6372_v61  ;;  %4256 = vmatpush.bf16.msrb.mxu1 %v8562_v60 }
 0x169   : > { %v6684_v62 = vld [vmem:[%s8229_s14 + $0x570] sm:$0xf]  ;;  %v7387_v33 = vld [vmem:[%s8229_s14 + $0x574] sm:$0xf0]  ;;  %10672 = vst [vmem:[#allocation52_spill] sm:$0xff] %v8571_v3  ;;  %v8586_v41 = vor.u32 %v7293_v54, %v6308_v2  ;;  %4237 = vmatpush.bf16.msrb.mxu0 %v8571_v3 }
 0x16a   : > { %v6244_v5 = vld [vmem:[%s8229_s14 + $0x200] sm:$0xf]  ;;  %v6620_v12 = vld [vmem:[%s8229_s14 + $0x4f0] sm:$0xf]  ;;  %v7371_v28 = vld [vmem:[%s8229_s14 + $0x4f4] sm:$0xf0]  ;;  %v8592_v43 = vor.u32 %v7387_v33, %v6684_v62  ;;  %4294 = vmatpush.bf16.msrb.mxu3 %v8578_v29 }
 0x16b   : > { %10673 = vst [vmem:[#allocation53_spill] sm:$0xff] %v8578_v29  ;;  %v7277_v23 = vld [vmem:[%s8229_s14 + $0x204] sm:$0xf0]  ;;  %v6436_v40 = vld [vmem:[%s8229_s14 + $0x380] sm:$0xf]  ;;  %v8597_v1 = vor.u32 %v7371_v28, %v6620_v12  ;;  %4276 = vmatpush.bf16.msrb.mxu2 %v8580_v52 }
 0x16c   : > { %10674 = vst [vmem:[#allocation54_spill] sm:$0xff] %v8580_v52  ;;  %v7325_v53 = vld [vmem:[%s8229_s14 + $0x384] sm:$0xf0]  ;;  %v5876_v16 = vld [vmem:[%s8217_s10 + $0x10] sm:$0xf]  ;;  %v8603_v2 = vor.u32 %v7277_v23, %v6244_v5  ;;  %4257 = vmatpush.bf16.msrb.mxu1 %v8586_v41 }
 0x16d   : > { %10675 = vst [vmem:[#allocation55_spill] sm:$0xff] %v8586_v41  ;;  %v7158_v49 = vld [vmem:[%s8217_s10 + $0x4c] sm:$0xf0]  ;;  %v7150_v19 = vld [vmem:[%s8217_s10 + $0x14] sm:$0xf]  ;;  %v8610_v12 = vor.u32 %v7325_v53, %v6436_v40 }
 0x16e   : > { %v5878_v36 = vld [vmem:[%s8217_s10 + $0x50] sm:$0xf0]  ;;  %10676 = vst [vmem:[#allocation56_spill] sm:$0xff] %v8592_v43  ;;  %v6556_v48 = vld [vmem:[%s8229_s14 + $0x470] sm:$0xf]  ;;  %v8626_v53 = vor.u32 %v7158_v49, %v5876_v16  ;;  %4238 = vmatpush.bf16.msrb.mxu0 %v8603_v2 }
 0x16f   : > { %v7355_v61 = vld [vmem:[%s8229_s14 + $0x474] sm:$0xf0]  ;;  %v6748_v14 = vld [vmem:[%s8229_s14 + $0x5f0] sm:$0xf]  ;;  %10677 = vst [vmem:[#allocation57_spill] sm:$0xff] %v8597_v1  ;;  %4345 = vmatpush.bf16.msra.mxu2 %v8592_v43  ;;  %v8628_v38 = vor.u32 %v7150_v19, %v5878_v36  ;;  %4295 = vmatpush.bf16.msrb.mxu3 %v8610_v12 }
 0x170   : > { %v7403_v60 = vld [vmem:[%s8229_s14 + $0x5f4] sm:$0xf0]  ;;  %v6676_v0 = vld [vmem:[%s8229_s14 + $0x560] sm:$0xf]  ;;  %v7385_v54 = vld [vmem:[%s8229_s14 + $0x564] sm:$0xf0]  ;;  %v8613_v50 = vor.u32 %v7355_v61, %v6556_v48  ;;  %4326 = vmatpush.bf16.msra.mxu1 %v8597_v1 }
 0x171   : > { %10678 = vst [vmem:[#allocation58_spill] sm:$0xff] %v8603_v2  ;;  %v5884_v55 = vld [vmem:[%s8217_s10 + $0x18] sm:$0xf]  ;;  %v7151_v33 = vld [vmem:[%s8217_s10 + $0x1c] sm:$0xf]  ;;  %v8619_v5 = vor.u32 %v7403_v60, %v6748_v14  ;;  %v8621_v56 = vor.u32 %v7385_v54, %v6676_v0  ;;  %4239 = vmatmul.bf16.vlgmr.msrb.gmra.mxu0 %v8626_v53  ;;  %4258 = vmatmul.bf16.vlgmr.msrb.gmra.mxu1 %v8628_v38 }
 0x172   : > { %v7159_v62 = vld [vmem:[%s8217_s10 + $0x54] sm:$0xf0]  ;;  %10679 = vst [vmem:[#allocation59_spill] sm:$0xff] %v8610_v12  ;;  %v5886_v28 = vld [vmem:[%s8217_s10 + $0x58] sm:$0xf0]  ;;  %4307 = vmatpush.bf16.msra.mxu0 %v8613_v50 }
 0x173   : > { %10680 = vst [vmem:[#allocation60_spill] sm:$0xff] %v8613_v50  ;;  %v6548_v3 = vld [vmem:[%s8229_s14 + $0x460] sm:$0xf]  ;;  %v7353_v23 = vld [vmem:[%s8229_s14 + $0x464] sm:$0xf0]  ;;  %v8635_v0 = vor.u32 %v7159_v62, %v5884_v55  ;;  %v8637_v14 = vor.u32 %v7151_v33, %v5886_v28  ;;  %4364 = vmatpush.bf16.msra.mxu3 %v8619_v5  ;;  %4346 = vmatpush.bf16.msra.mxu2 %v8621_v56 }
 0x174   : > { %10681 = vst [vmem:[#allocation61_spill] sm:$0xff] %v8619_v5  ;;  %v6612_v29 = vld [vmem:[%s8229_s14 + $0x4e0] sm:$0xf]  ;;  %v7369_v52 = vld [vmem:[%s8229_s14 + $0x4e4] sm:$0xf0]  ;;  %v8641_v49 = vor.u32 %v7353_v23, %v6548_v3 }
 0x175   : > { %10682 = vst [vmem:[#allocation62_spill] sm:$0xff] %v8621_v56  ;;  %v6740_v40 = vld [vmem:[%s8229_s14 + $0x5e0] sm:$0xf]  ;;  %v7401_v48 = vld [vmem:[%s8229_s14 + $0x5e4] sm:$0xf0]  ;;  %v8643_v16 = vor.u32 %v7369_v52, %v6612_v29  ;;  %4277 = vmatmul.bf16.vlgmr.msrb.gmra.mxu2 %v8635_v0  ;;  %4296 = vmatmul.bf16.vlgmr.msrb.gmra.mxu3 %v8637_v14 }
 0x176   : > { %v6668_v61 = vld [vmem:[%s8229_s14 + $0x550] sm:$0xf]  ;;  %v7383_v43 = vld [vmem:[%s8229_s14 + $0x554] sm:$0xf0]  ;;  %10683 = vst [vmem:[#allocation63_spill] sm:$0xff] %v8641_v49  ;;  %v8649_v55 = vor.u32 %v7401_v48, %v6740_v40  ;;  %4308 = vmatpush.bf16.msra.mxu0 %v8641_v49 }
 0x177   : > { %10684 = vst [vmem:[#allocation64_spill] sm:$0xff] %v8643_v16  ;;  %v6540_v19 = vld [vmem:[%s8229_s14 + $0x450] sm:$0xf]  ;;  %v7351_v60 = vld [vmem:[%s8229_s14 + $0x454] sm:$0xf0]  ;;  %v8651_v36 = vor.u32 %v7383_v43, %v6668_v61  ;;  %4327 = vmatpush.bf16.msra.mxu1 %v8643_v16 }
 0x178   : > { %10685 = vst [vmem:[#allocation65_spill] sm:$0xff] %v8649_v55  ;;  %v6604_v54 = vld [vmem:[%s8229_s14 + $0x4d0] sm:$0xf]  ;;  %v7367_v62 = vld [vmem:[%s8229_s14 + $0x4d4] sm:$0xf0]  ;;  %v8665_v43 = vor.u32 %v7351_v60, %v6540_v19  ;;  %4365 = vmatpush.bf16.msra.mxu3 %v8649_v55 }
 0x179   : > { %10686 = vst [vmem:[#allocation66_spill] sm:$0xff] %v8651_v36  ;;  %v6732_v33 = vld [vmem:[%s8229_s14 + $0x5d0] sm:$0xf]  ;;  %v7399_v52 = vld [vmem:[%s8229_s14 + $0x5d4] sm:$0xf0]  ;;  %v8667_v28 = vor.u32 %v7367_v62, %v6604_v54  ;;  %4347 = vmatpush.bf16.msra.mxu2 %v8651_v36 }
 0x17a   : > { %v6660_v29 = vld [vmem:[%s8229_s14 + $0x540] sm:$0xf]  ;;  %v7381_v3 = vld [vmem:[%s8229_s14 + $0x544] sm:$0xf0]  ;;  %10687 = vst [vmem:[#allocation67_spill] sm:$0xff] %v8665_v43  ;;  %v8673_v48 = vor.u32 %v7399_v52, %v6732_v33  ;;  %4309 = vmatpush.bf16.msra.mxu0 %v8665_v43 }
 0x17b   : > { %10688 = vst [vmem:[#allocation68_spill] sm:$0xff] %v8667_v28  ;;  %v6532_v23 = vld [vmem:[%s8229_s14 + $0x440] sm:$0xf]  ;;  %v7349_v40 = vld [vmem:[%s8229_s14 + $0x444] sm:$0xf0]  ;;  %v8675_v61 = vor.u32 %v7381_v3, %v6660_v29  ;;  %4328 = vmatpush.bf16.msra.mxu1 %v8667_v28 }
 0x17c   : > { %10689 = vst [vmem:[#allocation69_spill] sm:$0xff] %v8673_v48  ;;  %v6596_v49 = vld [vmem:[%s8229_s14 + $0x4c0] sm:$0xf]  ;;  %v7365_v16 = vld [vmem:[%s8229_s14 + $0x4c4] sm:$0xf0]  ;;  %v8685_v33 = vor.u32 %v7349_v40, %v6532_v23  ;;  %4366 = vmatpush.bf16.msra.mxu3 %v8673_v48 }
 0x17d   : > { %10690 = vst [vmem:[#allocation70_spill] sm:$0xff] %v8675_v61  ;;  %v6724_v19 = vld [vmem:[%s8229_s14 + $0x5c0] sm:$0xf]  ;;  %v7397_v60 = vld [vmem:[%s8229_s14 + $0x5c4] sm:$0xf0]  ;;  %v8687_v52 = vor.u32 %v7365_v16, %v6596_v49  ;;  %4348 = vmatpush.bf16.msra.mxu2 %v8675_v61 }
 0x17e   : > { %v6652_v54 = vld [vmem:[%s8229_s14 + $0x530] sm:$0xf]  ;;  %v7379_v62 = vld [vmem:[%s8229_s14 + $0x534] sm:$0xf0]  ;;  %10691 = vst [vmem:[#allocation71_spill] sm:$0xff] %v8685_v33  ;;  %v8693_v43 = vor.u32 %v7397_v60, %v6724_v19  ;;  %4310 = vmatpush.bf16.msra.mxu0 %v8685_v33 }
 0x17f   : > { %10692 = vst [vmem:[#allocation72_spill] sm:$0xff] %v8687_v52  ;;  %v6524_v29 = vld [vmem:[%s8229_s14 + $0x430] sm:$0xf]  ;;  %v7347_v3 = vld [vmem:[%s8229_s14 + $0x434] sm:$0xf0]  ;;  %v8699_v49 = vor.u32 %v7379_v62, %v6652_v54  ;;  %4329 = vmatpush.bf16.msra.mxu1 %v8687_v52 }
 0x180   : > { %10693 = vst [vmem:[#allocation73_spill] sm:$0xff] %v8693_v43  ;;  %v5940_v36 = vld [vmem:[%s8217_s10 + $0x90] sm:$0xf]  ;;  %v7166_v23 = vld [vmem:[%s8217_s10 + $0x94] sm:$0xf]  ;;  %v8713_v62 = vor.u32 %v7347_v3, %v6524_v29  ;;  %4367 = vmatpush.bf16.msra.mxu3 %v8693_v43 }
 0x181   : > { %v7174_v28 = vld [vmem:[%s8217_s10 + $0xcc] sm:$0xf0]  ;;  %v5942_v40 = vld [vmem:[%s8217_s10 + $0xd0] sm:$0xf0]  ;;  %10694 = vst [vmem:[#allocation74_spill] sm:$0xff] %v8699_v49  ;;  %4349 = vmatpush.bf16.msra.mxu2 %v8699_v49 }
 0x182   : > { %v6588_v16 = vld [vmem:[%s8229_s14 + $0x4b0] sm:$0xf]  ;;  %v7363_v55 = vld [vmem:[%s8229_s14 + $0x4b4] sm:$0xf0]  ;;  %v6644_v1 = vld [vmem:[%s8229_s14 + $0x520] sm:$0xf]  ;;  %v8728_v32 = vor.u32 %v7174_v28, %v5940_v36  ;;  %v8730_v29 = vor.u32 %v7166_v23, %v5942_v40  ;;  %4311 = vmatpush.bf16.msra.mxu0 %v8713_v62 }
 0x183   : > { %v6716_v56 = vld [vmem:[%s8229_s14 + $0x5b0] sm:$0xf]  ;;  %v7395_v5 = vld [vmem:[%s8229_s14 + $0x5b4] sm:$0xf0]  ;;  %v7377_v48 = vld [vmem:[%s8229_s14 + $0x524] sm:$0xf0]  ;;  %v8715_v50 = vor.u32 %v7363_v55, %v6588_v16 }
 0x184   : > { %v5948_v61 = vld [vmem:[%s8217_s10 + $0x98] sm:$0xf]  ;;  %v7167_v60 = vld [vmem:[%s8217_s10 + $0x9c] sm:$0xf]  ;;  %10695 = vst [vmem:[#allocation75_spill] sm:$0xff] %v8713_v62  ;;  %v8721_v2 = vor.u32 %v7395_v5, %v6716_v56  ;;  %v8723_v33 = vor.u32 %v7377_v48, %v6644_v1  ;;  %4244 = vmatmul.bf16.gmra.mxu0 %v8728_v32  ;;  %4263 = vmatmul.bf16.gmra.mxu1 %v8730_v29 }
 0x185   : > { %v7175_v19 = vld [vmem:[%s8217_s10 + $0xd4] sm:$0xf0]  ;;  %v5950_v54 = vld [vmem:[%s8217_s10 + $0xd8] sm:$0xf0]  ;;  %10696 = vst [vmem:[#allocation76_spill] sm:$0xff] %v8715_v50  ;;  %4330 = vmatpush.bf16.msra.mxu1 %v8715_v50 }
 0x186   : > { %v6516_v12 = vld [vmem:[%s8229_s14 + $0x420] sm:$0xf]  ;;  %v7345_v41 = vld [vmem:[%s8229_s14 + $0x424] sm:$0xf0]  ;;  %10697 = vst [vmem:[#allocation77_spill] sm:$0xff] %v8721_v2  ;;  %v8735_v49 = vor.u32 %v7175_v19, %v5948_v61  ;;  %v8737_v56 = vor.u32 %v7167_v60, %v5950_v54  ;;  %4368 = vmatpush.bf16.msra.mxu3 %v8721_v2  ;;  %4350 = vmatpush.bf16.msra.mxu2 %v8723_v33 }
 0x187   : > { %10698 = vst [vmem:[#allocation78_spill] sm:$0xff] %v8723_v33  ;;  %v6580_v52 = vld [vmem:[%s8229_s14 + $0x4a0] sm:$0xf]  ;;  %v7361_v31 = vld [vmem:[%s8229_s14 + $0x4a4] sm:$0xf0]  ;;  %v8741_v1 = vor.u32 %v7345_v41, %v6516_v12 }
 0x188   : > { %v6708_v25 = vld [vmem:[%s8229_s14 + $0x5a0] sm:$0xf]  ;;  %v7393_v55 = vld [vmem:[%s8229_s14 + $0x5a4] sm:$0xf0]  ;;  %v6636_v3 = vld [vmem:[%s8229_s14 + $0x510] sm:$0xf]  ;;  %v8743_v5 = vor.u32 %v7361_v31, %v6580_v52  ;;  %4282 = vmatmul.bf16.gmra.mxu2 %v8735_v49  ;;  %4301 = vmatmul.bf16.gmra.mxu3 %v8737_v56 }
 0x189   : > { %v7375_v16 = vld [vmem:[%s8229_s14 + $0x514] sm:$0xf0]  ;;  %10699 = vst [vmem:[#allocation79_spill] sm:$0xff] %v8741_v1  ;;  %v6508_v36 = vld [vmem:[%s8229_s14 + $0x410] sm:$0xf]  ;;  %v8749_v48 = vor.u32 %v7393_v55, %v6708_v25  ;;  %4312 = vmatpush.bf16.msra.mxu0 %v8741_v1 }
 0x18a   : > { %10700 = vst [vmem:[#allocation80_spill] sm:$0xff] %v8743_v5  ;;  %v7343_v28 = vld [vmem:[%s8229_s14 + $0x414] sm:$0xf0]  ;;  %v8751_v61 = vor.u32 %v7375_v16, %v6636_v3  ;;  %v6572_v23 = vld [vmem:[%s8229_s14 + $0x490] sm:$0xf]  ;;  %4331 = vmatpush.bf16.msra.mxu1 %v8743_v5 }
 0x18b   : > { %10701 = vst [vmem:[#allocation81_spill] sm:$0xff] %v8749_v48  ;;  %v7359_v40 = vld [vmem:[%s8229_s14 + $0x494] sm:$0xf0]  ;;  %v6700_v41 = vld [vmem:[%s8229_s14 + $0x590] sm:$0xf]  ;;  %v8767_v60 = vor.u32 %v7343_v28, %v6508_v36  ;;  %4369 = vmatpush.bf16.msra.mxu3 %v8749_v48 }
 0x18c   : > { %10702 = vst [vmem:[#allocation82_spill] sm:$0xff] %v8751_v61  ;;  %v7391_v31 = vld [vmem:[%s8229_s14 + $0x594] sm:$0xf0]  ;;  %v6628_v12 = vld [vmem:[%s8229_s14 + $0x500] sm:$0xf]  ;;  %v8769_v54 = vor.u32 %v7359_v40, %v6572_v23  ;;  %4351 = vmatpush.bf16.msra.mxu2 %v8751_v61 }
 0x18d   : > { %v7373_v52 = vld [vmem:[%s8229_s14 + $0x504] sm:$0xf0]  ;;  %v6940_v25 = vld [vmem:[%s8229_s14 + $0x770] sm:$0xf]  ;;  %v7451_v19 = vld [vmem:[%s8229_s14 + $0x774] sm:$0xf0]  ;;  %v8776_v33 = vor.u32 %v7391_v31, %v6700_v41  ;;  %4313 = vmatpush.bf16.msra.mxu0 %v8767_v60 }
 0x18e   : > { %10703 = vst [vmem:[#allocation83_spill] sm:$0xff] %v8767_v60  ;;  %v6500_v55 = vld [vmem:[%s8229_s14 + $0x400] sm:$0xf]  ;;  %v7341_v3 = vld [vmem:[%s8229_s14 + $0x404] sm:$0xf0]  ;;  %v8778_v1 = vor.u32 %v7373_v52, %v6628_v12  ;;  %v8783_v23 = vor.u32 %v7451_v19, %v6940_v25  ;;  %4332 = vmatpush.bf16.msra.mxu1 %v8769_v54 }
 0x18f   : > { %10704 = vst [vmem:[#allocation84_spill] sm:$0xff] %v8769_v54  ;;  %v6564_v16 = vld [vmem:[%s8229_s14 + $0x480] sm:$0xf]  ;;  %v7357_v36 = vld [vmem:[%s8229_s14 + $0x484] sm:$0xf0]  ;;  %v8793_v31 = vor.u32 %v7341_v3, %v6500_v55  ;;  %4370 = vmatpush.bf16.msra.mxu3 %v8776_v33 }
 0x190   : > { %10705 = vst [vmem:[#allocation85_spill] sm:$0xff] %v8776_v33  ;;  %v6692_v28 = vld [vmem:[%s8229_s14 + $0x580] sm:$0xf]  ;;  %v7389_v5 = vld [vmem:[%s8229_s14 + $0x584] sm:$0xf0]  ;;  %v8795_v12 = vor.u32 %v7357_v36, %v6564_v16  ;;  %4352 = vmatpush.bf16.msra.mxu2 %v8778_v1 }
 0x191   : > { %10706 = vst [vmem:[#allocation86_spill] sm:$0xff] %v8778_v1  ;;  %v6812_v40 = vld [vmem:[%s8229_s14 + $0x670] sm:$0xf]  ;;  %v7419_v2 = vld [vmem:[%s8229_s14 + $0x674] sm:$0xf0]  ;;  %v8801_v19 = vor.u32 %v7389_v5, %v6692_v28  ;;  %4314 = vmatpush.bf16.msra.mxu0 %v8793_v31 }
 0x192   : > { %10707 = vst [vmem:[#allocation87_spill] sm:$0xff] %v8783_v23  ;;  %v6876_v50 = vld [vmem:[%s8229_s14 + $0x6f0] sm:$0xf]  ;;  %v7435_v48 = vld [vmem:[%s8229_s14 + $0x6f4] sm:$0xf0]  ;;  %v8806_v3 = vor.u32 %v7419_v2, %v6812_v40  ;;  %4333 = vmatpush.bf16.msra.mxu1 %v8795_v12 }
 0x193   : > { %v7004_v61 = vld [vmem:[%s8229_s14 + $0x7f0] sm:$0xf]  ;;  %v7467_v41 = vld [vmem:[%s8229_s14 + $0x7f4] sm:$0xf0]  ;;  %10708 = vst [vmem:[#allocation88_spill] sm:$0xff] %v8793_v31  ;;  %v8810_v36 = vor.u32 %v7435_v48, %v6876_v50  ;;  %4371 = vmatpush.bf16.msra.mxu3 %v8801_v19 }
 0x194   : > { %10709 = vst [vmem:[#allocation89_spill] sm:$0xff] %v8795_v12  ;;  %v6932_v52 = vld [vmem:[%s8229_s14 + $0x760] sm:$0xf]  ;;  %v7449_v25 = vld [vmem:[%s8229_s14 + $0x764] sm:$0xf0]  ;;  %4421 = vmatpush.bf16.msrb.mxu2 %v8783_v23  ;;  %v8812_v62 = vor.u32 %v7467_v41, %v7004_v61 }
 0x195   : > { %10710 = vst [vmem:[#allocation90_spill] sm:$0xff] %v8801_v19  ;;  %v5892_v60 = vld [vmem:[%s8217_s10 + $0x20] sm:$0xf]  ;;  %v7152_v55 = vld [vmem:[%s8217_s10 + $0x24] sm:$0xf]  ;;  %v8819_v15 = vor.u32 %v7449_v25, %v6932_v52  ;;  %4383 = vmatpush.bf16.msrb.mxu0 %v8806_v3 }
 0x196   : > { %v7160_v54 = vld [vmem:[%s8217_s10 + $0x5c] sm:$0xf0]  ;;  %10711 = vst [vmem:[#allocation91_spill] sm:$0xff] %v8806_v3  ;;  %v5894_v16 = vld [vmem:[%s8217_s10 + $0x60] sm:$0xf0]  ;;  %4402 = vmatpush.bf16.msrb.mxu1 %v8810_v36 }
 0x197   : > { %10712 = vst [vmem:[#allocation92_spill] sm:$0xff] %v8810_v36  ;;  %v6804_v1 = vld [vmem:[%s8229_s14 + $0x660] sm:$0xf]  ;;  %v7417_v5 = vld [vmem:[%s8229_s14 + $0x664] sm:$0xf0]  ;;  %v8833_v25 = vor.u32 %v7160_v54, %v5892_v60  ;;  %v8835_v23 = vor.u32 %v7152_v55, %v5894_v16  ;;  %4440 = vmatpush.bf16.msrb.mxu3 %v8812_v62 }
 0x198   : > { %10713 = vst [vmem:[#allocation93_spill] sm:$0xff] %v8812_v62  ;;  %v5900_v28 = vld [vmem:[%s8217_s10 + $0x28] sm:$0xf]  ;;  %v7153_v43 = vld [vmem:[%s8217_s10 + $0x2c] sm:$0xf]  ;;  %v8828_v61 = vor.u32 %v7417_v5, %v6804_v1  ;;  %4422 = vmatpush.bf16.msrb.mxu2 %v8819_v15 }
 0x199   : > { %v7161_v33 = vld [vmem:[%s8217_s10 + $0x64] sm:$0xf0]  ;;  %10714 = vst [vmem:[#allocation94_spill] sm:$0xff] %v8819_v15  ;;  %v5902_v50 = vld [vmem:[%s8217_s10 + $0x68] sm:$0xf0]  ;;  %4315 = vmatmul.bf16.vlgmr.msra.gmra.mxu0 %v8833_v25  ;;  %4334 = vmatmul.bf16.vlgmr.msra.gmra.mxu1 %v8835_v23 }
 0x19a   : > { %v6868_v2 = vld [vmem:[%s8229_s14 + $0x6e0] sm:$0xf]  ;;  %v7433_v48 = vld [vmem:[%s8229_s14 + $0x6e4] sm:$0xf0]  ;;  %10715 = vst [vmem:[#allocation95_spill] sm:$0xff] %v8828_v61  ;;  %v8842_v5 = vor.u32 %v7161_v33, %v5900_v28  ;;  %v8844_v12 = vor.u32 %v7153_v43, %v5902_v50  ;;  %4384 = vmatpush.bf16.msrb.mxu0 %v8828_v61 }
 0x19b   : > { %v6996_v40 = vld [vmem:[%s8229_s14 + $0x7e0] sm:$0xf]  ;;  %v7465_v41 = vld [vmem:[%s8229_s14 + $0x7e4] sm:$0xf0]  ;;  %v6924_v52 = vld [vmem:[%s8229_s14 + $0x750] sm:$0xf]  ;;  %v8847_v60 = vor.u32 %v7433_v48, %v6868_v2 }
 0x19c   : > { %v7447_v19 = vld [vmem:[%s8229_s14 + $0x754] sm:$0xf0]  ;;  %v6796_v3 = vld [vmem:[%s8229_s14 + $0x650] sm:$0xf]  ;;  %v8849_v54 = vor.u32 %v7465_v41, %v6996_v40  ;;  %v6916_v28 = vld [vmem:[%s8229_s14 + $0x740] sm:$0xf]  ;;  %4353 = vmatmul.bf16.vlgmr.msra.gmra.mxu2 %v8842_v5  ;;  %4372 = vmatmul.bf16.vlgmr.msra.gmra.mxu3 %v8844_v12 }
 0x19d   : > { %v7415_v1 = vld [vmem:[%s8229_s14 + $0x654] sm:$0xf0]  ;;  %10716 = vst [vmem:[#allocation96_spill] sm:$0xff] %v8847_v60  ;;  %v6860_v55 = vld [vmem:[%s8229_s14 + $0x6d0] sm:$0xf]  ;;  %v8854_v62 = vor.u32 %v7447_v19, %v6924_v52  ;;  %4403 = vmatpush.bf16.msrb.mxu1 %v8847_v60 }
 0x19e   : > { %10717 = vst [vmem:[#allocation97_spill] sm:$0xff] %v8849_v54  ;;  %v7431_v16 = vld [vmem:[%s8229_s14 + $0x6d4] sm:$0xf0]  ;;  %v8856_v36 = vor.u32 %v7415_v1, %v6796_v3  ;;  %v6988_v33 = vld [vmem:[%s8229_s14 + $0x7d0] sm:$0xf]  ;;  %4441 = vmatpush.bf16.msrb.mxu3 %v8849_v54 }
 0x19f   : > { %10718 = vst [vmem:[#allocation98_spill] sm:$0xff] %v8854_v62  ;;  %v7463_v43 = vld [vmem:[%s8229_s14 + $0x7d4] sm:$0xf0]  ;;  %v7445_v50 = vld [vmem:[%s8229_s14 + $0x744] sm:$0xf0]  ;;  %v8870_v19 = vor.u32 %v7431_v16, %v6860_v55  ;;  %4423 = vmatpush.bf16.msrb.mxu2 %v8854_v62 }
 0x1a0   : > { %10719 = vst [vmem:[#allocation99_spill] sm:$0xff] %v8856_v36  ;;  %v6788_v2 = vld [vmem:[%s8229_s14 + $0x640] sm:$0xf]  ;;  %v7413_v48 = vld [vmem:[%s8229_s14 + $0x644] sm:$0xf0]  ;;  %v8872_v3 = vor.u32 %v7463_v43, %v6988_v33  ;;  %4385 = vmatpush.bf16.msrb.mxu0 %v8856_v36  ;;  %v8878_v52 = vor.u32 %v7445_v50, %v6916_v28 }
 0x1a1   : > { %10720 = vst [vmem:[#allocation100_spill] sm:$0xff] %v8870_v19  ;;  %v6852_v40 = vld [vmem:[%s8229_s14 + $0x6c0] sm:$0xf]  ;;  %v7429_v41 = vld [vmem:[%s8229_s14 + $0x6c4] sm:$0xf0]  ;;  %v8880_v1 = vor.u32 %v7413_v48, %v6788_v2  ;;  %4404 = vmatpush.bf16.msrb.mxu1 %v8870_v19 }
 0x1a2   : > { %10721 = vst [vmem:[#allocation101_spill] sm:$0xff] %v8872_v3  ;;  %v6980_v60 = vld [vmem:[%s8229_s14 + $0x7c0] sm:$0xf]  ;;  %v7461_v55 = vld [vmem:[%s8229_s14 + $0x7c4] sm:$0xf0]  ;;  %4442 = vmatpush.bf16.msrb.mxu3 %v8872_v3  ;;  %v8890_v28 = vor.u32 %v7429_v41, %v6852_v40 }
 0x1a3   : > { %10722 = vst [vmem:[#allocation102_spill] sm:$0xff] %v8878_v52  ;;  %v6908_v16 = vld [vmem:[%s8229_s14 + $0x730] sm:$0xf]  ;;  %v7443_v33 = vld [vmem:[%s8229_s14 + $0x734] sm:$0xf0]  ;;  %v8892_v50 = vor.u32 %v7461_v55, %v6980_v60  ;;  %4424 = vmatpush.bf16.msrb.mxu2 %v8878_v52 }
 0x1a4   : > { %10723 = vst [vmem:[#allocation103_spill] sm:$0xff] %v8880_v1  ;;  %v6780_v43 = vld [vmem:[%s8229_s14 + $0x630] sm:$0xf]  ;;  %v7411_v54 = vld [vmem:[%s8229_s14 + $0x634] sm:$0xf0]  ;;  %4386 = vmatpush.bf16.msrb.mxu0 %v8880_v1  ;;  %v8902_v40 = vor.u32 %v7443_v33, %v6908_v16 }
 0x1a5   : > { %10724 = vst [vmem:[#allocation104_spill] sm:$0xff] %v8890_v28  ;;  %v6844_v2 = vld [vmem:[%s8229_s14 + $0x6b0] sm:$0xf]  ;;  %v7427_v48 = vld [vmem:[%s8229_s14 + $0x6b4] sm:$0xf0]  ;;  %v8904_v60 = vor.u32 %v7411_v54, %v6780_v43  ;;  %4405 = vmatpush.bf16.msrb.mxu1 %v8890_v28 }
 0x1a6   : > { %10725 = vst [vmem:[#allocation105_spill] sm:$0xff] %v8892_v50  ;;  %v5956_v19 = vld [vmem:[%s8217_s10 + $0xa0] sm:$0xf]  ;;  %v7168_v3 = vld [vmem:[%s8217_s10 + $0xa4] sm:$0xf]  ;;  %4443 = vmatpush.bf16.msrb.mxu3 %v8892_v50  ;;  %v8918_v16 = vor.u32 %v7427_v48, %v6844_v2 }
 0x1a7   : > { %v7176_v36 = vld [vmem:[%s8217_s10 + $0xdc] sm:$0xf0]  ;;  %v5958_v62 = vld [vmem:[%s8217_s10 + $0xe0] sm:$0xf0]  ;;  %10726 = vst [vmem:[#allocation106_spill] sm:$0xff] %v8902_v40  ;;  %4425 = vmatpush.bf16.msrb.mxu2 %v8902_v40 }
 0x1a8   : > { %10727 = vst [vmem:[#allocation107_spill] sm:$0xff] %v8904_v60  ;;  %v6972_v41 = vld [vmem:[%s8229_s14 + $0x7b0] sm:$0xf]  ;;  %v7459_v55 = vld [vmem:[%s8229_s14 + $0x7b4] sm:$0xf0]  ;;  %4387 = vmatpush.bf16.msrb.mxu0 %v8904_v60  ;;  %v8933_v2 = vor.u32 %v7176_v36, %v5956_v19  ;;  %v8935_v48 = vor.u32 %v7168_v3, %v5958_v62 }
 0x1a9   : > { %v6900_v61 = vld [vmem:[%s8229_s14 + $0x720] sm:$0xf]  ;;  %v7441_v15 = vld [vmem:[%s8229_s14 + $0x724] sm:$0xf0]  ;;  %v7169_v6 = vld [vmem:[%s8217_s10 + $0xac] sm:$0xf]  ;;  %v8920_v33 = vor.u32 %v7459_v55, %v6972_v41  ;;  %4406 = vmatpush.bf16.msrb.mxu1 %v8918_v16 }
 0x1aa   : > { %v6772_v31 = vld [vmem:[%s8229_s14 + $0x620] sm:$0xf]  ;;  %v7409_v52 = vld [vmem:[%s8229_s14 + $0x624] sm:$0xf0]  ;;  %v5966_v54 = vld [vmem:[%s8217_s10 + $0xe8] sm:$0xf0]  ;;  %v8926_v63 = vor.u32 %v7441_v15, %v6900_v61  ;;  %4320 = vmatmul.bf16.gmra.mxu0 %v8933_v2  ;;  %4339 = vmatmul.bf16.gmra.mxu1 %v8935_v48 }
 0x1ab   : > { %v5964_v1 = vld [vmem:[%s8217_s10 + $0xa8] sm:$0xf]  ;;  %10728 = vst [vmem:[#allocation108_spill] sm:$0xff] %v8918_v16  ;;  %v6836_v43 = vld [vmem:[%s8229_s14 + $0x6a0] sm:$0xf]  ;;  %v8928_v28 = vor.u32 %v7409_v52, %v6772_v31  ;;  %v8942_v61 = vor.u32 %v7169_v6, %v5966_v54  ;;  %4444 = vmatpush.bf16.msrb.mxu3 %v8920_v33 }
 0x1ac   : > { %v7177_v7 = vld [vmem:[%s8217_s10 + $0xe4] sm:$0xf0]  ;;  %10729 = vst [vmem:[#allocation109_spill] sm:$0xff] %v8920_v33  ;;  %v6964_v50 = vld [vmem:[%s8229_s14 + $0x7a0] sm:$0xf]  ;;  %4426 = vmatpush.bf16.msrb.mxu2 %v8926_v63 }
 0x1ad   : > { %v7425_v10 = vld [vmem:[%s8229_s14 + $0x6a4] sm:$0xf0]  ;;  %10730 = vst [vmem:[#allocation110_spill] sm:$0xff] %v8926_v63  ;;  %v6892_v57 = vld [vmem:[%s8229_s14 + $0x710] sm:$0xf]  ;;  %v8940_v15 = vor.u32 %v7177_v7, %v5964_v1  ;;  %4388 = vmatpush.bf16.msrb.mxu0 %v8928_v28  ;;  %4377 = vmatmul.bf16.gmra.mxu3 %v8942_v61 }
 0x1ae   : > { %10731 = vst [vmem:[#allocation111_spill] sm:$0xff] %v8928_v28  ;;  %v7457_v58 = vld [vmem:[%s8229_s14 + $0x7a4] sm:$0xf0]  ;;  %v7439_v41 = vld [vmem:[%s8229_s14 + $0x714] sm:$0xf0]  ;;  %v8946_v31 = vor.u32 %v7425_v10, %v6836_v43 }
 0x1af   : > { %v6764_v55 = vld [vmem:[%s8229_s14 + $0x610] sm:$0xf]  ;;  %v7407_v40 = vld [vmem:[%s8229_s14 + $0x614] sm:$0xf0]  ;;  %v8948_v62 = vor.u32 %v7457_v58, %v6964_v50  ;;  %v8955_v6 = vor.u32 %v7439_v41, %v6892_v57  ;;  %v6884_v10 = vld [vmem:[%s8229_s14 + $0x700] sm:$0xf]  ;;  %4358 = vmatmul.bf16.gmra.mxu2 %v8940_v15 }
 0x1b0   : > { %10732 = vst [vmem:[#allocation112_spill] sm:$0xff] %v8946_v31  ;;  %v6828_v36 = vld [vmem:[%s8229_s14 + $0x690] sm:$0xf]  ;;  %v7423_v19 = vld [vmem:[%s8229_s14 + $0x694] sm:$0xf0]  ;;  %v8957_v7 = vor.u32 %v7407_v40, %v6764_v55  ;;  %4407 = vmatpush.bf16.msrb.mxu1 %v8946_v31 }
 0x1b1   : > { %10733 = vst [vmem:[#allocation113_spill] sm:$0xff] %v8948_v62  ;;  %v6956_v3 = vld [vmem:[%s8229_s14 + $0x790] sm:$0xf]  ;;  %v7455_v52 = vld [vmem:[%s8229_s14 + $0x794] sm:$0xf0]  ;;  %4445 = vmatpush.bf16.msrb.mxu3 %v8948_v62  ;;  %v8974_v41 = vor.u32 %v7423_v19, %v6828_v36  ;;  %4427 = vmatpush.bf16.msrb.mxu2 %v8955_v6 }
 0x1b2   : > { %10734 = vst [vmem:[#allocation114_spill] sm:$0xff] %v8955_v6  ;;  %v7437_v1 = vld [vmem:[%s8229_s14 + $0x704] sm:$0xf0]  ;;  %v6756_v58 = vld [vmem:[%s8229_s14 + $0x600] sm:$0xf]  ;;  %v8976_v55 = vor.u32 %v7455_v52, %v6956_v3  ;;  %4389 = vmatpush.bf16.msrb.mxu0 %v8957_v7 }
 0x1b3   : > { %10735 = vst [vmem:[#allocation115_spill] sm:$0xff] %v8957_v7  ;;  %v7405_v50 = vld [vmem:[%s8229_s14 + $0x604] sm:$0xf0]  ;;  %v7258_v54 = vld [vmem:[%s8229_s14 + $0x174] sm:$0xf]  ;;  %v8983_v31 = vor.u32 %v7437_v1, %v6884_v10 }
 0x1b4   : > { %v6174_v57 = vld [vmem:[%s8229_s14 + $0x178] sm:$0xf0]  ;;  %v7226_v40 = vld [vmem:[%s8229_s14 + $0x74] sm:$0xf]  ;;  %10736 = vst [vmem:[#allocation116_spill] sm:$0xff] %v8974_v41  ;;  %v8985_v16 = vor.u32 %v7405_v50, %v6756_v58  ;;  %4408 = vmatpush.bf16.msrb.mxu1 %v8974_v41 }
 0x1b5   : > { %v6046_v43 = vld [vmem:[%s8229_s14 + $0x78] sm:$0xf0]  ;;  %10737 = vst [vmem:[#allocation117_spill] sm:$0xff] %v8976_v55  ;;  %v6820_v28 = vld [vmem:[%s8229_s14 + $0x680] sm:$0xf]  ;;  %v8990_v3 = vor.u32 %v7258_v54, %v6174_v57  ;;  %4446 = vmatpush.bf16.msrb.mxu3 %v8976_v55  ;;  %4428 = vmatpush.bf16.msrb.mxu2 %v8983_v31 }
 0x1b6   : > { %v7421_v63 = vld [vmem:[%s8229_s14 + $0x684] sm:$0xf0]  ;;  %v6948_v33 = vld [vmem:[%s8229_s14 + $0x780] sm:$0xf]  ;;  %10738 = vst [vmem:[#allocation118_spill] sm:$0xff] %v8983_v31  ;;  %v8992_v52 = vor.u32 %v7226_v40, %v6046_v43  ;;  %4390 = vmatpush.bf16.msrb.mxu0 %v8985_v16 }
 0x1b7   : > { %10739 = vst [vmem:[#allocation119_spill] sm:$0xff] %v8985_v16  ;;  %v7453_v62 = vld [vmem:[%s8229_s14 + $0x784] sm:$0xf0]  ;;  %v7242_v36 = vld [vmem:[%s8229_s14 + $0xf4] sm:$0xf]  ;;  %v9002_v58 = vor.u32 %v7421_v63, %v6820_v28 }
 0x1b8   : > { %v6110_v19 = vld [vmem:[%s8229_s14 + $0xf8] sm:$0xf0]  ;;  %10740 = vst [vmem:[#allocation120_spill] sm:$0xff] %v8990_v3  ;;  %v7274_v60 = vld [vmem:[%s8229_s14 + $0x1f4] sm:$0xf]  ;;  %v9004_v50 = vor.u32 %v7453_v62, %v6948_v33 }
 0x1b9   : > { %10741 = vst [vmem:[#allocation121_spill] sm:$0xff] %v8992_v52  ;;  %v6238_v59 = vld [vmem:[%s8229_s14 + $0x1f8] sm:$0xf0]  ;;  %v7256_v6 = vld [vmem:[%s8229_s14 + $0x164] sm:$0xf]  ;;  %v9012_v55 = vor.u32 %v7242_v36, %v6110_v19  ;;  %4497 = vmatpush.bf16.msra.mxu2 %v8990_v3  ;;  %4409 = vmatpush.bf16.msrb.mxu1 %v9002_v58 }
 0x1ba   : > { %v6166_v7 = vld [vmem:[%s8229_s14 + $0x168] sm:$0xf0]  ;;  %v7224_v10 = vld [vmem:[%s8229_s14 + $0x64] sm:$0xf]  ;;  %10742 = vst [vmem:[#allocation122_spill] sm:$0xff] %v9002_v58  ;;  %v9014_v63 = vor.u32 %v7274_v60, %v6238_v59  ;;  %4459 = vmatpush.bf16.msra.mxu0 %v8992_v52  ;;  %4447 = vmatpush.bf16.msrb.mxu3 %v9004_v50 }
 0x1bb   : > { %v6038_v1 = vld [vmem:[%s8229_s14 + $0x68] sm:$0xf0]  ;;  %10743 = vst [vmem:[#allocation123_spill] sm:$0xff] %v9004_v50  ;;  %v5908_v54 = vld [vmem:[%s8217_s10 + $0x30] sm:$0xf]  ;;  %v9019_v33 = vor.u32 %v7256_v6, %v6166_v7 }
 0x1bc   : > { %v7162_v57 = vld [vmem:[%s8217_s10 + $0x6c] sm:$0xf0]  ;;  %v7154_v40 = vld [vmem:[%s8217_s10 + $0x34] sm:$0xf]  ;;  %10744 = vst [vmem:[#allocation124_spill] sm:$0xff] %v9012_v55  ;;  %v9021_v62 = vor.u32 %v7224_v10, %v6038_v1 }
 0x1bd   : > { %v5910_v43 = vld [vmem:[%s8217_s10 + $0x70] sm:$0xf0]  ;;  %10745 = vst [vmem:[#allocation125_spill] sm:$0xff] %v9014_v63  ;;  %v7240_v28 = vld [vmem:[%s8229_s14 + $0xe4] sm:$0xf]  ;;  %4478 = vmatpush.bf16.msra.mxu1 %v9012_v55  ;;  %v9043_v51 = vor.u32 %v7162_v57, %v5908_v54  ;;  %4498 = vmatpush.bf16.msra.mxu2 %v9019_v33 }
 0x1be   : > { %10746 = vst [vmem:[#allocation126_spill] sm:$0xff] %v9019_v33  ;;  %v6102_v16 = vld [vmem:[%s8229_s14 + $0xe8] sm:$0xf0]  ;;  %v7272_v31 = vld [vmem:[%s8229_s14 + $0x1e4] sm:$0xf]  ;;  %4516 = vmatpush.bf16.msra.mxu3 %v9014_v63  ;;  %v9045_v50 = vor.u32 %v7154_v40, %v5910_v43  ;;  %4460 = vmatpush.bf16.msra.mxu0 %v9021_v62 }
 0x1bf   : > { %10747 = vst [vmem:[#allocation127_spill] sm:$0xff] %v9021_v62  ;;  %v6230_v36 = vld [vmem:[%s8229_s14 + $0x1e8] sm:$0xf0]  ;;  %v5916_v19 = vld [vmem:[%s8217_s10 + $0x38] sm:$0xf]  ;;  %v9036_v10 = vor.u32 %v7240_v28, %v6102_v16  ;;  %4391 = vmatmul.bf16.vlgmr.msrb.gmra.mxu0 %v9043_v51 }
 0x1c0   : > { %v7163_v41 = vld [vmem:[%s8217_s10 + $0x74] sm:$0xf0]  ;;  %v7155_v59 = vld [vmem:[%s8217_s10 + $0x3c] sm:$0xf]  ;;  %v7254_v6 = vld [vmem:[%s8229_s14 + $0x154] sm:$0xf]  ;;  %v9038_v1 = vor.u32 %v7272_v31, %v6230_v36  ;;  %4410 = vmatmul.bf16.vlgmr.msrb.gmra.mxu1 %v9045_v50 }
 0x1c1   : > { %v5918_v60 = vld [vmem:[%s8217_s10 + $0x78] sm:$0xf0]  ;;  %10748 = vst [vmem:[#allocation128_spill] sm:$0xff] %v9036_v10  ;;  %v7222_v52 = vld [vmem:[%s8229_s14 + $0x54] sm:$0xf]  ;;  %v9052_v31 = vor.u32 %v7163_v41, %v5916_v19  ;;  %4479 = vmatpush.bf16.msra.mxu1 %v9036_v10 }
 0x1c2   : > { %v6158_v7 = vld [vmem:[%s8229_s14 + $0x158] sm:$0xf0]  ;;  %10749 = vst [vmem:[#allocation129_spill] sm:$0xff] %v9038_v1  ;;  %v7238_v58 = vld [vmem:[%s8229_s14 + $0xd4] sm:$0xf]  ;;  %v9054_v36 = vor.u32 %v7155_v59, %v5918_v60  ;;  %4517 = vmatpush.bf16.msra.mxu3 %v9038_v1 }
 0x1c3   : > { %v6030_v3 = vld [vmem:[%s8229_s14 + $0x58] sm:$0xf0]  ;;  %v7270_v28 = vld [vmem:[%s8229_s14 + $0x1d4] sm:$0xf]  ;;  %v9056_v54 = vor.u32 %v7254_v6, %v6158_v7  ;;  %v7252_v40 = vld [vmem:[%s8229_s14 + $0x144] sm:$0xf]  ;;  %4429 = vmatmul.bf16.vlgmr.msrb.gmra.mxu2 %v9052_v31 }
 0x1c4   : > { %v6094_v16 = vld [vmem:[%s8229_s14 + $0xd8] sm:$0xf0]  ;;  %v9058_v57 = vor.u32 %v7222_v52, %v6030_v3  ;;  %v6150_v43 = vld [vmem:[%s8229_s14 + $0x148] sm:$0xf0]  ;;  %v7220_v41 = vld [vmem:[%s8229_s14 + $0x44] sm:$0xf]  ;;  %4448 = vmatmul.bf16.vlgmr.msrb.gmra.mxu3 %v9054_v36 }
 0x1c5   : > { %v6222_v63 = vld [vmem:[%s8229_s14 + $0x1d8] sm:$0xf0]  ;;  %10750 = vst [vmem:[#allocation130_spill] sm:$0xff] %v9056_v54  ;;  %v9064_v62 = vor.u32 %v7238_v58, %v6094_v16  ;;  %v6022_v19 = vld [vmem:[%s8229_s14 + $0x48] sm:$0xf0]  ;;  %4499 = vmatpush.bf16.msra.mxu2 %v9056_v54  ;;  %v9080_v58 = vor.u32 %v7252_v40, %v6150_v43 }
 0x1c6   : > { %10751 = vst [vmem:[#allocation131_spill] sm:$0xff] %v9058_v57  ;;  %v9066_v33 = vor.u32 %v7270_v28, %v6222_v63  ;;  %v7236_v59 = vld [vmem:[%s8229_s14 + $0xc4] sm:$0xf]  ;;  %v6086_v3 = vld [vmem:[%s8229_s14 + $0xc8] sm:$0xf0]  ;;  %4461 = vmatpush.bf16.msra.mxu0 %v9058_v57  ;;  %v9082_v63 = vor.u32 %v7220_v41, %v6022_v19 }
 0x1c7   : > { %10752 = vst [vmem:[#allocation132_spill] sm:$0xff] %v9064_v62  ;;  %v7268_v52 = vld [vmem:[%s8229_s14 + $0x1c4] sm:$0xf]  ;;  %v6214_v60 = vld [vmem:[%s8229_s14 + $0x1c8] sm:$0xf0]  ;;  %4480 = vmatpush.bf16.msra.mxu1 %v9064_v62  ;;  %v9088_v16 = vor.u32 %v7236_v59, %v6086_v3 }
 0x1c8   : > { %10753 = vst [vmem:[#allocation133_spill] sm:$0xff] %v9066_v33  ;;  %v7250_v6 = vld [vmem:[%s8229_s14 + $0x134] sm:$0xf]  ;;  %v6142_v7 = vld [vmem:[%s8229_s14 + $0x138] sm:$0xf0]  ;;  %4518 = vmatpush.bf16.msra.mxu3 %v9066_v33  ;;  %v9090_v28 = vor.u32 %v7268_v52, %v6214_v60 }
 0x1c9   : > { %10754 = vst [vmem:[#allocation134_spill] sm:$0xff] %v9080_v58  ;;  %v7218_v54 = vld [vmem:[%s8229_s14 + $0x34] sm:$0xf]  ;;  %v6014_v40 = vld [vmem:[%s8229_s14 + $0x38] sm:$0xf0]  ;;  %4500 = vmatpush.bf16.msra.mxu2 %v9080_v58  ;;  %v9100_v59 = vor.u32 %v7250_v6, %v6142_v7 }
 0x1ca   : > { %10755 = vst [vmem:[#allocation135_spill] sm:$0xff] %v9082_v63  ;;  %v7234_v43 = vld [vmem:[%s8229_s14 + $0xb4] sm:$0xf]  ;;  %v6078_v41 = vld [vmem:[%s8229_s14 + $0xb8] sm:$0xf0]  ;;  %4462 = vmatpush.bf16.msra.mxu0 %v9082_v63  ;;  %v9102_v3 = vor.u32 %v7218_v54, %v6014_v40 }
 0x1cb   : > { %10756 = vst [vmem:[#allocation136_spill] sm:$0xff] %v9088_v16  ;;  %v7266_v19 = vld [vmem:[%s8229_s14 + $0x1b4] sm:$0xf]  ;;  %v6206_v57 = vld [vmem:[%s8229_s14 + $0x1b8] sm:$0xf0]  ;;  %4481 = vmatpush.bf16.msra.mxu1 %v9088_v16  ;;  %v9112_v6 = vor.u32 %v7234_v43, %v6078_v41 }
 0x1cc   : > { %10757 = vst [vmem:[#allocation137_spill] sm:$0xff] %v9090_v28  ;;  %v7248_v52 = vld [vmem:[%s8229_s14 + $0x124] sm:$0xf]  ;;  %v6134_v60 = vld [vmem:[%s8229_s14 + $0x128] sm:$0xf0]  ;;  %4519 = vmatpush.bf16.msra.mxu3 %v9090_v28  ;;  %v9114_v54 = vor.u32 %v7266_v19, %v6206_v57 }
 0x1cd   : > { %10758 = vst [vmem:[#allocation138_spill] sm:$0xff] %v9100_v59  ;;  %v5972_v58 = vld [vmem:[%s8217_s10 + $0xb0] sm:$0xf]  ;;  %v7170_v63 = vld [vmem:[%s8217_s10 + $0xb4] sm:$0xf]  ;;  %4501 = vmatpush.bf16.msra.mxu2 %v9100_v59  ;;  %v9128_v57 = vor.u32 %v7248_v52, %v6134_v60 }
 0x1ce   : > { %10759 = vst [vmem:[#allocation139_spill] sm:$0xff] %v9102_v3  ;;  %v7178_v33 = vld [vmem:[%s8217_s10 + $0xec] sm:$0xf0]  ;;  %v5974_v62 = vld [vmem:[%s8217_s10 + $0xf0] sm:$0xf0]  ;;  %4463 = vmatpush.bf16.msra.mxu0 %v9102_v3 }
 0x1cf   : > { %10760 = vst [vmem:[#allocation140_spill] sm:$0xff] %v9112_v6  ;;  %v7216_v7 = vld [vmem:[%s8229_s14 + $0x24] sm:$0xf]  ;;  %v6006_v40 = vld [vmem:[%s8229_s14 + $0x28] sm:$0xf0]  ;;  %4482 = vmatpush.bf16.msra.mxu1 %v9112_v6  ;;  %v9143_v60 = vor.u32 %v7178_v33, %v5972_v58 }
 0x1d0   : > { %10761 = vst [vmem:[#allocation141_spill] sm:$0xff] %v9114_v54  ;;  %v7232_v1 = vld [vmem:[%s8229_s14 + $0xa4] sm:$0xf]  ;;  %v6070_v10 = vld [vmem:[%s8229_s14 + $0xa8] sm:$0xf0]  ;;  %v9130_v43 = vor.u32 %v7216_v7, %v6006_v40  ;;  %4520 = vmatpush.bf16.msra.mxu3 %v9114_v54  ;;  %v9145_v7 = vor.u32 %v7170_v63, %v5974_v62 }
 0x1d1   : > { %v7264_v55 = vld [vmem:[%s8229_s14 + $0x1a4] sm:$0xf]  ;;  %v6198_v16 = vld [vmem:[%s8229_s14 + $0x1a8] sm:$0xf0]  ;;  %v5980_v28 = vld [vmem:[%s8217_s10 + $0xb8] sm:$0xf]  ;;  %v9136_v39 = vor.u32 %v7232_v1, %v6070_v10  ;;  %4502 = vmatpush.bf16.msra.mxu2 %v9128_v57  ;;  %4396 = vmatmul.bf16.gmra.mxu0 %v9143_v60 }
 0x1d2   : > { %v7179_v46 = vld [vmem:[%s8217_s10 + $0xf4] sm:$0xf0]  ;;  %v7171_v45 = vld [vmem:[%s8217_s10 + $0xbc] sm:$0xf]  ;;  %10762 = vst [vmem:[#allocation142_spill] sm:$0xff] %v9128_v57  ;;  %v9138_v34 = vor.u32 %v7264_v55, %v6198_v16  ;;  %4464 = vmatpush.bf16.msra.mxu0 %v9130_v43  ;;  %4415 = vmatmul.bf16.gmra.mxu1 %v9145_v7 }
 0x1d3   : > { %v5982_v47 = vld [vmem:[%s8217_s10 + $0xf8] sm:$0xf0]  ;;  %10763 = vst [vmem:[#allocation143_spill] sm:$0xff] %v9130_v43  ;;  %v7246_v41 = vld [vmem:[%s8229_s14 + $0x114] sm:$0xf]  ;;  %v9150_v54 = vor.u32 %v7179_v46, %v5980_v28  ;;  %4483 = vmatpush.bf16.msra.mxu1 %v9136_v39 }
 0x1d4   : > { %v6126_v19 = vld [vmem:[%s8229_s14 + $0x118] sm:$0xf0]  ;;  %10764 = vst [vmem:[#allocation144_spill] sm:$0xff] %v9136_v39  ;;  %v7214_v59 = vld [vmem:[%s8229_s14 + $0x14] sm:$0xf]  ;;  %v9152_v55 = vor.u32 %v7171_v45, %v5982_v47  ;;  %4521 = vmatpush.bf16.msra.mxu3 %v9138_v34 }
 0x1d5   : > { %10765 = vst [vmem:[#allocation145_spill] sm:$0xff] %v9138_v34  ;;  %v5998_v3 = vld [vmem:[%s8229_s14 + $0x18] sm:$0xf0]  ;;  %v7230_v52 = vld [vmem:[%s8229_s14 + $0x94] sm:$0xf]  ;;  %v9157_v33 = vor.u32 %v7246_v41, %v6126_v19  ;;  %4434 = vmatmul.bf16.gmra.mxu2 %v9150_v54 }
 0x1d6   : > { %10766 = vst [vmem:[#allocation146_spill] sm:$0xff] %v9145_v7  ;;  %v6062_v40 = vld [vmem:[%s8229_s14 + $0x98] sm:$0xf0]  ;;  %v7262_v30 = vld [vmem:[%s8229_s14 + $0x194] sm:$0xf]  ;;  %v9159_v62 = vor.u32 %v7214_v59, %v5998_v3  ;;  %4453 = vmatmul.bf16.gmra.mxu3 %v9152_v55 }
 0x1d7   : > { %v6190_v6 = vld [vmem:[%s8229_s14 + $0x198] sm:$0xf0]  ;;  %10767 = vst [vmem:[#allocation147_spill] sm:$0xff] %v9150_v54  ;;  %v7244_v10 = vld [vmem:[%s8229_s14 + $0x104] sm:$0xf]  ;;  %v9166_v45 = vor.u32 %v7230_v52, %v6062_v40  ;;  %4503 = vmatpush.bf16.msra.mxu2 %v9157_v33 }
 0x1d8   : > { %10768 = vst [vmem:[#allocation148_spill] sm:$0xff] %v9152_v55  ;;  %v6118_v1 = vld [vmem:[%s8229_s14 + $0x108] sm:$0xf0]  ;;  %v7212_v58 = vld [vmem:[%s8229_s14 + $0x4] sm:$0xf]  ;;  %v9168_v47 = vor.u32 %v7262_v30, %v6190_v6  ;;  %4465 = vmatpush.bf16.msra.mxu0 %v9159_v62 }
 0x1d9   : > { %10769 = vst [vmem:[#allocation149_spill] sm:$0xff] %v9157_v33  ;;  %v5990_v46 = vld [vmem:[%s8229_s14 + $0x8] sm:$0xf0]  ;;  %v7228_v63 = vld [vmem:[%s8229_s14 + $0x84] sm:$0xf]  ;;  %v9185_v52 = vor.u32 %v7244_v10, %v6118_v1  ;;  %4484 = vmatpush.bf16.msra.mxu1 %v9166_v45 }
 0x1da   : > { %10770 = vst [vmem:[#allocation150_spill] sm:$0xff] %v9159_v62  ;;  %v6054_v16 = vld [vmem:[%s8229_s14 + $0x88] sm:$0xf0]  ;;  %v7260_v28 = vld [vmem:[%s8229_s14 + $0x184] sm:$0xf]  ;;  %v9187_v40 = vor.u32 %v7212_v58, %v5990_v46  ;;  %4522 = vmatpush.bf16.msra.mxu3 %v9168_v47 }
 0x1db   : > { %10771 = vst [vmem:[#allocation151_spill] sm:$0xff] %v9166_v45  ;;  %v6182_v59 = vld [vmem:[%s8229_s14 + $0x188] sm:$0xf0]  ;;  %v7322_v3 = vld [vmem:[%s8229_s14 + $0x374] sm:$0xf]  ;;  %v9194_v33 = vor.u32 %v7228_v63, %v6054_v16  ;;  %4504 = vmatpush.bf16.msra.mxu2 %v9185_v52 }
 0x1dc   : > { %v6430_v41 = vld [vmem:[%s8229_s14 + $0x378] sm:$0xf0]  ;;  %v7290_v19 = vld [vmem:[%s8229_s14 + $0x274] sm:$0xf]  ;;  %v9196_v62 = vor.u32 %v7260_v28, %v6182_v59  ;;  %v7320_v58 = vld [vmem:[%s8229_s14 + $0x364] sm:$0xf]  ;;  %4466 = vmatpush.bf16.msra.mxu0 %v9187_v40 }
 0x1dd   : > { %v6302_v30 = vld [vmem:[%s8229_s14 + $0x278] sm:$0xf0]  ;;  %v7306_v6 = vld [vmem:[%s8229_s14 + $0x2f4] sm:$0xf]  ;;  %v9198_v10 = vor.u32 %v7322_v3, %v6430_v41  ;;  %v6422_v46 = vld [vmem:[%s8229_s14 + $0x368] sm:$0xf0]  ;;  %4485 = vmatpush.bf16.msra.mxu1 %v9194_v33 }
 0x1de   : > { %v6366_v34 = vld [vmem:[%s8229_s14 + $0x2f8] sm:$0xf0]  ;;  %v7338_v39 = vld [vmem:[%s8229_s14 + $0x3f4] sm:$0xf]  ;;  %10772 = vst [vmem:[#allocation152_spill] sm:$0xff] %v9196_v62  ;;  %v9200_v1 = vor.u32 %v7290_v19, %v6302_v30  ;;  %4523 = vmatpush.bf16.msra.mxu3 %v9196_v62 }
 0x1df   : > { %v6494_v43 = vld [vmem:[%s8229_s14 + $0x3f8] sm:$0xf0]  ;;  %10773 = vst [vmem:[#allocation153_spill] sm:$0xff] %v9198_v10  ;;  %v9204_v57 = vor.u32 %v7306_v6, %v6366_v34  ;;  %v7288_v54 = vld [vmem:[%s8229_s14 + $0x264] sm:$0xf]  ;;  %4573 = vmatpush.bf16.msrb.mxu2 %v9198_v10  ;;  %v9220_v34 = vor.u32 %v7320_v58, %v6422_v46  ;;  %v4164_v58 = vpop.f32.mrf.mxu0  ;;  %v4183_v46 = vpop.f32.mrf.mxu1 }
 0x1e0   : > { %10774 = vst [vmem:[#allocation154_spill] sm:$0xff] %v9200_v1  ;;  %v9206_v55 = vor.u32 %v7338_v39, %v6494_v43  ;;  %v6294_v45 = vld [vmem:[%s8229_s14 + $0x268] sm:$0xf0]  ;;  %v7304_v7 = vld [vmem:[%s8229_s14 + $0x2e4] sm:$0xf]  ;;  %4535 = vmatpush.bf16.msrb.mxu0 %v9200_v1 }
 0x1e1   : > { %10775 = vst [vmem:[#allocation155_spill] sm:$0xff] %v9204_v57  ;;  %v6358_v63 = vld [vmem:[%s8229_s14 + $0x2e8] sm:$0xf0]  ;;  %v7336_v16 = vld [vmem:[%s8229_s14 + $0x3e4] sm:$0xf]  ;;  %v9222_v39 = vor.u32 %v7288_v54, %v6294_v45  ;;  %4554 = vmatpush.bf16.msrb.mxu1 %v9204_v57  ;;  %4467 = vmatmul.bf16.vlgmr.msra.gmra.mxu0 %v8407_v11 }
 0x1e2   : > { %10776 = vst [vmem:[#allocation156_spill] sm:$0xff] %v9206_v55  ;;  %v6486_v28 = vld [vmem:[%s8229_s14 + $0x3e8] sm:$0xf0]  ;;  %4592 = vmatpush.bf16.msrb.mxu3 %v9206_v55  ;;  %v9226_v43 = vor.u32 %v7304_v7, %v6358_v63  ;;  %v7318_v3 = vld [vmem:[%s8229_s14 + $0x354] sm:$0xf]  ;;  %v4184_v63 = vadd.f32 %v4183_v46, %v4164_v58  ;;  %4486 = vmatmul.bf16.vlgmr.msra.gmra.mxu1 %v8415_v20 }
 0x1e3   : > { %10777 = vst [vmem:[#allocation157_spill] sm:$0xff] %v9220_v34  ;;  %v9228_v59 = vor.u32 %v7336_v16, %v6486_v28  ;;  %v6414_v41 = vld [vmem:[%s8229_s14 + $0x358] sm:$0xf0]  ;;  %v7286_v19 = vld [vmem:[%s8229_s14 + $0x254] sm:$0xf]  ;;  %4574 = vmatpush.bf16.msrb.mxu2 %v9220_v34 }
 0x1e4   : > { %10778 = vst [vmem:[#allocation158_spill] sm:$0xff] %v9222_v39  ;;  %v6286_v30 = vld [vmem:[%s8229_s14 + $0x258] sm:$0xf0]  ;;  %v7302_v6 = vld [vmem:[%s8229_s14 + $0x2d4] sm:$0xf]  ;;  %4536 = vmatpush.bf16.msrb.mxu0 %v9222_v39  ;;  %v9242_v16 = vor.u32 %v7318_v3, %v6414_v41 }
 0x1e5   : > { %10779 = vst [vmem:[#allocation159_spill] sm:$0xff] %v9226_v43  ;;  %v6350_v54 = vld [vmem:[%s8229_s14 + $0x2d8] sm:$0xf0]  ;;  %v7334_v7 = vld [vmem:[%s8229_s14 + $0x3d4] sm:$0xf]  ;;  %4555 = vmatpush.bf16.msrb.mxu1 %v9226_v43  ;;  %v9244_v28 = vor.u32 %v7286_v19, %v6286_v30  ;;  %4505 = vmatmul.bf16.vlgmr.msra.gmra.mxu2 %v8417_v21 }
 0x1e6   : > { %10780 = vst [vmem:[#allocation160_spill] sm:$0xff] %v9228_v59  ;;  %v6478_v45 = vld [vmem:[%s8229_s14 + $0x3d8] sm:$0xf0]  ;;  %4593 = vmatpush.bf16.msrb.mxu3 %v9228_v59  ;;  %v7316_v34 = vld [vmem:[%s8229_s14 + $0x344] sm:$0xf]  ;;  %v9248_v39 = vor.u32 %v7302_v6, %v6350_v54  ;;  %v4202_v6 = vpop.f32.mrf.mxu2 }
 0x1e7   : > { %10781 = vst [vmem:[#allocation161_spill] sm:$0xff] %v9242_v16  ;;  %v6406_v55 = vld [vmem:[%s8229_s14 + $0x348] sm:$0xf0]  ;;  %v9250_v57 = vor.u32 %v7334_v7, %v6478_v45  ;;  %v7284_v1 = vld [vmem:[%s8229_s14 + $0x244] sm:$0xf]  ;;  %4524 = vmatmul.bf16.vlgmr.msra.gmra.mxu3 %v8423_v27  ;;  %4575 = vmatpush.bf16.msrb.mxu2 %v9242_v16 }
 0x1e8   : > { %10782 = vst [vmem:[#allocation162_spill] sm:$0xff] %v9244_v28  ;;  %v6278_v10 = vld [vmem:[%s8229_s14 + $0x248] sm:$0xf0]  ;;  %v7300_v62 = vld [vmem:[%s8229_s14 + $0x2c4] sm:$0xf]  ;;  %4537 = vmatpush.bf16.msrb.mxu0 %v9244_v28  ;;  %v9264_v19 = vor.u32 %v7316_v34, %v6406_v55  ;;  %v4203_v34 = vadd.f32 %v4202_v6, %v4184_v63 }
 0x1e9   : > { %10783 = vst [vmem:[#allocation163_spill] sm:$0xff] %v9248_v39  ;;  %v6342_v58 = vld [vmem:[%s8229_s14 + $0x2c8] sm:$0xf0]  ;;  %v7332_v3 = vld [vmem:[%s8229_s14 + $0x3c4] sm:$0xf]  ;;  %v9266_v11 = vor.u32 %v7284_v1, %v6278_v10  ;;  %4556 = vmatpush.bf16.msrb.mxu1 %v9248_v39  ;;  %v4221_v10 = vpop.f32.mrf.mxu3  ;;  %v4166_v1 = vpop.f32.mrf.mxu0 }
 0x1ea   : > { %10784 = vst [vmem:[#allocation164_spill] sm:$0xff] %v9250_v57  ;;  %v6470_v41 = vld [vmem:[%s8229_s14 + $0x3c8] sm:$0xf0]  ;;  %v7314_v20 = vld [vmem:[%s8229_s14 + $0x334] sm:$0xf]  ;;  %4594 = vmatpush.bf16.msrb.mxu3 %v9250_v57  ;;  %v9272_v21 = vor.u32 %v7300_v62, %v6342_v58  ;;  %v4185_v39 = vpop.f32.mrf.mxu1  ;;  %v9284_v58 = vadd.f32 %v4221_v10, %v4203_v34 }
 0x1eb   : > { %10785 = vst [vmem:[#allocation165_spill] sm:$0xff] %v9264_v19  ;;  %v6398_v30 = vld [vmem:[%s8229_s14 + $0x338] sm:$0xf0]  ;;  %v9274_v27 = vor.u32 %v7332_v3, %v6470_v41  ;;  %v7282_v54 = vld [vmem:[%s8229_s14 + $0x234] sm:$0xf]  ;;  %v4186_v3 = vadd.f32 %v4185_v39, %v4166_v1  ;;  %4576 = vmatpush.bf16.msrb.mxu2 %v9264_v19 }
 0x1ec   : > { %10786 = vst [vmem:[#allocation166_spill] sm:$0xff] %v9266_v11  ;;  %v6270_v7 = vld [vmem:[%s8229_s14 + $0x238] sm:$0xf0]  ;;  %v7298_v55 = vld [vmem:[%s8229_s14 + $0x2b4] sm:$0xf]  ;;  %v9282_v62 = vor.u32 %v7314_v20, %v6398_v30  ;;  %4538 = vmatpush.bf16.msrb.mxu0 %v9266_v11 }
 0x1ed   : > { %10787 = vst [vmem:[#allocation167_spill] sm:$0xff] %v9272_v21  ;;  %v6334_v45 = vld [vmem:[%s8229_s14 + $0x2b8] sm:$0xf0]  ;;  %v7330_v46 = vld [vmem:[%s8229_s14 + $0x3b4] sm:$0xf]  ;;  %v9288_v63 = vor.u32 %v7282_v54, %v6270_v7  ;;  %4557 = vmatpush.bf16.msrb.mxu1 %v9272_v21 }
 0x1ee   : > { %10788 = vst [vmem:[#allocation168_spill] sm:$0xff] %v9274_v27  ;;  %v6462_v28 = vld [vmem:[%s8229_s14 + $0x3b8] sm:$0xf0]  ;;  %v7312_v41 = vld [vmem:[%s8229_s14 + $0x324] sm:$0xf]  ;;  %4595 = vmatpush.bf16.msrb.mxu3 %v9274_v27  ;;  %v9294_v20 = vor.u32 %v7298_v55, %v6334_v45 }
 0x1ef   : > { %10789 = vst [vmem:[#allocation169_spill] sm:$0xff] %v9282_v62  ;;  %v6390_v6 = vld [vmem:[%s8229_s14 + $0x328] sm:$0xf0]  ;;  %v9296_v30 = vor.u32 %v7330_v46, %v6462_v28  ;;  %v7280_v34 = vld [vmem:[%s8229_s14 + $0x224] sm:$0xf]  ;;  %4577 = vmatpush.bf16.msrb.mxu2 %v9282_v62  ;;  %v4204_v46 = vpop.f32.mrf.mxu2 }
 0x1f0   : > { %10790 = vst [vmem:[#allocation170_spill] sm:$0xff] %v9288_v63  ;;  %v6262_v39 = vld [vmem:[%s8229_s14 + $0x228] sm:$0xf0]  ;;  %v7296_v10 = vld [vmem:[%s8229_s14 + $0x2a4] sm:$0xf]  ;;  %4539 = vmatpush.bf16.msrb.mxu0 %v9288_v63  ;;  %v9306_v21 = vor.u32 %v7312_v41, %v6390_v6  ;;  %v4205_v6 = vadd.f32 %v4204_v46, %v4186_v3 }
 0x1f1   : > { %10791 = vst [vmem:[#allocation171_spill] sm:$0xff] %v9294_v20  ;;  %v6326_v1 = vld [vmem:[%s8229_s14 + $0x2a8] sm:$0xf0]  ;;  %v7328_v54 = vld [vmem:[%s8229_s14 + $0x3a4] sm:$0xf]  ;;  %v9308_v55 = vor.u32 %v7280_v34, %v6262_v39  ;;  %4558 = vmatpush.bf16.msrb.mxu1 %v9294_v20  ;;  %v4223_v34 = vpop.f32.mrf.mxu3  ;;  %v4169_v39 = vpop.f32.mrf.mxu0  ;;  %4472 = vmatmul.bf16.gmra.mxu0 %v8509_v24 }
 0x1f2   : > { %10792 = vst [vmem:[#allocation172_spill] sm:$0xff] %v9296_v30  ;;  %v6454_v7 = vld [vmem:[%s8229_s14 + $0x3a8] sm:$0xf0]  ;;  %v7310_v28 = vld [vmem:[%s8229_s14 + $0x314] sm:$0xf]  ;;  %4596 = vmatpush.bf16.msrb.mxu3 %v9296_v30  ;;  %v9314_v27 = vor.u32 %v7296_v10, %v6326_v1  ;;  %v4188_v20 = vpop.f32.mrf.mxu1  ;;  %v9327_v1 = vadd.f32 %v4223_v34, %v4205_v6  ;;  %4491 = vmatmul.bf16.gmra.mxu1 %v8516_v42 }
 0x1f3   : > { %10793 = vst [vmem:[#allocation173_spill] sm:$0xff] %v9306_v21  ;;  %v6382_v45 = vld [vmem:[%s8229_s14 + $0x318] sm:$0xf0]  ;;  %v9316_v62 = vor.u32 %v7328_v54, %v6454_v7  ;;  %v7278_v63 = vld [vmem:[%s8229_s14 + $0x214] sm:$0xf]  ;;  %v4189_v54 = vadd.f32 %v4188_v20, %v4169_v39  ;;  %4578 = vmatpush.bf16.msrb.mxu2 %v9306_v21 }
 0x1f4   : > { %10794 = vst [vmem:[#allocation174_spill] sm:$0xff] %v9308_v55  ;;  %v6254_v11 = vld [vmem:[%s8229_s14 + $0x218] sm:$0xf0]  ;;  %v7294_v41 = vld [vmem:[%s8229_s14 + $0x294] sm:$0xf]  ;;  %v9324_v30 = vor.u32 %v7310_v28, %v6382_v45  ;;  %4540 = vmatpush.bf16.msrb.mxu0 %v9308_v55 }
 0x1f5   : > { %10795 = vst [vmem:[#allocation175_spill] sm:$0xff] %v9314_v27  ;;  %v6318_v19 = vld [vmem:[%s8229_s14 + $0x298] sm:$0xf0]  ;;  %v7326_v57 = vld [vmem:[%s8229_s14 + $0x394] sm:$0xf]  ;;  %v9331_v3 = vor.u32 %v7278_v63, %v6254_v11  ;;  %4559 = vmatpush.bf16.msrb.mxu1 %v9314_v27  ;;  %4510 = vmatmul.bf16.gmra.mxu2 %v8518_v37 }
 0x1f6   : > { %10796 = vst [vmem:[#allocation176_spill] sm:$0xff] %v9316_v62  ;;  %v6446_v16 = vld [vmem:[%s8229_s14 + $0x398] sm:$0xf0]  ;;  %v7308_v10 = vld [vmem:[%s8229_s14 + $0x304] sm:$0xf]  ;;  %4597 = vmatpush.bf16.msrb.mxu3 %v9316_v62  ;;  %v9338_v20 = vor.u32 %v7294_v41, %v6318_v19 }
 0x1f7   : > { %10797 = vst [vmem:[#allocation177_spill] sm:$0xff] %v9324_v30  ;;  %v6374_v7 = vld [vmem:[%s8229_s14 + $0x308] sm:$0xf0]  ;;  %v7276_v46 = vld [vmem:[%s8229_s14 + $0x204] sm:$0xf]  ;;  %v9340_v28 = vor.u32 %v7326_v57, %v6446_v16  ;;  %4529 = vmatmul.bf16.gmra.mxu3 %v8523_v44  ;;  %4579 = vmatpush.bf16.msrb.mxu2 %v9324_v30  ;;  %v4207_v37 = vpop.f32.mrf.mxu2 }
 0x1f8   : > { %10798 = vst [vmem:[#allocation178_spill] sm:$0xff] %v9331_v3  ;;  %v6246_v59 = vld [vmem:[%s8229_s14 + $0x208] sm:$0xf0]  ;;  %v7292_v45 = vld [vmem:[%s8229_s14 + $0x284] sm:$0xf]  ;;  %4541 = vmatpush.bf16.msrb.mxu0 %v9331_v3  ;;  %v9357_v41 = vor.u32 %v7308_v10, %v6374_v7  ;;  %v4208_v10 = vadd.f32 %v4207_v37, %v4189_v54 }
 0x1f9   : > { %10799 = vst [vmem:[#allocation179_spill] sm:$0xff] %v9338_v20  ;;  %v6310_v6 = vld [vmem:[%s8229_s14 + $0x288] sm:$0xf0]  ;;  %v7324_v34 = vld [vmem:[%s8229_s14 + $0x384] sm:$0xf]  ;;  %v9359_v24 = vor.u32 %v7276_v46, %v6246_v59  ;;  %4560 = vmatpush.bf16.msrb.mxu1 %v9338_v20  ;;  %v4226_v7 = vpop.f32.mrf.mxu3  ;;  %v4171_v59 = vpop.f32.mrf.mxu0 }
 0x1fa   : > { %10800 = vst [vmem:[#allocation180_spill] sm:$0xff] %v9340_v28  ;;  %v6438_v11 = vld [vmem:[%s8229_s14 + $0x388] sm:$0xf0]  ;;  %v7386_v63 = vld [vmem:[%s8229_s14 + $0x574] sm:$0xf]  ;;  %4598 = vmatpush.bf16.msrb.mxu3 %v9340_v28  ;;  %v9366_v44 = vor.u32 %v7292_v45, %v6310_v6  ;;  %v4190_v20 = vpop.f32.mrf.mxu1  ;;  %v9383_v54 = vadd.f32 %v4226_v7, %v4208_v10 }
 0x1fb   : > { %v6686_v39 = vld [vmem:[%s8229_s14 + $0x578] sm:$0xf0]  ;;  %v7354_v19 = vld [vmem:[%s8229_s14 + $0x474] sm:$0xf]  ;;  %v9368_v3 = vor.u32 %v7324_v34, %v6438_v11  ;;  %v7384_v55 = vld [vmem:[%s8229_s14 + $0x564] sm:$0xf]  ;;  %v4191_v11 = vadd.f32 %v4190_v20, %v4171_v59  ;;  %4580 = vmatpush.bf16.msrb.mxu2 %v9357_v41 }
 0x1fc   : > { %v6558_v57 = vld [vmem:[%s8229_s14 + $0x478] sm:$0xf0]  ;;  %v7370_v16 = vld [vmem:[%s8229_s14 + $0x4f4] sm:$0xf]  ;;  %v9370_v46 = vor.u32 %v7386_v63, %v6686_v39  ;;  %v6678_v21 = vld [vmem:[%s8229_s14 + $0x568] sm:$0xf0]  ;;  %4542 = vmatpush.bf16.msrb.mxu0 %v9359_v24 }
 0x1fd   : > { %v6622_v42 = vld [vmem:[%s8229_s14 + $0x4f8] sm:$0xf0]  ;;  %v7402_v62 = vld [vmem:[%s8229_s14 + $0x5f4] sm:$0xf]  ;;  %v9372_v30 = vor.u32 %v7354_v19, %v6558_v57  ;;  %v7352_v45 = vld [vmem:[%s8229_s14 + $0x464] sm:$0xf]  ;;  %4561 = vmatpush.bf16.msrb.mxu1 %v9366_v44 }
 0x1fe   : > { %v6750_v27 = vld [vmem:[%s8229_s14 + $0x5f8] sm:$0xf0]  ;;  %10801 = vst [vmem:[#allocation181_spill] sm:$0xff] %v9370_v46  ;;  %v9376_v43 = vor.u32 %v7370_v16, %v6622_v42  ;;  %v6550_v6 = vld [vmem:[%s8229_s14 + $0x468] sm:$0xf0]  ;;  %4599 = vmatpush.bf16.msrb.mxu3 %v9368_v3 }
 0x1ff   : > { %10802 = vst [vmem:[#allocation182_spill] sm:$0xff] %v9372_v30  ;;  %v9378_v28 = vor.u32 %v7402_v62, %v6750_v27  ;;  %v7368_v34 = vld [vmem:[%s8229_s14 + $0x4e4] sm:$0xf]  ;;  %v6614_v63 = vld [vmem:[%s8229_s14 + $0x4e8] sm:$0xf0]  ;;  %4649 = vmatpush.bf16.msra.mxu2 %v9370_v46  ;;  %v9394_v27 = vor.u32 %v7384_v55, %v6678_v21  ;;  %v9396_v62 = vor.u32 %v7352_v45, %v6550_v6  ;;  %v4209_v37 = vpop.f32.mrf.mxu2 }
 0x200   : > { %10803 = vst [vmem:[#allocation183_spill] sm:$0xff] %v9376_v43  ;;  %v7400_v39 = vld [vmem:[%s8229_s14 + $0x5e4] sm:$0xf]  ;;  %v6742_v19 = vld [vmem:[%s8229_s14 + $0x5e8] sm:$0xf0]  ;;  %4611 = vmatpush.bf16.msra.mxu0 %v9372_v30  ;;  %v9400_v20 = vor.u32 %v7368_v34, %v6614_v63  ;;  %v4210_v55 = vadd.f32 %v4209_v37, %v4191_v11 }
 0x201   : > { %10804 = vst [vmem:[#allocation184_spill] sm:$0xff] %v9378_v28  ;;  %4630 = vmatpush.bf16.msra.mxu1 %v9376_v43  ;;  %v9402_v57 = vor.u32 %v7400_v39, %v6742_v19  ;;  %v7382_v16 = vld [vmem:[%s8229_s14 + $0x554] sm:$0xf]  ;;  %v6670_v42 = vld [vmem:[%s8229_s14 + $0x558] sm:$0xf0]  ;;  %v4228_v59 = vpop.f32.mrf.mxu3  ;;  %v4240_v63 = vpop.f32.mrf.mxu0  ;;  %4543 = vmatmul.bf16.vlgmr.msrb.gmra.mxu0 %v8626_v53 }
 0x202   : > { %10805 = vst [vmem:[#allocation185_spill] sm:$0xff] %v9394_v27  ;;  %4668 = vmatpush.bf16.msra.mxu3 %v9378_v28  ;;  %v7350_v10 = vld [vmem:[%s8229_s14 + $0x454] sm:$0xf]  ;;  %v6542_v7 = vld [vmem:[%s8229_s14 + $0x458] sm:$0xf0]  ;;  %v4259_v39 = vpop.f32.mrf.mxu1  ;;  %v9416_v11 = vadd.f32 %v4228_v59, %v4210_v55  ;;  %v4241_v19 = vadd.f32 %v4240_v63, %v9284_v58  ;;  %v9419_v37 = vor.u32 %v7382_v16, %v6670_v42 }
 0x203   : > { %10806 = vst [vmem:[#allocation186_spill] sm:$0xff] %v9396_v62  ;;  %v7366_v21 = vld [vmem:[%s8229_s14 + $0x4d4] sm:$0xf]  ;;  %4650 = vmatpush.bf16.msra.mxu2 %v9394_v27  ;;  %v6606_v45 = vld [vmem:[%s8229_s14 + $0x4d8] sm:$0xf0]  ;;  %4562 = vmatmul.bf16.vlgmr.msrb.gmra.mxu1 %v8628_v38 }
 0x204   : > { %10807 = vst [vmem:[#allocation187_spill] sm:$0xff] %v9400_v20  ;;  %4612 = vmatpush.bf16.msra.mxu0 %v9396_v62  ;;  %v7398_v6 = vld [vmem:[%s8229_s14 + $0x5d4] sm:$0xf]  ;;  %v6734_v34 = vld [vmem:[%s8229_s14 + $0x5d8] sm:$0xf0]  ;;  %v9421_v62 = vor.u32 %v7350_v10, %v6542_v7  ;;  %v9425_v43 = vor.u32 %v7366_v21, %v6606_v45  ;;  %v4260_v55 = vadd.f32 %v4259_v39, %v4241_v19 }
 0x205   : > { %10808 = vst [vmem:[#allocation188_spill] sm:$0xff] %v9402_v57  ;;  %4631 = vmatpush.bf16.msra.mxu1 %v9400_v20  ;;  %v7380_v27 = vld [vmem:[%s8229_s14 + $0x544] sm:$0xf]  ;;  %v6662_v28 = vld [vmem:[%s8229_s14 + $0x548] sm:$0xf0]  ;;  %v9427_v30 = vor.u32 %v7398_v6, %v6734_v34  ;;  %4581 = vmatmul.bf16.vlgmr.msrb.gmra.mxu2 %v8635_v0 }
 0x206   : > { %4669 = vmatpush.bf16.msra.mxu3 %v9402_v57  ;;  %v7348_v20 = vld [vmem:[%s8229_s14 + $0x444] sm:$0xf]  ;;  %v6534_v57 = vld [vmem:[%s8229_s14 + $0x448] sm:$0xf0]  ;;  %v9441_v53 = vor.u32 %v7380_v27, %v6662_v28  ;;  %v7378_v10 = vld [vmem:[%s8229_s14 + $0x534] sm:$0xf] }
 0x207   : > { %10809 = vst [vmem:[#allocation189_spill] sm:$0xff] %v9427_v30  ;;  %v7364_v46 = vld [vmem:[%s8229_s14 + $0x4c4] sm:$0xf]  ;;  %v6598_v58 = vld [vmem:[%s8229_s14 + $0x4c8] sm:$0xf0]  ;;  %4600 = vmatmul.bf16.vlgmr.msrb.gmra.mxu3 %v8637_v14  ;;  %4651 = vmatpush.bf16.msra.mxu2 %v9419_v37  ;;  %v9443_v38 = vor.u32 %v7348_v20, %v6534_v57  ;;  %v4278_v6 = vpop.f32.mrf.mxu2 }
 0x208   : > { %v7396_v16 = vld [vmem:[%s8229_s14 + $0x5c4] sm:$0xf]  ;;  %v6726_v42 = vld [vmem:[%s8229_s14 + $0x5c8] sm:$0xf0]  ;;  %4613 = vmatpush.bf16.msra.mxu0 %v9421_v62  ;;  %10810 = vst [vmem:[#allocation190_spill] sm:$0xff] %v9441_v53  ;;  %v9449_v0 = vor.u32 %v7364_v46, %v6598_v58  ;;  %v4279_v34 = vadd.f32 %v4278_v6, %v4260_v55 }
 0x209   : > { %10811 = vst [vmem:[#allocation191_spill] sm:$0xff] %v9443_v38  ;;  %v6654_v7 = vld [vmem:[%s8229_s14 + $0x538] sm:$0xf0]  ;;  %4632 = vmatpush.bf16.msra.mxu1 %v9425_v43  ;;  %v9451_v14 = vor.u32 %v7396_v16, %v6726_v42  ;;  %v7346_v21 = vld [vmem:[%s8229_s14 + $0x434] sm:$0xf]  ;;  %v4297_v28 = vpop.f32.mrf.mxu3  ;;  %v4242_v63 = vpop.f32.mrf.mxu0 }
 0x20a   : > { %4670 = vmatpush.bf16.msra.mxu3 %v9427_v30  ;;  %10812 = vst [vmem:[#allocation192_spill] sm:$0xff] %v9449_v0  ;;  %v6526_v59 = vld [vmem:[%s8229_s14 + $0x438] sm:$0xf0]  ;;  %v7362_v45 = vld [vmem:[%s8229_s14 + $0x4b4] sm:$0xf]  ;;  %v4261_v39 = vpop.f32.mrf.mxu1  ;;  %v4243_v46 = vadd.f32 %v4242_v63, %v9327_v1  ;;  %v9462_v19 = vor.u32 %v7378_v10, %v6654_v7  ;;  %v9468_v55 = vadd.f32 %v4297_v28, %v4279_v34 }
 0x20b   : > { %10813 = vst [vmem:[#allocation193_spill] sm:$0xff] %v9451_v14  ;;  %v6590_v27 = vld [vmem:[%s8229_s14 + $0x4b8] sm:$0xf0]  ;;  %v7394_v20 = vld [vmem:[%s8229_s14 + $0x5b4] sm:$0xf]  ;;  %4652 = vmatpush.bf16.msra.mxu2 %v9441_v53  ;;  %v9464_v58 = vor.u32 %v7346_v21, %v6526_v59 }
 0x20c   : > { %v6718_v57 = vld [vmem:[%s8229_s14 + $0x5b8] sm:$0xf0]  ;;  %4614 = vmatpush.bf16.msra.mxu0 %v9443_v38  ;;  %10814 = vst [vmem:[#allocation194_spill] sm:$0xff] %v9462_v19  ;;  %v7376_v16 = vld [vmem:[%s8229_s14 + $0x524] sm:$0xf]  ;;  %v9472_v1 = vor.u32 %v7362_v45, %v6590_v27  ;;  %v4262_v7 = vadd.f32 %v4261_v39, %v4243_v46 }
 0x20d   : > { %10815 = vst [vmem:[#allocation195_spill] sm:$0xff] %v9464_v58  ;;  %v6646_v42 = vld [vmem:[%s8229_s14 + $0x528] sm:$0xf0]  ;;  %4633 = vmatpush.bf16.msra.mxu1 %v9449_v0  ;;  %v9474_v6 = vor.u32 %v7394_v20, %v6718_v57  ;;  %v7344_v63 = vld [vmem:[%s8229_s14 + $0x424] sm:$0xf] }
 0x20e   : > { %4671 = vmatpush.bf16.msra.mxu3 %v9451_v14  ;;  %10816 = vst [vmem:[#allocation196_spill] sm:$0xff] %v9472_v1  ;;  %v6518_v38 = vld [vmem:[%s8229_s14 + $0x428] sm:$0xf0]  ;;  %v7360_v10 = vld [vmem:[%s8229_s14 + $0x4a4] sm:$0xf]  ;;  %v9484_v45 = vor.u32 %v7376_v16, %v6646_v42 }
 0x20f   : > { %10817 = vst [vmem:[#allocation197_spill] sm:$0xff] %v9474_v6  ;;  %v6582_v21 = vld [vmem:[%s8229_s14 + $0x4a8] sm:$0xf0]  ;;  %v7392_v59 = vld [vmem:[%s8229_s14 + $0x5a4] sm:$0xf]  ;;  %4653 = vmatpush.bf16.msra.mxu2 %v9462_v19  ;;  %v9486_v27 = vor.u32 %v7344_v63, %v6518_v38  ;;  %v4280_v16 = vpop.f32.mrf.mxu2 }
 0x210   : > { %v6710_v28 = vld [vmem:[%s8229_s14 + $0x5a8] sm:$0xf0]  ;;  %4615 = vmatpush.bf16.msra.mxu0 %v9464_v58  ;;  %10818 = vst [vmem:[#allocation198_spill] sm:$0xff] %v9484_v45  ;;  %v7374_v20 = vld [vmem:[%s8229_s14 + $0x514] sm:$0xf]  ;;  %v9492_v34 = vor.u32 %v7360_v10, %v6582_v21  ;;  %v4281_v0 = vadd.f32 %v4280_v16, %v4262_v7 }
 0x211   : > { %10819 = vst [vmem:[#allocation199_spill] sm:$0xff] %v9486_v27  ;;  %v6638_v57 = vld [vmem:[%s8229_s14 + $0x518] sm:$0xf0]  ;;  %4634 = vmatpush.bf16.msra.mxu1 %v9472_v1  ;;  %v9494_v39 = vor.u32 %v7392_v59, %v6710_v28  ;;  %v7342_v46 = vld [vmem:[%s8229_s14 + $0x414] sm:$0xf]  ;;  %v4299_v38 = vpop.f32.mrf.mxu3  ;;  %v4245_v53 = vpop.f32.mrf.mxu0  ;;  %4548 = vmatmul.bf16.gmra.mxu0 %v8728_v32 }
 0x212   : > { %4672 = vmatpush.bf16.msra.mxu3 %v9474_v6  ;;  %10820 = vst [vmem:[#allocation200_spill] sm:$0xff] %v9492_v34  ;;  %v6510_v19 = vld [vmem:[%s8229_s14 + $0x418] sm:$0xf0]  ;;  %v7358_v58 = vld [vmem:[%s8229_s14 + $0x494] sm:$0xf]  ;;  %v4264_v1 = vpop.f32.mrf.mxu1  ;;  %v4246_v21 = vadd.f32 %v4245_v53, %v9383_v54  ;;  %v9506_v59 = vor.u32 %v7374_v20, %v6638_v57  ;;  %v9513_v30 = vadd.f32 %v4299_v38, %v4281_v0 }
 0x213   : > { %10821 = vst [vmem:[#allocation201_spill] sm:$0xff] %v9494_v39  ;;  %v6574_v42 = vld [vmem:[%s8229_s14 + $0x498] sm:$0xf0]  ;;  %v7390_v63 = vld [vmem:[%s8229_s14 + $0x594] sm:$0xf]  ;;  %4654 = vmatpush.bf16.msra.mxu2 %v9484_v45  ;;  %v9508_v28 = vor.u32 %v7342_v46, %v6510_v19  ;;  %4567 = vmatmul.bf16.gmra.mxu1 %v8730_v29 }
 0x214   : > { %v6702_v14 = vld [vmem:[%s8229_s14 + $0x598] sm:$0xf0]  ;;  %v7372_v10 = vld [vmem:[%s8229_s14 + $0x504] sm:$0xf]  ;;  %4616 = vmatpush.bf16.msra.mxu0 %v9486_v27  ;;  %10822 = vst [vmem:[#allocation202_spill] sm:$0xff] %v9506_v59  ;;  %v9517_v54 = vor.u32 %v7358_v58, %v6574_v42  ;;  %v4265_v46 = vadd.f32 %v4264_v1, %v4246_v21 }
 0x215   : > { %10823 = vst [vmem:[#allocation203_spill] sm:$0xff] %v9508_v28  ;;  %v6630_v6 = vld [vmem:[%s8229_s14 + $0x508] sm:$0xf0]  ;;  %v7340_v7 = vld [vmem:[%s8229_s14 + $0x404] sm:$0xf]  ;;  %4635 = vmatpush.bf16.msra.mxu1 %v9492_v34  ;;  %v9519_v53 = vor.u32 %v7390_v63, %v6702_v14  ;;  %4586 = vmatmul.bf16.gmra.mxu2 %v8735_v49 }
 0x216   : > { %v6502_v16 = vld [vmem:[%s8229_s14 + $0x408] sm:$0xf0]  ;;  %4673 = vmatpush.bf16.msra.mxu3 %v9494_v39  ;;  %10824 = vst [vmem:[#allocation204_spill] sm:$0xff] %v9517_v54  ;;  %v7356_v19 = vld [vmem:[%s8229_s14 + $0x484] sm:$0xf]  ;;  %v9536_v32 = vor.u32 %v7372_v10, %v6630_v6 }
 0x217   : > { %10825 = vst [vmem:[#allocation205_spill] sm:$0xff] %v9519_v53  ;;  %v6566_v20 = vld [vmem:[%s8229_s14 + $0x488] sm:$0xf0]  ;;  %v7388_v57 = vld [vmem:[%s8229_s14 + $0x584] sm:$0xf]  ;;  %4605 = vmatmul.bf16.gmra.mxu3 %v8737_v56  ;;  %4655 = vmatpush.bf16.msra.mxu2 %v9506_v59  ;;  %v9538_v1 = vor.u32 %v7340_v7, %v6502_v16  ;;  %v4283_v59 = vpop.f32.mrf.mxu2 }
 0x218   : > { %v6694_v0 = vld [vmem:[%s8229_s14 + $0x588] sm:$0xf0]  ;;  %v7450_v38 = vld [vmem:[%s8229_s14 + $0x774] sm:$0xf]  ;;  %v6942_v34 = vld [vmem:[%s8229_s14 + $0x778] sm:$0xf0]  ;;  %4617 = vmatpush.bf16.msra.mxu0 %v9508_v28  ;;  %v9545_v49 = vor.u32 %v7356_v19, %v6566_v20 }
 0x219   : > { %v7418_v14 = vld [vmem:[%s8229_s14 + $0x674] sm:$0xf]  ;;  %v6814_v58 = vld [vmem:[%s8229_s14 + $0x678] sm:$0xf0]  ;;  %4636 = vmatpush.bf16.msra.mxu1 %v9517_v54  ;;  %v9547_v56 = vor.u32 %v7388_v57, %v6694_v0  ;;  %v4302_v28 = vpop.f32.mrf.mxu3  ;;  %v9549_v6 = vor.u32 %v7450_v38, %v6942_v34  ;;  %v7448_v7 = vld [vmem:[%s8229_s14 + $0x764] sm:$0xf]  ;;  %v4284_v54 = vadd.f32 %v4283_v59, %v4265_v46  ;;  %v4247_v39 = vpop.f32.mrf.mxu0 }
 0x21a   : > { %v7434_v42 = vld [vmem:[%s8229_s14 + $0x6f4] sm:$0xf]  ;;  %v6878_v29 = vld [vmem:[%s8229_s14 + $0x6f8] sm:$0xf0]  ;;  %4674 = vmatpush.bf16.msra.mxu3 %v9519_v53  ;;  %v9551_v10 = vor.u32 %v7418_v14, %v6814_v58  ;;  %v6934_v16 = vld [vmem:[%s8229_s14 + $0x768] sm:$0xf0]  ;;  %v4266_v27 = vpop.f32.mrf.mxu1  ;;  %v4248_v45 = vadd.f32 %v4247_v39, %v9416_v11 }
 0x21b   : > { %v7466_v63 = vld [vmem:[%s8229_s14 + $0x7f4] sm:$0xf]  ;;  %v7006_v21 = vld [vmem:[%s8229_s14 + $0x7f8] sm:$0xf0]  ;;  %10826 = vst [vmem:[#allocation206_spill] sm:$0xff] %v9549_v6  ;;  %v9555_v53 = vor.u32 %v7434_v42, %v6878_v29  ;;  %4656 = vmatpush.bf16.msra.mxu2 %v9536_v32  ;;  %v9568_v46 = vadd.f32 %v4302_v28, %v4284_v54  ;;  %v9574_v11 = vor.u32 %v7448_v7, %v6934_v16 }
 0x21c   : > { %10827 = vst [vmem:[#allocation207_spill] sm:$0xff] %v9551_v10  ;;  %v9557_v19 = vor.u32 %v7466_v63, %v7006_v21  ;;  %v7416_v20 = vld [vmem:[%s8229_s14 + $0x664] sm:$0xf]  ;;  %v6806_v57 = vld [vmem:[%s8229_s14 + $0x668] sm:$0xf0]  ;;  %4618 = vmatpush.bf16.msra.mxu0 %v9538_v1  ;;  %v4267_v14 = vadd.f32 %v4266_v27, %v4248_v45 }
 0x21d   : > { %10828 = vst [vmem:[#allocation208_spill] sm:$0xff] %v9555_v53  ;;  %v7432_v0 = vld [vmem:[%s8229_s14 + $0x6e4] sm:$0xf]  ;;  %v6870_v34 = vld [vmem:[%s8229_s14 + $0x6e8] sm:$0xf0]  ;;  %4637 = vmatpush.bf16.msra.mxu1 %v9545_v49  ;;  %v9576_v39 = vor.u32 %v7416_v20, %v6806_v57 }
 0x21e   : > { %10829 = vst [vmem:[#allocation209_spill] sm:$0xff] %v9557_v19  ;;  %v7464_v38 = vld [vmem:[%s8229_s14 + $0x7e4] sm:$0xf]  ;;  %v6998_v59 = vld [vmem:[%s8229_s14 + $0x7e8] sm:$0xf0]  ;;  %4675 = vmatpush.bf16.msra.mxu3 %v9547_v56  ;;  %v9580_v28 = vor.u32 %v7432_v0, %v6870_v34 }
 0x21f   : > { %4725 = vmatpush.bf16.msrb.mxu2 %v9549_v6  ;;  %10830 = vst [vmem:[#allocation210_spill] sm:$0xff] %v9574_v11  ;;  %v9582_v54 = vor.u32 %v7464_v38, %v6998_v59  ;;  %v7446_v45 = vld [vmem:[%s8229_s14 + $0x754] sm:$0xf]  ;;  %v6926_v27 = vld [vmem:[%s8229_s14 + $0x758] sm:$0xf0]  ;;  %v4285_v63 = vpop.f32.mrf.mxu2 }
 0x220   : > { %4687 = vmatpush.bf16.msrb.mxu0 %v9551_v10  ;;  %10831 = vst [vmem:[#allocation211_spill] sm:$0xff] %v9576_v39  ;;  %v7414_v58 = vld [vmem:[%s8229_s14 + $0x654] sm:$0xf]  ;;  %v6798_v42 = vld [vmem:[%s8229_s14 + $0x658] sm:$0xf0]  ;;  %v4286_v57 = vadd.f32 %v4285_v63, %v4267_v14  ;;  %v9597_v59 = vor.u32 %v7446_v45, %v6926_v27 }
 0x221   : > { %4706 = vmatpush.bf16.msrb.mxu1 %v9555_v53  ;;  %10832 = vst [vmem:[#allocation212_spill] sm:$0xff] %v9580_v28  ;;  %v7430_v29 = vld [vmem:[%s8229_s14 + $0x6d4] sm:$0xf]  ;;  %v4304_v21 = vpop.f32.mrf.mxu3  ;;  %v6862_v7 = vld [vmem:[%s8229_s14 + $0x6d8] sm:$0xf0]  ;;  %v4316_v0 = vpop.f32.mrf.mxu0  ;;  %4619 = vmatmul.bf16.vlgmr.msra.gmra.mxu0 %v8833_v25 }
 0x222   : > { %4744 = vmatpush.bf16.msrb.mxu3 %v9557_v19  ;;  %10833 = vst [vmem:[#allocation213_spill] sm:$0xff] %v9582_v54  ;;  %v7462_v16 = vld [vmem:[%s8229_s14 + $0x7d4] sm:$0xf]  ;;  %v6990_v20 = vld [vmem:[%s8229_s14 + $0x7d8] sm:$0xf0]  ;;  %v4335_v34 = vpop.f32.mrf.mxu1  ;;  %v4317_v38 = vadd.f32 %v4316_v0, %v9468_v55  ;;  %v9603_v53 = vadd.f32 %v4304_v21, %v4286_v57  ;;  %v9605_v14 = vor.u32 %v7430_v29, %v6862_v7 }
 0x223   : > { %4726 = vmatpush.bf16.msrb.mxu2 %v9574_v11  ;;  %10834 = vst [vmem:[#allocation214_spill] sm:$0xff] %v9597_v59  ;;  %v7444_v11 = vld [vmem:[%s8229_s14 + $0x744] sm:$0xf]  ;;  %v6918_v19 = vld [vmem:[%s8229_s14 + $0x748] sm:$0xf0]  ;;  %v9607_v63 = vor.u32 %v7462_v16, %v6990_v20  ;;  %4638 = vmatmul.bf16.vlgmr.msra.gmra.mxu1 %v8835_v23 }
 0x224   : > { %4688 = vmatpush.bf16.msrb.mxu0 %v9576_v39  ;;  %v9599_v39 = vor.u32 %v7414_v58, %v6798_v42  ;;  %10836 = vst [vmem:[#allocation216_spill] sm:$0xff] %v9605_v14  ;;  %v7428_v10 = vld [vmem:[%s8229_s14 + $0x6c4] sm:$0xf]  ;;  %v4336_v6 = vadd.f32 %v4335_v34, %v4317_v38  ;;  %v6854_v55 = vld [vmem:[%s8229_s14 + $0x6c8] sm:$0xf0]  ;;  %v9621_v25 = vor.u32 %v7444_v11, %v6918_v19 }
 0x225   : > { %4707 = vmatpush.bf16.msrb.mxu1 %v9580_v28  ;;  %10837 = vst [vmem:[#allocation217_spill] sm:$0xff] %v9607_v63  ;;  %v7412_v28 = vld [vmem:[%s8229_s14 + $0x644] sm:$0xf]  ;;  %v6982_v27 = vld [vmem:[%s8229_s14 + $0x7c8] sm:$0xf0]  ;;  %4657 = vmatmul.bf16.vlgmr.msra.gmra.mxu2 %v8842_v5  ;;  %v9629_v5 = vor.u32 %v7428_v10, %v6854_v55 }
 0x226   : > { %4745 = vmatpush.bf16.msrb.mxu3 %v9582_v54  ;;  %10835 = vst [vmem:[#allocation215_spill] sm:$0xff] %v9599_v39  ;;  %v6790_v54 = vld [vmem:[%s8229_s14 + $0x648] sm:$0xf0]  ;;  %v7460_v45 = vld [vmem:[%s8229_s14 + $0x7c4] sm:$0xf] }
 0x227   : > { %4676 = vmatmul.bf16.vlgmr.msra.gmra.mxu3 %v8844_v12  ;;  %4727 = vmatpush.bf16.msrb.mxu2 %v9597_v59  ;;  %10838 = vst [vmem:[#allocation218_spill] sm:$0xff] %v9621_v25  ;;  %v9623_v23 = vor.u32 %v7412_v28, %v6790_v54  ;;  %v7442_v58 = vld [vmem:[%s8229_s14 + $0x734] sm:$0xf]  ;;  %v6910_v42 = vld [vmem:[%s8229_s14 + $0x738] sm:$0xf0]  ;;  %v9631_v12 = vor.u32 %v7460_v45, %v6982_v27  ;;  %v4354_v16 = vpop.f32.mrf.mxu2 }
 0x228   : > { %4689 = vmatpush.bf16.msrb.mxu0 %v9599_v39  ;;  %10840 = vst [vmem:[#allocation220_spill] sm:$0xff] %v9629_v5  ;;  %v7410_v29 = vld [vmem:[%s8229_s14 + $0x634] sm:$0xf]  ;;  %v6782_v21 = vld [vmem:[%s8229_s14 + $0x638] sm:$0xf0]  ;;  %v4355_v20 = vadd.f32 %v4354_v16, %v4336_v6  ;;  %v9642_v34 = vor.u32 %v7442_v58, %v6910_v42 }
 0x229   : > { %10839 = vst [vmem:[#allocation219_spill] sm:$0xff] %v9623_v23  ;;  %4708 = vmatpush.bf16.msrb.mxu1 %v9605_v14  ;;  %v7426_v7 = vld [vmem:[%s8229_s14 + $0x6b4] sm:$0xf]  ;;  %v4373_v19 = vpop.f32.mrf.mxu3  ;;  %v6846_v11 = vld [vmem:[%s8229_s14 + $0x6b8] sm:$0xf0]  ;;  %v4318_v57 = vpop.f32.mrf.mxu0  ;;  %v9644_v38 = vor.u32 %v7410_v29, %v6782_v21 }
 0x22a   : > { %4746 = vmatpush.bf16.msrb.mxu3 %v9607_v63  ;;  %10841 = vst [vmem:[#allocation221_spill] sm:$0xff] %v9631_v12  ;;  %v7458_v28 = vld [vmem:[%s8229_s14 + $0x7b4] sm:$0xf]  ;;  %v6974_v54 = vld [vmem:[%s8229_s14 + $0x7b8] sm:$0xf0]  ;;  %v4337_v0 = vpop.f32.mrf.mxu1  ;;  %v4319_v10 = vadd.f32 %v4318_v57, %v9513_v30  ;;  %v9648_v6 = vadd.f32 %v4373_v19, %v4355_v20  ;;  %v9652_v30 = vor.u32 %v7426_v7, %v6846_v11 }
 0x22b   : > { %4728 = vmatpush.bf16.msrb.mxu2 %v9621_v25  ;;  %10842 = vst [vmem:[#allocation222_spill] sm:$0xff] %v9642_v34  ;;  %v7440_v55 = vld [vmem:[%s8229_s14 + $0x724] sm:$0xf]  ;;  %v6902_v45 = vld [vmem:[%s8229_s14 + $0x728] sm:$0xf0]  ;;  %v9654_v27 = vor.u32 %v7458_v28, %v6974_v54  ;;  %v10956_v25 = vld [vmem:[#allocation97_spill] sm:$0xff] }
 0x22c   : > { %4690 = vmatpush.bf16.msrb.mxu0 %v9623_v23  ;;  %10843 = vst [vmem:[#allocation223_spill] sm:$0xff] %v9644_v38  ;;  %v7408_v16 = vld [vmem:[%s8229_s14 + $0x624] sm:$0xf]  ;;  %v6774_v57 = vld [vmem:[%s8229_s14 + $0x628] sm:$0xf0]  ;;  %v4338_v42 = vadd.f32 %v4337_v0, %v4319_v10  ;;  %v9664_v7 = vor.u32 %v7440_v55, %v6902_v45 }
 0x22d   : > { %4709 = vmatpush.bf16.msrb.mxu1 %v9629_v5  ;;  %10844 = vst [vmem:[#allocation224_spill] sm:$0xff] %v9652_v30  ;;  %v7424_v58 = vld [vmem:[%s8229_s14 + $0x6a4] sm:$0xf]  ;;  %v6838_v29 = vld [vmem:[%s8229_s14 + $0x6a8] sm:$0xf0]  ;;  %v9666_v11 = vor.u32 %v7408_v16, %v6774_v57 }
 0x22e   : > { %4747 = vmatpush.bf16.msrb.mxu3 %v9631_v12  ;;  %10845 = vst [vmem:[#allocation225_spill] sm:$0xff] %v9654_v27  ;;  %v7456_v21 = vld [vmem:[%s8229_s14 + $0x7a4] sm:$0xf]  ;;  %v6966_v19 = vld [vmem:[%s8229_s14 + $0x7a8] sm:$0xf0]  ;;  %v9672_v20 = vor.u32 %v7424_v58, %v6838_v29 }
 0x22f   : > { %4729 = vmatpush.bf16.msrb.mxu2 %v9642_v34  ;;  %10846 = vst [vmem:[#allocation226_spill] sm:$0xff] %v9664_v7  ;;  %v7438_v28 = vld [vmem:[%s8229_s14 + $0x714] sm:$0xf]  ;;  %v6894_v54 = vld [vmem:[%s8229_s14 + $0x718] sm:$0xf0]  ;;  %v9674_v0 = vor.u32 %v7456_v21, %v6966_v19  ;;  %v4356_v12 = vpop.f32.mrf.mxu2 }
 0x230   : > { %4691 = vmatpush.bf16.msrb.mxu0 %v9644_v38  ;;  %10847 = vst [vmem:[#allocation227_spill] sm:$0xff] %v9666_v11  ;;  %v7406_v10 = vld [vmem:[%s8229_s14 + $0x614] sm:$0xf]  ;;  %v6766_v34 = vld [vmem:[%s8229_s14 + $0x618] sm:$0xf0]  ;;  %v4357_v5 = vadd.f32 %v4356_v12, %v4338_v42  ;;  %v9685_v29 = vor.u32 %v7438_v28, %v6894_v54 }
 0x231   : > { %4710 = vmatpush.bf16.msrb.mxu1 %v9652_v30  ;;  %10848 = vst [vmem:[#allocation228_spill] sm:$0xff] %v9672_v20  ;;  %v7422_v38 = vld [vmem:[%s8229_s14 + $0x694] sm:$0xf]  ;;  %v4375_v55 = vpop.f32.mrf.mxu3  ;;  %v6830_v45 = vld [vmem:[%s8229_s14 + $0x698] sm:$0xf0]  ;;  %v4321_v30 = vpop.f32.mrf.mxu0  ;;  %v9687_v21 = vor.u32 %v7406_v10, %v6766_v34  ;;  %4624 = vmatmul.bf16.gmra.mxu0 %v8933_v2 }
 0x232   : > { %4748 = vmatpush.bf16.msrb.mxu3 %v9654_v27  ;;  %10849 = vst [vmem:[#allocation229_spill] sm:$0xff] %v9674_v0  ;;  %v7454_v16 = vld [vmem:[%s8229_s14 + $0x794] sm:$0xf]  ;;  %v6958_v57 = vld [vmem:[%s8229_s14 + $0x798] sm:$0xf0]  ;;  %v4340_v27 = vpop.f32.mrf.mxu1  ;;  %v4322_v58 = vadd.f32 %v4321_v30, %v9568_v46  ;;  %v9691_v12 = vadd.f32 %v4375_v55, %v4357_v5  ;;  %v9695_v46 = vor.u32 %v7422_v38, %v6830_v45 }
 0x233   : > { %4730 = vmatpush.bf16.msrb.mxu2 %v9664_v7  ;;  %10850 = vst [vmem:[#allocation230_spill] sm:$0xff] %v9685_v29  ;;  %v7436_v19 = vld [vmem:[%s8229_s14 + $0x704] sm:$0xf]  ;;  %v6886_v23 = vld [vmem:[%s8229_s14 + $0x708] sm:$0xf0]  ;;  %v9697_v30 = vor.u32 %v7454_v16, %v6958_v57  ;;  %4643 = vmatmul.bf16.gmra.mxu1 %v8935_v48 }
 0x234   : > { %4692 = vmatpush.bf16.msrb.mxu0 %v9666_v11  ;;  %10851 = vst [vmem:[#allocation231_spill] sm:$0xff] %v9687_v21  ;;  %v7404_v42 = vld [vmem:[%s8229_s14 + $0x604] sm:$0xf]  ;;  %v6758_v11 = vld [vmem:[%s8229_s14 + $0x608] sm:$0xf0]  ;;  %v4341_v54 = vadd.f32 %v4340_v27, %v4322_v58  ;;  %v9711_v38 = vor.u32 %v7436_v19, %v6886_v23 }
 0x235   : > { %4711 = vmatpush.bf16.msrb.mxu1 %v9672_v20  ;;  %10852 = vst [vmem:[#allocation232_spill] sm:$0xff] %v9695_v46  ;;  %v7420_v28 = vld [vmem:[%s8229_s14 + $0x684] sm:$0xf]  ;;  %v6822_v34 = vld [vmem:[%s8229_s14 + $0x688] sm:$0xf0]  ;;  %4662 = vmatmul.bf16.gmra.mxu2 %v8940_v15  ;;  %v9713_v55 = vor.u32 %v7404_v42, %v6758_v11 }
 0x236   : > { %4749 = vmatpush.bf16.msrb.mxu3 %v9674_v0  ;;  %10853 = vst [vmem:[#allocation233_spill] sm:$0xff] %v9697_v30  ;;  %v7452_v10 = vld [vmem:[%s8229_s14 + $0x784] sm:$0xf]  ;;  %v6950_v5 = vld [vmem:[%s8229_s14 + $0x788] sm:$0xf0]  ;;  %v9717_v2 = vor.u32 %v7420_v28, %v6822_v34 }
 0x237   : > { %4681 = vmatmul.bf16.gmra.mxu3 %v8942_v61  ;;  %4731 = vmatpush.bf16.msrb.mxu2 %v9685_v29  ;;  %10854 = vst [vmem:[#allocation234_spill] sm:$0xff] %v9711_v38  ;;  %v9719_v48 = vor.u32 %v7452_v10, %v6950_v5  ;;  %v4359_v27 = vpop.f32.mrf.mxu2  ;;  %v10864_v10 = vld [vmem:[#allocation9_spill] sm:$0xff]  ;;  %v10938_v0 = vld [vmem:[#allocation80_spill] sm:$0xff] }
 0x238   : > { %4693 = vmatpush.bf16.msrb.mxu0 %v9687_v21  ;;  %10855 = vst [vmem:[#allocation235_spill] sm:$0xff] %v9713_v55  ;;  %v4360_v45 = vadd.f32 %v4359_v27, %v4341_v54  ;;  %v10865_v27 = vld [vmem:[#allocation12_spill] sm:$0xff] }
 0x239   : > { %4712 = vmatpush.bf16.msrb.mxu1 %v9695_v46  ;;  %10856 = vst [vmem:[#allocation236_spill] sm:$0xff] %v9717_v2  ;;  %v4378_v15 = vpop.f32.mrf.mxu3  ;;  %v4323_v61 = vpop.f32.mrf.mxu0  ;;  %v7118_v63 = vld [vmem:[%s8222_s22 + $0xe8] sm:$0xf0] }
 0x23a   : > { %4750 = vmatpush.bf16.msrb.mxu3 %v9697_v30  ;;  %10857 = vst [vmem:[#allocation237_spill] sm:$0xff] %v9719_v48  ;;  %v4342_v16 = vpop.f32.mrf.mxu1  ;;  %v4324_v57 = vadd.f32 %v4323_v61, %v9603_v53  ;;  %v4379_v23 = vadd.f32 %v4378_v15, %v4360_v45  ;;  %v10866_v15 = vld [vmem:[#allocation10_spill] sm:$0xff]  ;;  %v10867_v45 = vld [vmem:[#allocation11_spill] sm:$0xff]  ;;  %v10868_v61 = vld [vmem:[#allocation13_spill] sm:$0xff] }
 0x23b   : > { %4732 = vmatpush.bf16.msrb.mxu2 %v9711_v38  ;;  %v10923_v38 = vld [vmem:[#allocation65_spill] sm:$0xff]  ;;  %v7102_v30 = vld [vmem:[%s8222_s22 + $0xd8] sm:$0xf0] }
 0x23c   : > { %4694 = vmatpush.bf16.msrb.mxu0 %v9713_v55  ;;  %v4343_v11 = vadd.f32 %v4342_v16, %v4324_v57 }
 0x23d   : > { %4713 = vmatpush.bf16.msrb.mxu1 %v9717_v2 }
 0x23e   : > { %4751 = vmatpush.bf16.msrb.mxu3 %v9719_v48 }
 0x23f   : > { %4961 = vmatpush.bf16.msra.mxu2 %v8244_v9  ;;  %v4361_v58 = vpop.f32.mrf.mxu2 }
 0x240   : > { %4923 = vmatpush.bf16.msra.mxu0 %v8237_v4  ;;  %v4362_v19 = vadd.f32 %v4361_v58, %v4343_v11 }
 0x241   : > { %4942 = vmatpush.bf16.msra.mxu1 %v8242_v8  ;;  %v4380_v53 = vpop.f32.mrf.mxu3  ;;  %v4392_v42 = vpop.f32.mrf.mxu0  ;;  %4695 = vmatmul.bf16.vlgmr.msrb.gmra.mxu0 %v9043_v51  ;;  %v10858_v8 = vld [vmem:[#allocation3_spill] sm:$0xff] }
 0x242   : > { %4980 = vmatpush.bf16.msra.mxu3 %v8250_v13  ;;  %v4411_v28 = vpop.f32.mrf.mxu1  ;;  %v4393_v9 = vadd.f32 %v4392_v42, %v9648_v6  ;;  %v4381_v4 = vadd.f32 %v4380_v53, %v4362_v19  ;;  %v10859_v13 = vld [vmem:[#allocation4_spill] sm:$0xff]  ;;  %v10870_v42 = vld [vmem:[#allocation14_spill] sm:$0xff] }
 0x243   : > { %4962 = vmatpush.bf16.msra.mxu2 %v8265_v22  ;;  %4714 = vmatmul.bf16.vlgmr.msrb.gmra.mxu1 %v9045_v50  ;;  %v10861_v50 = vld [vmem:[#allocation8_spill] sm:$0xff] }
 0x244   : > { %4924 = vmatpush.bf16.msra.mxu0 %v8257_v17  ;;  %v4412_v54 = vadd.f32 %v4411_v28, %v4393_v9  ;;  %v10860_v17 = vld [vmem:[#allocation5_spill] sm:$0xff]  ;;  %v10869_v19 = vld [vmem:[#allocation16_spill] sm:$0xff]  ;;  %v10871_v9 = vld [vmem:[#allocation15_spill] sm:$0xff] }
 0x245   : > { %4943 = vmatpush.bf16.msra.mxu1 %v8259_v18  ;;  %4733 = vmatmul.bf16.vlgmr.msrb.gmra.mxu2 %v9052_v31  ;;  %v10862_v31 = vld [vmem:[#allocation6_spill] sm:$0xff] }
 0x246   : > { %4981 = vmatpush.bf16.msra.mxu3 %v8270_v26 }
 0x247   : > { %4752 = vmatmul.bf16.vlgmr.msrb.gmra.mxu3 %v9054_v36  ;;  %4963 = vmatpush.bf16.msra.mxu2 %v8285_v35  ;;  %v4430_v18 = vpop.f32.mrf.mxu2  ;;  %v10863_v35 = vld [vmem:[#allocation7_spill] sm:$0xff] }
 0x248   : > { %4925 = vmatpush.bf16.msra.mxu0 %v10858_v8  ;;  %v4431_v26 = vadd.f32 %v4430_v18, %v4412_v54  ;;  %v10872_v54 = vld [vmem:[#allocation17_spill] sm:$0xff]  ;;  %v10875_v18 = vld [vmem:[#allocation148_spill] sm:$0xff] }
 0x249   : > { %4944 = vmatpush.bf16.msra.mxu1 %v10859_v13  ;;  %v4449_v22 = vpop.f32.mrf.mxu3  ;;  %v4394_v6 = vpop.f32.mrf.mxu0  ;;  %v10873_v13 = vld [vmem:[#allocation146_spill] sm:$0xff] }
 0x24a   : > { %4982 = vmatpush.bf16.msra.mxu3 %v10860_v17  ;;  %v4413_v34 = vpop.f32.mrf.mxu1  ;;  %v4395_v51 = vadd.f32 %v4394_v6, %v9691_v12  ;;  %v9746_v36 = vadd.f32 %v4449_v22, %v4431_v26  ;;  %v10874_v17 = vld [vmem:[#allocation147_spill] sm:$0xff]  ;;  %v10877_v22 = vld [vmem:[#allocation18_spill] sm:$0xff]  ;;  %v10879_v6 = vld [vmem:[#allocation21_spill] sm:$0xff] }
 0x24b   : > { %4964 = vmatpush.bf16.msra.mxu2 %v10861_v50  ;;  %v10878_v26 = vld [vmem:[#allocation19_spill] sm:$0xff] }
 0x24c   : > { %4926 = vmatpush.bf16.msra.mxu0 %v10862_v31  ;;  %v4414_v5 = vadd.f32 %v4413_v34, %v4395_v51 }
 0x24d   : > { %4945 = vmatpush.bf16.msra.mxu1 %v10863_v35 }
 0x24e   : > { %4983 = vmatpush.bf16.msra.mxu3 %v10864_v10  ;;  %v10880_v10 = vld [vmem:[#allocation24_spill] sm:$0xff] }
 0x24f   : > { %4965 = vmatpush.bf16.msra.mxu2 %v10865_v27  ;;  %v4432_v12 = vpop.f32.mrf.mxu2 }
 0x250   : > { %4927 = vmatpush.bf16.msra.mxu0 %v10866_v15  ;;  %v4433_v57 = vadd.f32 %v4432_v12, %v4414_v5  ;;  %v10881_v5 = vld [vmem:[#allocation22_spill] sm:$0xff]  ;;  %v10882_v15 = vld [vmem:[#allocation23_spill] sm:$0xff] }
 0x251   : > { %4946 = vmatpush.bf16.msra.mxu1 %v10867_v45  ;;  %v4451_v16 = vpop.f32.mrf.mxu3  ;;  %v4397_v11 = vpop.f32.mrf.mxu0  ;;  %4700 = vmatmul.bf16.gmra.mxu0 %v9143_v60  ;;  %v10883_v45 = vld [vmem:[#allocation25_spill] sm:$0xff]  ;;  %v7012_v12 = vld [vmem:[%s8222_s22] sm:$0xf] }
 0x252   : > { %4984 = vmatpush.bf16.msra.mxu3 %v10868_v61  ;;  %v4416_v58 = vpop.f32.mrf.mxu1  ;;  %v4398_v53 = vadd.f32 %v4397_v11, %v4379_v23  ;;  %v9756_v28 = vadd.f32 %v4451_v16, %v4433_v57  ;;  %v10876_v23 = vld [vmem:[#allocation20_spill] sm:$0xff]  ;;  %v7188_v16 = vld [vmem:[%s8222_s22 + $0x3c] sm:$0xf0]  ;;  %v10884_v57 = vld [vmem:[#allocation26_spill] sm:$0xff] }
 0x253   : > { %4966 = vmatpush.bf16.msra.mxu2 %v10869_v19  ;;  %4719 = vmatmul.bf16.gmra.mxu1 %v10873_v13  ;;  %v10885_v11 = vld [vmem:[#allocation28_spill] sm:$0xff]  ;;  %v10886_v19 = vld [vmem:[#allocation27_spill] sm:$0xff] }
 0x254   : > { %4928 = vmatpush.bf16.msra.mxu0 %v10870_v42  ;;  %v4417_v8 = vadd.f32 %v4416_v58, %v4398_v53  ;;  %v7014_v58 = vld [vmem:[%s8222_s22 + $0x40] sm:$0xf0]  ;;  %v7020_v53 = vld [vmem:[%s8222_s22 + $0x8] sm:$0xf]  ;;  %v10887_v42 = vld [vmem:[#allocation29_spill] sm:$0xff] }
 0x255   : > { %4947 = vmatpush.bf16.msra.mxu1 %v10871_v9  ;;  %4738 = vmatmul.bf16.gmra.mxu2 %v10874_v17  ;;  %v7189_v9 = vld [vmem:[%s8222_s22 + $0x44] sm:$0xf0] }
 0x256   : > { %4985 = vmatpush.bf16.msra.mxu3 %v10872_v54  ;;  %v7181_v54 = vld [vmem:[%s8222_s22 + $0xc] sm:$0xf] }
 0x257   : > { %4757 = vmatmul.bf16.gmra.mxu3 %v10875_v18  ;;  %4967 = vmatpush.bf16.msra.mxu2 %v10876_v23  ;;  %v9786_v18 = vor.u32 %v7188_v16, %v7012_v12  ;;  %v10895_v12 = vld [vmem:[#allocation37_spill] sm:$0xff] }
 0x258   : > { %4929 = vmatpush.bf16.msra.mxu0 %v10877_v22  ;;  %v4435_v34 = vpop.f32.mrf.mxu2  ;;  %v10888_v22 = vld [vmem:[#allocation30_spill] sm:$0xff] }
 0x259   : > { %4948 = vmatpush.bf16.msra.mxu1 %v10878_v26  ;;  %v4454_v51 = vpop.f32.mrf.mxu3  ;;  %v4436_v60 = vadd.f32 %v4435_v34, %v4417_v8  ;;  %v4399_v50 = vpop.f32.mrf.mxu0  ;;  %v7022_v8 = vld [vmem:[%s8222_s22 + $0x48] sm:$0xf0] }
 0x25a   : > { %4986 = vmatpush.bf16.msra.mxu3 %v10879_v6  ;;  %v4418_v31 = vpop.f32.mrf.mxu1  ;;  %v4400_v35 = vadd.f32 %v4399_v50, %v4381_v4  ;;  %v7180_v4 = vld [vmem:[%s8222_s22 + $0x4] sm:$0xf]  ;;  %v10889_v26 = vld [vmem:[#allocation32_spill] sm:$0xff]  ;;  %v9794_v50 = vor.u32 %v7181_v54, %v7022_v8  ;;  %v10899_v8 = vld [vmem:[#allocation41_spill] sm:$0xff] }
 0x25b   : > { %4968 = vmatpush.bf16.msra.mxu2 %v10880_v10  ;;  %v9770_v27 = vadd.f32 %v4454_v51, %v4436_v60  ;;  %v9788_v23 = vor.u32 %v7180_v4, %v7014_v58  ;;  %v9792_v60 = vor.u32 %v7189_v9, %v7020_v53  ;;  %v10898_v54 = vld [vmem:[#allocation39_spill] sm:$0xff] }
 0x25c   : > { %4930 = vmatpush.bf16.msra.mxu0 %v10881_v5  ;;  %v4419_v61 = vadd.f32 %v4418_v31, %v4400_v35  ;;  %v10890_v31 = vld [vmem:[#allocation31_spill] sm:$0xff]  ;;  %v10891_v35 = vld [vmem:[#allocation33_spill] sm:$0xff] }
 0x25d   : > { %4949 = vmatpush.bf16.msra.mxu1 %v10882_v15  ;;  %v10892_v15 = vld [vmem:[#allocation34_spill] sm:$0xff] }
 0x25e   : > { %4987 = vmatpush.bf16.msra.mxu3 %v10883_v45  ;;  %v10893_v45 = vld [vmem:[#allocation36_spill] sm:$0xff] }
 0x25f   : > { %5037 = vmatpush.bf16.msrb.mxu2 %v10884_v57 }
 0x260   : > { %4999 = vmatpush.bf16.msrb.mxu0 %v10885_v11  ;;  %v4437_v13 = vpop.f32.mrf.mxu2 }
 0x261   : > { %5018 = vmatpush.bf16.msrb.mxu1 %v10886_v19  ;;  %v4456_v17 = vpop.f32.mrf.mxu3  ;;  %v4438_v6 = vadd.f32 %v4437_v13, %v4419_v61  ;;  %v4468_v34 = vpop.f32.mrf.mxu0  ;;  %4931 = vmatmul.bf16.vlgmr.msra.gmra.mxu0 %v9786_v18  ;;  %v10894_v61 = vld [vmem:[#allocation35_spill] sm:$0xff]  ;;  %v10896_v19 = vld [vmem:[#allocation38_spill] sm:$0xff] }
 0x262   : > { %5056 = vmatpush.bf16.msrb.mxu3 %v10887_v42  ;;  %v4487_v51 = vpop.f32.mrf.mxu1  ;;  %v10897_v42 = vld [vmem:[#allocation40_spill] sm:$0xff]  ;;  %v7076_v13 = vld [vmem:[%s8222_s22 + $0x80] sm:$0xf] }
 0x263   : > { %5038 = vmatpush.bf16.msrb.mxu2 %v10888_v22  ;;  %v4488_v10 = vadd.f32 %v4487_v51, %v4468_v34  ;;  %v9798_v5 = vadd.f32 %v4456_v17, %v4438_v6  ;;  %4950 = vmatmul.bf16.vlgmr.msra.gmra.mxu1 %v9788_v23  ;;  %v7204_v17 = vld [vmem:[%s8222_s22 + $0xbc] sm:$0xf0]  ;;  %v7196_v22 = vld [vmem:[%s8222_s22 + $0x84] sm:$0xf]  ;;  %v7084_v6 = vld [vmem:[%s8222_s22 + $0x88] sm:$0xf] }
 0x264   : > { %5000 = vmatpush.bf16.msrb.mxu0 %v10889_v26  ;;  %v7078_v26 = vld [vmem:[%s8222_s22 + $0xc0] sm:$0xf0]  ;;  %v7205_v34 = vld [vmem:[%s8222_s22 + $0xc4] sm:$0xf0]  ;;  %v7197_v51 = vld [vmem:[%s8222_s22 + $0x8c] sm:$0xf] }
 0x265   : > { %5019 = vmatpush.bf16.msrb.mxu1 %v10890_v31  ;;  %4969 = vmatmul.bf16.vlgmr.msra.gmra.mxu2 %v9792_v60  ;;  %v7086_v31 = vld [vmem:[%s8222_s22 + $0xc8] sm:$0xf0] }
 0x266   : > { %5057 = vmatpush.bf16.msrb.mxu3 %v10891_v35  ;;  %v10900_v35 = vld [vmem:[#allocation42_spill] sm:$0xff] }
 0x267   : > { %4988 = vmatmul.bf16.vlgmr.msra.gmra.mxu3 %v9794_v50  ;;  %5039 = vmatpush.bf16.msrb.mxu2 %v10892_v15  ;;  %v10902_v15 = vld [vmem:[#allocation43_spill] sm:$0xff] }
 0x268   : > { %5001 = vmatpush.bf16.msrb.mxu0 %v10893_v45  ;;  %v4506_v16 = vpop.f32.mrf.mxu2  ;;  %v10903_v45 = vld [vmem:[#allocation45_spill] sm:$0xff] }
 0x269   : > { %5020 = vmatpush.bf16.msrb.mxu1 %v10894_v61  ;;  %v4507_v11 = vadd.f32 %v4506_v16, %v4488_v10  ;;  %v4470_v4 = vpop.f32.mrf.mxu0  ;;  %v10901_v10 = vld [vmem:[#allocation44_spill] sm:$0xff]  ;;  %v9826_v16 = vor.u32 %v7204_v17, %v7076_v13  ;;  %v10907_v13 = vld [vmem:[#allocation49_spill] sm:$0xff] }
 0x26a   : > { %5058 = vmatpush.bf16.msrb.mxu3 %v10895_v12  ;;  %v4525_v57 = vpop.f32.mrf.mxu3  ;;  %v4489_v58 = vpop.f32.mrf.mxu1  ;;  %v10909_v17 = vld [vmem:[#allocation52_spill] sm:$0xff] }
 0x26b   : > { %v4490_v53 = vadd.f32 %v4489_v58, %v4470_v4  ;;  %5040 = vmatpush.bf16.msrb.mxu2 %v10896_v19  ;;  %v9810_v9 = vadd.f32 %v4525_v57, %v4507_v11  ;;  %v9828_v57 = vor.u32 %v7196_v22, %v7078_v26  ;;  %v9830_v19 = vor.u32 %v7205_v34, %v7084_v6  ;;  %v10910_v22 = vld [vmem:[#allocation51_spill] sm:$0xff]  ;;  %v10911_v26 = vld [vmem:[#allocation53_spill] sm:$0xff] }
 0x26c   : > { %5002 = vmatpush.bf16.msrb.mxu0 %v10897_v42  ;;  %v9832_v42 = vor.u32 %v7197_v51, %v7086_v31 }
 0x26d   : > { %5021 = vmatpush.bf16.msrb.mxu1 %v10898_v54 }
 0x26e   : > { %5059 = vmatpush.bf16.msrb.mxu3 %v10899_v8  ;;  %v10904_v8 = vld [vmem:[#allocation46_spill] sm:$0xff] }
 0x26f   : > { %5041 = vmatpush.bf16.msrb.mxu2 %v10900_v35  ;;  %v10905_v35 = vld [vmem:[#allocation48_spill] sm:$0xff] }
 0x270   : > { %5003 = vmatpush.bf16.msrb.mxu0 %v10901_v10  ;;  %v4508_v61 = vpop.f32.mrf.mxu2 }
 0x271   : > { %5022 = vmatpush.bf16.msrb.mxu1 %v10902_v15  ;;  %v4509_v11 = vadd.f32 %v4508_v61, %v4490_v53  ;;  %v4473_v4 = vpop.f32.mrf.mxu0  ;;  %v10906_v15 = vld [vmem:[#allocation47_spill] sm:$0xff]  ;;  %4936 = vmatmul.bf16.gmra.mxu0 %v9826_v16  ;;  %v10908_v53 = vld [vmem:[#allocation50_spill] sm:$0xff] }
 0x272   : > { %5060 = vmatpush.bf16.msrb.mxu3 %v10903_v45  ;;  %v4527_v12 = vpop.f32.mrf.mxu3  ;;  %v4492_v58 = vpop.f32.mrf.mxu1 }
 0x273   : > { %v4493_v54 = vadd.f32 %v4492_v58, %v4473_v4  ;;  %5042 = vmatpush.bf16.msrb.mxu2 %v10904_v8  ;;  %v9836_v10 = vadd.f32 %v4527_v12, %v4509_v11  ;;  %4955 = vmatmul.bf16.gmra.mxu1 %v9828_v57  ;;  %v10912_v12 = vld [vmem:[#allocation54_spill] sm:$0xff]  ;;  %v10914_v58 = vld [vmem:[#allocation55_spill] sm:$0xff] }
 0x274   : > { %5004 = vmatpush.bf16.msrb.mxu0 %v10905_v35  ;;  %v10913_v11 = vld [vmem:[#allocation58_spill] sm:$0xff]  ;;  %v10915_v8 = vld [vmem:[#allocation59_spill] sm:$0xff]  ;;  %v7028_v35 = vld [vmem:[%s8222_s22 + $0x10] sm:$0xf] }
 0x275   : > { %5023 = vmatpush.bf16.msrb.mxu1 %v10906_v15  ;;  %4974 = vmatmul.bf16.gmra.mxu2 %v9830_v19  ;;  %v7190_v15 = vld [vmem:[%s8222_s22 + $0x4c] sm:$0xf0] }
 0x276   : > { %5061 = vmatpush.bf16.msrb.mxu3 %v10907_v13  ;;  %v10916_v13 = vld [vmem:[#allocation56_spill] sm:$0xff] }
 0x277   : > { %4993 = vmatmul.bf16.gmra.mxu3 %v9832_v42  ;;  %5043 = vmatpush.bf16.msrb.mxu2 %v10908_v53  ;;  %v7182_v53 = vld [vmem:[%s8222_s22 + $0x14] sm:$0xf] }
 0x278   : > { %5005 = vmatpush.bf16.msrb.mxu0 %v10909_v17  ;;  %v4511_v6 = vpop.f32.mrf.mxu2  ;;  %v7030_v17 = vld [vmem:[%s8222_s22 + $0x50] sm:$0xf0] }
 0x279   : > { %5024 = vmatpush.bf16.msrb.mxu1 %v10910_v22  ;;  %v4512_v51 = vadd.f32 %v4511_v6, %v4493_v54  ;;  %v4475_v31 = vpop.f32.mrf.mxu0  ;;  %v10917_v54 = vld [vmem:[#allocation60_spill] sm:$0xff]  ;;  %v7036_v22 = vld [vmem:[%s8222_s22 + $0x18] sm:$0xf]  ;;  %v10919_v6 = vld [vmem:[#allocation61_spill] sm:$0xff] }
 0x27a   : > { %5062 = vmatpush.bf16.msrb.mxu3 %v10911_v26  ;;  %v4530_v34 = vpop.f32.mrf.mxu3  ;;  %v4494_v45 = vpop.f32.mrf.mxu1  ;;  %v10918_v26 = vld [vmem:[#allocation57_spill] sm:$0xff] }
 0x27b   : > { %v4495_v61 = vadd.f32 %v4494_v45, %v4475_v31  ;;  %5044 = vmatpush.bf16.msrb.mxu2 %v10912_v12  ;;  %v9850_v4 = vadd.f32 %v4530_v34, %v4512_v51  ;;  %v7191_v31 = vld [vmem:[%s8222_s22 + $0x54] sm:$0xf0]  ;;  %v7183_v34 = vld [vmem:[%s8222_s22 + $0x1c] sm:$0xf] }
 0x27c   : > { %5006 = vmatpush.bf16.msrb.mxu0 %v10913_v11  ;;  %v7038_v51 = vld [vmem:[%s8222_s22 + $0x58] sm:$0xf0]  ;;  %v9866_v11 = vor.u32 %v7190_v15, %v7028_v35  ;;  %v9872_v55 = vor.u32 %v7191_v31, %v7036_v22  ;;  %v10926_v22 = vld [vmem:[#allocation68_spill] sm:$0xff] }
 0x27d   : > { %5025 = vmatpush.bf16.msrb.mxu1 %v10914_v58  ;;  %v9868_v58 = vor.u32 %v7182_v53, %v7030_v17  ;;  %v10925_v17 = vld [vmem:[#allocation67_spill] sm:$0xff] }
 0x27e   : > { %5063 = vmatpush.bf16.msrb.mxu3 %v10915_v8  ;;  %v10920_v8 = vld [vmem:[#allocation62_spill] sm:$0xff] }
 0x27f   : > { %5113 = vmatpush.bf16.msra.mxu2 %v10916_v13  ;;  %v10921_v13 = vld [vmem:[#allocation63_spill] sm:$0xff] }
 0x280   : > { %5075 = vmatpush.bf16.msra.mxu0 %v10917_v54  ;;  %v4513_v45 = vpop.f32.mrf.mxu2 }
 0x281   : > { %5094 = vmatpush.bf16.msra.mxu1 %v10918_v26  ;;  %v4514_v54 = vadd.f32 %v4513_v45, %v4495_v61  ;;  %v4544_v48 = vpop.f32.mrf.mxu0  ;;  %v9874_v26 = vor.u32 %v7183_v34, %v7038_v51  ;;  %5007 = vmatmul.bf16.vlgmr.msrb.gmra.mxu0 %v9866_v11  ;;  %v10924_v61 = vld [vmem:[#allocation66_spill] sm:$0xff] }
 0x282   : > { %5132 = vmatpush.bf16.msra.mxu3 %v10919_v6  ;;  %v4532_v12 = vpop.f32.mrf.mxu3  ;;  %v4563_v2 = vpop.f32.mrf.mxu1  ;;  %v10922_v6 = vld [vmem:[#allocation64_spill] sm:$0xff]  ;;  %v4545_v35 = vadd.f32 %v4544_v48, %v9810_v9  ;;  %v10928_v45 = vld [vmem:[#allocation70_spill] sm:$0xff] }
 0x283   : > { %5114 = vmatpush.bf16.msra.mxu2 %v10920_v8  ;;  %v9879_v15 = vadd.f32 %v4532_v12, %v4514_v54  ;;  %5026 = vmatmul.bf16.vlgmr.msrb.gmra.mxu1 %v9868_v58  ;;  %v10929_v12 = vld [vmem:[#allocation71_spill] sm:$0xff]  ;;  %v10931_v54 = vld [vmem:[#allocation73_spill] sm:$0xff] }
 0x284   : > { %5076 = vmatpush.bf16.msra.mxu0 %v10921_v13  ;;  %v4564_v53 = vadd.f32 %v4563_v2, %v4545_v35  ;;  %v10930_v13 = vld [vmem:[#allocation72_spill] sm:$0xff]  ;;  %v7092_v35 = vld [vmem:[%s8222_s22 + $0x90] sm:$0xf] }
 0x285   : > { %5095 = vmatpush.bf16.msra.mxu1 %v10922_v6  ;;  %5045 = vmatmul.bf16.vlgmr.msrb.gmra.mxu2 %v9872_v55 }
 0x286   : > { %5133 = vmatpush.bf16.msra.mxu3 %v10923_v38  ;;  %v10927_v38 = vld [vmem:[#allocation69_spill] sm:$0xff] }
 0x287   : > { %5064 = vmatmul.bf16.vlgmr.msrb.gmra.mxu3 %v9874_v26  ;;  %5115 = vmatpush.bf16.msra.mxu2 %v10924_v61  ;;  %v7206_v61 = vld [vmem:[%s8222_s22 + $0xcc] sm:$0xf0] }
 0x288   : > { %5077 = vmatpush.bf16.msra.mxu0 %v10925_v17  ;;  %v4582_v2 = vpop.f32.mrf.mxu2  ;;  %v7094_v17 = vld [vmem:[%s8222_s22 + $0xd0] sm:$0xf0] }
 0x289   : > { %5096 = vmatpush.bf16.msra.mxu1 %v10926_v22  ;;  %v4583_v9 = vadd.f32 %v4582_v2, %v4564_v53  ;;  %v4546_v31 = vpop.f32.mrf.mxu0  ;;  %v7198_v53 = vld [vmem:[%s8222_s22 + $0x94] sm:$0xf]  ;;  %v7100_v22 = vld [vmem:[%s8222_s22 + $0x98] sm:$0xf]  ;;  %v7199_v2 = vld [vmem:[%s8222_s22 + $0x9c] sm:$0xf] }
 0x28a   : > { %5134 = vmatpush.bf16.msra.mxu3 %v10927_v38  ;;  %v4601_v48 = vpop.f32.mrf.mxu3  ;;  %v4565_v34 = vpop.f32.mrf.mxu1  ;;  %v4547_v51 = vadd.f32 %v4546_v31, %v9836_v10  ;;  %v7207_v38 = vld [vmem:[%s8222_s22 + $0xd4] sm:$0xf0]  ;;  %v10933_v31 = vld [vmem:[#allocation75_spill] sm:$0xff]  ;;  %v9914_v29 = vor.u32 %v7199_v2, %v7102_v30 }
 0x28b   : > { %5116 = vmatpush.bf16.msra.mxu2 %v10928_v45  ;;  %v9892_v8 = vadd.f32 %v4601_v48, %v4583_v9  ;;  %v10932_v10 = vld [vmem:[#allocation74_spill] sm:$0xff]  ;;  %v10934_v45 = vld [vmem:[#allocation76_spill] sm:$0xff]  ;;  %v10935_v48 = vld [vmem:[#allocation77_spill] sm:$0xff]  ;;  %v9912_v21 = vor.u32 %v7207_v38, %v7100_v22 }
 0x28c   : > { %5078 = vmatpush.bf16.msra.mxu0 %v10929_v12  ;;  %v4566_v6 = vadd.f32 %v4565_v34, %v4547_v51  ;;  %v9910_v34 = vor.u32 %v7198_v53, %v7094_v17  ;;  %v10940_v30 = vld [vmem:[#allocation82_spill] sm:$0xff] }
 0x28d   : > { %5097 = vmatpush.bf16.msra.mxu1 %v10930_v13  ;;  %v9908_v13 = vor.u32 %v7206_v61, %v7092_v35  ;;  %v10939_v35 = vld [vmem:[#allocation81_spill] sm:$0xff] }
 0x28e   : > { %5135 = vmatpush.bf16.msra.mxu3 %v10931_v54 }
 0x28f   : > { %5117 = vmatpush.bf16.msra.mxu2 %v10932_v10 }
 0x290   : > { %5079 = vmatpush.bf16.msra.mxu0 %v10933_v31  ;;  %v4584_v9 = vpop.f32.mrf.mxu2  ;;  %v10936_v31 = vld [vmem:[#allocation78_spill] sm:$0xff] }
 0x291   : > { %5098 = vmatpush.bf16.msra.mxu1 %v10934_v45  ;;  %v4585_v51 = vadd.f32 %v4584_v9, %v4566_v6  ;;  %v4549_v54 = vpop.f32.mrf.mxu0  ;;  %v10937_v45 = vld [vmem:[#allocation79_spill] sm:$0xff]  ;;  %5012 = vmatmul.bf16.gmra.mxu0 %v9908_v13  ;;  %v10942_v6 = vld [vmem:[#allocation84_spill] sm:$0xff]  ;;  %v10944_v9 = vld [vmem:[#allocation86_spill] sm:$0xff] }
 0x292   : > { %5136 = vmatpush.bf16.msra.mxu3 %v10935_v48  ;;  %v4603_v12 = vpop.f32.mrf.mxu3  ;;  %v4568_v46 = vpop.f32.mrf.mxu1  ;;  %v4550_v10 = vadd.f32 %v4549_v54, %v9850_v4  ;;  %v10941_v4 = vld [vmem:[#allocation83_spill] sm:$0xff]  ;;  %v10946_v54 = vld [vmem:[#allocation89_spill] sm:$0xff] }
 0x293   : > { %5118 = vmatpush.bf16.msra.mxu2 %v10936_v31  ;;  %v9919_v48 = vadd.f32 %v4603_v12, %v4585_v51  ;;  %5031 = vmatmul.bf16.gmra.mxu1 %v9910_v34  ;;  %v10945_v12 = vld [vmem:[#allocation88_spill] sm:$0xff] }
 0x294   : > { %5080 = vmatpush.bf16.msra.mxu0 %v10937_v45  ;;  %v4569_v61 = vadd.f32 %v4568_v46, %v4550_v10  ;;  %v10947_v10 = vld [vmem:[#allocation90_spill] sm:$0xff]  ;;  %v7044_v45 = vld [vmem:[%s8222_s22 + $0x20] sm:$0xf] }
 0x295   : > { %5099 = vmatpush.bf16.msra.mxu1 %v10938_v0  ;;  %5050 = vmatmul.bf16.gmra.mxu2 %v9912_v21  ;;  %v10943_v0 = vld [vmem:[#allocation85_spill] sm:$0xff] }
 0x296   : > { %5137 = vmatpush.bf16.msra.mxu3 %v10939_v35  ;;  %v7192_v35 = vld [vmem:[%s8222_s22 + $0x5c] sm:$0xf0] }
 0x297   : > { %5069 = vmatmul.bf16.gmra.mxu3 %v9914_v29  ;;  %5119 = vmatpush.bf16.msra.mxu2 %v10940_v30  ;;  %v10949_v30 = vld [vmem:[#allocation91_spill] sm:$0xff] }
 0x298   : > { %5081 = vmatpush.bf16.msra.mxu0 %v10941_v4  ;;  %v4587_v53 = vpop.f32.mrf.mxu2  ;;  %v7046_v4 = vld [vmem:[%s8222_s22 + $0x60] sm:$0xf0] }
 0x299   : > { %5100 = vmatpush.bf16.msra.mxu1 %v10942_v6  ;;  %v4588_v17 = vadd.f32 %v4587_v53, %v4569_v61  ;;  %v4551_v22 = vpop.f32.mrf.mxu0  ;;  %v10948_v61 = vld [vmem:[#allocation87_spill] sm:$0xff]  ;;  %v7052_v6 = vld [vmem:[%s8222_s22 + $0x28] sm:$0xf]  ;;  %v10951_v53 = vld [vmem:[#allocation93_spill] sm:$0xff] }
 0x29a   : > { %5138 = vmatpush.bf16.msra.mxu3 %v10943_v0  ;;  %v4606_v46 = vpop.f32.mrf.mxu3  ;;  %v4570_v38 = vpop.f32.mrf.mxu1  ;;  %v4552_v2 = vadd.f32 %v4551_v22, %v9879_v15  ;;  %v7184_v15 = vld [vmem:[%s8222_s22 + $0x24] sm:$0xf]  ;;  %v10950_v0 = vld [vmem:[#allocation92_spill] sm:$0xff] }
 0x29b   : > { %5120 = vmatpush.bf16.msra.mxu2 %v10944_v9  ;;  %v9934_v51 = vadd.f32 %v4606_v46, %v4588_v17  ;;  %v7193_v46 = vld [vmem:[%s8222_s22 + $0x64] sm:$0xf0]  ;;  %v7185_v17 = vld [vmem:[%s8222_s22 + $0x2c] sm:$0xf] }
 0x29c   : > { %5082 = vmatpush.bf16.msra.mxu0 %v10945_v12  ;;  %v4571_v31 = vadd.f32 %v4570_v38, %v4552_v2  ;;  %v7054_v22 = vld [vmem:[%s8222_s22 + $0x68] sm:$0xf0]  ;;  %v9952_v38 = vor.u32 %v7184_v15, %v7046_v4  ;;  %v10952_v2 = vld [vmem:[#allocation94_spill] sm:$0xff]  ;;  %v9956_v7 = vor.u32 %v7193_v46, %v7052_v6  ;;  %v10958_v4 = vld [vmem:[#allocation99_spill] sm:$0xff] }
 0x29d   : > { %5101 = vmatpush.bf16.msra.mxu1 %v10946_v54  ;;  %v9950_v54 = vor.u32 %v7192_v35, %v7044_v45  ;;  %v10959_v6 = vld [vmem:[#allocation100_spill] sm:$0xff] }
 0x29e   : > { %5139 = vmatpush.bf16.msra.mxu3 %v10947_v10  ;;  %v10953_v10 = vld [vmem:[#allocation95_spill] sm:$0xff] }
 0x29f   : > { %5189 = vmatpush.bf16.msrb.mxu2 %v10948_v61 }
 0x2a0   : > { %5151 = vmatpush.bf16.msrb.mxu0 %v10949_v30  ;;  %v4589_v9 = vpop.f32.mrf.mxu2 }
 0x2a1   : > { %5170 = vmatpush.bf16.msrb.mxu1 %v10950_v0  ;;  %v4590_v61 = vadd.f32 %v4589_v9, %v4571_v31  ;;  %v4620_v30 = vpop.f32.mrf.mxu0  ;;  %v9958_v0 = vor.u32 %v7185_v17, %v7054_v22  ;;  %5083 = vmatmul.bf16.vlgmr.msra.gmra.mxu0 %v9950_v54  ;;  %v10957_v31 = vld [vmem:[#allocation98_spill] sm:$0xff] }
 0x2a2   : > { %5208 = vmatpush.bf16.msrb.mxu3 %v10951_v53  ;;  %v4608_v12 = vpop.f32.mrf.mxu3  ;;  %v4639_v20 = vpop.f32.mrf.mxu1  ;;  %v10955_v53 = vld [vmem:[#allocation96_spill] sm:$0xff]  ;;  %v4621_v45 = vadd.f32 %v4620_v30, %v9892_v8  ;;  %v10964_v30 = vld [vmem:[#allocation105_spill] sm:$0xff] }
 0x2a3   : > { %5190 = vmatpush.bf16.msrb.mxu2 %v10952_v2  ;;  %10954 = vst [vmem:[#allocation3_spill] sm:$0xff] %v9958_v0  ;;  %v9963_v35 = vadd.f32 %v4608_v12, %v4590_v61  ;;  %5102 = vmatmul.bf16.vlgmr.msra.gmra.mxu1 %v9952_v38  ;;  %v10961_v12 = vld [vmem:[#allocation102_spill] sm:$0xff]  ;;  %v10962_v2 = vld [vmem:[#allocation103_spill] sm:$0xff]  ;;  %v10963_v61 = vld [vmem:[#allocation104_spill] sm:$0xff] }
 0x2a4   : > { %5152 = vmatpush.bf16.msrb.mxu0 %v10953_v10  ;;  %v4640_v15 = vadd.f32 %v4639_v20, %v4621_v45  ;;  %v7108_v45 = vld [vmem:[%s8222_s22 + $0xa0] sm:$0xf] }
 0x2a5   : > { %5171 = vmatpush.bf16.msrb.mxu1 %v10955_v53  ;;  %5121 = vmatmul.bf16.vlgmr.msra.gmra.mxu2 %v9956_v7 }
 0x2a6   : > { %5209 = vmatpush.bf16.msrb.mxu3 %v10956_v25  ;;  %v10960_v25 = vld [vmem:[#allocation101_spill] sm:$0xff] }
 0x2a7   : > { %5140 = vmatmul.bf16.vlgmr.msra.gmra.mxu3 %v9958_v0  ;;  %5191 = vmatpush.bf16.msrb.mxu2 %v10957_v31  ;;  %v7208_v31 = vld [vmem:[%s8222_s22 + $0xdc] sm:$0xf0]  ;;  %v10974_v0 = vld [vmem:[#allocation112_spill] sm:$0xff] }
 0x2a8   : > { %5153 = vmatpush.bf16.msrb.mxu0 %v10958_v4  ;;  %v4658_v20 = vpop.f32.mrf.mxu2  ;;  %v7110_v4 = vld [vmem:[%s8222_s22 + $0xe0] sm:$0xf0] }
 0x2a9   : > { %5172 = vmatpush.bf16.msrb.mxu1 %v10959_v6  ;;  %v4659_v46 = vadd.f32 %v4658_v20, %v4640_v15  ;;  %v4622_v17 = vpop.f32.mrf.mxu0  ;;  %v7200_v15 = vld [vmem:[%s8222_s22 + $0xa4] sm:$0xf]  ;;  %v7116_v6 = vld [vmem:[%s8222_s22 + $0xa8] sm:$0xf]  ;;  %v7201_v20 = vld [vmem:[%s8222_s22 + $0xac] sm:$0xf] }
 0x2aa   : > { %5210 = vmatpush.bf16.msrb.mxu3 %v10960_v25  ;;  %v4677_v8 = vpop.f32.mrf.mxu3  ;;  %v4641_v22 = vpop.f32.mrf.mxu1  ;;  %v4623_v9 = vadd.f32 %v4622_v17, %v9919_v48  ;;  %v7209_v25 = vld [vmem:[%s8222_s22 + $0xe4] sm:$0xf0]  ;;  %v10965_v48 = vld [vmem:[#allocation106_spill] sm:$0xff]  ;;  %v10966_v17 = vld [vmem:[#allocation107_spill] sm:$0xff]  ;;  %v9998_v59 = vor.u32 %v7201_v20, %v7118_v63 }
 0x2ab   : > { %5192 = vmatpush.bf16.msrb.mxu2 %v10961_v12  ;;  %v9976_v10 = vadd.f32 %v4677_v8, %v4659_v46  ;;  %v10967_v12 = vld [vmem:[#allocation108_spill] sm:$0xff]  ;;  %v10968_v8 = vld [vmem:[#allocation109_spill] sm:$0xff]  ;;  %v9996_v39 = vor.u32 %v7209_v25, %v7116_v6  ;;  %v10976_v63 = vld [vmem:[#allocation114_spill] sm:$0xff] }
 0x2ac   : > { %5154 = vmatpush.bf16.msrb.mxu0 %v10962_v2  ;;  %v4642_v53 = vadd.f32 %v4641_v22, %v4623_v9  ;;  %v9994_v22 = vor.u32 %v7200_v15, %v7110_v4  ;;  %10971 = vst [vmem:[#allocation8_spill] sm:$0xff] %v9998_v59 }
 0x2ad   : > { %5173 = vmatpush.bf16.msrb.mxu1 %v10963_v61  ;;  %v9992_v61 = vor.u32 %v7208_v31, %v7108_v45  ;;  %10970 = vst [vmem:[#allocation5_spill] sm:$0xff] %v9996_v39  ;;  %v10975_v45 = vld [vmem:[#allocation113_spill] sm:$0xff] }
 0x2ae   : > { %5211 = vmatpush.bf16.msrb.mxu3 %v10964_v30  ;;  %10969 = vst [vmem:[#allocation4_spill] sm:$0xff] %v9994_v22 }
 0x2af   : > { %5193 = vmatpush.bf16.msrb.mxu2 %v10965_v48 }
 0x2b0   : > { %5155 = vmatpush.bf16.msrb.mxu0 %v10966_v17  ;;  %v4660_v46 = vpop.f32.mrf.mxu2  ;;  %v10972_v17 = vld [vmem:[#allocation110_spill] sm:$0xff] }
 0x2b1   : > { %5174 = vmatpush.bf16.msrb.mxu1 %v10967_v12  ;;  %v4661_v9 = vadd.f32 %v4660_v46, %v4642_v53  ;;  %v4625_v30 = vpop.f32.mrf.mxu0  ;;  %v10973_v12 = vld [vmem:[#allocation111_spill] sm:$0xff]  ;;  %5088 = vmatmul.bf16.gmra.mxu0 %v9992_v61  ;;  %v10978_v53 = vld [vmem:[#allocation116_spill] sm:$0xff]  ;;  %v10980_v46 = vld [vmem:[#allocation118_spill] sm:$0xff] }
 0x2b2   : > { %5212 = vmatpush.bf16.msrb.mxu3 %v10968_v8  ;;  %v4679_v2 = vpop.f32.mrf.mxu3  ;;  %v4644_v14 = vpop.f32.mrf.mxu1  ;;  %v4626_v48 = vadd.f32 %v4625_v30, %v9934_v51  ;;  %v10977_v51 = vld [vmem:[#allocation115_spill] sm:$0xff]  ;;  %v10982_v30 = vld [vmem:[#allocation122_spill] sm:$0xff] }
 0x2b3   : > { %5194 = vmatpush.bf16.msrb.mxu2 %v10972_v17  ;;  %v10003_v8 = vadd.f32 %v4679_v2, %v4661_v9  ;;  %5107 = vmatmul.bf16.gmra.mxu1 %v9994_v22  ;;  %v10981_v2 = vld [vmem:[#allocation119_spill] sm:$0xff]  ;;  %v10995_v22 = vld [vmem:[#allocation129_spill] sm:$0xff] }
 0x2b4   : > { %5156 = vmatpush.bf16.msrb.mxu0 %v10973_v12  ;;  %v4645_v31 = vadd.f32 %v4644_v14, %v4626_v48  ;;  %v10983_v48 = vld [vmem:[#allocation123_spill] sm:$0xff]  ;;  %v7060_v12 = vld [vmem:[%s8222_s22 + $0x30] sm:$0xf] }
 0x2b5   : > { %5175 = vmatpush.bf16.msrb.mxu1 %v10974_v0  ;;  %5126 = vmatmul.bf16.gmra.mxu2 %v9996_v39  ;;  %v10979_v0 = vld [vmem:[#allocation117_spill] sm:$0xff] }
 0x2b6   : > { %5213 = vmatpush.bf16.msrb.mxu3 %v10975_v45  ;;  %v7194_v45 = vld [vmem:[%s8222_s22 + $0x6c] sm:$0xf0] }
 0x2b7   : > { %5145 = vmatmul.bf16.gmra.mxu3 %v9998_v59  ;;  %5195 = vmatpush.bf16.msrb.mxu2 %v10976_v63  ;;  %v10985_v63 = vld [vmem:[#allocation121_spill] sm:$0xff] }
 0x2b8   : > { %5157 = vmatpush.bf16.msrb.mxu0 %v10977_v51  ;;  %v4663_v15 = vpop.f32.mrf.mxu2  ;;  %v7062_v51 = vld [vmem:[%s8222_s22 + $0x70] sm:$0xf0] }
 0x2b9   : > { %5176 = vmatpush.bf16.msrb.mxu1 %v10978_v53  ;;  %v4664_v4 = vadd.f32 %v4663_v15, %v4645_v31  ;;  %v4627_v6 = vpop.f32.mrf.mxu0  ;;  %v10984_v31 = vld [vmem:[#allocation120_spill] sm:$0xff]  ;;  %v7068_v53 = vld [vmem:[%s8222_s22 + $0x38] sm:$0xf]  ;;  %v10987_v15 = vld [vmem:[#allocation125_spill] sm:$0xff] }
 0x2ba   : > { %5214 = vmatpush.bf16.msrb.mxu3 %v10979_v0  ;;  %v4682_v14 = vpop.f32.mrf.mxu3  ;;  %v4646_v25 = vpop.f32.mrf.mxu1  ;;  %v4628_v20 = vadd.f32 %v4627_v6, %v9963_v35  ;;  %v7186_v35 = vld [vmem:[%s8222_s22 + $0x34] sm:$0xf]  ;;  %v10986_v0 = vld [vmem:[#allocation124_spill] sm:$0xff]  ;;  %v7070_v6 = vld [vmem:[%s8222_s22 + $0x78] sm:$0xf0] }
 0x2bb   : > { %5196 = vmatpush.bf16.msrb.mxu2 %v10980_v46  ;;  %v10018_v9 = vadd.f32 %v4682_v14, %v4664_v4  ;;  %v7195_v14 = vld [vmem:[%s8222_s22 + $0x74] sm:$0xf0]  ;;  %v7187_v4 = vld [vmem:[%s8222_s22 + $0x3c] sm:$0xf] }
 0x2bc   : > { %5158 = vmatpush.bf16.msrb.mxu0 %v10981_v2  ;;  %v4647_v17 = vadd.f32 %v4646_v25, %v4628_v20  ;;  %v10036_v25 = vor.u32 %v7186_v35, %v7062_v51  ;;  %v10990_v20 = vld [vmem:[#allocation126_spill] sm:$0xff]  ;;  %v10040_v39 = vor.u32 %v7195_v14, %v7068_v53  ;;  %v10997_v51 = vld [vmem:[#allocation131_spill] sm:$0xff]  ;;  %v10998_v53 = vld [vmem:[#allocation132_spill] sm:$0xff] }
 0x2bd   : > { %5177 = vmatpush.bf16.msrb.mxu1 %v10982_v30  ;;  %v10034_v30 = vor.u32 %v7194_v45, %v7060_v12 }
 0x2be   : > { %5215 = vmatpush.bf16.msrb.mxu3 %v10983_v48  ;;  %10989 = vst [vmem:[#allocation7_spill] sm:$0xff] %v10036_v25  ;;  %v10991_v48 = vld [vmem:[#allocation127_spill] sm:$0xff] }
 0x2bf   : > { %5265 = vmatpush.bf16.msra.mxu2 %v10984_v31  ;;  %10988 = vst [vmem:[#allocation6_spill] sm:$0xff] %v10034_v30 }
 0x2c0   : > { %5227 = vmatpush.bf16.msra.mxu0 %v10985_v63  ;;  %v4665_v46 = vpop.f32.mrf.mxu2  ;;  %10992 = vst [vmem:[#allocation9_spill] sm:$0xff] %v10040_v39 }
 0x2c1   : > { %5246 = vmatpush.bf16.msra.mxu1 %v10986_v0  ;;  %v4666_v31 = vadd.f32 %v4665_v46, %v4647_v17  ;;  %v4696_v63 = vpop.f32.mrf.mxu0  ;;  %v10042_v0 = vor.u32 %v7187_v4, %v7070_v6  ;;  %5159 = vmatmul.bf16.vlgmr.msrb.gmra.mxu0 %v10034_v30  ;;  %v10996_v17 = vld [vmem:[#allocation130_spill] sm:$0xff] }
 0x2c2   : > { %5284 = vmatpush.bf16.msra.mxu3 %v10987_v15  ;;  %v4684_v2 = vpop.f32.mrf.mxu3  ;;  %v4715_v59 = vpop.f32.mrf.mxu1  ;;  %v10994_v15 = vld [vmem:[#allocation128_spill] sm:$0xff]  ;;  %v4697_v12 = vadd.f32 %v4696_v63, %v9976_v10  ;;  %v10999_v10 = vld [vmem:[#allocation133_spill] sm:$0xff] }
 0x2c3   : > { %5266 = vmatpush.bf16.msra.mxu2 %v10990_v20  ;;  %10993 = vst [vmem:[#allocation12_spill] sm:$0xff] %v10042_v0  ;;  %v10047_v45 = vadd.f32 %v4684_v2, %v4666_v31  ;;  %5178 = vmatmul.bf16.vlgmr.msrb.gmra.mxu1 %v10036_v25  ;;  %v11000_v2 = vld [vmem:[#allocation134_spill] sm:$0xff]  ;;  %v11001_v20 = vld [vmem:[#allocation135_spill] sm:$0xff]  ;;  %v11002_v31 = vld [vmem:[#allocation136_spill] sm:$0xff] }
 0x2c4   : > { %5228 = vmatpush.bf16.msra.mxu0 %v10991_v48  ;;  %v4716_v35 = vadd.f32 %v4715_v59, %v4697_v12  ;;  %v11003_v63 = vld [vmem:[#allocation137_spill] sm:$0xff] }
 0x2c5   : > { %5247 = vmatpush.bf16.msra.mxu1 %v10994_v15  ;;  %5197 = vmatmul.bf16.vlgmr.msrb.gmra.mxu2 %v10040_v39  ;;  %v7124_v12 = vld [vmem:[%s8222_s22 + $0xb0] sm:$0xf] }
 0x2c6   : > { %5285 = vmatpush.bf16.msra.mxu3 %v10995_v22 }
 0x2c7   : > { %5216 = vmatmul.bf16.vlgmr.msrb.gmra.mxu3 %v10042_v0  ;;  %5267 = vmatpush.bf16.msra.mxu2 %v10996_v17  ;;  %v5531_v17 = vmul.f32 %v9746_v36, %v9746_v36  ;;  %v11004_v0 = vld [vmem:[#allocation138_spill] sm:$0xff] }
 0x2c8   : > { %5229 = vmatpush.bf16.msra.mxu0 %v10997_v51  ;;  %v4734_v22 = vpop.f32.mrf.mxu2 }
 0x2c9   : > { %5248 = vmatpush.bf16.msra.mxu1 %v10998_v53  ;;  %v4735_v14 = vadd.f32 %v4734_v22, %v4716_v35  ;;  %v4698_v4 = vpop.f32.mrf.mxu0  ;;  %v7210_v35 = vld [vmem:[%s8222_s22 + $0xec] sm:$0xf0]  ;;  %v7202_v53 = vld [vmem:[%s8222_s22 + $0xb4] sm:$0xf]  ;;  %v7211_v22 = vld [vmem:[%s8222_s22 + $0xf4] sm:$0xf0] }
 0x2ca   : > { %5286 = vmatpush.bf16.msra.mxu3 %v10999_v10  ;;  %v4753_v59 = vpop.f32.mrf.mxu3  ;;  %v4717_v6 = vpop.f32.mrf.mxu1  ;;  %v4699_v46 = vadd.f32 %v4698_v4, %v10003_v8  ;;  %v7126_v10 = vld [vmem:[%s8222_s22 + $0xf0] sm:$0xf0]  ;;  %v7132_v8 = vld [vmem:[%s8222_s22 + $0xb8] sm:$0xf]  ;;  %v7203_v4 = vld [vmem:[%s8222_s22 + $0xbc] sm:$0xf]  ;;  %v10078_v36 = vor.u32 %v7210_v35, %v7124_v12 }
 0x2cb   : > { %5268 = vmatpush.bf16.msra.mxu2 %v11000_v2  ;;  %v4754_v48 = vadd.f32 %v4753_v59, %v4735_v14  ;;  %v7134_v2 = vld [vmem:[%s8222_s22 + $0xf8] sm:$0xf0]  ;;  %v11005_v59 = vld [vmem:[#allocation139_spill] sm:$0xff]  ;;  %v10082_v30 = vor.u32 %v7211_v22, %v7132_v8 }
 0x2cc   : > { %5230 = vmatpush.bf16.msra.mxu0 %v11001_v20  ;;  %v4718_v15 = vadd.f32 %v4717_v6, %v4699_v46  ;;  %v11006_v20 = vld [vmem:[#allocation140_spill] sm:$0xff]  ;;  %v11007_v6 = vld [vmem:[#allocation141_spill] sm:$0xff] }
 0x2cd   : > { %5249 = vmatpush.bf16.msra.mxu1 %v11002_v31  ;;  %v5535_v51 = vmul.f32 %v4754_v48, %v4754_v48  ;;  %v10080_v48 = vor.u32 %v7202_v53, %v7126_v10  ;;  %v11013_v53 = vld [vmem:[#allocation150_spill] sm:$0xff]  ;;  %v11014_v10 = vld [vmem:[#allocation151_spill] sm:$0xff] }
 0x2ce   : > { %5287 = vmatpush.bf16.msra.mxu3 %v11003_v63 }
 0x2cf   : > { %5269 = vmatpush.bf16.msra.mxu2 %v11004_v0  ;;  %v10074_v14 = vadd.f32 %v5535_v51, %v5531_v17  ;;  %v10084_v0 = vor.u32 %v7203_v4, %v7134_v2  ;;  %v11008_v51 = vld [vmem:[#allocation142_spill] sm:$0xff] }
 0x2d0   : > { %5231 = vmatpush.bf16.msra.mxu0 %v11005_v59  ;;  %v4736_v46 = vpop.f32.mrf.mxu2  ;;  %v11009_v59 = vld [vmem:[#allocation143_spill] sm:$0xff] }
 0x2d1   : > { %5250 = vmatpush.bf16.msra.mxu1 %v11006_v20  ;;  %v4737_v63 = vadd.f32 %v4736_v46, %v4718_v15  ;;  %v4701_v39 = vpop.f32.mrf.mxu0  ;;  %v11010_v20 = vld [vmem:[#allocation144_spill] sm:$0xff]  ;;  %5164 = vmatmul.bf16.gmra.mxu0 %v10078_v36  ;;  %v11012_v15 = vld [vmem:[#allocation149_spill] sm:$0xff] }
 0x2d2   : > { %5288 = vmatpush.bf16.msra.mxu3 %v11007_v6  ;;  %v4755_v31 = vpop.f32.mrf.mxu3  ;;  %v4720_v25 = vpop.f32.mrf.mxu1  ;;  %v4702_v17 = vadd.f32 %v4701_v39, %v10018_v9  ;;  %v11011_v6 = vld [vmem:[#allocation145_spill] sm:$0xff]  ;;  %v5532_v39 = vmul.f32 %v9756_v28, %v9756_v28 }
 0x2d3   : > { %5270 = vmatpush.bf16.msra.mxu2 %v11008_v51  ;;  %v4756_v12 = vadd.f32 %v4755_v31, %v4737_v63  ;;  %5183 = vmatmul.bf16.gmra.mxu1 %v10080_v48  ;;  %v11015_v63 = vld [vmem:[#allocation152_spill] sm:$0xff]  ;;  %v5533_v51 = vmul.f32 %v9770_v27, %v9770_v27 }
 0x2d4   : > { %5232 = vmatpush.bf16.msra.mxu0 %v11009_v59  ;;  %v4721_v35 = vadd.f32 %v4720_v25, %v4702_v17  ;;  %v11016_v17 = vld [vmem:[#allocation153_spill] sm:$0xff]  ;;  %v11023_v27 = vld [vmem:[#allocation160_spill] sm:$0xff] }
 0x2d5   : > { %5251 = vmatpush.bf16.msra.mxu1 %v11010_v20  ;;  %5202 = vmatmul.bf16.gmra.mxu2 %v10082_v30  ;;  %v5536_v9 = vmul.f32 %v4756_v12, %v4756_v12 }
 0x2d6   : > { %5289 = vmatpush.bf16.msra.mxu3 %v11011_v6  ;;  %v11018_v6 = vld [vmem:[#allocation155_spill] sm:$0xff] }
 0x2d7   : > { %5221 = vmatmul.bf16.gmra.mxu3 %v10084_v0  ;;  %5271 = vmatpush.bf16.msra.mxu2 %v11012_v15  ;;  %v10101_v25 = vadd.f32 %v5536_v9, %v5532_v39 }
 0x2d8   : > { %5233 = vmatpush.bf16.msra.mxu0 %v11013_v53  ;;  %v4739_v8 = vpop.f32.mrf.mxu2  ;;  %v11022_v53 = vld [vmem:[#allocation159_spill] sm:$0xff] }
 0x2d9   : > { %5252 = vmatpush.bf16.msra.mxu1 %v11014_v10  ;;  %v4740_v4 = vadd.f32 %v4739_v8, %v4721_v35  ;;  %v4703_v2 = vpop.f32.mrf.mxu0  ;;  %v11021_v35 = vld [vmem:[#allocation158_spill] sm:$0xff] }
 0x2da   : > { %5290 = vmatpush.bf16.msra.mxu3 %v9168_v47  ;;  %v4758_v22 = vpop.f32.mrf.mxu3  ;;  %v4722_v46 = vpop.f32.mrf.mxu1  ;;  %v4704_v31 = vadd.f32 %v4703_v2, %v10047_v45  ;;  %v11017_v47 = vld [vmem:[#allocation154_spill] sm:$0xff]  ;;  %v11019_v45 = vld [vmem:[#allocation156_spill] sm:$0xff]  ;;  %v11024_v2 = vld [vmem:[#allocation161_spill] sm:$0xff] }
 0x2db   : > { %5272 = vmatpush.bf16.msra.mxu2 %v9185_v52  ;;  %v4759_v28 = vadd.f32 %v4758_v22, %v4740_v4  ;;  %v5534_v22 = vmul.f32 %v9798_v5, %v9798_v5  ;;  %v11029_v5 = vld [vmem:[#allocation166_spill] sm:$0xff] }
 0x2dc   : > { %5234 = vmatpush.bf16.msra.mxu0 %v9187_v40  ;;  %v4723_v20 = vadd.f32 %v4722_v46, %v4704_v31  ;;  %v11025_v46 = vld [vmem:[#allocation162_spill] sm:$0xff]  ;;  %v11026_v31 = vld [vmem:[#allocation163_spill] sm:$0xff] }
 0x2dd   : > { %5253 = vmatpush.bf16.msra.mxu1 %v9194_v33  ;;  %v5537_v59 = vmul.f32 %v4759_v28, %v4759_v28  ;;  %v11020_v33 = vld [vmem:[#allocation157_spill] sm:$0xff]  ;;  %v11027_v28 = vld [vmem:[#allocation164_spill] sm:$0xff] }
 0x2de   : > { %5291 = vmatpush.bf16.msra.mxu3 %v11015_v63 }
 0x2df   : > { %5341 = vmatpush.bf16.msrb.mxu2 %v11016_v17  ;;  %v10114_v52 = vadd.f32 %v5537_v59, %v5533_v51  ;;  %v11028_v51 = vld [vmem:[#allocation165_spill] sm:$0xff] }
 0x2e0   : > { %5303 = vmatpush.bf16.msrb.mxu0 %v11017_v47  ;;  %v4741_v40 = vpop.f32.mrf.mxu2 }
 0x2e1   : > { %5322 = vmatpush.bf16.msrb.mxu1 %v11018_v6  ;;  %v4742_v39 = vadd.f32 %v4741_v40, %v4723_v20  ;;  %v4932_v9 = vpop.f32.mrf.mxu0  ;;  %5235 = vmatmul.bf16.vlgmr.msra.gmra.mxu0 %v9786_v18  ;;  %v11030_v20 = vld [vmem:[#allocation167_spill] sm:$0xff]  ;;  %v11031_v6 = vld [vmem:[#allocation168_spill] sm:$0xff]  ;;  %v11033_v40 = vld [vmem:[#allocation170_spill] sm:$0xff] }
 0x2e2   : > { %5360 = vmatpush.bf16.msrb.mxu3 %v11019_v45  ;;  %v4760_v12 = vpop.f32.mrf.mxu3  ;;  %v4951_v15 = vpop.f32.mrf.mxu1  ;;  %v11032_v45 = vld [vmem:[#allocation169_spill] sm:$0xff] }
 0x2e3   : > { %5342 = vmatpush.bf16.msrb.mxu2 %v11020_v33  ;;  %v4952_v10 = vadd.f32 %v4951_v15, %v4932_v9  ;;  %v4761_v8 = vadd.f32 %v4760_v12, %v4742_v39  ;;  %5254 = vmatmul.bf16.vlgmr.msra.gmra.mxu1 %v9788_v23  ;;  %v11034_v12 = vld [vmem:[#allocation171_spill] sm:$0xff]  ;;  %v11035_v33 = vld [vmem:[#allocation172_spill] sm:$0xff] }
 0x2e4   : > { %5304 = vmatpush.bf16.msrb.mxu0 %v11021_v35 }
 0x2e5   : > { %5323 = vmatpush.bf16.msrb.mxu1 %v11022_v53  ;;  %5273 = vmatmul.bf16.vlgmr.msra.gmra.mxu2 %v9792_v60  ;;  %v5538_v4 = vmul.f32 %v4761_v8, %v4761_v8  ;;  %v11037_v8 = vld [vmem:[#allocation174_spill] sm:$0xff] }
 0x2e6   : > { %5361 = vmatpush.bf16.msrb.mxu3 %v11023_v27 }
 0x2e7   : > { %5292 = vmatmul.bf16.vlgmr.msra.gmra.mxu3 %v9794_v50  ;;  %5343 = vmatpush.bf16.msrb.mxu2 %v11024_v2  ;;  %v10130_v63 = vadd.f32 %v5538_v4, %v5534_v22  ;;  %v11038_v4 = vld [vmem:[#allocation175_spill] sm:$0xff]  ;;  %v11039_v2 = vld [vmem:[#allocation176_spill] sm:$0xff] }
 0x2e8   : > { %5305 = vmatpush.bf16.msrb.mxu0 %v11025_v46  ;;  %v4970_v18 = vpop.f32.mrf.mxu2  ;;  %v11040_v46 = vld [vmem:[#allocation177_spill] sm:$0xff] }
 0x2e9   : > { %5324 = vmatpush.bf16.msrb.mxu1 %v11026_v31  ;;  %v4971_v17 = vadd.f32 %v4970_v18, %v4952_v10  ;;  %v4934_v60 = vpop.f32.mrf.mxu0  ;;  %v11036_v10 = vld [vmem:[#allocation173_spill] sm:$0xff]  ;;  %v11041_v31 = vld [vmem:[#allocation178_spill] sm:$0xff]  ;;  %v11043_v18 = vld [vmem:[#allocation180_spill] sm:$0xff] }
 0x2ea   : > { %5362 = vmatpush.bf16.msrb.mxu3 %v11027_v28  ;;  %v4989_v23 = vpop.f32.mrf.mxu3  ;;  %v4953_v47 = vpop.f32.mrf.mxu1  ;;  %v11042_v28 = vld [vmem:[#allocation179_spill] sm:$0xff] }
 0x2eb   : > { %v4954_v50 = vadd.f32 %v4953_v47, %v4934_v60  ;;  %5344 = vmatpush.bf16.msrb.mxu2 %v11028_v51  ;;  %v4990_v59 = vadd.f32 %v4989_v23, %v4971_v17  ;;  %v11046_v51 = vld [vmem:[#allocation183_spill] sm:$0xff] }
 0x2ec   : > { %5306 = vmatpush.bf16.msrb.mxu0 %v11029_v5  ;;  %v11047_v5 = vld [vmem:[#allocation184_spill] sm:$0xff] }
 0x2ed   : > { %5325 = vmatpush.bf16.msrb.mxu1 %v11030_v20 }
 0x2ee   : > { %5363 = vmatpush.bf16.msrb.mxu3 %v11031_v6 }
 0x2ef   : > { %5345 = vmatpush.bf16.msrb.mxu2 %v11032_v45  ;;  %v11048_v45 = vld [vmem:[#allocation185_spill] sm:$0xff] }
 0x2f0   : > { %5307 = vmatpush.bf16.msrb.mxu0 %v11033_v40  ;;  %v4972_v35 = vpop.f32.mrf.mxu2 }
 0x2f1   : > { %5326 = vmatpush.bf16.msrb.mxu1 %v11034_v12  ;;  %v4973_v9 = vadd.f32 %v4972_v35, %v4954_v50  ;;  %v4937_v15 = vpop.f32.mrf.mxu0  ;;  %5240 = vmatmul.bf16.gmra.mxu0 %v9826_v16 }
 0x2f2   : > { %5364 = vmatpush.bf16.msrb.mxu3 %v11035_v33  ;;  %v4991_v39 = vpop.f32.mrf.mxu3  ;;  %v4956_v53 = vpop.f32.mrf.mxu1 }
 0x2f3   : > { %v4957_v27 = vadd.f32 %v4956_v53, %v4937_v15  ;;  %5346 = vmatpush.bf16.msrb.mxu2 %v11036_v10  ;;  %v4992_v22 = vadd.f32 %v4991_v39, %v4973_v9  ;;  %5259 = vmatmul.bf16.gmra.mxu1 %v9828_v57  ;;  %v11052_v9 = vld [vmem:[#allocation189_spill] sm:$0xff] }
 0x2f4   : > { %5308 = vmatpush.bf16.msrb.mxu0 %v11037_v8  ;;  %v11053_v8 = vld [vmem:[#allocation190_spill] sm:$0xff] }
 0x2f5   : > { %5327 = vmatpush.bf16.msrb.mxu1 %v11038_v4  ;;  %5278 = vmatmul.bf16.gmra.mxu2 %v9830_v19  ;;  %v11044_v19 = vld [vmem:[#allocation181_spill] sm:$0xff]  ;;  %v11057_v4 = vld [vmem:[#allocation194_spill] sm:$0xff] }
 0x2f6   : > { %5365 = vmatpush.bf16.msrb.mxu3 %v11039_v2  ;;  %v11059_v2 = vld [vmem:[#allocation196_spill] sm:$0xff] }
 0x2f7   : > { %5297 = vmatmul.bf16.gmra.mxu3 %v9832_v42  ;;  %5347 = vmatpush.bf16.msrb.mxu2 %v11040_v46  ;;  %v11045_v42 = vld [vmem:[#allocation182_spill] sm:$0xff]  ;;  %v11060_v46 = vld [vmem:[#allocation197_spill] sm:$0xff] }
 0x2f8   : > { %5309 = vmatpush.bf16.msrb.mxu0 %v11041_v31  ;;  %v4975_v23 = vpop.f32.mrf.mxu2 }
 0x2f9   : > { %5328 = vmatpush.bf16.msrb.mxu1 %v11042_v28  ;;  %v4976_v60 = vadd.f32 %v4975_v23, %v4957_v27  ;;  %v4939_v47 = vpop.f32.mrf.mxu0 }
 0x2fa   : > { %5366 = vmatpush.bf16.msrb.mxu3 %v11043_v18  ;;  %v4994_v17 = vpop.f32.mrf.mxu3  ;;  %v4958_v50 = vpop.f32.mrf.mxu1 }
 0x2fb   : > { %v4959_v16 = vadd.f32 %v4958_v50, %v4939_v47  ;;  %5348 = vmatpush.bf16.msrb.mxu2 %v9357_v41  ;;  %v4995_v57 = vadd.f32 %v4994_v17, %v4976_v60  ;;  %v11049_v41 = vld [vmem:[#allocation186_spill] sm:$0xff]  ;;  %v11062_v47 = vld [vmem:[#allocation199_spill] sm:$0xff] }
 0x2fc   : > { %5310 = vmatpush.bf16.msrb.mxu0 %v9359_v24  ;;  %v11061_v60 = vld [vmem:[#allocation198_spill] sm:$0xff] }
 0x2fd   : > { %5329 = vmatpush.bf16.msrb.mxu1 %v9366_v44  ;;  %v11050_v44 = vld [vmem:[#allocation187_spill] sm:$0xff] }
 0x2fe   : > { %5367 = vmatpush.bf16.msrb.mxu3 %v9368_v3  ;;  %v11051_v3 = vld [vmem:[#allocation188_spill] sm:$0xff] }
 0x2ff   : > { %5417 = vmatpush.bf16.msra.mxu2 %v11044_v19  ;;  %v11064_v19 = vld [vmem:[#allocation201_spill] sm:$0xff] }
 0x300   : > { %5379 = vmatpush.bf16.msra.mxu0 %v11045_v42  ;;  %v4977_v20 = vpop.f32.mrf.mxu2 }
 0x301   : > { %5398 = vmatpush.bf16.msra.mxu1 %v11046_v51  ;;  %v4978_v24 = vadd.f32 %v4977_v20, %v4959_v16  ;;  %v5008_v40 = vpop.f32.mrf.mxu0  ;;  %5311 = vmatmul.bf16.vlgmr.msrb.gmra.mxu0 %v9866_v11  ;;  %v11063_v16 = vld [vmem:[#allocation200_spill] sm:$0xff]  ;;  %v11065_v51 = vld [vmem:[#allocation202_spill] sm:$0xff]  ;;  %v11068_v20 = vld [vmem:[#allocation205_spill] sm:$0xff] }
 0x302   : > { %5436 = vmatpush.bf16.msra.mxu3 %v11047_v5  ;;  %v4996_v6 = vpop.f32.mrf.mxu3  ;;  %v5027_v12 = vpop.f32.mrf.mxu1  ;;  %v5009_v33 = vadd.f32 %v5008_v40, %v4990_v59  ;;  %v11067_v5 = vld [vmem:[#allocation204_spill] sm:$0xff] }
 0x303   : > { %5418 = vmatpush.bf16.msra.mxu2 %v11048_v45  ;;  %v4997_v35 = vadd.f32 %v4996_v6, %v4978_v24  ;;  %5330 = vmatmul.bf16.vlgmr.msrb.gmra.mxu1 %v9868_v58  ;;  %v11054_v58 = vld [vmem:[#allocation191_spill] sm:$0xff] }
 0x304   : > { %5380 = vmatpush.bf16.msra.mxu0 %v11049_v41  ;;  %v5028_v39 = vadd.f32 %v5027_v12, %v5009_v33  ;;  %v11070_v12 = vld [vmem:[#allocation207_spill] sm:$0xff] }
 0x305   : > { %5399 = vmatpush.bf16.msra.mxu1 %v11050_v44  ;;  %5349 = vmatmul.bf16.vlgmr.msrb.gmra.mxu2 %v9872_v55  ;;  %v11071_v44 = vld [vmem:[#allocation208_spill] sm:$0xff] }
 0x306   : > { %5437 = vmatpush.bf16.msra.mxu3 %v11051_v3  ;;  %v11072_v3 = vld [vmem:[#allocation209_spill] sm:$0xff] }
 0x307   : > { %5368 = vmatmul.bf16.vlgmr.msrb.gmra.mxu3 %v9874_v26  ;;  %5419 = vmatpush.bf16.msra.mxu2 %v9419_v37  ;;  %v11055_v26 = vld [vmem:[#allocation192_spill] sm:$0xff]  ;;  %v11056_v37 = vld [vmem:[#allocation193_spill] sm:$0xff] }
 0x308   : > { %5381 = vmatpush.bf16.msra.mxu0 %v9421_v62  ;;  %v5046_v15 = vpop.f32.mrf.mxu2 }
 0x309   : > { %5400 = vmatpush.bf16.msra.mxu1 %v9425_v43  ;;  %v5047_v53 = vadd.f32 %v5046_v15, %v5028_v39  ;;  %v5010_v27 = vpop.f32.mrf.mxu0  ;;  %v11058_v43 = vld [vmem:[#allocation195_spill] sm:$0xff]  ;;  %v11073_v39 = vld [vmem:[#allocation210_spill] sm:$0xff]  ;;  %v11075_v15 = vld [vmem:[#allocation212_spill] sm:$0xff] }
 0x30a   : > { %5438 = vmatpush.bf16.msra.mxu3 %v11052_v9  ;;  %v5065_v59 = vpop.f32.mrf.mxu3  ;;  %v5029_v10 = vpop.f32.mrf.mxu1  ;;  %v5011_v11 = vadd.f32 %v5010_v27, %v4992_v22 }
 0x30b   : > { %5420 = vmatpush.bf16.msra.mxu2 %v11053_v8  ;;  %v5066_v55 = vadd.f32 %v5065_v59, %v5047_v53  ;;  %v11079_v8 = vld [vmem:[#allocation215_spill] sm:$0xff] }
 0x30c   : > { %5382 = vmatpush.bf16.msra.mxu0 %v11054_v58  ;;  %v5030_v62 = vadd.f32 %v5029_v10, %v5011_v11  ;;  %v11077_v10 = vld [vmem:[#allocation3_spill] sm:$0xff]  ;;  %v11078_v11 = vld [vmem:[#allocation214_spill] sm:$0xff]  ;;  %v11080_v58 = vld [vmem:[#allocation216_spill] sm:$0xff] }
 0x30d   : > { %5401 = vmatpush.bf16.msra.mxu1 %v11055_v26  ;;  %v11081_v26 = vld [vmem:[#allocation217_spill] sm:$0xff] }
 0x30e   : > { %5439 = vmatpush.bf16.msra.mxu3 %v11056_v37 }
 0x30f   : > { %5421 = vmatpush.bf16.msra.mxu2 %v11057_v4 }
 0x310   : > { %5383 = vmatpush.bf16.msra.mxu0 %v11058_v43  ;;  %v5048_v31 = vpop.f32.mrf.mxu2 }
 0x311   : > { %5402 = vmatpush.bf16.msra.mxu1 %v11059_v2  ;;  %v5049_v28 = vadd.f32 %v5048_v31, %v5030_v62  ;;  %v5013_v18 = vpop.f32.mrf.mxu0  ;;  %5316 = vmatmul.bf16.gmra.mxu0 %v9908_v13  ;;  %v11082_v2 = vld [vmem:[#allocation218_spill] sm:$0xff]  ;;  %v11085_v31 = vld [vmem:[#allocation221_spill] sm:$0xff] }
 0x312   : > { %5440 = vmatpush.bf16.msra.mxu3 %v11060_v46  ;;  %v5067_v22 = vpop.f32.mrf.mxu3  ;;  %v5032_v23 = vpop.f32.mrf.mxu1  ;;  %v5014_v17 = vadd.f32 %v5013_v18, %v4995_v57  ;;  %v11066_v57 = vld [vmem:[#allocation203_spill] sm:$0xff]  ;;  %v11084_v46 = vld [vmem:[#allocation220_spill] sm:$0xff] }
 0x313   : > { %5422 = vmatpush.bf16.msra.mxu2 %v11061_v60  ;;  %v5068_v50 = vadd.f32 %v5067_v22, %v5049_v28  ;;  %5335 = vmatmul.bf16.gmra.mxu1 %v9910_v34  ;;  %v11069_v34 = vld [vmem:[#allocation206_spill] sm:$0xff]  ;;  %v11087_v18 = vld [vmem:[#allocation223_spill] sm:$0xff] }
 0x314   : > { %5384 = vmatpush.bf16.msra.mxu0 %v11062_v47  ;;  %v5033_v42 = vadd.f32 %v5032_v23, %v5014_v17  ;;  %v11086_v28 = vld [vmem:[#allocation222_spill] sm:$0xff]  ;;  %v11088_v23 = vld [vmem:[#allocation224_spill] sm:$0xff]  ;;  %v11089_v17 = vld [vmem:[#allocation225_spill] sm:$0xff] }
 0x315   : > { %5403 = vmatpush.bf16.msra.mxu1 %v11063_v16  ;;  %5354 = vmatmul.bf16.gmra.mxu2 %v9912_v21 }
 0x316   : > { %5441 = vmatpush.bf16.msra.mxu3 %v11064_v19 }
 0x317   : > { %5373 = vmatmul.bf16.gmra.mxu3 %v9914_v29  ;;  %5423 = vmatpush.bf16.msra.mxu2 %v11065_v51  ;;  %v11090_v51 = vld [vmem:[#allocation226_spill] sm:$0xff] }
 0x318   : > { %5385 = vmatpush.bf16.msra.mxu0 %v11066_v57  ;;  %v5051_v6 = vpop.f32.mrf.mxu2  ;;  %v11091_v57 = vld [vmem:[#allocation227_spill] sm:$0xff] }
 0x319   : > { %5404 = vmatpush.bf16.msra.mxu1 %v11067_v5  ;;  %v5052_v41 = vadd.f32 %v5051_v6, %v5033_v42  ;;  %v5015_v24 = vpop.f32.mrf.mxu0  ;;  %v11093_v6 = vld [vmem:[#allocation229_spill] sm:$0xff] }
 0x31a   : > { %5442 = vmatpush.bf16.msra.mxu3 %v11068_v20  ;;  %v5070_v45 = vpop.f32.mrf.mxu3  ;;  %v5034_v40 = vpop.f32.mrf.mxu1  ;;  %v5016_v13 = vadd.f32 %v5015_v24, %v4997_v35  ;;  %v11092_v20 = vld [vmem:[#allocation228_spill] sm:$0xff]  ;;  %v11095_v24 = vld [vmem:[#allocation5_spill] sm:$0xff] }
 0x31b   : > { %5424 = vmatpush.bf16.msra.mxu2 %v9536_v32  ;;  %v5071_v21 = vadd.f32 %v5070_v45, %v5052_v41  ;;  %v11074_v32 = vld [vmem:[#allocation211_spill] sm:$0xff]  ;;  %v11094_v41 = vld [vmem:[#allocation4_spill] sm:$0xff] }
 0x31c   : > { %5386 = vmatpush.bf16.msra.mxu0 %v9538_v1  ;;  %v5035_v29 = vadd.f32 %v5034_v40, %v5016_v13  ;;  %v11096_v40 = vld [vmem:[#allocation8_spill] sm:$0xff]  ;;  %v11097_v13 = vld [vmem:[#allocation230_spill] sm:$0xff] }
 0x31d   : > { %5405 = vmatpush.bf16.msra.mxu1 %v9545_v49 }
 0x31e   : > { %5443 = vmatpush.bf16.msra.mxu3 %v9547_v56  ;;  %v11076_v56 = vld [vmem:[#allocation213_spill] sm:$0xff] }
 0x31f   : > { %5493 = vmatpush.bf16.msrb.mxu2 %v11069_v34  ;;  %v11100_v34 = vld [vmem:[#allocation233_spill] sm:$0xff] }
 0x320   : > { %5455 = vmatpush.bf16.msrb.mxu0 %v11070_v12  ;;  %v5053_v33 = vpop.f32.mrf.mxu2 }
 0x321   : > { %5474 = vmatpush.bf16.msrb.mxu1 %v11071_v44  ;;  %v5054_v1 = vadd.f32 %v5053_v33, %v5035_v29  ;;  %v5084_v9 = vpop.f32.mrf.mxu0  ;;  %5387 = vmatmul.bf16.vlgmr.msra.gmra.mxu0 %v9950_v54  ;;  %v11099_v29 = vld [vmem:[#allocation232_spill] sm:$0xff] }
 0x322   : > { %5512 = vmatpush.bf16.msrb.mxu3 %v11072_v3  ;;  %v5072_v35 = vpop.f32.mrf.mxu3  ;;  %v5103_v49 = vpop.f32.mrf.mxu1  ;;  %v5085_v59 = vadd.f32 %v5084_v9, %v5066_v55  ;;  %v11103_v9 = vld [vmem:[#allocation236_spill] sm:$0xff] }
 0x323   : > { %5494 = vmatpush.bf16.msrb.mxu2 %v11073_v39  ;;  %v5073_v53 = vadd.f32 %v5072_v35, %v5054_v1  ;;  %5406 = vmatmul.bf16.vlgmr.msra.gmra.mxu1 %v9952_v38  ;;  %v11083_v38 = vld [vmem:[#allocation219_spill] sm:$0xff]  ;;  %v11101_v39 = vld [vmem:[#allocation234_spill] sm:$0xff] }
 0x324   : > { %5456 = vmatpush.bf16.msrb.mxu0 %v11074_v32  ;;  %v5104_v27 = vadd.f32 %v5103_v49, %v5085_v59  ;;  %v11102_v32 = vld [vmem:[#allocation235_spill] sm:$0xff]  ;;  %v11104_v49 = vld [vmem:[#allocation237_spill] sm:$0xff] }
 0x325   : > { %5475 = vmatpush.bf16.msrb.mxu1 %v11075_v15  ;;  %5425 = vmatmul.bf16.vlgmr.msra.gmra.mxu2 %v9956_v7 }
 0x326   : > { %5513 = vmatpush.bf16.msrb.mxu3 %v11076_v56 }
 0x327   : > { %5444 = vmatmul.bf16.vlgmr.msra.gmra.mxu3 %v11077_v10  ;;  %5495 = vmatpush.bf16.msrb.mxu2 %v11078_v11 }
 0x328   : > { %5457 = vmatpush.bf16.msrb.mxu0 %v11079_v8  ;;  %v5122_v37 = vpop.f32.mrf.mxu2 }
 0x329   : > { %5476 = vmatpush.bf16.msrb.mxu1 %v11080_v58  ;;  %v5123_v62 = vadd.f32 %v5122_v37, %v5104_v27  ;;  %v5086_v4 = vpop.f32.mrf.mxu0  ;;  %v11105_v37 = vld [vmem:[#allocation6_spill] sm:$0xff] }
 0x32a   : > { %5514 = vmatpush.bf16.msrb.mxu3 %v11081_v26  ;;  %v5141_v55 = vpop.f32.mrf.mxu3  ;;  %v5105_v43 = vpop.f32.mrf.mxu1  ;;  %v5087_v54 = vadd.f32 %v5086_v4, %v5068_v50 }
 0x32b   : > { %5496 = vmatpush.bf16.msrb.mxu2 %v11082_v2  ;;  %v5142_v7 = vadd.f32 %v5141_v55, %v5123_v62  ;;  %v11107_v55 = vld [vmem:[#allocation9_spill] sm:$0xff]  ;;  %v11108_v62 = vld [vmem:[#allocation12_spill] sm:$0xff] }
 0x32c   : > { %5458 = vmatpush.bf16.msrb.mxu0 %v11083_v38  ;;  %v5106_v22 = vadd.f32 %v5105_v43, %v5087_v54 }
 0x32d   : > { %5477 = vmatpush.bf16.msrb.mxu1 %v11084_v46 }
 0x32e   : > { %5515 = vmatpush.bf16.msrb.mxu3 %v11085_v31 }
 0x32f   : > { %5497 = vmatpush.bf16.msrb.mxu2 %v11086_v28 }
 0x330   : > { %5459 = vmatpush.bf16.msrb.mxu0 %v11087_v18  ;;  %v5124_v60 = vpop.f32.mrf.mxu2 }
 0x331   : > { %5478 = vmatpush.bf16.msrb.mxu1 %v11088_v23  ;;  %v5125_v50 = vadd.f32 %v5124_v60, %v5106_v22  ;;  %v5089_v16 = vpop.f32.mrf.mxu0  ;;  %5392 = vmatmul.bf16.gmra.mxu0 %v9992_v61 }
 0x332   : > { %5516 = vmatpush.bf16.msrb.mxu3 %v11089_v17  ;;  %v5143_v47 = vpop.f32.mrf.mxu3  ;;  %v5108_v19 = vpop.f32.mrf.mxu1  ;;  %v5090_v42 = vadd.f32 %v5089_v16, %v5071_v21  ;;  %v11098_v21 = vld [vmem:[#allocation231_spill] sm:$0xff] }
 0x333   : > { %5498 = vmatpush.bf16.msrb.mxu2 %v11090_v51  ;;  %v5144_v5 = vadd.f32 %v5143_v47, %v5125_v50  ;;  %5411 = vmatmul.bf16.gmra.mxu1 %v11094_v41 }
 0x334   : > { %5460 = vmatpush.bf16.msrb.mxu0 %v11091_v57  ;;  %v5109_v45 = vadd.f32 %v5108_v19, %v5090_v42 }
 0x335   : > { %5479 = vmatpush.bf16.msrb.mxu1 %v11092_v20  ;;  %5430 = vmatmul.bf16.gmra.mxu2 %v11095_v24 }
 0x336   : > { %5517 = vmatpush.bf16.msrb.mxu3 %v11093_v6 }
 0x337   : > { %5449 = vmatmul.bf16.gmra.mxu3 %v11096_v40  ;;  %5499 = vmatpush.bf16.msrb.mxu2 %v11097_v13 }
 0x338   : > { %5461 = vmatpush.bf16.msrb.mxu0 %v11098_v21  ;;  %v5127_v12 = vpop.f32.mrf.mxu2 }
 0x339   : > { %5480 = vmatpush.bf16.msrb.mxu1 %v11099_v29  ;;  %v5128_v3 = vadd.f32 %v5127_v12, %v5109_v45  ;;  %v5091_v33 = vpop.f32.mrf.mxu0 }
 0x33a   : > { %5518 = vmatpush.bf16.msrb.mxu3 %v11100_v34  ;;  %v5146_v44 = vpop.f32.mrf.mxu3  ;;  %v5110_v35 = vpop.f32.mrf.mxu1  ;;  %v5092_v61 = vadd.f32 %v5091_v33, %v5073_v53  ;;  %v11106_v53 = vld [vmem:[#allocation7_spill] sm:$0xff] }
 0x33b   : > { %5500 = vmatpush.bf16.msrb.mxu2 %v11101_v39  ;;  %v5147_v1 = vadd.f32 %v5146_v44, %v5128_v3 }
 0x33c   : > { %5462 = vmatpush.bf16.msrb.mxu0 %v11102_v32  ;;  %v5111_v15 = vadd.f32 %v5110_v35, %v5092_v61 }
 0x33d   : > { %5481 = vmatpush.bf16.msrb.mxu1 %v11103_v9 }
 0x33e   : > { %5519 = vmatpush.bf16.msrb.mxu3 %v11104_v49 }
 0x340   : > { %v5129_v56 = vpop.f32.mrf.mxu2 }
 0x341   : > { %v5130_v27 = vadd.f32 %v5129_v56, %v5111_v15  ;;  %v5160_v10 = vpop.f32.mrf.mxu0  ;;  %5463 = vmatmul.bf16.vlgmr.msrb.gmra.mxu0 %v11105_v37 }
 0x342   : > { %v5148_v59 = vpop.f32.mrf.mxu3  ;;  %v5179_v11 = vpop.f32.mrf.mxu1  ;;  %v5161_v8 = vadd.f32 %v5160_v10, %v5142_v7 }
 0x343   : > { %v5149_v58 = vadd.f32 %v5148_v59, %v5130_v27  ;;  %5482 = vmatmul.bf16.vlgmr.msrb.gmra.mxu1 %v11106_v53 }
 0x344   : > { %v5180_v26 = vadd.f32 %v5179_v11, %v5161_v8 }
 0x345   : > { %5501 = vmatmul.bf16.vlgmr.msrb.gmra.mxu2 %v11107_v55 }
 0x347   : > { %5520 = vmatmul.bf16.vlgmr.msrb.gmra.mxu3 %v11108_v62 }
 0x348   : > { %v5198_v4 = vpop.f32.mrf.mxu2 }
 0x349   : > { %v5199_v54 = vadd.f32 %v5198_v4, %v5180_v26  ;;  %v5162_v2 = vpop.f32.mrf.mxu0 }
 0x34a   : > { %v5217_v43 = vpop.f32.mrf.mxu3  ;;  %v5181_v38 = vpop.f32.mrf.mxu1  ;;  %v5163_v46 = vadd.f32 %v5162_v2, %v5144_v5 }
 0x34b   : > { %v10240_v31 = vadd.f32 %v5217_v43, %v5199_v54 }
 0x34c   : > { %v5182_v22 = vadd.f32 %v5181_v38, %v5163_v46 }
 0x350   : > { %v5200_v7 = vpop.f32.mrf.mxu2 }
 0x351   : > { %v5201_v18 = vadd.f32 %v5200_v7, %v5182_v22  ;;  %v5165_v23 = vpop.f32.mrf.mxu0  ;;  %5468 = vmatmul.bf16.gmra.mxu0 %v10078_v36 }
 0x352   : > { %v5219_v28 = vpop.f32.mrf.mxu3  ;;  %v5184_v17 = vpop.f32.mrf.mxu1  ;;  %v5166_v60 = vadd.f32 %v5165_v23, %v5147_v1 }
 0x353   : > { %v10242_v47 = vadd.f32 %v5219_v28, %v5201_v18  ;;  %5487 = vmatmul.bf16.gmra.mxu1 %v10080_v48 }
 0x354   : > { %v5185_v50 = vadd.f32 %v5184_v17, %v5166_v60 }
 0x355   : > { %5506 = vmatmul.bf16.gmra.mxu2 %v10082_v30 }
 0x357   : > { %5525 = vmatmul.bf16.gmra.mxu3 %v10084_v0 }
 0x358   : > { %v5203_v16 = vpop.f32.mrf.mxu2 }
 0x359   : > { %v5204_v42 = vadd.f32 %v5203_v16, %v5185_v50  ;;  %v5167_v51 = vpop.f32.mrf.mxu0 }
 0x35a   : > { %v5222_v19 = vpop.f32.mrf.mxu3  ;;  %v5186_v57 = vpop.f32.mrf.mxu1  ;;  %v5168_v5 = vadd.f32 %v5167_v51, %v5149_v58 }
 0x35b   : > { %v10248_v20 = vadd.f32 %v5222_v19, %v5204_v42 }
 0x35c   : > { %v5187_v6 = vadd.f32 %v5186_v57, %v5168_v5 }
 0x360   : > { %v5205_v45 = vpop.f32.mrf.mxu2 }
 0x361   : > { %v5206_v24 = vadd.f32 %v5205_v45, %v5187_v6  ;;  %v5236_v40 = vpop.f32.mrf.mxu0 }
 0x362   : > { %v5224_v41 = vpop.f32.mrf.mxu3  ;;  %v5255_v36 = vpop.f32.mrf.mxu1 }
 0x363   : > { %v5256_v13 = vadd.f32 %v5255_v36, %v5236_v40  ;;  %v10250_v48 = vadd.f32 %v5224_v41, %v5206_v24 }
 0x368   : > { %v5274_v30 = vpop.f32.mrf.mxu2 }
 0x369   : > { %v5275_v0 = vadd.f32 %v5274_v30, %v5256_v13  ;;  %v5238_v29 = vpop.f32.mrf.mxu0 }
 0x36a   : > { %v5293_v21 = vpop.f32.mrf.mxu3  ;;  %v5257_v34 = vpop.f32.mrf.mxu1 }
 0x36b   : > { %v5258_v12 = vadd.f32 %v5257_v34, %v5238_v29  ;;  %v5294_v44 = vadd.f32 %v5293_v21, %v5275_v0  ;;  %v10253_v34 = vmax.f32 %v10074_v14, 1e-08 }
 0x36d   : > { %7525 = vrsqrt.f32 %v10253_v34  ;;  %vm5554_vm0 = vcmp.eq.f32.partialorder %v10253_v34, inf  ;;  %vm5556_vm1 = vcmp.eq.f32.partialorder %v10253_v34, 0.0 }
 0x370   : > { %v5276_v3 = vpop.f32.mrf.mxu2 }
 0x371   : > { %v5277_v35 = vadd.f32 %v5276_v3, %v5258_v12  ;;  %v5241_v61 = vpop.f32.mrf.mxu0 }
 0x372   : > { %v5295_v33 = vpop.f32.mrf.mxu3  ;;  %v5260_v39 = vpop.f32.mrf.mxu1 }
 0x373   : > { %v5261_v32 = vadd.f32 %v5260_v39, %v5241_v61  ;;  %v5296_v1 = vadd.f32 %v5295_v33, %v5277_v35 }
 0x378   : > { %v5279_v9 = vpop.f32.mrf.mxu2 }
 0x379   : > { %v5280_v15 = vadd.f32 %v5279_v9, %v5261_v32  ;;  %v5243_v56 = vpop.f32.mrf.mxu0 }
 0x37a   : > { %v5298_v49 = vpop.f32.mrf.mxu3  ;;  %v5262_v59 = vpop.f32.mrf.mxu1 }
 0x37b   : > { %v5263_v27 = vadd.f32 %v5262_v59, %v5243_v56  ;;  %v5299_v10 = vadd.f32 %v5298_v49, %v5280_v15  ;;  %v10259_v15 = vmax.f32 %v10101_v25, 1e-08 }
 0x37d   : > { %7527 = vrsqrt.f32 %v10259_v15  ;;  %vm5566_vm2 = vcmp.eq.f32.partialorder %v10259_v15, inf  ;;  %vm5568_vm5 = vcmp.eq.f32.partialorder %v10259_v15, 0.0 }
 0x380   : > { %v5281_v11 = vpop.f32.mrf.mxu2 }
 0x381   : > { %v5282_v58 = vadd.f32 %v5281_v11, %v5263_v27  ;;  %v5312_v26 = vpop.f32.mrf.mxu0  ;;  %v7526_v11 = vpop.eup %7525 }
 0x382   : > { %v5300_v8 = vpop.f32.mrf.mxu3  ;;  %v5331_v37 = vpop.f32.mrf.mxu1  ;;  %v5313_v53 = vadd.f32 %v5312_v26, %v5294_v44  ;;  %v10263_v26 = vmax.f32 %v10114_v52, 1e-08 }
 0x383   : > { %v5301_v55 = vadd.f32 %v5300_v8, %v5282_v58 }
 0x384   : > { %v5332_v62 = vadd.f32 %v5331_v37, %v5313_v53  ;;  %7529 = vrsqrt.f32 %v10263_v26  ;;  %vm5578_vm6 = vcmp.eq.f32.partialorder %v10263_v26, inf  ;;  %vm5580_vm7 = vcmp.eq.f32.partialorder %v10263_v26, 0.0 }
 0x388   : > { %v5350_v4 = vpop.f32.mrf.mxu2 }
 0x389   : > { %v5351_v54 = vadd.f32 %v5350_v4, %v5332_v62  ;;  %v5314_v2 = vpop.f32.mrf.mxu0  ;;  %v5548_v62 = vmul.f32 %v7526_v11, %v10253_v34 }
 0x38a   : > { %v5369_v43 = vpop.f32.mrf.mxu3  ;;  %v5333_v38 = vpop.f32.mrf.mxu1  ;;  %v5315_v13 = vadd.f32 %v5314_v2, %v5296_v1 }
 0x38b   : > { %v5370_v46 = vadd.f32 %v5369_v43, %v5351_v54 }
 0x38c   : > { %v5334_v30 = vadd.f32 %v5333_v38, %v5315_v13 }
 0x390   : > { %v5352_v22 = vpop.f32.mrf.mxu2 }
 0x391   : > { %v5317_v28 = vpop.f32.mrf.mxu0  ;;  %v5353_v12 = vadd.f32 %v5352_v22, %v5334_v30 }
 0x392   : > { %v5371_v7 = vpop.f32.mrf.mxu3  ;;  %v5336_v18 = vpop.f32.mrf.mxu1  ;;  %v5318_v33 = vadd.f32 %v5317_v28, %v5299_v10 }
 0x393   : > { %v5372_v61 = vadd.f32 %v5371_v7, %v5353_v12  ;;  %v5549_v7 = vmul.f32 %v7526_v11, %v5548_v62 }
 0x394   : > { %v5337_v32 = vadd.f32 %v5336_v18, %v5318_v33  ;;  %v7528_v18 = vpop.eup %7527 }
 0x398   : > { %v5355_v23 = vpop.f32.mrf.mxu2 }
 0x399   : > { %v5319_v60 = vpop.f32.mrf.mxu0  ;;  %v5356_v56 = vadd.f32 %v5355_v23, %v5337_v32  ;;  %v5596_v32 = vmul.f32 %v10242_v47, %v10242_v47 }
 0x39a   : > { %v5374_v17 = vpop.f32.mrf.mxu3  ;;  %v5338_v50 = vpop.f32.mrf.mxu1  ;;  %v5320_v8 = vadd.f32 %v5319_v60, %v5301_v55  ;;  %v5595_v60 = vmul.f32 %v10240_v31, %v10240_v31 }
 0x39b   : > { %v5375_v37 = vadd.f32 %v5374_v17, %v5356_v56 }
 0x39c   : > { %v5339_v4 = vadd.f32 %v5338_v50, %v5320_v8 }
 0x3a0   : > { %v5357_v16 = vpop.f32.mrf.mxu2 }
 0x3a1   : > { %v5388_v42 = vpop.f32.mrf.mxu0  ;;  %v5358_v38 = vadd.f32 %v5357_v16, %v5339_v4 }
 0x3a2   : > { %v5376_v19 = vpop.f32.mrf.mxu3  ;;  %v5407_v51 = vpop.f32.mrf.mxu1  ;;  %v5389_v21 = vadd.f32 %v5388_v42, %v5370_v46 }
 0x3a3   : > { %v5377_v50 = vadd.f32 %v5376_v19, %v5358_v38 }
 0x3a4   : > { %v5408_v35 = vadd.f32 %v5407_v51, %v5389_v21 }
 0x3a8   : > { %v5426_v57 = vpop.f32.mrf.mxu2 }
 0x3a9   : > { %v5390_v6 = vpop.f32.mrf.mxu0  ;;  %v5427_v39 = vadd.f32 %v5426_v57, %v5408_v35  ;;  %v5550_v57 = vmul.f32 0.5, %v5549_v7 }
 0x3aa   : > { %v5445_v5 = vpop.f32.mrf.mxu3  ;;  %v5409_v45 = vpop.f32.mrf.mxu1  ;;  %v5391_v9 = vadd.f32 %v5390_v6, %v5372_v61 }
 0x3ab   : > { %v5446_v14 = vadd.f32 %v5445_v5, %v5427_v39  ;;  %v5560_v5 = vmul.f32 %v7528_v18, %v10259_v15  ;;  %v10270_v6 = vpop.eup %7529  ;;  %v5551_v12 = vsub.f32 1.5, %v5550_v57 }
 0x3ac   : > { %v5410_v10 = vadd.f32 %v5409_v45, %v5391_v9  ;;  %v5572_v19 = vmul.f32 %v10270_v6, %v10263_v26 }
 0x3ad   : > { %v5561_v31 = vmul.f32 %v7528_v18, %v5560_v5 }
 0x3af   : > { %v5562_v56 = vmul.f32 0.5, %v5561_v31 }
 0x3b0   : > { %v5428_v41 = vpop.f32.mrf.mxu2 }
 0x3b1   : > { %v5393_v40 = vpop.f32.mrf.mxu0  ;;  %v5429_v53 = vadd.f32 %v5428_v41, %v5410_v10 }
 0x3b2   : > { %v5447_v24 = vpop.f32.mrf.mxu3  ;;  %v5412_v36 = vpop.f32.mrf.mxu1  ;;  %v5394_v25 = vadd.f32 %v5393_v40, %v5375_v37 }
 0x3b3   : > { %v5448_v55 = vadd.f32 %v5447_v24, %v5429_v53  ;;  %v5563_v53 = vsub.f32 1.5, %v5562_v56 }
 0x3b4   : > { %v5413_v52 = vadd.f32 %v5412_v36, %v5394_v25 }
 0x3b5   : > { %v5564_v7 = vmul.f32 %v7528_v18, %v5563_v53 }
 0x3b8   : > { %v5431_v0 = vpop.f32.mrf.mxu2 }
 0x3b9   : > { %v5395_v44 = vpop.f32.mrf.mxu0  ;;  %v5432_v42 = vadd.f32 %v5431_v0, %v5413_v52  ;;  %v10277_v0 = vmax.f32 %v10130_v63, 1e-08 }
 0x3ba   : > { %v5450_v29 = vpop.f32.mrf.mxu3  ;;  %v5414_v3 = vpop.f32.mrf.mxu1  ;;  %v5396_v16 = vadd.f32 %v5395_v44, %v5377_v50 }
 0x3bb   : > { %v5451_v13 = vadd.f32 %v5450_v29, %v5432_v42  ;;  %v5552_v29 = vmul.f32 %v7526_v11, %v5551_v12  ;;  %vm5590_vm12 = vcmp.eq.f32.partialorder %v10277_v0, inf  ;;  %vm5592_vm13 = vcmp.eq.f32.partialorder %v10277_v0, 0.0 }
 0x3bc   : > { %v5415_v33 = vadd.f32 %v5414_v3, %v5396_v16  ;;  %v5565_v16 = vmul.f32 %v5564_v7, %v10259_v15 }
 0x3be   : > { %v5567_v31 = vsel %vm5566_vm2, %v10259_v15, %v5565_v16 }
 0x3c0   : > { %v5433_v49 = vpop.f32.mrf.mxu2 }
 0x3c1   : > { %v5464_v59 = vpop.f32.mrf.mxu0  ;;  %v5434_v39 = vadd.f32 %v5433_v49, %v5415_v33  ;;  %v5553_v49 = vmul.f32 %v5552_v29, %v10253_v34 }
 0x3c2   : > { %v10256_v1 = vpop.f32.mrf.mxu3  ;;  %v5483_v27 = vpop.f32.mrf.mxu1  ;;  %v5465_v58 = vadd.f32 %v5464_v59, %v5446_v14  ;;  %v5573_v14 = vmul.f32 %v10270_v6, %v5572_v19 }
 0x3c3   : > { %v5453_v8 = vadd.f32 %v10256_v1, %v5434_v39  ;;  %v5597_v1 = vmul.f32 %v10248_v20, %v10248_v20  ;;  %v5555_v38 = vsel %vm5554_vm0, %v10253_v34, %v5553_v49 }
 0x3c4   : > { %v5484_v43 = vadd.f32 %v5483_v27, %v5465_v58  ;;  %v5574_v62 = vmul.f32 0.5, %v5573_v14 }
 0x3c8   : > { %v5502_v54 = vpop.f32.mrf.mxu2 }
 0x3c9   : > { %v5503_v46 = vadd.f32 %v5502_v54, %v5484_v43  ;;  %v5466_v22 = vpop.f32.mrf.mxu0 }
 0x3ca   : > { %v5521_v2 = vpop.f32.mrf.mxu3  ;;  %v5485_v28 = vpop.f32.mrf.mxu1  ;;  %v5467_v17 = vadd.f32 %v5466_v22, %v5448_v55  ;;  %v5557_v55 = vand.u32 2147483648, %v10253_v34 }
 0x3cb   : > { %v5522_v23 = vadd.f32 %v5521_v2, %v5503_v46 }
 0x3cc   : > { %v5486_v41 = vadd.f32 %v5485_v28, %v5467_v17  ;;  %v5575_v28 = vsub.f32 1.5, %v5574_v62  ;;  %v5558_v42 = vsel %vm5556_vm1, %v5557_v55, %v5555_v38 }
 0x3cd   : > { %v5599_v51 = vmul.f32 %v5522_v23, %v5522_v23 }
 0x3ce   : > { %v5576_v18 = vmul.f32 %v10270_v6, %v5575_v28  ;;  %v5598_v6 = vmul.f32 %v10250_v48, %v10250_v48 }
 0x3cf   : > { %v5603_v45 = vadd.f32 %v5599_v51, %v5595_v60 }
 0x3d0   : > { %v5504_v24 = vpop.f32.mrf.mxu2  ;;  %v5577_v19 = vmul.f32 %v5576_v18, %v10263_v26 }
 0x3d1   : > { %v10272_v36 = vmax.f32 %v5603_v45, 1e-08  ;;  %v5505_v30 = vadd.f32 %v5504_v24, %v5486_v41  ;;  %v5469_v21 = vpop.f32.mrf.mxu0 }
 0x3d2   : > { %v5523_v40 = vpop.f32.mrf.mxu3  ;;  %v5470_v44 = vadd.f32 %v5469_v21, %v5451_v13  ;;  %v5488_v61 = vpop.f32.mrf.mxu1 }
 0x3d3   : > { %7531 = vrsqrt.f32 %v10272_v36  ;;  %v5524_v35 = vadd.f32 %v5523_v40, %v5505_v30  ;;  %vm5618_vm3 = vcmp.eq.f32.partialorder %v10272_v36, inf  ;;  %v5621_v13 = vand.u32 2147483648, %v10272_v36 }
 0x3d4   : > { %7533 = vrsqrt.f32 %v10277_v0  ;;  %v5489_v59 = vadd.f32 %v5488_v61, %v5470_v44  ;;  %vm5620_vm4 = vcmp.eq.f32.partialorder %v10272_v36, 0.0 }
 0x3d5   : > { %v5600_v9 = vmul.f32 %v5524_v35, %v5524_v35 }
 0x3d7   : > { %v5604_v63 = vadd.f32 %v5600_v9, %v5596_v32  ;;  %v5569_v32 = vand.u32 2147483648, %v10259_v15 }
 0x3d8   : > { %v5507_v27 = vpop.f32.mrf.mxu2 }
 0x3d9   : > { %v7532_v3 = vpop.eup %7531  ;;  %v5508_v10 = vadd.f32 %v5507_v27, %v5489_v59  ;;  %v5471_v37 = vpop.f32.mrf.mxu0  ;;  %v10287_v47 = vmax.f32 %v5604_v63, 1e-08  ;;  %v5570_v14 = vsel %vm5568_vm5, %v5569_v32, %v5567_v31  ;;  %v5579_v63 = vsel %vm5578_vm6, %v10263_v26, %v5577_v19 }
 0x3da   : > { %v5526_v58 = vpop.f32.mrf.mxu3  ;;  %v5612_v11 = vmul.f32 %v7532_v3, %v10272_v36  ;;  %v5472_v25 = vadd.f32 %v5471_v37, %v5453_v8  ;;  %v10290_v54 = vpop.eup %7533 }
 0x3db   : > { %v5527_v4 = vadd.f32 %v5526_v58, %v5508_v10  ;;  %7535 = vrsqrt.f32 %v10287_v47  ;;  %v5490_v22 = vpop.f32.mrf.mxu1  ;;  %v5584_v17 = vmul.f32 %v10290_v54, %v10277_v0  ;;  %v5581_v10 = vand.u32 2147483648, %v10263_v26 }
 0x3dc   : > { %v5613_v43 = vmul.f32 %v7532_v3, %v5612_v11  ;;  %v5491_v23 = vadd.f32 %v5490_v22, %v5472_v25  ;;  %vm5630_vm8 = vcmp.eq.f32.partialorder %v10287_v47, inf  ;;  %v5633_v37 = vand.u32 2147483648, %v10287_v47 }
 0x3dd   : > { %v5601_v2 = vmul.f32 %v5527_v4, %v5527_v4  ;;  %v5585_v41 = vmul.f32 %v10290_v54, %v5584_v17  ;;  %v5582_v11 = vsel %vm5580_vm7, %v5581_v10, %v5579_v63  ;;  %vm5632_vm9 = vcmp.eq.f32.partialorder %v10287_v47, 0.0 }
 0x3de   : > { %v5614_v46 = vmul.f32 0.5, %v5613_v43 }
 0x3df   : > { %v5605_v52 = vadd.f32 %v5601_v2, %v5597_v1  ;;  %v5586_v35 = vmul.f32 0.5, %v5585_v41 }
 0x3e0   : > { %v5615_v60 = vsub.f32 1.5, %v5614_v46  ;;  %v5509_v50 = vpop.f32.mrf.mxu2 }
 0x3e1   : > { %v10300_v20 = vmax.f32 %v5605_v52, 1e-08  ;;  %v5510_v51 = vadd.f32 %v5509_v50, %v5491_v23  ;;  %v7536_v57 = vpop.eup %7535  ;;  %v5587_v27 = vsub.f32 1.5, %v5586_v35 }
 0x3e2   : > { %v5616_v5 = vmul.f32 %v7532_v3, %v5615_v60  ;;  %v5624_v45 = vmul.f32 %v7536_v57, %v10287_v47  ;;  %v5528_v34 = vpop.f32.mrf.mxu3 }
 0x3e3   : > { %7537 = vrsqrt.f32 %v10300_v20  ;;  %v5529_v40 = vadd.f32 %v5528_v34, %v5510_v51  ;;  %v5588_v4 = vmul.f32 %v10290_v54, %v5587_v27  ;;  %vm5642_vm10 = vcmp.eq.f32.partialorder %v10300_v20, inf }
 0x3e4   : > { %7539 = vlog2.f32 %v5558_v42  ;;  %v5617_v24 = vmul.f32 %v5616_v5, %v10272_v36  ;;  %v5625_v30 = vmul.f32 %v7536_v57, %v5624_v45  ;;  %v5645_v60 = vand.u32 2147483648, %v10300_v20 }
 0x3e5   : > { %v5602_v12 = vmul.f32 %v5529_v40, %v5529_v40  ;;  %vm5644_vm11 = vcmp.eq.f32.partialorder %v10300_v20, 0.0 }
 0x3e6   : > { %v5619_v21 = vsel %vm5618_vm3, %v10272_v36, %v5617_v24  ;;  %v5626_v44 = vmul.f32 0.5, %v5625_v30 }
 0x3e7   : > { %v5622_v33 = vsel %vm5620_vm4, %v5621_v13, %v5619_v21  ;;  %v5606_v39 = vadd.f32 %v5602_v12, %v5598_v6  ;;  %v5593_v13 = vand.u32 2147483648, %v10277_v0 }
 0x3e8   : > { %v5659_v61 = vsub.f32 %v5622_v33, %v5558_v42  ;;  %7541 = vlog2.f32 %v5622_v33  ;;  %v5627_v9 = vsub.f32 1.5, %v5626_v44  ;;  %v5670_v25 = vmul.f32 %v5622_v33, %v5622_v33 }
 0x3e9   : > { %v7538_v29 = vpop.eup %7537  ;;  %v10320_v56 = vmax.f32 %v5606_v39, 1e-08 }
 0x3ea   : > { %v7540_v48 = vpop.eup %7539  ;;  %v5636_v36 = vmul.f32 %v7538_v29, %v10300_v20  ;;  %v5628_v59 = vmul.f32 %v7536_v57, %v5627_v9  ;;  %v5663_v22 = vmul.f32 %v5659_v61, %v5659_v61 }
 0x3eb   : > { %7543 = vrsqrt.f32 %v10320_v56  ;;  %v5678_v8 = vmul.f32 0.6931472, %v7540_v48  ;;  %vm5654_vm14 = vcmp.eq.f32.partialorder %v10320_v56, inf  ;;  %vm5656_vm15 = vcmp.eq.f32.partialorder %v10320_v56, 0.0 }
 0x3ec   : > { %v5637_v3 = vmul.f32 %v7538_v29, %v5636_v36  ;;  %v5629_v15 = vmul.f32 %v5628_v59, %v10287_v47  ;;  %7545 = vlog2.f32 %v5570_v14 }
 0x3ee   : > { %v7542_v58 = vpop.eup %7541  ;;  %v5638_v49 = vmul.f32 0.5, %v5637_v3  ;;  %v5631_v62 = vsel %vm5630_vm8, %v10287_v47, %v5629_v15  ;;  %v5589_v47 = vmul.f32 %v5588_v4, %v10277_v0  ;;  %v5704_v3 = vld [vmem:[%s8227_s26] sm:$0xff]  ;;  %v7138_v4 = vld [vmem:[%s8227_s26 + $0x8] sm:$0xff] }
 0x3ef   : > { %v5686_v53 = vmul.f32 0.6931472, %v7542_v58  ;;  %v5634_v43 = vsel %vm5632_vm9, %v5633_v37, %v5631_v62 }
 0x3f0   : > { %v5639_v26 = vsub.f32 1.5, %v5638_v49  ;;  %v5660_v2 = vsub.f32 %v5634_v43, %v5570_v14  ;;  %v5671_v38 = vmul.f32 %v5634_v43, %v5634_v43  ;;  %7547 = vlog2.f32 %v5634_v43  ;;  %v7140_v43 = vld [vmem:[%s8227_s26 + $0x10] sm:$0xff] }
 0x3f1   : > { %v5693_v1 = vsub.f32 %v5678_v8, %v5686_v53  ;;  %v7544_v55 = vpop.eup %7543  ;;  %7549 = vlog2.f32 %v5582_v11  ;;  %v5591_v41 = vsel %vm5590_vm12, %v10277_v0, %v5589_v47 }
 0x3f2   : > { %v5640_v46 = vmul.f32 %v7538_v29, %v5639_v26  ;;  %v5664_v7 = vmul.f32 %v5660_v2, %v5660_v2  ;;  %v5674_v28 = vadd.f32 %v5671_v38, %v5670_v25  ;;  %v5648_v52 = vmul.f32 %v7544_v55, %v10320_v56  ;;  %v7546_v23 = vpop.eup %7545 }
 0x3f3   : > { %v5680_v57 = vmul.f32 0.6931472, %v7546_v23  ;;  %v5594_v12 = vsel %vm5592_vm13, %v5593_v13, %v5591_v41  ;;  %v5697_v31 = vand.u32 2147483647, %v5693_v1  ;;  %v5657_v29 = vand.u32 2147483648, %v10320_v56 }
 0x3f4   : > { %v5641_v54 = vmul.f32 %v5640_v46, %v10300_v20  ;;  %v5667_v17 = vadd.f32 %v5664_v7, %v5663_v22  ;;  %v5649_v50 = vmul.f32 %v7544_v55, %v5648_v52 }
 0x3f6   : > { %v5643_v42 = vsel %vm5642_vm10, %v10300_v20, %v5641_v54  ;;  %v7548_v51 = vpop.eup %7547  ;;  %v5650_v16 = vmul.f32 0.5, %v5649_v50 }
 0x3f7   : > { %v5646_v5 = vsel %vm5644_vm11, %v5645_v60, %v5643_v42  ;;  %v5688_v18 = vmul.f32 0.6931472, %v7548_v51  ;;  %v7550_v40 = vpop.eup %7549 }
 0x3f8   : > { %v5661_v45 = vsub.f32 %v5646_v5, %v5582_v11  ;;  %v5672_v34 = vmul.f32 %v5646_v5, %v5646_v5  ;;  %7551 = vlog2.f32 %v5646_v5  ;;  %v5651_v24 = vsub.f32 1.5, %v5650_v16 }
 0x3f9   : > { %v5694_v30 = vsub.f32 %v5680_v57, %v5688_v18  ;;  %v5682_v61 = vmul.f32 0.6931472, %v7550_v40  ;;  %7553 = vlog2.f32 %v5594_v12 }
 0x3fa   : > { %v5665_v6 = vmul.f32 %v5661_v45, %v5661_v45  ;;  %v5675_v21 = vadd.f32 %v5674_v28, %v5672_v34  ;;  %v5652_v20 = vmul.f32 %v7544_v55, %v5651_v24 }
 0x3fb   : > { %v5698_v19 = vand.u32 2147483647, %v5694_v30 }
 0x3fc   : > { %v5668_v33 = vadd.f32 %v5667_v17, %v5665_v6  ;;  %v5653_v44 = vmul.f32 %v5652_v20, %v10320_v56 }
 0x3fd   : > { %v5701_v39 = vadd.f32 %v5698_v19, %v5697_v31 }
 0x3fe   : > { %v7552_v35 = vpop.eup %7551  ;;  %v5655_v9 = vsel %vm5654_vm14, %v10320_v56, %v5653_v44 }
 0x3ff   : > { %v5690_v32 = vmul.f32 0.6931472, %v7552_v35  ;;  %v5658_v0 = vsel %vm5656_vm15, %v5657_v29, %v5655_v9  ;;  %v7554_v8 = vpop.eup %7553 }
 0x400   : > { %v5662_v36 = vsub.f32 %v5658_v0, %v5594_v12  ;;  %v5673_v14 = vmul.f32 %v5658_v0, %v5658_v0  ;;  %7555 = vlog2.f32 %v5658_v0  ;;  %v5684_v56 = vmul.f32 0.6931472, %v7554_v8 }
 0x401   : > { %v5695_v48 = vsub.f32 %v5682_v61, %v5690_v32 }
 0x402   : > { %v5666_v63 = vmul.f32 %v5662_v36, %v5662_v36  ;;  %v5676_v27 = vadd.f32 %v5675_v21, %v5673_v14 }
 0x403   : > { %v5699_v59 = vand.u32 2147483647, %v5695_v48 }
 0x404   : > { %v5669_v15 = vadd.f32 %v5668_v33, %v5666_v63  ;;  %v5709_v25 = vadd.f32 %v7138_v4, %v5676_v27 }
 0x405   : > { %v5702_v10 = vadd.f32 %v5701_v39, %v5699_v59 }
 0x406   : > { %v7556_v58 = vpop.eup %7555  ;;  %v5705_v37 = vadd.f32 %v5704_v3, %v5669_v15  ;;  %7139 = vst [vmem:[%s8227_s26 + $0x8] sm:$0xff] %v5709_v25 }
 0x407   : > { %v5692_v49 = vmul.f32 0.6931472, %v7556_v58 }
 0x408   : > { %5706 = vst [vmem:[%s8227_s26] sm:$0xff] %v5705_v37 }
 0x409   : > { %v5696_v11 = vsub.f32 %v5684_v56, %v5692_v49 }
 0x40b   : > { %v5700_v53 = vand.u32 2147483647, %v5696_v11 }
 0x40d   : > { %v5703_v62 = vadd.f32 %v5702_v10, %v5700_v53 }
 0x40f   : > { %v5713_v26 = vadd.f32 %v7140_v43, %v5703_v62 }
 0x411   : > { %7141 = vst [vmem:[%s8227_s26 + $0x10] sm:$0xff] %v5713_v26 }
 0x412 PF: > { %s13_s18 = sadd.s32 1, %s7611_s18   ;;  %s11109_s12 = smov %s7591_s13 }
 0x413   : > { %p10_p13 = scmp.ge.s32.totalorder %s13_s18, 20   ;;  %s11110_s13 = smov %s7683_s23 }
 0x414   : > { %s11111_s14 = smov %s7603_s16  ;;  %s11112_s15 = smov %s7607_s17 }
 0x415   : > { %s11113_s16 = smov %s11116_s19  ;;  %s11114_s17 = smov %s11120_s20 }
 0x416   :  { %12 = sbr.rel (!%p10_p13) target bundleno = 4 (0x4), region = 137 }

// kernel: loss_function.5
= control target key start
LH: loop header
LB: loop body
LE: loop exit
PB: predicated region body
PF: predicated region fallthrough
CT: control target
= control target key end

     0   :  { %s4122_s12 = smov 0   ;;  %s4124_s13 = smov 0   ;;  %s5832_s0 = inlined_call_operand.vmem [shape: bf16[2,48,1024], index: 0, kind: input, shape index: {}]   ;;  %s5833_s1 = inlined_call_operand.vmem [shape: bf16[2,48,1024], index: 1, kind: input, shape index: {}]   ;;  %s5834_s2 = inlined_call_operand.vmem [shape: bf16[1024,1280], index: 2, kind: input, shape index: {}]   ;;  %s5835_s3 = inlined_call_operand.vmem [shape: f32[6,8,128], index: 3, kind: output, shape index: {}]  }
   0x1   :  { %s4126_s14 = smov 0   ;;  %s4128_s15 = smov 0  }
   0x2   :  { %s4130_s16 = smov 0   ;;  %s4132_s17 = smov 0  }
   0x3   :  { %s4134_s18 = smov 0  }
   0x4 LB: > { %s25_s19 = sadd.s32 1, %s4091_s16  ;;  %s32_s20 = sadd.s32 1, %s4095_s17  ;;  %s4099_s18 = sphi %s4134_s18, %s13_s18   ;;  %s4095_s17 = sphi %s4132_s17, %s6117_s17   ;;  %s4091_s16 = sphi %s4130_s16, %s6116_s16   ;;  %s4087_s15 = sphi %s4128_s15, %s6115_s15   ;;  %s4083_s14 = sphi %s4126_s14, %s6114_s14   ;;  %s4079_s13 = sphi %s4124_s13, %s6113_s13   ;;  %s4075_s12 = sphi %s4122_s12, %s6112_s12  }
   0x5   : > { %p26_p0 = scmp.ge.s32.totalorder %s25_s19, 5  ;;  %s95_s21 = sadd.s32 1, %s4079_s13 }
   0x6   : > { %p102_p1 = scmp.ne.s32.totalorder %s4079_s13, %s4075_s12  ;;  %p103_p2 = scmp.eq.s32.totalorder %s4099_s18, 0 }
   0x7   : > { %s6119_s19 = smov (%p26_p0, %s25_s19), 0  ;;  %s6121_s20 = smov (!%p26_p0, %s32_s20), %s4095_s17 }
   0x8   : > { %s92_s22 = ssub.s32 %s4091_s16, %s6119_s19  ;;  %p104_p3 = por %p103_p2, %p102_p1 }
   0x9   : > { %p34_p4 = scmp.ge.s32.totalorder %s6121_s20, 2  ;;  %p93_p5 = scmp.eq.s32.totalorder %s92_s22, 0 }
   0xa   : > { %p3041_p6 = scmp.ge.s32.totalorder %s4099_s18, 10 }
   0xb   : > { %s6123_s20 = smov (%p34_p4, %s6121_s20), 0 }
   0xc   : > { %s4171_s23 = scalar_select %p93_p5, %s4079_s13, %s95_s21  }
   0xd   : > { %154 = sbr.rel (%p3041_p6) target bundleno = 150 (0x96), region = 16 }
  0x12   : > { %185 = sbr.rel (!%p104_p3) target bundleno = 150 (0x96), region = 28  ;;  %s187_s24 = sand.u32 (%p104_p3), 1, %s4079_s13  }
  0x13   : > { %s3761_s25 = sshll.u32 (%p104_p3), %s4091_s16, 3  ;;  %s3042_s26 = sshll.u32 (%p104_p3), %s187_s24, 10 }
  0x14   : > { %s4179_s29 = scalar_lea.vmem (%p104_p3), %s5834_s2, %s3761_s25  ;;  %s4184_s30 = scalar_lea.vmem (%p104_p3), [#allocation2], %s3042_s26 }
  0x15   : > { %v475_v0 = vld [vmem:[%s4179_s29] sm:$0xff] (%p104_p3)  ;;  %v477_v1 = vld [vmem:[%s4179_s29 + $0x28] sm:$0xff] (%p104_p3)  ;;  %v479_v2 = vld [vmem:[%s4179_s29 + $0x50] sm:$0xff] (%p104_p3) }
  0x16   : > { %476 = vst [vmem:[%s4184_s30] sm:$0xff] (%p104_p3), %v475_v0  ;;  %v481_v3 = vld [vmem:[%s4179_s29 + $0x78] sm:$0xff] (%p104_p3)  ;;  %v483_v4 = vld [vmem:[%s4179_s29 + $0xa0] sm:$0xff] (%p104_p3)  ;;  %v485_v5 = vld [vmem:[%s4179_s29 + $0xc8] sm:$0xff] (%p104_p3) }
  0x17   : > { %478 = vst [vmem:[%s4184_s30 + $0x8] sm:$0xff] %v477_v1  ;;  %v487_v6 = vld [vmem:[%s4179_s29 + $0xf0] sm:$0xff]  ;;  %v489_v7 = vld [vmem:[%s4179_s29 + $0x118] sm:$0xff]  ;;  %v491_v8 = vld [vmem:[%s4179_s29 + $0x140] sm:$0xff] }
  0x18   : > { %480 = vst [vmem:[%s4184_s30 + $0x10] sm:$0xff] %v479_v2  ;;  %v493_v9 = vld [vmem:[%s4179_s29 + $0x168] sm:$0xff]  ;;  %v495_v10 = vld [vmem:[%s4179_s29 + $0x190] sm:$0xff]  ;;  %v497_v11 = vld [vmem:[%s4179_s29 + $0x1b8] sm:$0xff] }
  0x19   : > { %482 = vst [vmem:[%s4184_s30 + $0x18] sm:$0xff] %v481_v3  ;;  %v499_v12 = vld [vmem:[%s4179_s29 + $0x1e0] sm:$0xff]  ;;  %v501_v13 = vld [vmem:[%s4179_s29 + $0x208] sm:$0xff]  ;;  %v503_v14 = vld [vmem:[%s4179_s29 + $0x230] sm:$0xff] }
  0x1a   : > { %484 = vst [vmem:[%s4184_s30 + $0x20] sm:$0xff] %v483_v4  ;;  %v505_v15 = vld [vmem:[%s4179_s29 + $0x258] sm:$0xff]  ;;  %v507_v16 = vld [vmem:[%s4179_s29 + $0x280] sm:$0xff]  ;;  %v509_v17 = vld [vmem:[%s4179_s29 + $0x2a8] sm:$0xff] }
  0x1b   : > { %486 = vst [vmem:[%s4184_s30 + $0x28] sm:$0xff] %v485_v5  ;;  %v511_v18 = vld [vmem:[%s4179_s29 + $0x2d0] sm:$0xff]  ;;  %v513_v19 = vld [vmem:[%s4179_s29 + $0x2f8] sm:$0xff]  ;;  %v515_v20 = vld [vmem:[%s4179_s29 + $0x320] sm:$0xff] }
  0x1c   : > { %488 = vst [vmem:[%s4184_s30 + $0x30] sm:$0xff] %v487_v6  ;;  %v517_v21 = vld [vmem:[%s4179_s29 + $0x348] sm:$0xff]  ;;  %v519_v22 = vld [vmem:[%s4179_s29 + $0x370] sm:$0xff]  ;;  %v521_v23 = vld [vmem:[%s4179_s29 + $0x398] sm:$0xff] }
  0x1d   : > { %490 = vst [vmem:[%s4184_s30 + $0x38] sm:$0xff] %v489_v7  ;;  %v523_v24 = vld [vmem:[%s4179_s29 + $0x3c0] sm:$0xff]  ;;  %v525_v25 = vld [vmem:[%s4179_s29 + $0x3e8] sm:$0xff]  ;;  %v527_v26 = vld [vmem:[%s4179_s29 + $0x410] sm:$0xff] }
  0x1e   : > { %492 = vst [vmem:[%s4184_s30 + $0x40] sm:$0xff] %v491_v8  ;;  %v529_v27 = vld [vmem:[%s4179_s29 + $0x438] sm:$0xff]  ;;  %v531_v28 = vld [vmem:[%s4179_s29 + $0x460] sm:$0xff]  ;;  %v533_v29 = vld [vmem:[%s4179_s29 + $0x488] sm:$0xff] }
  0x1f   : > { %494 = vst [vmem:[%s4184_s30 + $0x48] sm:$0xff] %v493_v9  ;;  %v535_v30 = vld [vmem:[%s4179_s29 + $0x4b0] sm:$0xff]  ;;  %v537_v31 = vld [vmem:[%s4179_s29 + $0x4d8] sm:$0xff]  ;;  %v539_v32 = vld [vmem:[%s4179_s29 + $0x500] sm:$0xff] }
  0x20   : > { %496 = vst [vmem:[%s4184_s30 + $0x50] sm:$0xff] %v495_v10  ;;  %v541_v33 = vld [vmem:[%s4179_s29 + $0x528] sm:$0xff]  ;;  %v543_v34 = vld [vmem:[%s4179_s29 + $0x550] sm:$0xff]  ;;  %v545_v35 = vld [vmem:[%s4179_s29 + $0x578] sm:$0xff] }
  0x21   : > { %498 = vst [vmem:[%s4184_s30 + $0x58] sm:$0xff] %v497_v11  ;;  %v547_v36 = vld [vmem:[%s4179_s29 + $0x5a0] sm:$0xff]  ;;  %v549_v37 = vld [vmem:[%s4179_s29 + $0x5c8] sm:$0xff]  ;;  %v551_v38 = vld [vmem:[%s4179_s29 + $0x5f0] sm:$0xff] }
  0x22   : > { %500 = vst [vmem:[%s4184_s30 + $0x60] sm:$0xff] %v499_v12  ;;  %v553_v39 = vld [vmem:[%s4179_s29 + $0x618] sm:$0xff]  ;;  %v555_v40 = vld [vmem:[%s4179_s29 + $0x640] sm:$0xff]  ;;  %v557_v41 = vld [vmem:[%s4179_s29 + $0x668] sm:$0xff] }
  0x23   : > { %502 = vst [vmem:[%s4184_s30 + $0x68] sm:$0xff] %v501_v13  ;;  %v559_v42 = vld [vmem:[%s4179_s29 + $0x690] sm:$0xff]  ;;  %v561_v43 = vld [vmem:[%s4179_s29 + $0x6b8] sm:$0xff]  ;;  %v563_v44 = vld [vmem:[%s4179_s29 + $0x6e0] sm:$0xff] }
  0x24   : > { %504 = vst [vmem:[%s4184_s30 + $0x70] sm:$0xff] %v503_v14  ;;  %v565_v45 = vld [vmem:[%s4179_s29 + $0x708] sm:$0xff]  ;;  %v567_v46 = vld [vmem:[%s4179_s29 + $0x730] sm:$0xff]  ;;  %v569_v47 = vld [vmem:[%s4179_s29 + $0x758] sm:$0xff] }
  0x25   : > { %506 = vst [vmem:[%s4184_s30 + $0x78] sm:$0xff] %v505_v15  ;;  %v571_v48 = vld [vmem:[%s4179_s29 + $0x780] sm:$0xff]  ;;  %v573_v49 = vld [vmem:[%s4179_s29 + $0x7a8] sm:$0xff]  ;;  %v575_v50 = vld [vmem:[%s4179_s29 + $0x7d0] sm:$0xff] }
  0x26   : > { %508 = vst [vmem:[%s4184_s30 + $0x80] sm:$0xff] %v507_v16  ;;  %v577_v51 = vld [vmem:[%s4179_s29 + $0x7f8] sm:$0xff]  ;;  %v579_v52 = vld [vmem:[%s4179_s29 + $0x820] sm:$0xff]  ;;  %v581_v53 = vld [vmem:[%s4179_s29 + $0x848] sm:$0xff] }
  0x27   : > { %510 = vst [vmem:[%s4184_s30 + $0x88] sm:$0xff] %v509_v17  ;;  %v583_v54 = vld [vmem:[%s4179_s29 + $0x870] sm:$0xff]  ;;  %v585_v55 = vld [vmem:[%s4179_s29 + $0x898] sm:$0xff]  ;;  %v587_v56 = vld [vmem:[%s4179_s29 + $0x8c0] sm:$0xff] }
  0x28   : > { %512 = vst [vmem:[%s4184_s30 + $0x90] sm:$0xff] %v511_v18  ;;  %v589_v57 = vld [vmem:[%s4179_s29 + $0x8e8] sm:$0xff]  ;;  %v591_v58 = vld [vmem:[%s4179_s29 + $0x910] sm:$0xff]  ;;  %v593_v59 = vld [vmem:[%s4179_s29 + $0x938] sm:$0xff] }
  0x29   : > { %514 = vst [vmem:[%s4184_s30 + $0x98] sm:$0xff] %v513_v19  ;;  %v595_v60 = vld [vmem:[%s4179_s29 + $0x960] sm:$0xff]  ;;  %v597_v61 = vld [vmem:[%s4179_s29 + $0x988] sm:$0xff]  ;;  %v599_v62 = vld [vmem:[%s4179_s29 + $0x9b0] sm:$0xff] }
  0x2a   : > { %516 = vst [vmem:[%s4184_s30 + $0xa0] sm:$0xff] %v515_v20  ;;  %v601_v63 = vld [vmem:[%s4179_s29 + $0x9d8] sm:$0xff]  ;;  %v603_v0 = vld [vmem:[%s4179_s29 + $0xa00] sm:$0xff]  ;;  %v605_v1 = vld [vmem:[%s4179_s29 + $0xa28] sm:$0xff] }
  0x2b   : > { %518 = vst [vmem:[%s4184_s30 + $0xa8] sm:$0xff] %v517_v21  ;;  %v607_v2 = vld [vmem:[%s4179_s29 + $0xa50] sm:$0xff]  ;;  %v609_v3 = vld [vmem:[%s4179_s29 + $0xa78] sm:$0xff]  ;;  %v611_v4 = vld [vmem:[%s4179_s29 + $0xaa0] sm:$0xff] }
  0x2c   : > { %520 = vst [vmem:[%s4184_s30 + $0xb0] sm:$0xff] %v519_v22  ;;  %v613_v5 = vld [vmem:[%s4179_s29 + $0xac8] sm:$0xff]  ;;  %v615_v6 = vld [vmem:[%s4179_s29 + $0xaf0] sm:$0xff]  ;;  %v617_v7 = vld [vmem:[%s4179_s29 + $0xb18] sm:$0xff] }
  0x2d   : > { %522 = vst [vmem:[%s4184_s30 + $0xb8] sm:$0xff] %v521_v23  ;;  %v619_v8 = vld [vmem:[%s4179_s29 + $0xb40] sm:$0xff]  ;;  %v621_v9 = vld [vmem:[%s4179_s29 + $0xb68] sm:$0xff]  ;;  %v623_v10 = vld [vmem:[%s4179_s29 + $0xb90] sm:$0xff] }
  0x2e   : > { %524 = vst [vmem:[%s4184_s30 + $0xc0] sm:$0xff] %v523_v24  ;;  %v625_v11 = vld [vmem:[%s4179_s29 + $0xbb8] sm:$0xff]  ;;  %v627_v12 = vld [vmem:[%s4179_s29 + $0xbe0] sm:$0xff]  ;;  %v629_v13 = vld [vmem:[%s4179_s29 + $0xc08] sm:$0xff] }
  0x2f   : > { %526 = vst [vmem:[%s4184_s30 + $0xc8] sm:$0xff] %v525_v25  ;;  %v631_v14 = vld [vmem:[%s4179_s29 + $0xc30] sm:$0xff]  ;;  %v633_v15 = vld [vmem:[%s4179_s29 + $0xc58] sm:$0xff]  ;;  %v635_v16 = vld [vmem:[%s4179_s29 + $0xc80] sm:$0xff] }
  0x30   : > { %528 = vst [vmem:[%s4184_s30 + $0xd0] sm:$0xff] %v527_v26  ;;  %v637_v17 = vld [vmem:[%s4179_s29 + $0xca8] sm:$0xff]  ;;  %v639_v18 = vld [vmem:[%s4179_s29 + $0xcd0] sm:$0xff]  ;;  %v641_v19 = vld [vmem:[%s4179_s29 + $0xcf8] sm:$0xff] }
  0x31   : > { %530 = vst [vmem:[%s4184_s30 + $0xd8] sm:$0xff] %v529_v27  ;;  %v643_v20 = vld [vmem:[%s4179_s29 + $0xd20] sm:$0xff]  ;;  %v645_v21 = vld [vmem:[%s4179_s29 + $0xd48] sm:$0xff]  ;;  %v647_v22 = vld [vmem:[%s4179_s29 + $0xd70] sm:$0xff] }
  0x32   : > { %532 = vst [vmem:[%s4184_s30 + $0xe0] sm:$0xff] %v531_v28  ;;  %v649_v23 = vld [vmem:[%s4179_s29 + $0xd98] sm:$0xff]  ;;  %v651_v24 = vld [vmem:[%s4179_s29 + $0xdc0] sm:$0xff]  ;;  %v653_v25 = vld [vmem:[%s4179_s29 + $0xde8] sm:$0xff] }
  0x33   : > { %534 = vst [vmem:[%s4184_s30 + $0xe8] sm:$0xff] %v533_v29  ;;  %v655_v26 = vld [vmem:[%s4179_s29 + $0xe10] sm:$0xff]  ;;  %v657_v27 = vld [vmem:[%s4179_s29 + $0xe38] sm:$0xff]  ;;  %v659_v28 = vld [vmem:[%s4179_s29 + $0xe60] sm:$0xff] }
  0x34   : > { %536 = vst [vmem:[%s4184_s30 + $0xf0] sm:$0xff] %v535_v30  ;;  %v661_v29 = vld [vmem:[%s4179_s29 + $0xe88] sm:$0xff]  ;;  %v663_v30 = vld [vmem:[%s4179_s29 + $0xeb0] sm:$0xff] }
  0x35   : > { %538 = vst [vmem:[%s4184_s30 + $0xf8] sm:$0xff] %v537_v31  ;;  %v665_v31 = vld [vmem:[%s4179_s29 + $0xed8] sm:$0xff] }
  0x36   : > { %540 = vst [vmem:[%s4184_s30 + $0x100] sm:$0xff] %v539_v32  ;;  %v667_v32 = vld [vmem:[%s4179_s29 + $0xf00] sm:$0xff] }
  0x37   : > { %542 = vst [vmem:[%s4184_s30 + $0x108] sm:$0xff] %v541_v33  ;;  %v669_v33 = vld [vmem:[%s4179_s29 + $0xf28] sm:$0xff] }
  0x38   : > { %544 = vst [vmem:[%s4184_s30 + $0x110] sm:$0xff] %v543_v34  ;;  %v671_v34 = vld [vmem:[%s4179_s29 + $0xf50] sm:$0xff] }
  0x39   : > { %546 = vst [vmem:[%s4184_s30 + $0x118] sm:$0xff] %v545_v35  ;;  %v673_v35 = vld [vmem:[%s4179_s29 + $0xf78] sm:$0xff] }
  0x3a   : > { %548 = vst [vmem:[%s4184_s30 + $0x120] sm:$0xff] %v547_v36  ;;  %v675_v36 = vld [vmem:[%s4179_s29 + $0xfa0] sm:$0xff] }
  0x3b   : > { %550 = vst [vmem:[%s4184_s30 + $0x128] sm:$0xff] %v549_v37  ;;  %v677_v37 = vld [vmem:[%s4179_s29 + $0xfc8] sm:$0xff] }
  0x3c   : > { %552 = vst [vmem:[%s4184_s30 + $0x130] sm:$0xff] %v551_v38  ;;  %v679_v38 = vld [vmem:[%s4179_s29 + $0xff0] sm:$0xff] }
  0x3d   : > { %554 = vst [vmem:[%s4184_s30 + $0x138] sm:$0xff] %v553_v39  ;;  %v681_v39 = vld [vmem:[%s4179_s29 + $0x1018] sm:$0xff] }
  0x3e   : > { %556 = vst [vmem:[%s4184_s30 + $0x140] sm:$0xff] %v555_v40  ;;  %v683_v40 = vld [vmem:[%s4179_s29 + $0x1040] sm:$0xff] }
  0x3f   : > { %558 = vst [vmem:[%s4184_s30 + $0x148] sm:$0xff] %v557_v41  ;;  %v685_v41 = vld [vmem:[%s4179_s29 + $0x1068] sm:$0xff] }
  0x40   : > { %560 = vst [vmem:[%s4184_s30 + $0x150] sm:$0xff] %v559_v42  ;;  %v687_v42 = vld [vmem:[%s4179_s29 + $0x1090] sm:$0xff] }
  0x41   : > { %562 = vst [vmem:[%s4184_s30 + $0x158] sm:$0xff] %v561_v43  ;;  %v689_v43 = vld [vmem:[%s4179_s29 + $0x10b8] sm:$0xff] }
  0x42   : > { %564 = vst [vmem:[%s4184_s30 + $0x160] sm:$0xff] %v563_v44  ;;  %v691_v44 = vld [vmem:[%s4179_s29 + $0x10e0] sm:$0xff] }
  0x43   : > { %566 = vst [vmem:[%s4184_s30 + $0x168] sm:$0xff] %v565_v45  ;;  %v693_v45 = vld [vmem:[%s4179_s29 + $0x1108] sm:$0xff] }
  0x44   : > { %568 = vst [vmem:[%s4184_s30 + $0x170] sm:$0xff] %v567_v46  ;;  %v695_v46 = vld [vmem:[%s4179_s29 + $0x1130] sm:$0xff] }
  0x45   : > { %570 = vst [vmem:[%s4184_s30 + $0x178] sm:$0xff] %v569_v47  ;;  %v697_v47 = vld [vmem:[%s4179_s29 + $0x1158] sm:$0xff] }
  0x46   : > { %572 = vst [vmem:[%s4184_s30 + $0x180] sm:$0xff] %v571_v48  ;;  %v699_v48 = vld [vmem:[%s4179_s29 + $0x1180] sm:$0xff] }
  0x47   : > { %574 = vst [vmem:[%s4184_s30 + $0x188] sm:$0xff] %v573_v49  ;;  %v701_v49 = vld [vmem:[%s4179_s29 + $0x11a8] sm:$0xff] }
  0x48   : > { %576 = vst [vmem:[%s4184_s30 + $0x190] sm:$0xff] %v575_v50  ;;  %v703_v50 = vld [vmem:[%s4179_s29 + $0x11d0] sm:$0xff] }
  0x49   : > { %578 = vst [vmem:[%s4184_s30 + $0x198] sm:$0xff] %v577_v51  ;;  %v705_v51 = vld [vmem:[%s4179_s29 + $0x11f8] sm:$0xff] }
  0x4a   : > { %580 = vst [vmem:[%s4184_s30 + $0x1a0] sm:$0xff] %v579_v52  ;;  %v707_v52 = vld [vmem:[%s4179_s29 + $0x1220] sm:$0xff] }
  0x4b   : > { %582 = vst [vmem:[%s4184_s30 + $0x1a8] sm:$0xff] %v581_v53  ;;  %v709_v53 = vld [vmem:[%s4179_s29 + $0x1248] sm:$0xff] }
  0x4c   : > { %584 = vst [vmem:[%s4184_s30 + $0x1b0] sm:$0xff] %v583_v54  ;;  %v711_v54 = vld [vmem:[%s4179_s29 + $0x1270] sm:$0xff] }
  0x4d   : > { %586 = vst [vmem:[%s4184_s30 + $0x1b8] sm:$0xff] %v585_v55  ;;  %v713_v55 = vld [vmem:[%s4179_s29 + $0x1298] sm:$0xff] }
  0x4e   : > { %588 = vst [vmem:[%s4184_s30 + $0x1c0] sm:$0xff] %v587_v56  ;;  %v715_v56 = vld [vmem:[%s4179_s29 + $0x12c0] sm:$0xff] }
  0x4f   : > { %590 = vst [vmem:[%s4184_s30 + $0x1c8] sm:$0xff] %v589_v57  ;;  %v717_v57 = vld [vmem:[%s4179_s29 + $0x12e8] sm:$0xff] }
  0x50   : > { %592 = vst [vmem:[%s4184_s30 + $0x1d0] sm:$0xff] %v591_v58  ;;  %v719_v58 = vld [vmem:[%s4179_s29 + $0x1310] sm:$0xff] }
  0x51   : > { %594 = vst [vmem:[%s4184_s30 + $0x1d8] sm:$0xff] %v593_v59  ;;  %v721_v59 = vld [vmem:[%s4179_s29 + $0x1338] sm:$0xff] }
  0x52   : > { %596 = vst [vmem:[%s4184_s30 + $0x1e0] sm:$0xff] %v595_v60  ;;  %v723_v60 = vld [vmem:[%s4179_s29 + $0x1360] sm:$0xff] }
  0x53   : > { %598 = vst [vmem:[%s4184_s30 + $0x1e8] sm:$0xff] %v597_v61  ;;  %v725_v61 = vld [vmem:[%s4179_s29 + $0x1388] sm:$0xff] }
  0x54   : > { %600 = vst [vmem:[%s4184_s30 + $0x1f0] sm:$0xff] %v599_v62  ;;  %v727_v62 = vld [vmem:[%s4179_s29 + $0x13b0] sm:$0xff] }
  0x55   : > { %602 = vst [vmem:[%s4184_s30 + $0x1f8] sm:$0xff] %v601_v63  ;;  %v729_v63 = vld [vmem:[%s4179_s29 + $0x13d8] sm:$0xff] }
  0x56   : > { %604 = vst [vmem:[%s4184_s30 + $0x200] sm:$0xff] %v603_v0 }
  0x57   : > { %606 = vst [vmem:[%s4184_s30 + $0x208] sm:$0xff] %v605_v1 }
  0x58   : > { %608 = vst [vmem:[%s4184_s30 + $0x210] sm:$0xff] %v607_v2 }
  0x59   : > { %610 = vst [vmem:[%s4184_s30 + $0x218] sm:$0xff] %v609_v3 }
  0x5a   : > { %612 = vst [vmem:[%s4184_s30 + $0x220] sm:$0xff] %v611_v4 }
  0x5b   : > { %614 = vst [vmem:[%s4184_s30 + $0x228] sm:$0xff] %v613_v5 }
  0x5c   : > { %616 = vst [vmem:[%s4184_s30 + $0x230] sm:$0xff] %v615_v6 }
  0x5d   : > { %618 = vst [vmem:[%s4184_s30 + $0x238] sm:$0xff] %v617_v7 }
  0x5e   : > { %620 = vst [vmem:[%s4184_s30 + $0x240] sm:$0xff] %v619_v8 }
  0x5f   : > { %622 = vst [vmem:[%s4184_s30 + $0x248] sm:$0xff] %v621_v9 }
  0x60   : > { %624 = vst [vmem:[%s4184_s30 + $0x250] sm:$0xff] %v623_v10 }
  0x61   : > { %626 = vst [vmem:[%s4184_s30 + $0x258] sm:$0xff] %v625_v11 }
  0x62   : > { %628 = vst [vmem:[%s4184_s30 + $0x260] sm:$0xff] %v627_v12 }
  0x63   : > { %630 = vst [vmem:[%s4184_s30 + $0x268] sm:$0xff] %v629_v13 }
  0x64   : > { %632 = vst [vmem:[%s4184_s30 + $0x270] sm:$0xff] %v631_v14 }
  0x65   : > { %634 = vst [vmem:[%s4184_s30 + $0x278] sm:$0xff] %v633_v15 }
  0x66   : > { %636 = vst [vmem:[%s4184_s30 + $0x280] sm:$0xff] %v635_v16 }
  0x67   : > { %638 = vst [vmem:[%s4184_s30 + $0x288] sm:$0xff] %v637_v17 }
  0x68   : > { %640 = vst [vmem:[%s4184_s30 + $0x290] sm:$0xff] %v639_v18 }
  0x69   : > { %642 = vst [vmem:[%s4184_s30 + $0x298] sm:$0xff] %v641_v19 }
  0x6a   : > { %644 = vst [vmem:[%s4184_s30 + $0x2a0] sm:$0xff] %v643_v20 }
  0x6b   : > { %646 = vst [vmem:[%s4184_s30 + $0x2a8] sm:$0xff] %v645_v21 }
  0x6c   : > { %648 = vst [vmem:[%s4184_s30 + $0x2b0] sm:$0xff] %v647_v22 }
  0x6d   : > { %650 = vst [vmem:[%s4184_s30 + $0x2b8] sm:$0xff] %v649_v23 }
  0x6e   : > { %652 = vst [vmem:[%s4184_s30 + $0x2c0] sm:$0xff] %v651_v24 }
  0x6f   : > { %654 = vst [vmem:[%s4184_s30 + $0x2c8] sm:$0xff] %v653_v25 }
  0x70   : > { %656 = vst [vmem:[%s4184_s30 + $0x2d0] sm:$0xff] %v655_v26 }
  0x71   : > { %658 = vst [vmem:[%s4184_s30 + $0x2d8] sm:$0xff] %v657_v27 }
  0x72   : > { %660 = vst [vmem:[%s4184_s30 + $0x2e0] sm:$0xff] %v659_v28 }
  0x73   : > { %662 = vst [vmem:[%s4184_s30 + $0x2e8] sm:$0xff] %v661_v29 }
  0x74   : > { %664 = vst [vmem:[%s4184_s30 + $0x2f0] sm:$0xff] %v663_v30 }
  0x75   : > { %666 = vst [vmem:[%s4184_s30 + $0x2f8] sm:$0xff] %v665_v31 }
  0x76   : > { %668 = vst [vmem:[%s4184_s30 + $0x300] sm:$0xff] %v667_v32 }
  0x77   : > { %670 = vst [vmem:[%s4184_s30 + $0x308] sm:$0xff] %v669_v33 }
  0x78   : > { %672 = vst [vmem:[%s4184_s30 + $0x310] sm:$0xff] %v671_v34 }
  0x79   : > { %674 = vst [vmem:[%s4184_s30 + $0x318] sm:$0xff] %v673_v35 }
  0x7a   : > { %676 = vst [vmem:[%s4184_s30 + $0x320] sm:$0xff] %v675_v36 }
  0x7b   : > { %678 = vst [vmem:[%s4184_s30 + $0x328] sm:$0xff] %v677_v37 }
  0x7c   : > { %680 = vst [vmem:[%s4184_s30 + $0x330] sm:$0xff] %v679_v38 }
  0x7d   : > { %682 = vst [vmem:[%s4184_s30 + $0x338] sm:$0xff] %v681_v39 }
  0x7e   : > { %684 = vst [vmem:[%s4184_s30 + $0x340] sm:$0xff] %v683_v40 }
  0x7f   : > { %686 = vst [vmem:[%s4184_s30 + $0x348] sm:$0xff] %v685_v41 }
  0x80   : > { %688 = vst [vmem:[%s4184_s30 + $0x350] sm:$0xff] %v687_v42 }
  0x81   : > { %690 = vst [vmem:[%s4184_s30 + $0x358] sm:$0xff] %v689_v43 }
  0x82   : > { %692 = vst [vmem:[%s4184_s30 + $0x360] sm:$0xff] %v691_v44 }
  0x83   : > { %694 = vst [vmem:[%s4184_s30 + $0x368] sm:$0xff] %v693_v45 }
  0x84   : > { %696 = vst [vmem:[%s4184_s30 + $0x370] sm:$0xff] %v695_v46 }
  0x85   : > { %698 = vst [vmem:[%s4184_s30 + $0x378] sm:$0xff] %v697_v47 }
  0x86   : > { %700 = vst [vmem:[%s4184_s30 + $0x380] sm:$0xff] %v699_v48 }
  0x87   : > { %702 = vst [vmem:[%s4184_s30 + $0x388] sm:$0xff] %v701_v49 }
  0x88   : > { %704 = vst [vmem:[%s4184_s30 + $0x390] sm:$0xff] %v703_v50 }
  0x89   : > { %706 = vst [vmem:[%s4184_s30 + $0x398] sm:$0xff] %v705_v51 }
  0x8a   : > { %708 = vst [vmem:[%s4184_s30 + $0x3a0] sm:$0xff] %v707_v52 }
  0x8b   : > { %710 = vst [vmem:[%s4184_s30 + $0x3a8] sm:$0xff] %v709_v53 }
  0x8c   : > { %712 = vst [vmem:[%s4184_s30 + $0x3b0] sm:$0xff] %v711_v54 }
  0x8d   : > { %714 = vst [vmem:[%s4184_s30 + $0x3b8] sm:$0xff] %v713_v55 }
  0x8e   : > { %716 = vst [vmem:[%s4184_s30 + $0x3c0] sm:$0xff] %v715_v56 }
  0x8f   : > { %718 = vst [vmem:[%s4184_s30 + $0x3c8] sm:$0xff] %v717_v57 }
  0x90   : > { %720 = vst [vmem:[%s4184_s30 + $0x3d0] sm:$0xff] %v719_v58 }
  0x91   : > { %722 = vst [vmem:[%s4184_s30 + $0x3d8] sm:$0xff] %v721_v59 }
  0x92   : > { %724 = vst [vmem:[%s4184_s30 + $0x3e0] sm:$0xff] %v723_v60 }
  0x93   : > { %726 = vst [vmem:[%s4184_s30 + $0x3e8] sm:$0xff] %v725_v61 }
  0x94   : > { %728 = vst [vmem:[%s4184_s30 + $0x3f0] sm:$0xff] %v727_v62 }
  0x95   : > { %730 = vst [vmem:[%s4184_s30 + $0x3f8] sm:$0xff] %v729_v63 }
  0x96 PF: > { %p3045_p7 = scmp.ge.s32.totalorder %s4099_s18, 1  ;;  %p735_p8 = scmp.lt.s32.totalorder %s4099_s18, 11 }
  0x98   : > { %p736_p9 = pnand %p3045_p7, %p735_p8 }
  0x9a   : > { %739 = sbr.rel (%p736_p9) target bundleno = 766 (0x2fe), region = 66 }
  0x9f   : > { %s742_s4 = sand.u32 1, %s4075_s12   ;;  %p786_p10 = scmp.lt.s32.totalorder %s4087_s15, 1 }
  0xa0   : > { %s3046_s5 = sshll.u32 %s742_s4, 10  ;;  %s808_s6 = smul.u32 3, %s4087_s15 }
  0xa1   : > { %p815_p11 = scmp.eq.s32.totalorder %s4083_s14, 0  ;;  %s6125_s15 = smov (!%p786_p10, %s4087_s15), 1 }
  0xa2   : > { %p809_p12 = scmp.lt.s32.totalorder %s808_s6, 5  ;;  %s3939_s7 = smul.u32 192, %s6125_s15  ;;  %v4101_v0 = vmov (%p815_p11), 0.0  }
  0xa3   : > { %s4461_s14 = scalar_lea.vmem [#allocation2], %s3046_s5  ;;  %819 = sbr.rel (!%p815_p11) target bundleno = 170 (0xaa), region = 74 }
  0xa4   : > { %s6127_s6 = smov (!%p809_p12, %s808_s6), 5  ;;  %s4449_s10 = scalar_lea.vmem %s5832_s0, %s3939_s7 }
  0xa5   : > { %s4454_s22 = scalar_lea.vmem %s5833_s1, %s3939_s7  ;;  %s3049_s24 = sshll.u32 %s6127_s6, 3 }
  0xa6   : > { %s4459_s26 = scalar_lea.vmem %s5835_s3, %s3049_s24 }
  0xa7   : > { %820 = vst [vmem:[%s4459_s26] sm:$0xff] (%p815_p11), %v4101_v0 }
  0xa8   : > { %821 = vst [vmem:[%s4459_s26 + $0x8] sm:$0xff] %v4101_v0 }
  0xa9   : > { %822 = vst [vmem:[%s4459_s26 + $0x10] sm:$0xff] %v4101_v0 }
  0xaa PF: > { %v3205_v1 = vld [vmem:[%s4461_s14 + $0x70] sm:$0xf]  ;;  %v3826_v2 = vld [vmem:[%s4461_s14 + $0x74] sm:$0xf0]  ;;  %v3197_v12 = vld [vmem:[%s4461_s14 + $0x60] sm:$0xf] }
  0xab   : > { %v3269_v3 = vld [vmem:[%s4461_s14 + $0xf0] sm:$0xf]  ;;  %v4469_v4 = vor.u32 %v3826_v2, %v3205_v1  ;;  %v3842_v5 = vld [vmem:[%s4461_s14 + $0xf4] sm:$0xf0]  ;;  %v3824_v14 = vld [vmem:[%s4461_s14 + $0x64] sm:$0xf0] }
  0xac   : > { %v3333_v6 = vld [vmem:[%s4461_s14 + $0x170] sm:$0xf]  ;;  %v3858_v7 = vld [vmem:[%s4461_s14 + $0x174] sm:$0xf0]  ;;  %v4474_v8 = vor.u32 %v3842_v5, %v3269_v3  ;;  %v3261_v15 = vld [vmem:[%s4461_s14 + $0xe0] sm:$0xf]  ;;  %v4489_v17 = vor.u32 %v3824_v14, %v3197_v12 }
  0xad   : > { %v4476_v9 = vor.u32 %v3858_v7, %v3333_v6  ;;  %v3397_v10 = vld [vmem:[%s4461_s14 + $0x1f0] sm:$0xf]  ;;  %v3874_v11 = vld [vmem:[%s4461_s14 + $0x1f4] sm:$0xf0]  ;;  %1759 = vmatpush.bf16.msra.mxu0 %v4469_v4  ;;  %v3840_v16 = vld [vmem:[%s4461_s14 + $0xe4] sm:$0xf0] }
  0xae   : > { %v4482_v13 = vor.u32 %v3874_v11, %v3397_v10  ;;  %1783 = vmatpush.bf16.msra.mxu1 %v4474_v8  ;;  %v4491_v18 = vor.u32 %v3840_v16, %v3261_v15  ;;  %v3325_v19 = vld [vmem:[%s4461_s14 + $0x160] sm:$0xf]  ;;  %v3856_v20 = vld [vmem:[%s4461_s14 + $0x164] sm:$0xf0]  ;;  %v3189_v24 = vld [vmem:[%s4461_s14 + $0x50] sm:$0xf] }
  0xaf   : > { %1807 = vmatpush.bf16.msra.mxu2 %v4476_v9  ;;  %v3389_v21 = vld [vmem:[%s4461_s14 + $0x1e0] sm:$0xf]  ;;  %v4497_v22 = vor.u32 %v3856_v20, %v3325_v19  ;;  %v3872_v23 = vld [vmem:[%s4461_s14 + $0x1e4] sm:$0xf0]  ;;  %v3822_v25 = vld [vmem:[%s4461_s14 + $0x54] sm:$0xf0] }
  0xb0   : > { %1831 = vmatpush.bf16.msra.mxu3 %v4482_v13  ;;  %v4502_v26 = vor.u32 %v3872_v23, %v3389_v21  ;;  %v3253_v27 = vld [vmem:[%s4461_s14 + $0xd0] sm:$0xf]  ;;  %v3838_v28 = vld [vmem:[%s4461_s14 + $0xd4] sm:$0xf0]  ;;  %v4508_v30 = vor.u32 %v3822_v25, %v3189_v24  ;;  %v3181_v36 = vld [vmem:[%s4461_s14 + $0x40] sm:$0xf] }
  0xb1   : > { %v3317_v29 = vld [vmem:[%s4461_s14 + $0x150] sm:$0xf]  ;;  %1760 = vmatpush.bf16.msra.mxu0 %v4489_v17  ;;  %v3854_v31 = vld [vmem:[%s4461_s14 + $0x154] sm:$0xf0]  ;;  %v4515_v34 = vor.u32 %v3838_v28, %v3253_v27  ;;  %v3820_v37 = vld [vmem:[%s4461_s14 + $0x44] sm:$0xf0] }
  0xb2   : > { %v3381_v32 = vld [vmem:[%s4461_s14 + $0x1d0] sm:$0xf]  ;;  %v3870_v33 = vld [vmem:[%s4461_s14 + $0x1d4] sm:$0xf0]  ;;  %1784 = vmatpush.bf16.msra.mxu1 %v4491_v18  ;;  %v4517_v35 = vor.u32 %v3854_v31, %v3317_v29  ;;  %v3245_v38 = vld [vmem:[%s4461_s14 + $0xc0] sm:$0xf]  ;;  %v4531_v45 = vor.u32 %v3820_v37, %v3181_v36 }
  0xb3   : > { %1808 = vmatpush.bf16.msra.mxu2 %v4497_v22  ;;  %v4523_v39 = vor.u32 %v3870_v33, %v3381_v32  ;;  %v3836_v40 = vld [vmem:[%s4461_s14 + $0xc4] sm:$0xf0]  ;;  %v3309_v41 = vld [vmem:[%s4461_s14 + $0x140] sm:$0xf]  ;;  %v3173_v48 = vld [vmem:[%s4461_s14 + $0x30] sm:$0xf] }
  0xb4   : > { %1832 = vmatpush.bf16.msra.mxu3 %v4502_v26  ;;  %v3852_v42 = vld [vmem:[%s4461_s14 + $0x144] sm:$0xf0]  ;;  %v3373_v43 = vld [vmem:[%s4461_s14 + $0x1c0] sm:$0xf]  ;;  %v4535_v46 = vor.u32 %v3836_v40, %v3245_v38  ;;  %v3818_v49 = vld [vmem:[%s4461_s14 + $0x34] sm:$0xf0] }
  0xb5   : > { %v3868_v44 = vld [vmem:[%s4461_s14 + $0x1c4] sm:$0xf0]  ;;  %1761 = vmatpush.bf16.msra.mxu0 %v4508_v30  ;;  %v4537_v47 = vor.u32 %v3852_v42, %v3309_v41  ;;  %v3237_v50 = vld [vmem:[%s4461_s14 + $0xb0] sm:$0xf]  ;;  %v3834_v52 = vld [vmem:[%s4461_s14 + $0xb4] sm:$0xf0]  ;;  %v4551_v57 = vor.u32 %v3818_v49, %v3173_v48 }
  0xb6   : > { %1785 = vmatpush.bf16.msra.mxu1 %v4515_v34  ;;  %v4543_v51 = vor.u32 %v3868_v44, %v3373_v43  ;;  %v3301_v53 = vld [vmem:[%s4461_s14 + $0x130] sm:$0xf]  ;;  %v3850_v54 = vld [vmem:[%s4461_s14 + $0x134] sm:$0xf0]  ;;  %v4555_v58 = vor.u32 %v3834_v52, %v3237_v50  ;;  %v3165_v60 = vld [vmem:[%s4461_s14 + $0x20] sm:$0xf] }
  0xb7   : > { %1809 = vmatpush.bf16.msra.mxu2 %v4517_v35  ;;  %v3365_v55 = vld [vmem:[%s4461_s14 + $0x1b0] sm:$0xf]  ;;  %v3866_v56 = vld [vmem:[%s4461_s14 + $0x1b4] sm:$0xf0]  ;;  %v4557_v59 = vor.u32 %v3850_v54, %v3301_v53  ;;  %v3816_v61 = vld [vmem:[%s4461_s14 + $0x24] sm:$0xf0] }
  0xb8   : > { %1833 = vmatpush.bf16.msra.mxu3 %v4523_v39  ;;  %v3229_v62 = vld [vmem:[%s4461_s14 + $0xa0] sm:$0xf]  ;;  %v4563_v63 = vor.u32 %v3866_v56, %v3365_v55  ;;  %v3832_v0 = vld [vmem:[%s4461_s14 + $0xa4] sm:$0xf0]  ;;  %v4571_v6 = vor.u32 %v3816_v61, %v3165_v60  ;;  %v3157_v11 = vld [vmem:[%s4461_s14 + $0x10] sm:$0xf] }
  0xb9   : > { %1762 = vmatpush.bf16.msra.mxu0 %v4531_v45  ;;  %v3293_v1 = vld [vmem:[%s4461_s14 + $0x120] sm:$0xf]  ;;  %v3848_v2 = vld [vmem:[%s4461_s14 + $0x124] sm:$0xf0]  ;;  %v4575_v7 = vor.u32 %v3832_v0, %v3229_v62  ;;  %v3814_v12 = vld [vmem:[%s4461_s14 + $0x14] sm:$0xf0] }
  0xba   : > { %1786 = vmatpush.bf16.msra.mxu1 %v4535_v46  ;;  %v3357_v3 = vld [vmem:[%s4461_s14 + $0x1a0] sm:$0xf]  ;;  %v3864_v5 = vld [vmem:[%s4461_s14 + $0x1a4] sm:$0xf0]  ;;  %v4577_v10 = vor.u32 %v3848_v2, %v3293_v1  ;;  %v3221_v14 = vld [vmem:[%s4461_s14 + $0x90] sm:$0xf]  ;;  %v4592_v25 = vor.u32 %v3814_v12, %v3157_v11 }
  0xbb   : > { %1810 = vmatpush.bf16.msra.mxu2 %v4537_v47  ;;  %v4583_v15 = vor.u32 %v3864_v5, %v3357_v3  ;;  %v3830_v16 = vld [vmem:[%s4461_s14 + $0x94] sm:$0xf0]  ;;  %v3285_v19 = vld [vmem:[%s4461_s14 + $0x110] sm:$0xf]  ;;  %v3149_v24 = vld [vmem:[%s4461_s14] sm:$0xf] }
  0xbc   : > { %1834 = vmatpush.bf16.msra.mxu3 %v4543_v51  ;;  %v3846_v20 = vld [vmem:[%s4461_s14 + $0x114] sm:$0xf0]  ;;  %v3349_v21 = vld [vmem:[%s4461_s14 + $0x190] sm:$0xf]  ;;  %v3812_v27 = vld [vmem:[%s4461_s14 + $0x4] sm:$0xf0]  ;;  %v4599_v31 = vor.u32 %v3830_v16, %v3221_v14 }
  0xbd   : > { %1763 = vmatpush.bf16.msra.mxu0 %v4551_v57  ;;  %v3862_v23 = vld [vmem:[%s4461_s14 + $0x194] sm:$0xf0]  ;;  %v3213_v28 = vld [vmem:[%s4461_s14 + $0x80] sm:$0xf]  ;;  %v3828_v29 = vld [vmem:[%s4461_s14 + $0x84] sm:$0xf0]  ;;  %v4601_v32 = vor.u32 %v3846_v20, %v3285_v19  ;;  %v4617_v50 = vor.u32 %v3812_v27, %v3149_v24 }
  0xbe   : > { %1787 = vmatpush.bf16.msra.mxu1 %v4555_v58  ;;  %5928 = vst [vmem:[#allocation3_spill] sm:$0xff] %v4599_v31  ;;  %v3277_v33 = vld [vmem:[%s4461_s14 + $0x100] sm:$0xf]  ;;  %v3844_v36 = vld [vmem:[%s4461_s14 + $0x104] sm:$0xf0]  ;;  %v4607_v38 = vor.u32 %v3862_v23, %v3349_v21  ;;  %v4624_v55 = vor.u32 %v3828_v29, %v3213_v28 }
  0xbf   : > { %1811 = vmatpush.bf16.msra.mxu2 %v4557_v59  ;;  %v3341_v37 = vld [vmem:[%s4461_s14 + $0x180] sm:$0xf]  ;;  %v3860_v40 = vld [vmem:[%s4461_s14 + $0x184] sm:$0xf0]  ;;  %v3763_v43 = vld [vmem:[%s4449_s10 + $0x4] sm:$0xf]  ;;  %v4626_v56 = vor.u32 %v3844_v36, %v3277_v33 }
  0xc0   : > { %1835 = vmatpush.bf16.msra.mxu3 %v4563_v63  ;;  %5929 = vst [vmem:[#allocation4_spill] sm:$0xff] %v4607_v38  ;;  %v3053_v41 = vld [vmem:[%s4449_s10] sm:$0xf]  ;;  %v3055_v44 = vld [vmem:[%s4449_s10 + $0x20] sm:$0xf0]  ;;  %v4632_v0 = vor.u32 %v3860_v40, %v3341_v37 }
  0xc1   : > { %1764 = vmatpush.bf16.msra.mxu0 %v4571_v6  ;;  %v3767_v42 = vld [vmem:[%s4449_s10 + $0x1c] sm:$0xf0]  ;;  %v3589_v48 = vld [vmem:[%s4461_s14 + $0x370] sm:$0xf]  ;;  %v3922_v49 = vld [vmem:[%s4461_s14 + $0x374] sm:$0xf0]  ;;  %v4647_v20 = vor.u32 %v3763_v43, %v3055_v44 }
  0xc2   : > { %1788 = vmatpush.bf16.msra.mxu1 %v4575_v7  ;;  %5930 = vst [vmem:[#allocation5_spill] sm:$0xff] %v4617_v50  ;;  %v3061_v52 = vld [vmem:[%s4449_s10 + $0x8] sm:$0xf]  ;;  %v3653_v53 = vld [vmem:[%s4461_s14 + $0x3f0] sm:$0xf]  ;;  %v4634_v1 = vor.u32 %v3922_v49, %v3589_v48  ;;  %v4639_v11 = vor.u32 %v3767_v42, %v3053_v41 }
  0xc3   : > { %1812 = vmatpush.bf16.msra.mxu2 %v4577_v10  ;;  %v3938_v54 = vld [vmem:[%s4461_s14 + $0x3f4] sm:$0xf0]  ;;  %5931 = vst [vmem:[#allocation6_spill] sm:$0xff] %v4624_v55  ;;  %v3768_v60 = vld [vmem:[%s4449_s10 + $0x24] sm:$0xf0] }
  0xc4   : > { %1836 = vmatpush.bf16.msra.mxu3 %v4583_v15  ;;  %5932 = vst [vmem:[#allocation7_spill] sm:$0xff] %v4626_v56  ;;  %v3764_v61 = vld [vmem:[%s4449_s10 + $0xc] sm:$0xf]  ;;  %v3461_v2 = vld [vmem:[%s4461_s14 + $0x270] sm:$0xf]  ;;  %v4641_v12 = vor.u32 %v3938_v54, %v3653_v53  ;;  %v4649_v21 = vor.u32 %v3768_v60, %v3061_v52 }
  0xc5   : > { %1765 = vmatpush.bf16.msra.mxu0 %v4592_v25  ;;  %v3063_v62 = vld [vmem:[%s4449_s10 + $0x28] sm:$0xf0]  ;;  %5933 = vst [vmem:[#allocation8_spill] sm:$0xff] %v4632_v0  ;;  %v3890_v3 = vld [vmem:[%s4461_s14 + $0x274] sm:$0xf0] }
  0xc6   : > { %1789 = vmatpush.bf16.msra.mxu1 %v4599_v31  ;;  %5934 = vst [vmem:[#allocation9_spill] sm:$0xff] %v4634_v1  ;;  %v3525_v5 = vld [vmem:[%s4461_s14 + $0x2f0] sm:$0xf]  ;;  %v3906_v14 = vld [vmem:[%s4461_s14 + $0x2f4] sm:$0xf0]  ;;  %v4655_v27 = vor.u32 %v3764_v61, %v3063_v62  ;;  %v4657_v28 = vor.u32 %v3890_v3, %v3461_v2 }
  0xc7   : > { %1813 = vmatpush.bf16.msra.mxu2 %v4601_v32  ;;  %5935 = vst [vmem:[#allocation10_spill] sm:$0xff] %v4641_v12  ;;  %v3581_v16 = vld [vmem:[%s4461_s14 + $0x360] sm:$0xf]  ;;  %v3920_v19 = vld [vmem:[%s4461_s14 + $0x364] sm:$0xf0]  ;;  %v4661_v29 = vor.u32 %v3906_v14, %v3525_v5 }
  0xc8   : > { %1837 = vmatpush.bf16.msra.mxu3 %v4607_v38  ;;  %v3645_v23 = vld [vmem:[%s4461_s14 + $0x3e0] sm:$0xf]  ;;  %v3936_v24 = vld [vmem:[%s4461_s14 + $0x3e4] sm:$0xf0]  ;;  %5936 = vst [vmem:[#allocation11_spill] sm:$0xff] %v4657_v28  ;;  %v4663_v33 = vor.u32 %v3920_v19, %v3581_v16 }
  0xc9   : > { %1766 = vmatpush.bf16.msra.mxu0 %v4617_v50  ;;  %5937 = vst [vmem:[#allocation12_spill] sm:$0xff] %v4661_v29  ;;  %v3453_v36 = vld [vmem:[%s4461_s14 + $0x260] sm:$0xf]  ;;  %v3888_v37 = vld [vmem:[%s4461_s14 + $0x264] sm:$0xf0]  ;;  %v4670_v41 = vor.u32 %v3936_v24, %v3645_v23 }
  0xca   : > { %1790 = vmatpush.bf16.msra.mxu1 %v4624_v55  ;;  %5938 = vst [vmem:[#allocation13_spill] sm:$0xff] %v4663_v33  ;;  %v3517_v40 = vld [vmem:[%s4461_s14 + $0x2e0] sm:$0xf]  ;;  %v3904_v42 = vld [vmem:[%s4461_s14 + $0x2e4] sm:$0xf0]  ;;  %v4681_v52 = vor.u32 %v3888_v37, %v3453_v36 }
  0xcb   : > { %1814 = vmatpush.bf16.msra.mxu2 %v4626_v56  ;;  %5939 = vst [vmem:[#allocation14_spill] sm:$0xff] %v4670_v41  ;;  %v3573_v43 = vld [vmem:[%s4461_s14 + $0x350] sm:$0xf]  ;;  %v3918_v44 = vld [vmem:[%s4461_s14 + $0x354] sm:$0xf0]  ;;  %v4685_v53 = vor.u32 %v3904_v42, %v3517_v40 }
  0xcc   : > { %1838 = vmatpush.bf16.msra.mxu3 %v4632_v0  ;;  %1767 = vmatmul.bf16.vlgmr.msra.gmra.mxu0 %v4639_v11  ;;  %v3637_v48 = vld [vmem:[%s4461_s14 + $0x3d0] sm:$0xf]  ;;  %v3934_v49 = vld [vmem:[%s4461_s14 + $0x3d4] sm:$0xf0]  ;;  %5940 = vst [vmem:[#allocation15_spill] sm:$0xff] %v4681_v52  ;;  %v4687_v54 = vor.u32 %v3918_v44, %v3573_v43 }
  0xcd   : > { %1791 = vmatmul.bf16.vlgmr.msra.gmra.mxu1 %v4647_v20  ;;  %1855 = vmatpush.bf16.msrb.mxu0 %v4657_v28  ;;  %5941 = vst [vmem:[#allocation16_spill] sm:$0xff] %v4685_v53  ;;  %v3445_v60 = vld [vmem:[%s4461_s14 + $0x250] sm:$0xf]  ;;  %v3886_v61 = vld [vmem:[%s4461_s14 + $0x254] sm:$0xf0]  ;;  %v4693_v2 = vor.u32 %v3934_v49, %v3637_v48 }
  0xce   : > { %1815 = vmatmul.bf16.vlgmr.msra.gmra.mxu2 %v4649_v21  ;;  %1879 = vmatpush.bf16.msrb.mxu1 %v4661_v29  ;;  %5942 = vst [vmem:[#allocation17_spill] sm:$0xff] %v4687_v54  ;;  %v3509_v62 = vld [vmem:[%s4461_s14 + $0x2d0] sm:$0xf]  ;;  %v3902_v3 = vld [vmem:[%s4461_s14 + $0x2d4] sm:$0xf0]  ;;  %v4701_v23 = vor.u32 %v3886_v61, %v3445_v60 }
  0xcf   : > { %1903 = vmatpush.bf16.msrb.mxu2 %v4634_v1  ;;  %1839 = vmatmul.bf16.vlgmr.msra.gmra.mxu3 %v4655_v27  ;;  %5943 = vst [vmem:[#allocation18_spill] sm:$0xff] %v4693_v2  ;;  %v3565_v5 = vld [vmem:[%s4461_s14 + $0x340] sm:$0xf]  ;;  %v3916_v14 = vld [vmem:[%s4461_s14 + $0x344] sm:$0xf0]  ;;  %v4707_v37 = vor.u32 %v3902_v3, %v3509_v62 }
  0xd0   : > { %1927 = vmatpush.bf16.msrb.mxu3 %v4641_v12  ;;  %v3629_v16 = vld [vmem:[%s4461_s14 + $0x3c0] sm:$0xf]  ;;  %v3932_v19 = vld [vmem:[%s4461_s14 + $0x3c4] sm:$0xf0]  ;;  %5944 = vst [vmem:[#allocation19_spill] sm:$0xff] %v4701_v23  ;;  %v4709_v40 = vor.u32 %v3916_v14, %v3565_v5 }
  0xd1   : > { %1856 = vmatpush.bf16.msrb.mxu0 %v4681_v52  ;;  %v3085_v24 = vld [vmem:[%s4449_s10 + $0x40] sm:$0xf]  ;;  %5945 = vst [vmem:[#allocation20_spill] sm:$0xff] %v4707_v37  ;;  %v3884_v43 = vld [vmem:[%s4461_s14 + $0x244] sm:$0xf0]  ;;  %v4717_v60 = vor.u32 %v3932_v19, %v3629_v16 }
  0xd2   : > { %1880 = vmatpush.bf16.msrb.mxu1 %v4685_v53  ;;  %v3775_v36 = vld [vmem:[%s4449_s10 + $0x5c] sm:$0xf0]  ;;  %5946 = vst [vmem:[#allocation21_spill] sm:$0xff] %v4709_v40  ;;  %v3771_v48 = vld [vmem:[%s4449_s10 + $0x44] sm:$0xf] }
  0xd3   : > { %1904 = vmatpush.bf16.msrb.mxu2 %v4663_v33  ;;  %v3437_v42 = vld [vmem:[%s4461_s14 + $0x240] sm:$0xf]  ;;  %v3087_v49 = vld [vmem:[%s4449_s10 + $0x60] sm:$0xf0]  ;;  %5947 = vst [vmem:[#allocation22_spill] sm:$0xff] %v4717_v60  ;;  %v4740_v12 = vor.u32 %v3775_v36, %v3085_v24 }
  0xd4   : > { %1928 = vmatpush.bf16.msrb.mxu3 %v4670_v41  ;;  %v3501_v44 = vld [vmem:[%s4461_s14 + $0x2c0] sm:$0xf]  ;;  %v3900_v61 = vld [vmem:[%s4461_s14 + $0x2c4] sm:$0xf0]  ;;  %v3914_v62 = vld [vmem:[%s4461_s14 + $0x334] sm:$0xf0]  ;;  %v4729_v52 = vor.u32 %v3884_v43, %v3437_v42 }
  0xd5   : > { %v3093_v3 = vld [vmem:[%s4449_s10 + $0x48] sm:$0xf]  ;;  %v3621_v5 = vld [vmem:[%s4461_s14 + $0x3b0] sm:$0xf]  ;;  %v3930_v14 = vld [vmem:[%s4461_s14 + $0x3b4] sm:$0xf0]  ;;  %1857 = vmatpush.bf16.msrb.mxu0 %v4701_v23  ;;  %v4733_v16 = vor.u32 %v3900_v61, %v3501_v44 }
  0xd6   : > { %v3776_v53 = vld [vmem:[%s4449_s10 + $0x64] sm:$0xf0]  ;;  %v3095_v41 = vld [vmem:[%s4449_s10 + $0x68] sm:$0xf0]  ;;  %5948 = vst [vmem:[#allocation23_spill] sm:$0xff] %v4729_v52  ;;  %1881 = vmatpush.bf16.msrb.mxu1 %v4707_v37  ;;  %v4743_v42 = vor.u32 %v3930_v14, %v3621_v5 }
  0xd7   : > { %1905 = vmatpush.bf16.msrb.mxu2 %v4687_v54  ;;  %v3557_v54 = vld [vmem:[%s4461_s14 + $0x330] sm:$0xf]  ;;  %5949 = vst [vmem:[#allocation24_spill] sm:$0xff] %v4733_v16  ;;  %v3882_v29 = vld [vmem:[%s4461_s14 + $0x234] sm:$0xf0]  ;;  %v4750_v44 = vor.u32 %v3776_v53, %v3093_v3 }
  0xd8   : > { %1929 = vmatpush.bf16.msrb.mxu3 %v4693_v2  ;;  %v3772_v2 = vld [vmem:[%s4449_s10 + $0x4c] sm:$0xf]  ;;  %v4735_v19 = vor.u32 %v3914_v62, %v3557_v54  ;;  %v3429_v33 = vld [vmem:[%s4461_s14 + $0x230] sm:$0xf]  ;;  %5951 = vst [vmem:[#allocation26_spill] sm:$0xff] %v4743_v42 }
  0xd9   : > { %v3493_v23 = vld [vmem:[%s4461_s14 + $0x2b0] sm:$0xf]  ;;  %v3898_v43 = vld [vmem:[%s4461_s14 + $0x2b4] sm:$0xf0]  ;;  %v3549_v37 = vld [vmem:[%s4461_s14 + $0x320] sm:$0xf]  ;;  %v4754_v24 = vor.u32 %v3772_v2, %v3095_v41  ;;  %1858 = vmatpush.bf16.msrb.mxu0 %v4729_v52  ;;  %v4757_v36 = vor.u32 %v3882_v29, %v3429_v33 }
  0xda   : > { %5950 = vst [vmem:[#allocation25_spill] sm:$0xff] %v4735_v19  ;;  %v3912_v28 = vld [vmem:[%s4461_s14 + $0x324] sm:$0xf0]  ;;  %v3613_v54 = vld [vmem:[%s4461_s14 + $0x3a0] sm:$0xf]  ;;  %1882 = vmatpush.bf16.msrb.mxu1 %v4733_v16 }
  0xdb   : > { %1906 = vmatpush.bf16.msrb.mxu2 %v4709_v40  ;;  %v4748_v40 = vor.u32 %v3771_v48, %v3087_v49  ;;  %v3928_v61 = vld [vmem:[%s4461_s14 + $0x3a4] sm:$0xf0]  ;;  %5952 = vst [vmem:[#allocation27_spill] sm:$0xff] %v4757_v36  ;;  %v4761_v48 = vor.u32 %v3898_v43, %v3493_v23  ;;  %v4763_v53 = vor.u32 %v3912_v28, %v3549_v37  ;;  %v3421_v49 = vld [vmem:[%s4461_s14 + $0x220] sm:$0xf] }
  0xdc   : > { %1930 = vmatpush.bf16.msrb.mxu3 %v4717_v60  ;;  %v3880_v62 = vld [vmem:[%s4461_s14 + $0x224] sm:$0xf0]  ;;  %v3485_v3 = vld [vmem:[%s4461_s14 + $0x2a0] sm:$0xf]  ;;  %1772 = vmatmul.bf16.gmra.mxu0 %v4740_v12  ;;  %v4770_v29 = vor.u32 %v3928_v61, %v3613_v54  ;;  %v3541_v41 = vld [vmem:[%s4461_s14 + $0x310] sm:$0xf] }
  0xdd   : > { %5953 = vst [vmem:[#allocation28_spill] sm:$0xff] %v4761_v48  ;;  %v3896_v33 = vld [vmem:[%s4461_s14 + $0x2a4] sm:$0xf0]  ;;  %v3910_v2 = vld [vmem:[%s4461_s14 + $0x314] sm:$0xf0]  ;;  %1796 = vmatmul.bf16.gmra.mxu1 %v4748_v40  ;;  %1859 = vmatpush.bf16.msrb.mxu0 %v4757_v36  ;;  %v4781_v37 = vor.u32 %v3880_v62, %v3421_v49 }
  0xde   : > { %5954 = vst [vmem:[#allocation29_spill] sm:$0xff] %v4763_v53  ;;  %1820 = vmatmul.bf16.gmra.mxu2 %v4750_v44  ;;  %v3605_v28 = vld [vmem:[%s4461_s14 + $0x390] sm:$0xf]  ;;  %v3926_v23 = vld [vmem:[%s4461_s14 + $0x394] sm:$0xf0]  ;;  %1883 = vmatpush.bf16.msrb.mxu1 %v4761_v48  ;;  %v4786_v14 = vor.u32 %v3896_v33, %v3485_v3  ;;  %v4788_v43 = vor.u32 %v3910_v2, %v3541_v41 }
  0xdf   : > { %1907 = vmatpush.bf16.msrb.mxu2 %v4735_v19  ;;  %5955 = vst [vmem:[#allocation30_spill] sm:$0xff] %v4770_v29  ;;  %1844 = vmatmul.bf16.gmra.mxu3 %v4754_v24  ;;  %v3413_v5 = vld [vmem:[%s4461_s14 + $0x210] sm:$0xf]  ;;  %v3878_v54 = vld [vmem:[%s4461_s14 + $0x214] sm:$0xf0]  ;;  %v4794_v49 = vor.u32 %v3926_v23, %v3605_v28 }
  0xe0   : > { %1931 = vmatpush.bf16.msrb.mxu3 %v4743_v42  ;;  %5956 = vst [vmem:[#allocation31_spill] sm:$0xff] %v4781_v37  ;;  %v3477_v61 = vld [vmem:[%s4461_s14 + $0x290] sm:$0xf]  ;;  %v3894_v42 = vld [vmem:[%s4461_s14 + $0x294] sm:$0xf0]  ;;  %v4803_v2 = vor.u32 %v3878_v54, %v3413_v5 }
  0xe1   : > { %5957 = vst [vmem:[#allocation32_spill] sm:$0xff] %v4786_v14  ;;  %v3533_v62 = vld [vmem:[%s4461_s14 + $0x300] sm:$0xf]  ;;  %v3908_v48 = vld [vmem:[%s4461_s14 + $0x304] sm:$0xf0]  ;;  %1860 = vmatpush.bf16.msrb.mxu0 %v4781_v37  ;;  %v4811_v19 = vor.u32 %v3894_v42, %v3477_v61 }
  0xe2   : > { %5958 = vst [vmem:[#allocation33_spill] sm:$0xff] %v4788_v43  ;;  %v3924_v3 = vld [vmem:[%s4461_s14 + $0x384] sm:$0xf0]  ;;  %v3857_v33 = vld [vmem:[%s4461_s14 + $0x174] sm:$0xf]  ;;  %1884 = vmatpush.bf16.msrb.mxu1 %v4786_v14  ;;  %v4813_v16 = vor.u32 %v3908_v48, %v3533_v62 }
  0xe3   : > { %1908 = vmatpush.bf16.msrb.mxu2 %v4763_v53  ;;  %5959 = vst [vmem:[#allocation34_spill] sm:$0xff] %v4794_v49  ;;  %v3597_v53 = vld [vmem:[%s4461_s14 + $0x380] sm:$0xf]  ;;  %v3335_v41 = vld [vmem:[%s4461_s14 + $0x178] sm:$0xf0] }
  0xe4   : > { %1932 = vmatpush.bf16.msrb.mxu3 %v4770_v29  ;;  %5960 = vst [vmem:[#allocation35_spill] sm:$0xff] %v4803_v2  ;;  %v3873_v36 = vld [vmem:[%s4461_s14 + $0x1f4] sm:$0xf]  ;;  %v3399_v29 = vld [vmem:[%s4461_s14 + $0x1f8] sm:$0xf0]  ;;  %v4821_v1 = vor.u32 %v3924_v3, %v3597_v53 }
  0xe5   : > { %v3117_v28 = vld [vmem:[%s4449_s10 + $0x80] sm:$0xf]  ;;  %5961 = vst [vmem:[#allocation36_spill] sm:$0xff] %v4811_v19  ;;  %v3876_v54 = vld [vmem:[%s4461_s14 + $0x204] sm:$0xf0]  ;;  %v4829_v62 = vor.u32 %v3873_v36, %v3399_v29  ;;  %1861 = vmatpush.bf16.msrb.mxu0 %v4803_v2 }
  0xe6   : > { %v3783_v23 = vld [vmem:[%s4449_s10 + $0x9c] sm:$0xf0]  ;;  %5962 = vst [vmem:[#allocation37_spill] sm:$0xff] %v4813_v16  ;;  %v3779_v60 = vld [vmem:[%s4449_s10 + $0x84] sm:$0xf]  ;;  %1885 = vmatpush.bf16.msrb.mxu1 %v4811_v19 }
  0xe7   : > { %1909 = vmatpush.bf16.msrb.mxu2 %v4788_v43  ;;  %v3405_v5 = vld [vmem:[%s4461_s14 + $0x200] sm:$0xf]  ;;  %v3119_v52 = vld [vmem:[%s4449_s10 + $0xa0] sm:$0xf0]  ;;  %5963 = vst [vmem:[#allocation38_spill] sm:$0xff] %v4821_v1  ;;  %v4824_v43 = vor.u32 %v3857_v33, %v3335_v41  ;;  %v4848_v31 = vor.u32 %v3783_v23, %v3117_v28 }
  0xe8   : > { %v3469_v37 = vld [vmem:[%s4461_s14 + $0x280] sm:$0xf]  ;;  %1933 = vmatpush.bf16.msrb.mxu3 %v4794_v49  ;;  %v3892_v14 = vld [vmem:[%s4461_s14 + $0x284] sm:$0xf0]  ;;  %v3825_v42 = vld [vmem:[%s4461_s14 + $0x74] sm:$0xf]  ;;  %v4837_v53 = vor.u32 %v3876_v54, %v3405_v5 }
  0xe9   : > { %5964 = vst [vmem:[#allocation39_spill] sm:$0xff] %v4824_v43  ;;  %v3207_v48 = vld [vmem:[%s4461_s14 + $0x78] sm:$0xf0]  ;;  %v3125_v61 = vld [vmem:[%s4449_s10 + $0x88] sm:$0xf]  ;;  %v4841_v3 = vor.u32 %v3892_v14, %v3469_v37  ;;  %v4857_v14 = vor.u32 %v3779_v60, %v3119_v52 }
  0xea   : > { %5965 = vst [vmem:[#allocation40_spill] sm:$0xff] %v4829_v62  ;;  %v3841_v55 = vld [vmem:[%s4461_s14 + $0xf4] sm:$0xf]  ;;  %v3271_v0 = vld [vmem:[%s4461_s14 + $0xf8] sm:$0xf0]  ;;  %v4843_v36 = vor.u32 %v3825_v42, %v3207_v48  ;;  %1862 = vmatpush.bf16.msrb.mxu0 %v4837_v53 }
  0xeb   : > { %v3784_v50 = vld [vmem:[%s4449_s10 + $0xa4] sm:$0xf0]  ;;  %v3780_v56 = vld [vmem:[%s4449_s10 + $0x8c] sm:$0xf]  ;;  %5966 = vst [vmem:[#allocation41_spill] sm:$0xff] %v4837_v53  ;;  %1910 = vmatpush.bf16.msrb.mxu2 %v4813_v16  ;;  %v4852_v5 = vor.u32 %v3841_v55, %v3271_v0  ;;  %1886 = vmatpush.bf16.msrb.mxu1 %v4841_v3 }
  0xec   : > { %v3127_v49 = vld [vmem:[%s4449_s10 + $0xa8] sm:$0xf0]  ;;  %5967 = vst [vmem:[#allocation42_spill] sm:$0xff] %v4841_v3  ;;  %v3855_v29 = vld [vmem:[%s4461_s14 + $0x164] sm:$0xf]  ;;  %1934 = vmatpush.bf16.msrb.mxu3 %v4821_v1  ;;  %v4859_v42 = vor.u32 %v3784_v50, %v3125_v61  ;;  %1777 = vmatmul.bf16.gmra.mxu0 %v4848_v31 }
  0xed   : > { %5968 = vst [vmem:[#allocation43_spill] sm:$0xff] %v4843_v36  ;;  %v3327_v33 = vld [vmem:[%s4461_s14 + $0x168] sm:$0xf0]  ;;  %v3823_v41 = vld [vmem:[%s4461_s14 + $0x64] sm:$0xf]  ;;  %v4864_v48 = vor.u32 %v3780_v56, %v3127_v49  ;;  %1801 = vmatmul.bf16.gmra.mxu1 %v4857_v14 }
  0xee   : > { %5969 = vst [vmem:[#allocation44_spill] sm:$0xff] %v4852_v5  ;;  %v3199_v54 = vld [vmem:[%s4461_s14 + $0x68] sm:$0xf0]  ;;  %v3871_v16 = vld [vmem:[%s4461_s14 + $0x1e4] sm:$0xf]  ;;  %v4867_v55 = vor.u32 %v3855_v29, %v3327_v33  ;;  %1951 = vmatpush.bf16.msra.mxu0 %v4843_v36  ;;  %1825 = vmatmul.bf16.gmra.mxu2 %v4859_v42 }
  0xef   : > { %1999 = vmatpush.bf16.msra.mxu2 %v4824_v43  ;;  %v3391_v37 = vld [vmem:[%s4461_s14 + $0x1e8] sm:$0xf0]  ;;  %v3839_v28 = vld [vmem:[%s4461_s14 + $0xe4] sm:$0xf]  ;;  %v4871_v0 = vor.u32 %v3823_v41, %v3199_v54  ;;  %v3853_v52 = vld [vmem:[%s4461_s14 + $0x154] sm:$0xf]  ;;  %1975 = vmatpush.bf16.msra.mxu1 %v4852_v5 }
  0xf0   : > { %2023 = vmatpush.bf16.msra.mxu3 %v4829_v62  ;;  %v3263_v23 = vld [vmem:[%s4461_s14 + $0xe8] sm:$0xf0]  ;;  %5970 = vst [vmem:[#allocation45_spill] sm:$0xff] %v4867_v55  ;;  %v4873_v50 = vor.u32 %v3871_v16, %v3391_v37  ;;  %v3319_v60 = vld [vmem:[%s4461_s14 + $0x158] sm:$0xf0] }
  0xf1   : > { %5971 = vst [vmem:[#allocation46_spill] sm:$0xff] %v4871_v0  ;;  %v3821_v61 = vld [vmem:[%s4461_s14 + $0x54] sm:$0xf]  ;;  %v4880_v56 = vor.u32 %v3839_v28, %v3263_v23  ;;  %v3191_v49 = vld [vmem:[%s4461_s14 + $0x58] sm:$0xf0]  ;;  %1849 = vmatmul.bf16.gmra.mxu3 %v4864_v48  ;;  %v4889_v16 = vor.u32 %v3853_v52, %v3319_v60 }
  0xf2   : > { %5972 = vst [vmem:[#allocation47_spill] sm:$0xff] %v4873_v50  ;;  %v3869_v29 = vld [vmem:[%s4461_s14 + $0x1d4] sm:$0xf]  ;;  %v3383_v33 = vld [vmem:[%s4461_s14 + $0x1d8] sm:$0xf0]  ;;  %1952 = vmatpush.bf16.msra.mxu0 %v4871_v0  ;;  %v4895_v37 = vor.u32 %v3821_v61, %v3191_v49 }
  0xf3   : > { %5973 = vst [vmem:[#allocation48_spill] sm:$0xff] %v4880_v56  ;;  %2000 = vmatpush.bf16.msra.mxu2 %v4867_v55  ;;  %v3837_v41 = vld [vmem:[%s4461_s14 + $0xd4] sm:$0xf]  ;;  %v3255_v54 = vld [vmem:[%s4461_s14 + $0xd8] sm:$0xf0]  ;;  %v4897_v28 = vor.u32 %v3869_v29, %v3383_v33  ;;  %1976 = vmatpush.bf16.msra.mxu1 %v4880_v56 }
  0xf4   : > { %5974 = vst [vmem:[#allocation49_spill] sm:$0xff] %v4889_v16  ;;  %2024 = vmatpush.bf16.msra.mxu3 %v4873_v50  ;;  %v3851_v23 = vld [vmem:[%s4461_s14 + $0x144] sm:$0xf]  ;;  %v3311_v5 = vld [vmem:[%s4461_s14 + $0x148] sm:$0xf0]  ;;  %v4903_v52 = vor.u32 %v3837_v41, %v3255_v54 }
  0xf5   : > { %5975 = vst [vmem:[#allocation50_spill] sm:$0xff] %v4895_v37  ;;  %v3819_v62 = vld [vmem:[%s4461_s14 + $0x44] sm:$0xf]  ;;  %v3183_v60 = vld [vmem:[%s4461_s14 + $0x48] sm:$0xf0]  ;;  %v4911_v49 = vor.u32 %v3851_v23, %v3311_v5 }
  0xf6   : > { %5976 = vst [vmem:[#allocation51_spill] sm:$0xff] %v4897_v28  ;;  %v3867_v0 = vld [vmem:[%s4461_s14 + $0x1c4] sm:$0xf]  ;;  %v3375_v55 = vld [vmem:[%s4461_s14 + $0x1c8] sm:$0xf0]  ;;  %1953 = vmatpush.bf16.msra.mxu0 %v4895_v37  ;;  %v4917_v41 = vor.u32 %v3819_v62, %v3183_v60 }
  0xf7   : > { %5977 = vst [vmem:[#allocation52_spill] sm:$0xff] %v4903_v52  ;;  %v3835_v50 = vld [vmem:[%s4461_s14 + $0xc4] sm:$0xf]  ;;  %v3247_v61 = vld [vmem:[%s4461_s14 + $0xc8] sm:$0xf0]  ;;  %2001 = vmatpush.bf16.msra.mxu2 %v4889_v16  ;;  %v4919_v54 = vor.u32 %v3867_v0, %v3375_v55  ;;  %1977 = vmatpush.bf16.msra.mxu1 %v4903_v52 }
  0xf8   : > { %5978 = vst [vmem:[#allocation53_spill] sm:$0xff] %v4911_v49  ;;  %v3069_v29 = vld [vmem:[%s4449_s10 + $0x10] sm:$0xf]  ;;  %2025 = vmatpush.bf16.msra.mxu3 %v4897_v28  ;;  %v3849_v16 = vld [vmem:[%s4461_s14 + $0x134] sm:$0xf]  ;;  %v4926_v36 = vor.u32 %v3835_v50, %v3247_v61 }
  0xf9   : > { %v3769_v33 = vld [vmem:[%s4449_s10 + $0x2c] sm:$0xf0]  ;;  %5979 = vst [vmem:[#allocation54_spill] sm:$0xff] %v4917_v41  ;;  %v3303_v56 = vld [vmem:[%s4461_s14 + $0x138] sm:$0xf0] }
  0xfa   : > { %5980 = vst [vmem:[#allocation55_spill] sm:$0xff] %v4919_v54  ;;  %v3817_v5 = vld [vmem:[%s4461_s14 + $0x34] sm:$0xf]  ;;  %v3175_v43 = vld [vmem:[%s4461_s14 + $0x38] sm:$0xf0]  ;;  %v4938_v53 = vor.u32 %v3849_v16, %v3303_v56  ;;  %1954 = vmatpush.bf16.msra.mxu0 %v4917_v41  ;;  %v4949_v38 = vor.u32 %v3769_v33, %v3069_v29 }
  0xfb   : > { %v3765_v23 = vld [vmem:[%s4449_s10 + $0x14] sm:$0xf]  ;;  %5981 = vst [vmem:[#allocation56_spill] sm:$0xff] %v4926_v36  ;;  %v3367_v28 = vld [vmem:[%s4461_s14 + $0x1b8] sm:$0xf0]  ;;  %2002 = vmatpush.bf16.msra.mxu2 %v4911_v49  ;;  %v4943_v50 = vor.u32 %v3817_v5, %v3175_v43  ;;  %1978 = vmatpush.bf16.msra.mxu1 %v4926_v36 }
  0xfc   : > { %v3865_v37 = vld [vmem:[%s4461_s14 + $0x1b4] sm:$0xf]  ;;  %v3239_v60 = vld [vmem:[%s4461_s14 + $0xb8] sm:$0xf0]  ;;  %v3077_v1 = vld [vmem:[%s4449_s10 + $0x18] sm:$0xf]  ;;  %2026 = vmatpush.bf16.msra.mxu3 %v4919_v54  ;;  %1863 = vmatmul.bf16.vlgmr.msrb.gmra.mxu0 %v4949_v38 }
  0xfd   : > { %v3071_v3 = vld [vmem:[%s4449_s10 + $0x30] sm:$0xf0]  ;;  %v3770_v55 = vld [vmem:[%s4449_s10 + $0x34] sm:$0xf0]  ;;  %v3766_v0 = vld [vmem:[%s4449_s10 + $0x1c] sm:$0xf]  ;;  %v4945_v61 = vor.u32 %v3865_v37, %v3367_v28 }
  0xfe   : > { %v3833_v62 = vld [vmem:[%s4461_s14 + $0xb4] sm:$0xf]  ;;  %5982 = vst [vmem:[#allocation57_spill] sm:$0xff] %v4938_v53  ;;  %v3079_v19 = vld [vmem:[%s4449_s10 + $0x38] sm:$0xf0]  ;;  %v4954_v56 = vor.u32 %v3765_v23, %v3071_v3  ;;  %v4956_v16 = vor.u32 %v3770_v55, %v3077_v1  ;;  %1955 = vmatpush.bf16.msra.mxu0 %v4943_v50 }
  0xff   : > { %5983 = vst [vmem:[#allocation58_spill] sm:$0xff] %v4943_v50  ;;  %v3847_v52 = vld [vmem:[%s4461_s14 + $0x124] sm:$0xf]  ;;  %v3295_v2 = vld [vmem:[%s4461_s14 + $0x128] sm:$0xf0]  ;;  %v4952_v49 = vor.u32 %v3833_v62, %v3239_v60  ;;  %v4958_v43 = vor.u32 %v3766_v0, %v3079_v19  ;;  %2003 = vmatpush.bf16.msra.mxu2 %v4938_v53 }
 0x100   : > { %5984 = vst [vmem:[#allocation59_spill] sm:$0xff] %v4945_v61  ;;  %v4961_v37 = vor.u32 %v3847_v52, %v3295_v2  ;;  %2027 = vmatpush.bf16.msra.mxu3 %v4945_v61  ;;  %1887 = vmatmul.bf16.vlgmr.msrb.gmra.mxu1 %v4954_v56  ;;  %v3815_v1 = vld [vmem:[%s4461_s14 + $0x24] sm:$0xf]  ;;  %v3167_v19 = vld [vmem:[%s4461_s14 + $0x28] sm:$0xf0] }
 0x101   : > { %5985 = vst [vmem:[#allocation60_spill] sm:$0xff] %v4952_v49  ;;  %1979 = vmatpush.bf16.msra.mxu1 %v4952_v49  ;;  %1911 = vmatmul.bf16.vlgmr.msrb.gmra.mxu2 %v4956_v16  ;;  %v3863_v2 = vld [vmem:[%s4461_s14 + $0x1a4] sm:$0xf]  ;;  %v4974_v3 = vor.u32 %v3815_v1, %v3167_v19  ;;  %v3359_v28 = vld [vmem:[%s4461_s14 + $0x1a8] sm:$0xf0] }
 0x102   : > { %5986 = vst [vmem:[#allocation61_spill] sm:$0xff] %v4961_v37  ;;  %1935 = vmatmul.bf16.vlgmr.msrb.gmra.mxu3 %v4958_v43  ;;  %v3831_v52 = vld [vmem:[%s4461_s14 + $0xa4] sm:$0xf]  ;;  %v3231_v29 = vld [vmem:[%s4461_s14 + $0xa8] sm:$0xf0]  ;;  %v4979_v33 = vor.u32 %v3863_v2, %v3359_v28 }
 0x103   : > { %2004 = vmatpush.bf16.msra.mxu2 %v4961_v37  ;;  %5987 = vst [vmem:[#allocation62_spill] sm:$0xff] %v4974_v3  ;;  %v4981_v5 = vor.u32 %v3831_v52, %v3231_v29  ;;  %v3845_v23 = vld [vmem:[%s4461_s14 + $0x114] sm:$0xf]  ;;  %v3287_v62 = vld [vmem:[%s4461_s14 + $0x118] sm:$0xf0]  ;;  %1956 = vmatpush.bf16.msra.mxu0 %v4974_v3 }
 0x104   : > { %5988 = vst [vmem:[#allocation63_spill] sm:$0xff] %v4979_v33  ;;  %v3813_v60 = vld [vmem:[%s4461_s14 + $0x14] sm:$0xf]  ;;  %v4987_v55 = vor.u32 %v3845_v23, %v3287_v62  ;;  %v3159_v0 = vld [vmem:[%s4461_s14 + $0x18] sm:$0xf0]  ;;  %2028 = vmatpush.bf16.msra.mxu3 %v4979_v33 }
 0x105   : > { %5989 = vst [vmem:[#allocation64_spill] sm:$0xff] %v4981_v5  ;;  %v3861_v1 = vld [vmem:[%s4461_s14 + $0x194] sm:$0xf]  ;;  %v3351_v19 = vld [vmem:[%s4461_s14 + $0x198] sm:$0xf0]  ;;  %1980 = vmatpush.bf16.msra.mxu1 %v4981_v5  ;;  %v4994_v2 = vor.u32 %v3813_v60, %v3159_v0 }
 0x106   : > { %5990 = vst [vmem:[#allocation65_spill] sm:$0xff] %v4987_v55  ;;  %v4996_v28 = vor.u32 %v3861_v1, %v3351_v19  ;;  %v3829_v52 = vld [vmem:[%s4461_s14 + $0x94] sm:$0xf]  ;;  %v3223_v29 = vld [vmem:[%s4461_s14 + $0x98] sm:$0xf0] }
 0x107   : > { %5991 = vst [vmem:[#allocation66_spill] sm:$0xff] %v4994_v2  ;;  %v3843_v23 = vld [vmem:[%s4461_s14 + $0x104] sm:$0xf]  ;;  %v3101_v62 = vld [vmem:[%s4449_s10 + $0x50] sm:$0xf]  ;;  %2005 = vmatpush.bf16.msra.mxu2 %v4987_v55  ;;  %v5003_v33 = vor.u32 %v3829_v52, %v3223_v29  ;;  %1957 = vmatpush.bf16.msra.mxu0 %v4994_v2 }
 0x108   : > { %5992 = vst [vmem:[#allocation67_spill] sm:$0xff] %v4996_v28  ;;  %v3279_v3 = vld [vmem:[%s4461_s14 + $0x108] sm:$0xf0]  ;;  %v3811_v5 = vld [vmem:[%s4461_s14 + $0x4] sm:$0xf]  ;;  %2029 = vmatpush.bf16.msra.mxu3 %v4996_v28 }
 0x109   : > { %5993 = vst [vmem:[#allocation68_spill] sm:$0xff] %v5003_v33  ;;  %v3151_v37 = vld [vmem:[%s4461_s14 + $0x8] sm:$0xf0]  ;;  %v5008_v60 = vor.u32 %v3843_v23, %v3279_v3  ;;  %v3859_v0 = vld [vmem:[%s4461_s14 + $0x184] sm:$0xf]  ;;  %1981 = vmatpush.bf16.msra.mxu1 %v5003_v33 }
 0x10a   : > { %v3343_v1 = vld [vmem:[%s4461_s14 + $0x188] sm:$0xf0]  ;;  %v3827_v19 = vld [vmem:[%s4461_s14 + $0x84] sm:$0xf]  ;;  %v3777_v49 = vld [vmem:[%s4449_s10 + $0x6c] sm:$0xf0]  ;;  %v5016_v50 = vor.u32 %v3811_v5, %v3151_v37 }
 0x10b   : > { %5994 = vst [vmem:[#allocation69_spill] sm:$0xff] %v5008_v60  ;;  %v3773_v61 = vld [vmem:[%s4449_s10 + $0x54] sm:$0xf]  ;;  %v3215_v55 = vld [vmem:[%s4461_s14 + $0x88] sm:$0xf0]  ;;  %v5024_v3 = vor.u32 %v3859_v0, %v3343_v1  ;;  %2006 = vmatpush.bf16.msra.mxu2 %v5008_v60  ;;  %v5031_v37 = vor.u32 %v3777_v49, %v3101_v62 }
 0x10c   : > { %5995 = vst [vmem:[#allocation70_spill] sm:$0xff] %v5016_v50  ;;  %v3103_v53 = vld [vmem:[%s4449_s10 + $0x70] sm:$0xf0]  ;;  %v3109_v52 = vld [vmem:[%s4449_s10 + $0x58] sm:$0xf]  ;;  %v5026_v23 = vor.u32 %v3827_v19, %v3215_v55  ;;  %1958 = vmatpush.bf16.msra.mxu0 %v5016_v50 }
 0x10d   : > { %v3778_v29 = vld [vmem:[%s4449_s10 + $0x74] sm:$0xf0]  ;;  %5996 = vst [vmem:[#allocation71_spill] sm:$0xff] %v5024_v3  ;;  %v3774_v36 = vld [vmem:[%s4449_s10 + $0x5c] sm:$0xf]  ;;  %v5033_v5 = vor.u32 %v3773_v61, %v3103_v53  ;;  %2030 = vmatpush.bf16.msra.mxu3 %v5024_v3  ;;  %1868 = vmatmul.bf16.gmra.mxu0 %v5031_v37 }
 0x10e   : > { %5997 = vst [vmem:[#allocation72_spill] sm:$0xff] %v5026_v23  ;;  %v3111_v54 = vld [vmem:[%s4449_s10 + $0x78] sm:$0xf0]  ;;  %v5035_v28 = vor.u32 %v3778_v29, %v3109_v52  ;;  %1982 = vmatpush.bf16.msra.mxu1 %v5026_v23  ;;  %v3921_v53 = vld [vmem:[%s4461_s14 + $0x374] sm:$0xf] }
 0x10f   : > { %5998 = vst [vmem:[#allocation73_spill] sm:$0xff] %v5033_v5  ;;  %v5038_v0 = vor.u32 %v3774_v36, %v3111_v54  ;;  %v3591_v36 = vld [vmem:[%s4461_s14 + $0x378] sm:$0xf0]  ;;  %v3889_v49 = vld [vmem:[%s4461_s14 + $0x274] sm:$0xf] }
 0x110   : > { %5999 = vst [vmem:[#allocation74_spill] sm:$0xff] %v5035_v28  ;;  %1892 = vmatmul.bf16.gmra.mxu1 %v5033_v5  ;;  %v5049_v54 = vor.u32 %v3921_v53, %v3591_v36  ;;  %v3463_v61 = vld [vmem:[%s4461_s14 + $0x278] sm:$0xf0]  ;;  %v3937_v55 = vld [vmem:[%s4461_s14 + $0x3f4] sm:$0xf] }
 0x111   : > { %6000 = vst [vmem:[#allocation75_spill] sm:$0xff] %v5038_v0  ;;  %1916 = vmatmul.bf16.gmra.mxu2 %v5035_v28  ;;  %v3655_v62 = vld [vmem:[%s4461_s14 + $0x3f8] sm:$0xf0]  ;;  %v5054_v1 = vor.u32 %v3889_v49, %v3463_v61  ;;  %v3905_v52 = vld [vmem:[%s4461_s14 + $0x2f4] sm:$0xf] }
 0x112   : > { %1940 = vmatmul.bf16.gmra.mxu3 %v5038_v0  ;;  %6001 = vst [vmem:[#allocation76_spill] sm:$0xff] %v5049_v54  ;;  %v5056_v19 = vor.u32 %v3937_v55, %v3655_v62  ;;  %v3527_v29 = vld [vmem:[%s4461_s14 + $0x2f8] sm:$0xf0]  ;;  %v3919_v23 = vld [vmem:[%s4461_s14 + $0x364] sm:$0xf]  ;;  %2095 = vmatpush.bf16.msrb.mxu2 %v5049_v54 }
 0x113   : > { %6002 = vst [vmem:[#allocation77_spill] sm:$0xff] %v5054_v1  ;;  %v5062_v53 = vor.u32 %v3905_v52, %v3527_v29  ;;  %v3583_v36 = vld [vmem:[%s4461_s14 + $0x368] sm:$0xf0]  ;;  %v3887_v3 = vld [vmem:[%s4461_s14 + $0x264] sm:$0xf]  ;;  %2047 = vmatpush.bf16.msrb.mxu0 %v5054_v1 }
 0x114   : > { %6003 = vst [vmem:[#allocation78_spill] sm:$0xff] %v5056_v19  ;;  %v3455_v50 = vld [vmem:[%s4461_s14 + $0x268] sm:$0xf0]  ;;  %2119 = vmatpush.bf16.msrb.mxu3 %v5056_v19  ;;  %v5069_v49 = vor.u32 %v3919_v23, %v3583_v36  ;;  %v3935_v55 = vld [vmem:[%s4461_s14 + $0x3e4] sm:$0xf] }
 0x115   : > { %6004 = vst [vmem:[#allocation79_spill] sm:$0xff] %v5062_v53  ;;  %v5071_v61 = vor.u32 %v3887_v3, %v3455_v50  ;;  %v3647_v62 = vld [vmem:[%s4461_s14 + $0x3e8] sm:$0xf0]  ;;  %v3903_v52 = vld [vmem:[%s4461_s14 + $0x2e4] sm:$0xf]  ;;  %2071 = vmatpush.bf16.msrb.mxu1 %v5062_v53 }
 0x116   : > { %v3133_v29 = vld [vmem:[%s4449_s10 + $0x90] sm:$0xf]  ;;  %v5078_v1 = vor.u32 %v3935_v55, %v3647_v62  ;;  %v3519_v54 = vld [vmem:[%s4461_s14 + $0x2e8] sm:$0xf0]  ;;  %v3917_v19 = vld [vmem:[%s4461_s14 + $0x354] sm:$0xf]  ;;  %2096 = vmatpush.bf16.msrb.mxu2 %v5069_v49 }
 0x117   : > { %6005 = vst [vmem:[#allocation80_spill] sm:$0xff] %v5071_v61  ;;  %v3575_v60 = vld [vmem:[%s4461_s14 + $0x358] sm:$0xf0]  ;;  %v5083_v23 = vor.u32 %v3903_v52, %v3519_v54  ;;  %v3885_v50 = vld [vmem:[%s4461_s14 + $0x254] sm:$0xf]  ;;  %2048 = vmatpush.bf16.msrb.mxu0 %v5071_v61 }
 0x118   : > { %6006 = vst [vmem:[#allocation81_spill] sm:$0xff] %v5078_v1  ;;  %v3447_v3 = vld [vmem:[%s4461_s14 + $0x258] sm:$0xf0]  ;;  %v3933_v36 = vld [vmem:[%s4461_s14 + $0x3d4] sm:$0xf]  ;;  %v5091_v41 = vor.u32 %v3917_v19, %v3575_v60  ;;  %2120 = vmatpush.bf16.msrb.mxu3 %v5078_v1 }
 0x119   : > { %6007 = vst [vmem:[#allocation82_spill] sm:$0xff] %v5083_v23  ;;  %v3785_v33 = vld [vmem:[%s4449_s10 + $0xac] sm:$0xf0]  ;;  %v3781_v2 = vld [vmem:[%s4449_s10 + $0x94] sm:$0xf]  ;;  %v5099_v54 = vor.u32 %v3885_v50, %v3447_v3  ;;  %2072 = vmatpush.bf16.msrb.mxu1 %v5083_v23 }
 0x11a   : > { %6008 = vst [vmem:[#allocation83_spill] sm:$0xff] %v5091_v41  ;;  %v3639_v53 = vld [vmem:[%s4461_s14 + $0x3d8] sm:$0xf0]  ;;  %v3135_v0 = vld [vmem:[%s4449_s10 + $0xb0] sm:$0xf0]  ;;  %v5106_v60 = vor.u32 %v3785_v33, %v3133_v29  ;;  %2097 = vmatpush.bf16.msrb.mxu2 %v5091_v41 }
 0x11b   : > { %v3141_v55 = vld [vmem:[%s4449_s10 + $0x98] sm:$0xf]  ;;  %6009 = vst [vmem:[#allocation84_spill] sm:$0xff] %v5099_v54  ;;  %v5101_v52 = vor.u32 %v3933_v36, %v3639_v53  ;;  %v3782_v28 = vld [vmem:[%s4449_s10 + $0x9c] sm:$0xf]  ;;  %v5108_v19 = vor.u32 %v3781_v2, %v3135_v0  ;;  %2049 = vmatpush.bf16.msrb.mxu0 %v5099_v54 }
 0x11c   : > { %v3786_v62 = vld [vmem:[%s4449_s10 + $0xb4] sm:$0xf0]  ;;  %v3143_v5 = vld [vmem:[%s4449_s10 + $0xb8] sm:$0xf0]  ;;  %v3901_v33 = vld [vmem:[%s4461_s14 + $0x2d4] sm:$0xf] }
 0x11d   : > { %6010 = vst [vmem:[#allocation85_spill] sm:$0xff] %v5101_v52  ;;  %v5110_v61 = vor.u32 %v3786_v62, %v3141_v55  ;;  %v5113_v50 = vor.u32 %v3782_v28, %v3143_v5  ;;  %2121 = vmatpush.bf16.msrb.mxu3 %v5101_v52  ;;  %1873 = vmatmul.bf16.gmra.mxu0 %v5106_v60  ;;  %v3511_v2 = vld [vmem:[%s4461_s14 + $0x2d8] sm:$0xf0]  ;;  %v3915_v28 = vld [vmem:[%s4461_s14 + $0x344] sm:$0xf] }
 0x11e   : > { %v5124_v5 = vor.u32 %v3901_v33, %v3511_v2  ;;  %v3567_v0 = vld [vmem:[%s4461_s14 + $0x348] sm:$0xf0]  ;;  %v3883_v53 = vld [vmem:[%s4461_s14 + $0x244] sm:$0xf]  ;;  %v3913_v54 = vld [vmem:[%s4461_s14 + $0x334] sm:$0xf] }
 0x11f   : > { %v3439_v29 = vld [vmem:[%s4461_s14 + $0x248] sm:$0xf0]  ;;  %v5129_v3 = vor.u32 %v3915_v28, %v3567_v0  ;;  %v3931_v55 = vld [vmem:[%s4461_s14 + $0x3c4] sm:$0xf]  ;;  %v3559_v41 = vld [vmem:[%s4461_s14 + $0x338] sm:$0xf0] }
 0x120   : > { %1897 = vmatmul.bf16.gmra.mxu1 %v5108_v19  ;;  %6011 = vst [vmem:[#allocation86_spill] sm:$0xff] %v5124_v5  ;;  %v5131_v36 = vor.u32 %v3883_v53, %v3439_v29  ;;  %v3631_v62 = vld [vmem:[%s4461_s14 + $0x3c8] sm:$0xf0]  ;;  %v3899_v52 = vld [vmem:[%s4461_s14 + $0x2c4] sm:$0xf]  ;;  %v5146_v0 = vor.u32 %v3913_v54, %v3559_v41 }
 0x121   : > { %1921 = vmatmul.bf16.gmra.mxu2 %v5110_v61  ;;  %6012 = vst [vmem:[#allocation87_spill] sm:$0xff] %v5129_v3  ;;  %2073 = vmatpush.bf16.msrb.mxu1 %v5124_v5  ;;  %v5137_v33 = vor.u32 %v3931_v55, %v3631_v62  ;;  %v3503_v2 = vld [vmem:[%s4461_s14 + $0x2c8] sm:$0xf0]  ;;  %v3881_v53 = vld [vmem:[%s4461_s14 + $0x234] sm:$0xf] }
 0x122   : > { %1945 = vmatmul.bf16.gmra.mxu3 %v5113_v50  ;;  %2098 = vmatpush.bf16.msrb.mxu2 %v5129_v3  ;;  %v5144_v28 = vor.u32 %v3899_v52, %v3503_v2  ;;  %v3431_v29 = vld [vmem:[%s4461_s14 + $0x238] sm:$0xf0]  ;;  %v3929_v23 = vld [vmem:[%s4461_s14 + $0x3b4] sm:$0xf]  ;;  %v3911_v54 = vld [vmem:[%s4461_s14 + $0x324] sm:$0xf] }
 0x123   : > { %2050 = vmatpush.bf16.msrb.mxu0 %v5131_v36  ;;  %2122 = vmatpush.bf16.msrb.mxu3 %v5137_v33  ;;  %v5152_v55 = vor.u32 %v3881_v53, %v3431_v29  ;;  %v3623_v62 = vld [vmem:[%s4461_s14 + $0x3b8] sm:$0xf0]  ;;  %v3897_v5 = vld [vmem:[%s4461_s14 + $0x2b4] sm:$0xf]  ;;  %v3927_v2 = vld [vmem:[%s4461_s14 + $0x3a4] sm:$0xf] }
 0x124   : > { %v3495_v1 = vld [vmem:[%s4461_s14 + $0x2b8] sm:$0xf0]  ;;  %v5157_v3 = vor.u32 %v3929_v23, %v3623_v62  ;;  %v3551_v23 = vld [vmem:[%s4461_s14 + $0x328] sm:$0xf0]  ;;  %v3895_v29 = vld [vmem:[%s4461_s14 + $0x2a4] sm:$0xf] }
 0x125   : > { %6013 = vst [vmem:[#allocation88_spill] sm:$0xff] %v5152_v55  ;;  %2074 = vmatpush.bf16.msrb.mxu1 %v5144_v28  ;;  %v5160_v41 = vor.u32 %v3897_v5, %v3495_v1  ;;  %v5169_v52 = vor.u32 %v3911_v54, %v3551_v23  ;;  %v3879_v1 = vld [vmem:[%s4461_s14 + $0x224] sm:$0xf]  ;;  %v3423_v5 = vld [vmem:[%s4461_s14 + $0x228] sm:$0xf0] }
 0x126   : > { %6014 = vst [vmem:[#allocation89_spill] sm:$0xff] %v5157_v3  ;;  %2099 = vmatpush.bf16.msrb.mxu2 %v5146_v0  ;;  %v3615_v53 = vld [vmem:[%s4461_s14 + $0x3a8] sm:$0xf0]  ;;  %v3909_v62 = vld [vmem:[%s4461_s14 + $0x314] sm:$0xf] }
 0x127   : > { %6015 = vst [vmem:[#allocation90_spill] sm:$0xff] %v5160_v41  ;;  %2051 = vmatpush.bf16.msrb.mxu0 %v5152_v55  ;;  %2123 = vmatpush.bf16.msrb.mxu3 %v5157_v3  ;;  %v3543_v54 = vld [vmem:[%s4461_s14 + $0x318] sm:$0xf0]  ;;  %v3877_v23 = vld [vmem:[%s4461_s14 + $0x214] sm:$0xf] }
 0x128   : > { %6016 = vst [vmem:[#allocation91_spill] sm:$0xff] %v5169_v52  ;;  %v3891_v3 = vld [vmem:[%s4461_s14 + $0x284] sm:$0xf]  ;;  %v3471_v55 = vld [vmem:[%s4461_s14 + $0x288] sm:$0xf0] }
 0x129   : > { %2075 = vmatpush.bf16.msrb.mxu1 %v5160_v41  ;;  %v3599_v41 = vld [vmem:[%s4461_s14 + $0x388] sm:$0xf0] }
 0x12a   : > { %2100 = vmatpush.bf16.msrb.mxu2 %v5169_v52 }
 0x12d   : > { %1959 = vmatmul.bf16.vlgmr.msra.gmra.mxu0 %v4639_v11  ;;  %v5178_v11 = vor.u32 %v3879_v1, %v3423_v5  ;;  %v5193_v1 = vor.u32 %v3909_v62, %v3543_v54  ;;  %v3415_v5 = vld [vmem:[%s4461_s14 + $0x218] sm:$0xf0]  ;;  %v3535_v54 = vld [vmem:[%s4461_s14 + $0x308] sm:$0xf0] }
 0x12f   : > { %6017 = vst [vmem:[#allocation92_spill] sm:$0xff] %v5178_v11  ;;  %2052 = vmatpush.bf16.msrb.mxu0 %v5178_v11  ;;  %v3907_v11 = vld [vmem:[%s4461_s14 + $0x304] sm:$0xf]  ;;  %2101 = vmatpush.bf16.msrb.mxu2 %v5193_v1 }
 0x130   : > { %1983 = vmatmul.bf16.vlgmr.msra.gmra.mxu1 %v4647_v20  ;;  %v3487_v20 = vld [vmem:[%s4461_s14 + $0x2a8] sm:$0xf0]  ;;  %v5211_v52 = vor.u32 %v3907_v11, %v3535_v54 }
 0x131   : > { %2007 = vmatmul.bf16.vlgmr.msra.gmra.mxu2 %v4649_v21  ;;  %v5183_v21 = vor.u32 %v3927_v2, %v3615_v53  ;;  %v3925_v2 = vld [vmem:[%s4461_s14 + $0x394] sm:$0xf]  ;;  %v3607_v53 = vld [vmem:[%s4461_s14 + $0x398] sm:$0xf0]  ;;  %v6037_v54 = vld [vmem:[#allocation20_spill] sm:$0xff] }
 0x132   : > { %2031 = vmatmul.bf16.vlgmr.msra.gmra.mxu3 %v4655_v27  ;;  %v5185_v27 = vor.u32 %v3895_v29, %v3487_v20  ;;  %v5198_v29 = vor.u32 %v3877_v23, %v3415_v5  ;;  %v5200_v20 = vor.u32 %v3925_v2, %v3607_v53  ;;  %v3875_v23 = vld [vmem:[%s4461_s14 + $0x204] sm:$0xf]  ;;  %v3407_v5 = vld [vmem:[%s4461_s14 + $0x208] sm:$0xf0] }
 0x133   : > { %6018 = vst [vmem:[#allocation93_spill] sm:$0xff] %v5183_v21  ;;  %2124 = vmatpush.bf16.msrb.mxu3 %v5183_v21  ;;  %v3893_v21 = vld [vmem:[%s4461_s14 + $0x294] sm:$0xf]  ;;  %v3923_v2 = vld [vmem:[%s4461_s14 + $0x384] sm:$0xf]  ;;  %v5217_v53 = vor.u32 %v3875_v23, %v3407_v5  ;;  %2102 = vmatpush.bf16.msrb.mxu2 %v5211_v52 }
 0x134   : > { %6019 = vst [vmem:[#allocation94_spill] sm:$0xff] %v5185_v27  ;;  %2076 = vmatpush.bf16.msrb.mxu1 %v5185_v27  ;;  %v3479_v27 = vld [vmem:[%s4461_s14 + $0x298] sm:$0xf0]  ;;  %2053 = vmatpush.bf16.msrb.mxu0 %v5198_v29 }
 0x135   : > { %v5206_v62 = vor.u32 %v3893_v21, %v3479_v27  ;;  %v5223_v21 = vor.u32 %v3923_v2, %v3599_v41  ;;  %v5225_v27 = vor.u32 %v3891_v3, %v3471_v55  ;;  %v6034_v3 = vld [vmem:[#allocation17_spill] sm:$0xff]  ;;  %v6035_v55 = vld [vmem:[#allocation19_spill] sm:$0xff]  ;;  %v6036_v41 = vld [vmem:[#allocation18_spill] sm:$0xff] }
 0x137   : > { %2125 = vmatpush.bf16.msrb.mxu3 %v5200_v20  ;;  %2311 = vmatpush.bf16.msra.mxu2 %v4476_v9 }
 0x138   : > { %2077 = vmatpush.bf16.msrb.mxu1 %v5206_v62  ;;  %2054 = vmatpush.bf16.msrb.mxu0 %v5217_v53 }
 0x13b   : > { %2126 = vmatpush.bf16.msrb.mxu3 %v5223_v21  ;;  %2312 = vmatpush.bf16.msra.mxu2 %v4497_v22 }
 0x13c   : > { %2078 = vmatpush.bf16.msrb.mxu1 %v5225_v27  ;;  %2263 = vmatpush.bf16.msra.mxu0 %v4469_v4 }
 0x13d   : > { %1964 = vmatmul.bf16.gmra.mxu0 %v4740_v12  ;;  %v6029_v12 = vld [vmem:[#allocation12_spill] sm:$0xff] }
 0x13f   : > { %2335 = vmatpush.bf16.msra.mxu3 %v4482_v13  ;;  %2313 = vmatpush.bf16.msra.mxu2 %v4517_v35  ;;  %v6020_v35 = vld [vmem:[#allocation4_spill] sm:$0xff] }
 0x140   : > { %1988 = vmatmul.bf16.gmra.mxu1 %v4748_v40  ;;  %2264 = vmatpush.bf16.msra.mxu0 %v4489_v17 }
 0x141   : > { %2012 = vmatmul.bf16.gmra.mxu2 %v4750_v44  ;;  %2287 = vmatpush.bf16.msra.mxu1 %v4474_v8 }
 0x142   : > { %2036 = vmatmul.bf16.gmra.mxu3 %v4754_v24 }
 0x143   : > { %2336 = vmatpush.bf16.msra.mxu3 %v4502_v26  ;;  %2314 = vmatpush.bf16.msra.mxu2 %v4537_v47 }
 0x144   : > { %2265 = vmatpush.bf16.msra.mxu0 %v4508_v30 }
 0x145   : > { %2288 = vmatpush.bf16.msra.mxu1 %v4491_v18 }
 0x147   : > { %2337 = vmatpush.bf16.msra.mxu3 %v4523_v39  ;;  %2315 = vmatpush.bf16.msra.mxu2 %v4557_v59 }
 0x148   : > { %2266 = vmatpush.bf16.msra.mxu0 %v4531_v45  ;;  %v6021_v45 = vld [vmem:[#allocation3_spill] sm:$0xff] }
 0x149   : > { %2289 = vmatpush.bf16.msra.mxu1 %v4515_v34  ;;  %v1768_v4 = vpop.f32.mrf.mxu0 }
 0x14a   : > { %v1792_v8 = vpop.f32.mrf.mxu1 }
 0x14b   : > { %v1793_v9 = vadd.f32 %v1792_v8, %v1768_v4  ;;  %2338 = vmatpush.bf16.msra.mxu3 %v4543_v51  ;;  %2316 = vmatpush.bf16.msra.mxu2 %v4577_v10  ;;  %v6025_v10 = vld [vmem:[#allocation6_spill] sm:$0xff]  ;;  %v6038_v8 = vld [vmem:[#allocation21_spill] sm:$0xff] }
 0x14c   : > { %2267 = vmatpush.bf16.msra.mxu0 %v4551_v57 }
 0x14d   : > { %1969 = vmatmul.bf16.gmra.mxu0 %v4848_v31  ;;  %2290 = vmatpush.bf16.msra.mxu1 %v4535_v46  ;;  %v6028_v31 = vld [vmem:[#allocation10_spill] sm:$0xff] }
 0x14f   : > { %2339 = vmatpush.bf16.msra.mxu3 %v4563_v63  ;;  %2317 = vmatpush.bf16.msra.mxu2 %v4601_v32 }
 0x150   : > { %1993 = vmatmul.bf16.gmra.mxu1 %v4857_v14  ;;  %2268 = vmatpush.bf16.msra.mxu0 %v4571_v6  ;;  %v6023_v6 = vld [vmem:[#allocation5_spill] sm:$0xff] }
 0x151   : > { %2017 = vmatmul.bf16.gmra.mxu2 %v4859_v42  ;;  %v1816_v13 = vpop.f32.mrf.mxu2  ;;  %2291 = vmatpush.bf16.msra.mxu1 %v4555_v58  ;;  %v1770_v22 = vpop.f32.mrf.mxu0  ;;  %v6022_v58 = vld [vmem:[#allocation7_spill] sm:$0xff]  ;;  %v6030_v14 = vld [vmem:[#allocation13_spill] sm:$0xff] }
 0x152   : > { %2041 = vmatmul.bf16.gmra.mxu3 %v4864_v48  ;;  %v1817_v17 = vadd.f32 %v1816_v13, %v1793_v9  ;;  %v1840_v18 = vpop.f32.mrf.mxu3  ;;  %v1794_v26 = vpop.f32.mrf.mxu1 }
 0x153   : > { %v1795_v34 = vadd.f32 %v1794_v26, %v1770_v22  ;;  %2340 = vmatpush.bf16.msra.mxu3 %v4583_v15  ;;  %2318 = vmatpush.bf16.msra.mxu2 %v6022_v58  ;;  %v6026_v15 = vld [vmem:[#allocation9_spill] sm:$0xff]  ;;  %v6041_v22 = vld [vmem:[#allocation24_spill] sm:$0xff] }
 0x154   : > { %v5259_v30 = vadd.f32 %v1840_v18, %v1817_v17  ;;  %2269 = vmatpush.bf16.msra.mxu0 %v4592_v25  ;;  %v6027_v25 = vld [vmem:[#allocation11_spill] sm:$0xff]  ;;  %v6040_v18 = vld [vmem:[#allocation22_spill] sm:$0xff]  ;;  %v6042_v26 = vld [vmem:[#allocation73_spill] sm:$0xff] }
 0x155   : > { %2292 = vmatpush.bf16.msra.mxu1 %v4575_v7  ;;  %v6024_v7 = vld [vmem:[#allocation8_spill] sm:$0xff]  ;;  %v6039_v17 = vld [vmem:[#allocation23_spill] sm:$0xff] }
 0x157   : > { %2341 = vmatpush.bf16.msra.mxu3 %v6020_v35  ;;  %v6044_v35 = vld [vmem:[#allocation75_spill] sm:$0xff] }
 0x158   : > { %2270 = vmatpush.bf16.msra.mxu0 %v6023_v6  ;;  %v6049_v6 = vld [vmem:[#allocation29_spill] sm:$0xff] }
 0x159   : > { %v1818_v39 = vpop.f32.mrf.mxu2  ;;  %2293 = vmatpush.bf16.msra.mxu1 %v6021_v45  ;;  %v1773_v51 = vpop.f32.mrf.mxu0  ;;  %v6046_v45 = vld [vmem:[#allocation27_spill] sm:$0xff] }
 0x15a   : > { %v1819_v46 = vadd.f32 %v1818_v39, %v1795_v34  ;;  %v1842_v47 = vpop.f32.mrf.mxu3  ;;  %v1797_v57 = vpop.f32.mrf.mxu1  ;;  %v6043_v34 = vld [vmem:[#allocation74_spill] sm:$0xff]  ;;  %v6045_v39 = vld [vmem:[#allocation25_spill] sm:$0xff] }
 0x15b   : > { %v1798_v63 = vadd.f32 %v1797_v57, %v1773_v51  ;;  %2342 = vmatpush.bf16.msra.mxu3 %v6024_v7  ;;  %v6048_v51 = vld [vmem:[#allocation28_spill] sm:$0xff] }
 0x15c   : > { %v5269_v59 = vadd.f32 %v1842_v47, %v1819_v46  ;;  %v6047_v46 = vld [vmem:[#allocation26_spill] sm:$0xff] }
 0x15d   : > { %2055 = vmatmul.bf16.vlgmr.msrb.gmra.mxu0 %v4949_v38  ;;  %2294 = vmatpush.bf16.msra.mxu1 %v6025_v10 }
 0x15e   : > { %2359 = vmatpush.bf16.msrb.mxu0 %v6027_v25  ;;  %v6051_v25 = vld [vmem:[#allocation30_spill] sm:$0xff] }
 0x160   : > { %2079 = vmatmul.bf16.vlgmr.msrb.gmra.mxu1 %v4954_v56  ;;  %v6031_v56 = vld [vmem:[#allocation15_spill] sm:$0xff] }
 0x161   : > { %2103 = vmatmul.bf16.vlgmr.msrb.gmra.mxu2 %v4956_v16  ;;  %v1821_v32 = vpop.f32.mrf.mxu2  ;;  %2383 = vmatpush.bf16.msrb.mxu1 %v6029_v12  ;;  %v1775_v38 = vpop.f32.mrf.mxu0  ;;  %v6032_v16 = vld [vmem:[#allocation14_spill] sm:$0xff]  ;;  %v6054_v12 = vld [vmem:[#allocation35_spill] sm:$0xff] }
 0x162   : > { %2127 = vmatmul.bf16.vlgmr.msrb.gmra.mxu3 %v4958_v43  ;;  %2407 = vmatpush.bf16.msrb.mxu2 %v6026_v15  ;;  %v1822_v40 = vadd.f32 %v1821_v32, %v1798_v63  ;;  %v1845_v44 = vpop.f32.mrf.mxu3  ;;  %v1799_v24 = vpop.f32.mrf.mxu1  ;;  %v6033_v43 = vld [vmem:[#allocation16_spill] sm:$0xff]  ;;  %v6050_v15 = vld [vmem:[#allocation31_spill] sm:$0xff]  ;;  %v6053_v32 = vld [vmem:[#allocation33_spill] sm:$0xff] }
 0x163   : > { %2431 = vmatpush.bf16.msrb.mxu3 %v6028_v31  ;;  %v1800_v48 = vadd.f32 %v1799_v24, %v1775_v38  ;;  %2360 = vmatpush.bf16.msrb.mxu0 %v6031_v56  ;;  %v6052_v31 = vld [vmem:[#allocation32_spill] sm:$0xff] }
 0x164   : > { %v5283_v42 = vadd.f32 %v1845_v44, %v1822_v40  ;;  %v6055_v40 = vld [vmem:[#allocation34_spill] sm:$0xff]  ;;  %v6056_v38 = vld [vmem:[#allocation36_spill] sm:$0xff] }
 0x165   : > { %2384 = vmatpush.bf16.msrb.mxu1 %v6033_v43  ;;  %v6057_v43 = vld [vmem:[#allocation37_spill] sm:$0xff] }
 0x166   : > { %2408 = vmatpush.bf16.msrb.mxu2 %v6030_v14 }
 0x167   : > { %2432 = vmatpush.bf16.msrb.mxu3 %v6032_v16  ;;  %2361 = vmatpush.bf16.msrb.mxu0 %v6035_v55  ;;  %v6058_v55 = vld [vmem:[#allocation41_spill] sm:$0xff] }
 0x169   : > { %v1823_v11 = vpop.f32.mrf.mxu2  ;;  %2385 = vmatpush.bf16.msrb.mxu1 %v6037_v54  ;;  %v1778_v2 = vpop.f32.mrf.mxu0  ;;  %v6060_v54 = vld [vmem:[#allocation42_spill] sm:$0xff] }
 0x16a   : > { %2409 = vmatpush.bf16.msrb.mxu2 %v6034_v3  ;;  %v1824_v23 = vadd.f32 %v1823_v11, %v1800_v48  ;;  %v1847_v5 = vpop.f32.mrf.mxu3  ;;  %v1802_v4 = vpop.f32.mrf.mxu1 }
 0x16b   : > { %2433 = vmatpush.bf16.msrb.mxu3 %v6036_v41  ;;  %v1803_v13 = vadd.f32 %v1802_v4, %v1778_v2  ;;  %2362 = vmatpush.bf16.msrb.mxu0 %v6039_v17  ;;  %v6059_v41 = vld [vmem:[#allocation38_spill] sm:$0xff]  ;;  %v3661_v17 = vld [vmem:[%s4454_s22] sm:$0xf] }
 0x16c   : > { %v5293_v9 = vadd.f32 %v1847_v5, %v1824_v23 }
 0x16d   : > { %2060 = vmatmul.bf16.gmra.mxu0 %v5031_v37  ;;  %2386 = vmatpush.bf16.msrb.mxu1 %v6041_v22  ;;  %v3663_v22 = vld [vmem:[%s4454_s22 + $0x20] sm:$0xf0] }
 0x16e   : > { %2410 = vmatpush.bf16.msrb.mxu2 %v6038_v8 }
 0x16f   : > { %2434 = vmatpush.bf16.msrb.mxu3 %v6040_v18  ;;  %2363 = vmatpush.bf16.msrb.mxu0 %v6046_v45  ;;  %v3791_v18 = vld [vmem:[%s4454_s22 + $0x1c] sm:$0xf0] }
 0x170   : > { %2084 = vmatmul.bf16.gmra.mxu1 %v6042_v26  ;;  %v3669_v26 = vld [vmem:[%s4454_s22 + $0x8] sm:$0xf] }
 0x171   : > { %2108 = vmatmul.bf16.gmra.mxu2 %v6043_v34  ;;  %v1826_v47 = vpop.f32.mrf.mxu2  ;;  %2387 = vmatpush.bf16.msrb.mxu1 %v6048_v51  ;;  %v1780_v37 = vpop.f32.mrf.mxu0  ;;  %v3788_v34 = vld [vmem:[%s4454_s22 + $0xc] sm:$0xf] }
 0x172   : > { %2132 = vmatmul.bf16.gmra.mxu3 %v6044_v35  ;;  %2411 = vmatpush.bf16.msrb.mxu2 %v6045_v39  ;;  %v1827_v57 = vadd.f32 %v1826_v47, %v1803_v13  ;;  %v1804_v63 = vpop.f32.mrf.mxu1  ;;  %v3671_v35 = vld [vmem:[%s4454_s22 + $0x28] sm:$0xf0]  ;;  %v5338_v39 = vor.u32 %v3791_v18, %v3661_v17 }
 0x173   : > { %2435 = vmatpush.bf16.msrb.mxu3 %v6047_v46  ;;  %v1805_v10 = vadd.f32 %v1804_v63, %v1780_v37  ;;  %2364 = vmatpush.bf16.msrb.mxu0 %v6050_v15  ;;  %v5345_v37 = vor.u32 %v3788_v34, %v3671_v35  ;;  %v6062_v15 = vld [vmem:[#allocation43_spill] sm:$0xff]  ;;  %v6072_v18 = vld [vmem:[#allocation52_spill] sm:$0xff] }
 0x174   : > { %v1850_v58 = vpop.f32.mrf.mxu3 }
 0x175   : > { %v5307_v7 = vadd.f32 %v1850_v58, %v1827_v57  ;;  %2388 = vmatpush.bf16.msrb.mxu1 %v6052_v31  ;;  %v6064_v31 = vld [vmem:[#allocation44_spill] sm:$0xff] }
 0x176   : > { %2412 = vmatpush.bf16.msrb.mxu2 %v6049_v6 }
 0x177   : > { %2436 = vmatpush.bf16.msrb.mxu3 %v6051_v25  ;;  %2365 = vmatpush.bf16.msrb.mxu0 %v6054_v12 }
 0x179   : > { %v1828_v44 = vpop.f32.mrf.mxu2  ;;  %2389 = vmatpush.bf16.msrb.mxu1 %v6056_v38  ;;  %v1864_v48 = vpop.f32.mrf.mxu0 }
 0x17a   : > { %2413 = vmatpush.bf16.msrb.mxu2 %v6053_v32  ;;  %v1829_v24 = vadd.f32 %v1828_v44, %v1805_v10  ;;  %v1865_v56 = vadd.f32 %v1864_v48, %v5259_v30  ;;  %v6061_v10 = vld [vmem:[#allocation39_spill] sm:$0xff]  ;;  %v6066_v48 = vld [vmem:[#allocation46_spill] sm:$0xff] }
 0x17b   : > { %2437 = vmatpush.bf16.msrb.mxu3 %v6055_v40  ;;  %2366 = vmatpush.bf16.msrb.mxu0 %v6058_v55  ;;  %v3693_v55 = vld [vmem:[%s4454_s22 + $0x40] sm:$0xf] }
 0x17c   : > { %v1852_v14 = vpop.f32.mrf.mxu3 }
 0x17d   : > { %v1888_v16 = vpop.f32.mrf.mxu1  ;;  %v5318_v3 = vadd.f32 %v1852_v14, %v1829_v24  ;;  %2065 = vmatmul.bf16.gmra.mxu0 %v5106_v60  ;;  %2390 = vmatpush.bf16.msrb.mxu1 %v6060_v54  ;;  %v6065_v24 = vld [vmem:[#allocation45_spill] sm:$0xff]  ;;  %v3695_v54 = vld [vmem:[%s4454_s22 + $0x60] sm:$0xf0] }
 0x17e   : > { %2414 = vmatpush.bf16.msrb.mxu2 %v6057_v43  ;;  %v1889_v11 = vadd.f32 %v1888_v16, %v1865_v56  ;;  %v6067_v56 = vld [vmem:[#allocation47_spill] sm:$0xff]  ;;  %v6068_v43 = vld [vmem:[#allocation48_spill] sm:$0xff] }
 0x17f   : > { %2438 = vmatpush.bf16.msrb.mxu3 %v6059_v41  ;;  %v3799_v41 = vld [vmem:[%s4454_s22 + $0x5c] sm:$0xf0] }
 0x180   : > { %2089 = vmatmul.bf16.gmra.mxu1 %v5108_v19  ;;  %v3787_v19 = vld [vmem:[%s4454_s22 + $0x4] sm:$0xf]  ;;  %v5375_v17 = vor.u32 %v3799_v41, %v3693_v55  ;;  %v6084_v55 = vld [vmem:[#allocation64_spill] sm:$0xff]  ;;  %v3725_v41 = vld [vmem:[%s4454_s22 + $0x80] sm:$0xf] }
 0x181   : > { %2113 = vmatmul.bf16.gmra.mxu2 %v5110_v61  ;;  %v1866_v2 = vpop.f32.mrf.mxu0  ;;  %v3792_v61 = vld [vmem:[%s4454_s22 + $0x24] sm:$0xf0]  ;;  %v5340_v51 = vor.u32 %v3787_v19, %v3663_v22 }
 0x182   : > { %2137 = vmatmul.bf16.gmra.mxu3 %v5113_v50  ;;  %v1867_v4 = vadd.f32 %v1866_v2, %v5269_v59  ;;  %v5342_v59 = vor.u32 %v3792_v61, %v3669_v26  ;;  %v3703_v2 = vld [vmem:[%s4454_s22 + $0x68] sm:$0xf0] }
 0x184   : > { %v1912_v30 = vpop.f32.mrf.mxu2 }
 0x185   : > { %v1913_v23 = vadd.f32 %v1912_v30, %v1889_v11  ;;  %v1936_v5 = vpop.f32.mrf.mxu3  ;;  %v1890_v60 = vpop.f32.mrf.mxu1  ;;  %v3795_v11 = vld [vmem:[%s4454_s22 + $0x44] sm:$0xf]  ;;  %v3701_v30 = vld [vmem:[%s4454_s22 + $0x48] sm:$0xf] }
 0x186   : > { %v1891_v13 = vadd.f32 %v1890_v60, %v1867_v4  ;;  %v6070_v4 = vld [vmem:[#allocation50_spill] sm:$0xff]  ;;  %v6071_v60 = vld [vmem:[#allocation51_spill] sm:$0xff]  ;;  %v5378_v61 = vor.u32 %v3795_v11, %v3695_v54 }
 0x187   : > { %v5328_v8 = vadd.f32 %v1936_v5, %v1913_v23  ;;  %v3800_v23 = vld [vmem:[%s4454_s22 + $0x64] sm:$0xf0]  ;;  %v3796_v5 = vld [vmem:[%s4454_s22 + $0x4c] sm:$0xf]  ;;  %v3807_v11 = vld [vmem:[%s4454_s22 + $0x9c] sm:$0xf0] }
 0x188   : > { %v5380_v34 = vor.u32 %v3800_v23, %v3701_v30  ;;  %v3803_v54 = vld [vmem:[%s4454_s22 + $0x84] sm:$0xf]  ;;  %v3733_v23 = vld [vmem:[%s4454_s22 + $0x88] sm:$0xf] }
 0x189   : > { %v3727_v30 = vld [vmem:[%s4454_s22 + $0xa0] sm:$0xf0] }
 0x18a   : > { %v1869_v47 = vpop.f32.mrf.mxu0 }
 0x18b   : > { %v1870_v57 = vadd.f32 %v1869_v47, %v5283_v42  ;;  %v6063_v42 = vld [vmem:[#allocation40_spill] sm:$0xff] }
 0x18c   : > { %v1914_v50 = vpop.f32.mrf.mxu2 }
 0x18d   : > { %v1915_v45 = vadd.f32 %v1914_v50, %v1891_v13  ;;  %v1938_v46 = vpop.f32.mrf.mxu3  ;;  %v1893_v58 = vpop.f32.mrf.mxu1  ;;  %2271 = vmatmul.bf16.vlgmr.msra.gmra.mxu0 %v5338_v39 }
 0x18e   : > { %v1894_v6 = vadd.f32 %v1893_v58, %v1870_v57  ;;  %2455 = vmatpush.bf16.msra.mxu0 %v6062_v15  ;;  %v6074_v57 = vld [vmem:[#allocation54_spill] sm:$0xff]  ;;  %v6075_v58 = vld [vmem:[#allocation55_spill] sm:$0xff] }
 0x18f   : > { %v5347_v63 = vadd.f32 %v1938_v46, %v1915_v45  ;;  %v5383_v45 = vor.u32 %v3796_v5, %v3703_v2  ;;  %v6073_v46 = vld [vmem:[#allocation53_spill] sm:$0xff]  ;;  %v6078_v15 = vld [vmem:[#allocation58_spill] sm:$0xff]  ;;  %v3804_v5 = vld [vmem:[%s4454_s22 + $0x8c] sm:$0xf] }
 0x190   : > { %2295 = vmatmul.bf16.vlgmr.msra.gmra.mxu1 %v5340_v51  ;;  %v3735_v2 = vld [vmem:[%s4454_s22 + $0xa8] sm:$0xf0] }
 0x191   : > { %2319 = vmatmul.bf16.vlgmr.msra.gmra.mxu2 %v5342_v59  ;;  %2479 = vmatpush.bf16.msra.mxu1 %v6064_v31  ;;  %v6080_v31 = vld [vmem:[#allocation60_spill] sm:$0xff] }
 0x192   : > { %2343 = vmatmul.bf16.vlgmr.msra.gmra.mxu3 %v5345_v37  ;;  %2503 = vmatpush.bf16.msra.mxu2 %v6061_v10  ;;  %v1871_v40 = vpop.f32.mrf.mxu0  ;;  %v6076_v10 = vld [vmem:[#allocation56_spill] sm:$0xff] }
 0x193   : > { %2527 = vmatpush.bf16.msra.mxu3 %v6063_v42  ;;  %v1872_v44 = vadd.f32 %v1871_v40, %v5293_v9  ;;  %2456 = vmatpush.bf16.msra.mxu0 %v6066_v48  ;;  %v6069_v9 = vld [vmem:[#allocation49_spill] sm:$0xff]  ;;  %v6079_v42 = vld [vmem:[#allocation59_spill] sm:$0xff] }
 0x194   : > { %v1917_v25 = vpop.f32.mrf.mxu2 }
 0x195   : > { %v1918_v32 = vadd.f32 %v1917_v25, %v1894_v6  ;;  %v1941_v12 = vpop.f32.mrf.mxu3  ;;  %v1895_v38 = vpop.f32.mrf.mxu1  ;;  %2480 = vmatpush.bf16.msra.mxu1 %v6068_v43 }
 0x196   : > { %2504 = vmatpush.bf16.msra.mxu2 %v6065_v24  ;;  %v1896_v16 = vadd.f32 %v1895_v38, %v1872_v44  ;;  %v6081_v24 = vld [vmem:[#allocation61_spill] sm:$0xff] }
 0x197   : > { %v5359_v14 = vadd.f32 %v1941_v12, %v1918_v32  ;;  %2528 = vmatpush.bf16.msra.mxu3 %v6067_v56  ;;  %2457 = vmatpush.bf16.msra.mxu0 %v6070_v4  ;;  %v6082_v56 = vld [vmem:[#allocation62_spill] sm:$0xff] }
 0x198   : > { %v6086_v4 = vld [vmem:[#allocation66_spill] sm:$0xff] }
 0x199   : > { %2481 = vmatpush.bf16.msra.mxu1 %v6072_v18  ;;  %v5417_v18 = vor.u32 %v3807_v11, %v3725_v41  ;;  %v3685_v41 = vld [vmem:[%s4454_s22 + $0x18] sm:$0xf] }
 0x19a   : > { %2505 = vmatpush.bf16.msra.mxu2 %v6069_v9  ;;  %v1874_v26 = vpop.f32.mrf.mxu0  ;;  %v3808_v9 = vld [vmem:[%s4454_s22 + $0xa4] sm:$0xf0]  ;;  %v3794_v11 = vld [vmem:[%s4454_s22 + $0x34] sm:$0xf0] }
 0x19b   : > { %2529 = vmatpush.bf16.msra.mxu3 %v6071_v60  ;;  %v1875_v35 = vadd.f32 %v1874_v26, %v5307_v7  ;;  %2458 = vmatpush.bf16.msra.mxu0 %v6074_v57  ;;  %v6077_v7 = vld [vmem:[#allocation57_spill] sm:$0xff]  ;;  %v6087_v60 = vld [vmem:[#allocation67_spill] sm:$0xff] }
 0x19c   : > { %v1919_v13 = vpop.f32.mrf.mxu2 }
 0x19d   : > { %v1920_v19 = vadd.f32 %v1919_v13, %v1896_v16  ;;  %v1943_v22 = vpop.f32.mrf.mxu3  ;;  %v1898_v50 = vpop.f32.mrf.mxu1  ;;  %2276 = vmatmul.bf16.gmra.mxu0 %v5375_v17  ;;  %2482 = vmatpush.bf16.msra.mxu1 %v6076_v10  ;;  %v6083_v16 = vld [vmem:[#allocation63_spill] sm:$0xff] }
 0x19e   : > { %2506 = vmatpush.bf16.msra.mxu2 %v6073_v46  ;;  %v1899_v6 = vadd.f32 %v1898_v50, %v1875_v35  ;;  %v5420_v50 = vor.u32 %v3803_v54, %v3727_v30  ;;  %v5422_v46 = vor.u32 %v3808_v9, %v3733_v23  ;;  %v3790_v54 = vld [vmem:[%s4454_s22 + $0x1c] sm:$0xf] }
 0x19f   : > { %v5386_v47 = vadd.f32 %v1943_v22, %v1920_v19  ;;  %2530 = vmatpush.bf16.msra.mxu3 %v6075_v58  ;;  %2459 = vmatpush.bf16.msra.mxu0 %v6078_v15  ;;  %v6088_v19 = vld [vmem:[#allocation68_spill] sm:$0xff]  ;;  %v5424_v58 = vor.u32 %v3804_v5, %v3735_v2  ;;  %v6090_v15 = vld [vmem:[#allocation70_spill] sm:$0xff] }
 0x1a0   : > { %2300 = vmatmul.bf16.gmra.mxu1 %v5378_v61  ;;  %v3687_v30 = vld [vmem:[%s4454_s22 + $0x38] sm:$0xf0] }
 0x1a1   : > { %2324 = vmatmul.bf16.gmra.mxu2 %v5380_v34  ;;  %2483 = vmatpush.bf16.msra.mxu1 %v6080_v31 }
 0x1a2   : > { %2348 = vmatmul.bf16.gmra.mxu3 %v5383_v45  ;;  %2507 = vmatpush.bf16.msra.mxu2 %v6077_v7  ;;  %v1876_v40 = vpop.f32.mrf.mxu0 }
 0x1a3   : > { %2531 = vmatpush.bf16.msra.mxu3 %v6079_v42  ;;  %v1877_v44 = vadd.f32 %v1876_v40, %v5318_v3  ;;  %2460 = vmatpush.bf16.msra.mxu0 %v6082_v56  ;;  %v6085_v3 = vld [vmem:[#allocation65_spill] sm:$0xff]  ;;  %v6091_v42 = vld [vmem:[#allocation71_spill] sm:$0xff] }
 0x1a4   : > { %v1922_v25 = vpop.f32.mrf.mxu2  ;;  %v3677_v56 = vld [vmem:[%s4454_s22 + $0x10] sm:$0xf] }
 0x1a5   : > { %v1923_v32 = vadd.f32 %v1922_v25, %v1899_v6  ;;  %v1946_v12 = vpop.f32.mrf.mxu3  ;;  %v1900_v38 = vpop.f32.mrf.mxu1  ;;  %2484 = vmatpush.bf16.msra.mxu1 %v6084_v55  ;;  %v6089_v6 = vld [vmem:[#allocation69_spill] sm:$0xff]  ;;  %v6092_v25 = vld [vmem:[#allocation72_spill] sm:$0xff] }
 0x1a6   : > { %2508 = vmatpush.bf16.msra.mxu2 %v6081_v24  ;;  %v1901_v43 = vadd.f32 %v1900_v38, %v1877_v44  ;;  %v3679_v55 = vld [vmem:[%s4454_s22 + $0x30] sm:$0xf0] }
 0x1a7   : > { %v5401_v48 = vadd.f32 %v1946_v12, %v1923_v32  ;;  %2532 = vmatpush.bf16.msra.mxu3 %v6083_v16  ;;  %2461 = vmatpush.bf16.msra.mxu0 %v6086_v4  ;;  %v3793_v16 = vld [vmem:[%s4454_s22 + $0x2c] sm:$0xf0] }
 0x1a8   : > { %v5446_v9 = vor.u32 %v3793_v16, %v3677_v56  ;;  %v6099_v56 = vld [vmem:[#allocation82_spill] sm:$0xff]  ;;  %v3709_v16 = vld [vmem:[%s4454_s22 + $0x50] sm:$0xf] }
 0x1a9   : > { %2485 = vmatpush.bf16.msra.mxu1 %v6088_v19  ;;  %v5452_v19 = vor.u32 %v3790_v54, %v3687_v30  ;;  %v3802_v54 = vld [vmem:[%s4454_s22 + $0x74] sm:$0xf0]  ;;  %v6100_v30 = vld [vmem:[#allocation83_spill] sm:$0xff] }
 0x1aa   : > { %2509 = vmatpush.bf16.msra.mxu2 %v6085_v3  ;;  %v1960_v35 = vpop.f32.mrf.mxu0 }
 0x1ab   : > { %2533 = vmatpush.bf16.msra.mxu3 %v6087_v60  ;;  %2462 = vmatpush.bf16.msra.mxu0 %v6090_v15  ;;  %v5450_v60 = vor.u32 %v3794_v11, %v3685_v41  ;;  %v6096_v15 = vld [vmem:[#allocation79_spill] sm:$0xff]  ;;  %v3711_v41 = vld [vmem:[%s4454_s22 + $0x70] sm:$0xf0]  ;;  %v3717_v11 = vld [vmem:[%s4454_s22 + $0x58] sm:$0xf] }
 0x1ac   : > { %v1924_v13 = vpop.f32.mrf.mxu2 }
 0x1ad   : > { %v1925_v22 = vadd.f32 %v1924_v13, %v1901_v43  ;;  %v1948_v26 = vpop.f32.mrf.mxu3  ;;  %v1984_v57 = vpop.f32.mrf.mxu1  ;;  %2281 = vmatmul.bf16.gmra.mxu0 %v5417_v18  ;;  %2486 = vmatpush.bf16.msra.mxu1 %v6092_v25  ;;  %v3789_v43 = vld [vmem:[%s4454_s22 + $0x14] sm:$0xf] }
 0x1ae   : > { %2510 = vmatpush.bf16.msra.mxu2 %v6089_v6  ;;  %v1985_v7 = vadd.f32 %v1984_v57, %v1960_v35  ;;  %v5448_v4 = vor.u32 %v3789_v43, %v3679_v55  ;;  %v6093_v35 = vld [vmem:[#allocation76_spill] sm:$0xff]  ;;  %v6094_v57 = vld [vmem:[#allocation77_spill] sm:$0xff]  ;;  %v6095_v6 = vld [vmem:[#allocation78_spill] sm:$0xff] }
 0x1af   : > { %v5427_v10 = vadd.f32 %v1948_v26, %v1925_v22  ;;  %2534 = vmatpush.bf16.msra.mxu3 %v6091_v42  ;;  %v3801_v43 = vld [vmem:[%s4454_s22 + $0x6c] sm:$0xf0]  ;;  %v3797_v55 = vld [vmem:[%s4454_s22 + $0x54] sm:$0xf] }
 0x1b0   : > { %2305 = vmatmul.bf16.gmra.mxu1 %v5420_v50 }
 0x1b1   : > { %2329 = vmatmul.bf16.gmra.mxu2 %v5422_v46 }
 0x1b2   : > { %2353 = vmatmul.bf16.gmra.mxu3 %v5424_v58  ;;  %v1962_v40 = vpop.f32.mrf.mxu0 }
 0x1b4   : > { %v2008_v31 = vpop.f32.mrf.mxu2 }
 0x1b5   : > { %v2009_v32 = vadd.f32 %v2008_v31, %v1985_v7  ;;  %v2032_v12 = vpop.f32.mrf.mxu3  ;;  %v1986_v44 = vpop.f32.mrf.mxu1 }
 0x1b6   : > { %v1987_v24 = vadd.f32 %v1986_v44, %v1962_v40  ;;  %v6097_v44 = vld [vmem:[#allocation80_spill] sm:$0xff] }
 0x1b7   : > { %v5436_v38 = vadd.f32 %v2032_v12, %v2009_v32 }
 0x1ba   : > { %v1965_v2 = vpop.f32.mrf.mxu0 }
 0x1bc   : > { %v2010_v23 = vpop.f32.mrf.mxu2 }
 0x1bd   : > { %v2011_v3 = vadd.f32 %v2010_v23, %v1987_v24  ;;  %v2034_v5 = vpop.f32.mrf.mxu3  ;;  %v1989_v13 = vpop.f32.mrf.mxu1  ;;  %2367 = vmatmul.bf16.vlgmr.msrb.gmra.mxu0 %v5446_v9  ;;  %v6098_v24 = vld [vmem:[#allocation81_spill] sm:$0xff]  ;;  %v3798_v23 = vld [vmem:[%s4454_s22 + $0x5c] sm:$0xf] }
 0x1be   : > { %v1990_v26 = vadd.f32 %v1989_v13, %v1965_v2  ;;  %2551 = vmatpush.bf16.msrb.mxu0 %v6094_v57  ;;  %v5481_v13 = vor.u32 %v3801_v43, %v3709_v16 }
 0x1bf   : > { %v5454_v22 = vadd.f32 %v2034_v5, %v2011_v3  ;;  %v3719_v3 = vld [vmem:[%s4454_s22 + $0x78] sm:$0xf0]  ;;  %v6102_v5 = vld [vmem:[#allocation85_spill] sm:$0xff] }
 0x1c0   : > { %2391 = vmatmul.bf16.vlgmr.msrb.gmra.mxu1 %v5448_v4 }
 0x1c1   : > { %2415 = vmatmul.bf16.vlgmr.msrb.gmra.mxu2 %v5450_v60  ;;  %2575 = vmatpush.bf16.msrb.mxu1 %v6096_v15  ;;  %v5486_v15 = vor.u32 %v3802_v54, %v3717_v11  ;;  %v6109_v11 = vld [vmem:[#allocation92_spill] sm:$0xff]  ;;  %v6110_v54 = vld [vmem:[#allocation93_spill] sm:$0xff] }
 0x1c2   : > { %2439 = vmatmul.bf16.vlgmr.msrb.gmra.mxu3 %v5452_v19  ;;  %2599 = vmatpush.bf16.msrb.mxu2 %v6093_v35  ;;  %v1967_v31 = vpop.f32.mrf.mxu0 }
 0x1c3   : > { %2623 = vmatpush.bf16.msrb.mxu3 %v6095_v6  ;;  %2552 = vmatpush.bf16.msrb.mxu0 %v6097_v44 }
 0x1c4   : > { %v2013_v7 = vpop.f32.mrf.mxu2 }
 0x1c5   : > { %v2014_v42 = vadd.f32 %v2013_v7, %v1990_v26  ;;  %v2037_v25 = vpop.f32.mrf.mxu3  ;;  %v1991_v32 = vpop.f32.mrf.mxu1  ;;  %2576 = vmatpush.bf16.msrb.mxu1 %v6099_v56  ;;  %v6103_v26 = vld [vmem:[#allocation86_spill] sm:$0xff]  ;;  %v5484_v7 = vor.u32 %v3797_v55, %v3711_v41  ;;  %v6108_v55 = vld [vmem:[#allocation91_spill] sm:$0xff] }
 0x1c6   : > { %2600 = vmatpush.bf16.msrb.mxu2 %v5069_v49  ;;  %v1992_v40 = vadd.f32 %v1991_v32, %v1967_v31  ;;  %v6101_v49 = vld [vmem:[#allocation84_spill] sm:$0xff]  ;;  %v6104_v31 = vld [vmem:[#allocation87_spill] sm:$0xff] }
 0x1c7   : > { %v5465_v12 = vadd.f32 %v2037_v25, %v2014_v42  ;;  %2624 = vmatpush.bf16.msrb.mxu3 %v6098_v24  ;;  %2553 = vmatpush.bf16.msrb.mxu0 %v6101_v49  ;;  %v5488_v25 = vor.u32 %v3798_v23, %v3719_v3  ;;  %v6106_v24 = vld [vmem:[#allocation89_spill] sm:$0xff] }
 0x1c8   : > { %v3741_v23 = vld [vmem:[%s4454_s22 + $0x90] sm:$0xf]  ;;  %v3805_v49 = vld [vmem:[%s4454_s22 + $0x94] sm:$0xf] }
 0x1c9   : > { %2577 = vmatpush.bf16.msrb.mxu1 %v6103_v26  ;;  %v3809_v3 = vld [vmem:[%s4454_s22 + $0xac] sm:$0xf0]  ;;  %v3810_v26 = vld [vmem:[%s4454_s22 + $0xb4] sm:$0xf0] }
 0x1ca   : > { %2601 = vmatpush.bf16.msrb.mxu2 %v6100_v30  ;;  %v1970_v6 = vpop.f32.mrf.mxu0  ;;  %v6111_v30 = vld [vmem:[#allocation94_spill] sm:$0xff] }
 0x1cb   : > { %2625 = vmatpush.bf16.msrb.mxu3 %v6102_v5  ;;  %2554 = vmatpush.bf16.msrb.mxu0 %v5131_v36  ;;  %v3743_v5 = vld [vmem:[%s4454_s22 + $0xb0] sm:$0xf0] }
 0x1cc   : > { %v2015_v2 = vpop.f32.mrf.mxu2 }
 0x1cd   : > { %v2016_v35 = vadd.f32 %v2015_v2, %v1992_v40  ;;  %v2039_v57 = vpop.f32.mrf.mxu3  ;;  %v1994_v42 = vpop.f32.mrf.mxu1  ;;  %2372 = vmatmul.bf16.gmra.mxu0 %v5481_v13  ;;  %2578 = vmatpush.bf16.msrb.mxu1 %v5144_v28  ;;  %v6105_v40 = vld [vmem:[#allocation88_spill] sm:$0xff]  ;;  %v3749_v2 = vld [vmem:[%s4454_s22 + $0x98] sm:$0xf] }
 0x1ce   : > { %2602 = vmatpush.bf16.msrb.mxu2 %v6104_v31  ;;  %v1995_v44 = vadd.f32 %v1994_v42, %v1970_v6  ;;  %v5521_v42 = vor.u32 %v3809_v3, %v3741_v23 }
 0x1cf   : > { %v5491_v32 = vadd.f32 %v2039_v57, %v2016_v35  ;;  %2626 = vmatpush.bf16.msrb.mxu3 %v5137_v33  ;;  %2555 = vmatpush.bf16.msrb.mxu0 %v6105_v40  ;;  %v6107_v33 = vld [vmem:[#allocation90_spill] sm:$0xff] }
 0x1d0   : > { %2396 = vmatmul.bf16.gmra.mxu1 %v5484_v7  ;;  %v3806_v35 = vld [vmem:[%s4454_s22 + $0x9c] sm:$0xf] }
 0x1d1   : > { %2420 = vmatmul.bf16.gmra.mxu2 %v5486_v15  ;;  %2579 = vmatpush.bf16.msrb.mxu1 %v6107_v33  ;;  %v3751_v57 = vld [vmem:[%s4454_s22 + $0xb8] sm:$0xf0] }
 0x1d2   : > { %2444 = vmatmul.bf16.gmra.mxu3 %v5488_v25  ;;  %2603 = vmatpush.bf16.msrb.mxu2 %v5146_v0  ;;  %v1972_v16 = vpop.f32.mrf.mxu0 }
 0x1d3   : > { %2627 = vmatpush.bf16.msrb.mxu3 %v6106_v24  ;;  %2556 = vmatpush.bf16.msrb.mxu0 %v6109_v11  ;;  %v5524_v24 = vor.u32 %v3805_v49, %v3743_v5 }
 0x1d4   : > { %v2018_v36 = vpop.f32.mrf.mxu2 }
 0x1d5   : > { %v2019_v28 = vadd.f32 %v2018_v36, %v1995_v44  ;;  %v2042_v56 = vpop.f32.mrf.mxu3  ;;  %v1996_v43 = vpop.f32.mrf.mxu1  ;;  %2580 = vmatpush.bf16.msrb.mxu1 %v6111_v30  ;;  %v5526_v36 = vor.u32 %v3810_v26, %v3749_v2 }
 0x1d6   : > { %2604 = vmatpush.bf16.msrb.mxu2 %v6108_v55  ;;  %v1997_v41 = vadd.f32 %v1996_v43, %v1972_v16  ;;  %v2647_v55 = vmul.f32 %v5328_v8, %v5328_v8  ;;  %v2648_v8 = vmul.f32 %v5347_v63, %v5347_v63 }
 0x1d7   : > { %v5505_v0 = vadd.f32 %v2042_v56, %v2019_v28  ;;  %2628 = vmatpush.bf16.msrb.mxu3 %v6110_v54  ;;  %2557 = vmatpush.bf16.msrb.mxu0 %v5198_v29  ;;  %v5529_v28 = vor.u32 %v3806_v35, %v3751_v57 }
 0x1d9   : > { %2581 = vmatpush.bf16.msrb.mxu1 %v5206_v62 }
 0x1da   : > { %2605 = vmatpush.bf16.msrb.mxu2 %v5193_v1  ;;  %v2056_v40 = vpop.f32.mrf.mxu0 }
 0x1db   : > { %2629 = vmatpush.bf16.msrb.mxu3 %v5200_v20  ;;  %v2057_v1 = vadd.f32 %v2056_v40, %v5436_v38  ;;  %2558 = vmatpush.bf16.msrb.mxu0 %v5217_v53 }
 0x1dc   : > { %v2020_v6 = vpop.f32.mrf.mxu2 }
 0x1dd   : > { %v2021_v31 = vadd.f32 %v2020_v6, %v1997_v41  ;;  %v2044_v44 = vpop.f32.mrf.mxu3  ;;  %v2080_v33 = vpop.f32.mrf.mxu1  ;;  %2377 = vmatmul.bf16.gmra.mxu0 %v5521_v42  ;;  %2582 = vmatpush.bf16.msrb.mxu1 %v5225_v27 }
 0x1de   : > { %2606 = vmatpush.bf16.msrb.mxu2 %v5211_v52  ;;  %v2081_v20 = vadd.f32 %v2080_v33, %v2057_v1 }
 0x1df   : > { %v5532_v29 = vadd.f32 %v2044_v44, %v2021_v31  ;;  %2630 = vmatpush.bf16.msrb.mxu3 %v5223_v21 }
 0x1e0   : > { %2401 = vmatmul.bf16.gmra.mxu1 %v5524_v24 }
 0x1e1   : > { %2425 = vmatmul.bf16.gmra.mxu2 %v5526_v36 }
 0x1e2   : > { %2449 = vmatmul.bf16.gmra.mxu3 %v5529_v28  ;;  %v2058_v56 = vpop.f32.mrf.mxu0 }
 0x1e3   : > { %v2059_v16 = vadd.f32 %v2058_v56, %v5454_v22 }
 0x1e4   : > { %v2104_v62 = vpop.f32.mrf.mxu2 }
 0x1e5   : > { %v2105_v38 = vadd.f32 %v2104_v62, %v2081_v20  ;;  %v2128_v52 = vpop.f32.mrf.mxu3  ;;  %v2082_v53 = vpop.f32.mrf.mxu1 }
 0x1e6   : > { %v2083_v21 = vadd.f32 %v2082_v53, %v2059_v16 }
 0x1e7   : > { %v2129_v43 = vadd.f32 %v2128_v52, %v2105_v38 }
 0x1e9   : > { %v2653_v41 = vmul.f32 %v2129_v43, %v2129_v43 }
 0x1ea   : > { %v2061_v23 = vpop.f32.mrf.mxu0 }
 0x1eb   : > { %v5544_v27 = vadd.f32 %v2653_v41, %v2647_v55  ;;  %v2062_v3 = vadd.f32 %v2061_v23, %v5465_v12 }
 0x1ec   : > { %v2106_v11 = vpop.f32.mrf.mxu2 }
 0x1ed   : > { %v2107_v54 = vadd.f32 %v2106_v11, %v2083_v21  ;;  %v2130_v30 = vpop.f32.mrf.mxu3  ;;  %v2085_v49 = vpop.f32.mrf.mxu1  ;;  %2463 = vmatmul.bf16.vlgmr.msra.gmra.mxu0 %v5338_v39 }
 0x1ee   : > { %v2086_v2 = vadd.f32 %v2085_v49, %v2062_v3 }
 0x1ef   : > { %v2131_v5 = vadd.f32 %v2130_v30, %v2107_v54 }
 0x1f0   : > { %2487 = vmatmul.bf16.vlgmr.msra.gmra.mxu1 %v5340_v51  ;;  %v2649_v51 = vmul.f32 %v5359_v14, %v5359_v14  ;;  %v2650_v14 = vmul.f32 %v5386_v47, %v5386_v47 }
 0x1f1   : > { %2511 = vmatmul.bf16.vlgmr.msra.gmra.mxu2 %v5342_v59  ;;  %v2654_v22 = vmul.f32 %v2131_v5, %v2131_v5 }
 0x1f2   : > { %2535 = vmatmul.bf16.vlgmr.msra.gmra.mxu3 %v5345_v37  ;;  %v2063_v6 = vpop.f32.mrf.mxu0 }
 0x1f3   : > { %v5553_v26 = vadd.f32 %v2654_v22, %v2648_v8  ;;  %v2064_v31 = vadd.f32 %v2063_v6, %v5491_v32 }
 0x1f4   : > { %v2109_v35 = vpop.f32.mrf.mxu2 }
 0x1f5   : > { %v2110_v57 = vadd.f32 %v2109_v35, %v2086_v2  ;;  %v2133_v12 = vpop.f32.mrf.mxu3  ;;  %v2087_v44 = vpop.f32.mrf.mxu1 }
 0x1f6   : > { %v2088_v40 = vadd.f32 %v2087_v44, %v2064_v31 }
 0x1f7   : > { %v2134_v39 = vadd.f32 %v2133_v12, %v2110_v57 }
 0x1f9   : > { %v2655_v59 = vmul.f32 %v2134_v39, %v2134_v39 }
 0x1fa   : > { %v2066_v20 = vpop.f32.mrf.mxu0 }
 0x1fb   : > { %v5558_v1 = vadd.f32 %v2655_v59, %v2649_v51  ;;  %v2067_v62 = vadd.f32 %v2066_v20, %v5505_v0 }
 0x1fc   : > { %v2111_v63 = vpop.f32.mrf.mxu2 }
 0x1fd   : > { %v2112_v33 = vadd.f32 %v2111_v63, %v2088_v40  ;;  %v2135_v37 = vpop.f32.mrf.mxu3  ;;  %v2090_v38 = vpop.f32.mrf.mxu1  ;;  %2468 = vmatmul.bf16.gmra.mxu0 %v5375_v17 }
 0x1fe   : > { %v2091_v56 = vadd.f32 %v2090_v38, %v2067_v62 }
 0x1ff   : > { %v2136_v52 = vadd.f32 %v2135_v37, %v2112_v33 }
 0x200   : > { %2492 = vmatmul.bf16.gmra.mxu1 %v5378_v61  ;;  %v2651_v61 = vmul.f32 %v5401_v48, %v5401_v48  ;;  %v2652_v48 = vmul.f32 %v5427_v10, %v5427_v10 }
 0x201   : > { %2516 = vmatmul.bf16.gmra.mxu2 %v5380_v34  ;;  %v2656_v32 = vmul.f32 %v2136_v52, %v2136_v52 }
 0x202   : > { %2540 = vmatmul.bf16.gmra.mxu3 %v5383_v45  ;;  %v2068_v21 = vpop.f32.mrf.mxu0 }
 0x203   : > { %v5567_v16 = vadd.f32 %v2656_v32, %v2650_v14  ;;  %v2069_v55 = vadd.f32 %v2068_v21, %v5532_v29 }
 0x204   : > { %v2114_v53 = vpop.f32.mrf.mxu2 }
 0x205   : > { %v2115_v43 = vadd.f32 %v2114_v53, %v2091_v56  ;;  %v2138_v0 = vpop.f32.mrf.mxu3  ;;  %v2092_v41 = vpop.f32.mrf.mxu1 }
 0x206   : > { %v2093_v11 = vadd.f32 %v2092_v41, %v2069_v55 }
 0x207   : > { %v2139_v17 = vadd.f32 %v2138_v0, %v2115_v43 }
 0x209   : > { %v2657_v34 = vmul.f32 %v2139_v17, %v2139_v17 }
 0x20a   : > { %v2272_v23 = vpop.f32.mrf.mxu0 }
 0x20b   : > { %v5572_v54 = vadd.f32 %v2657_v34, %v2651_v61 }
 0x20c   : > { %v2116_v47 = vpop.f32.mrf.mxu2 }
 0x20d   : > { %v2117_v30 = vadd.f32 %v2116_v47, %v2093_v11  ;;  %v2140_v45 = vpop.f32.mrf.mxu3  ;;  %v2296_v3 = vpop.f32.mrf.mxu1  ;;  %2473 = vmatmul.bf16.gmra.mxu0 %v5417_v18 }
 0x20e   : > { %v2297_v5 = vadd.f32 %v2296_v3, %v2272_v23 }
 0x20f   : > { %v2141_v49 = vadd.f32 %v2140_v45, %v2117_v30 }
 0x210   : > { %2497 = vmatmul.bf16.gmra.mxu1 %v5420_v50 }
 0x211   : > { %2521 = vmatmul.bf16.gmra.mxu2 %v5422_v46  ;;  %v2658_v29 = vmul.f32 %v2141_v49, %v2141_v49 }
 0x212   : > { %2545 = vmatmul.bf16.gmra.mxu3 %v5424_v58  ;;  %v2274_v57 = vpop.f32.mrf.mxu0 }
 0x213   : > { %v5580_v2 = vadd.f32 %v2658_v29, %v2652_v48 }
 0x214   : > { %v2320_v8 = vpop.f32.mrf.mxu2 }
 0x215   : > { %v2321_v22 = vadd.f32 %v2320_v8, %v2297_v5  ;;  %v2344_v35 = vpop.f32.mrf.mxu3  ;;  %v2298_v12 = vpop.f32.mrf.mxu1 }
 0x216   : > { %v2299_v31 = vadd.f32 %v2298_v12, %v2274_v57 }
 0x217   : > { %v2345_v6 = vadd.f32 %v2344_v35, %v2321_v22 }
 0x21a   : > { %v2277_v39 = vpop.f32.mrf.mxu0 }
 0x21c   : > { %v2322_v18 = vpop.f32.mrf.mxu2 }
 0x21d   : > { %v2323_v44 = vadd.f32 %v2322_v18, %v2299_v31  ;;  %v2346_v50 = vpop.f32.mrf.mxu3  ;;  %v2301_v46 = vpop.f32.mrf.mxu1  ;;  %2559 = vmatmul.bf16.vlgmr.msrb.gmra.mxu0 %v5446_v9 }
 0x21e   : > { %v2302_v59 = vadd.f32 %v2301_v46, %v2277_v39 }
 0x21f   : > { %v2347_v51 = vadd.f32 %v2346_v50, %v2323_v44 }
 0x220   : > { %2583 = vmatmul.bf16.vlgmr.msrb.gmra.mxu1 %v5448_v4 }
 0x221   : > { %2607 = vmatmul.bf16.vlgmr.msrb.gmra.mxu2 %v5450_v60 }
 0x222   : > { %2631 = vmatmul.bf16.vlgmr.msrb.gmra.mxu3 %v5452_v19  ;;  %v2279_v63 = vpop.f32.mrf.mxu0 }
 0x224   : > { %v2325_v58 = vpop.f32.mrf.mxu2 }
 0x225   : > { %v2326_v10 = vadd.f32 %v2325_v58, %v2302_v59  ;;  %v2349_v40 = vpop.f32.mrf.mxu3  ;;  %v2303_v33 = vpop.f32.mrf.mxu1 }
 0x226   : > { %v2304_v20 = vadd.f32 %v2303_v33, %v2279_v63 }
 0x227   : > { %v2350_v37 = vadd.f32 %v2349_v40, %v2326_v10 }
 0x22a   : > { %v2282_v56 = vpop.f32.mrf.mxu0 }
 0x22c   : > { %v2327_v62 = vpop.f32.mrf.mxu2 }
 0x22d   : > { %v2328_v38 = vadd.f32 %v2327_v62, %v2304_v20  ;;  %v2351_v52 = vpop.f32.mrf.mxu3  ;;  %v2306_v14 = vpop.f32.mrf.mxu1  ;;  %2564 = vmatmul.bf16.gmra.mxu0 %v5481_v13 }
 0x22e   : > { %v2307_v9 = vadd.f32 %v2306_v14, %v2282_v56 }
 0x22f   : > { %v2352_v32 = vadd.f32 %v2351_v52, %v2328_v38 }
 0x230   : > { %2588 = vmatmul.bf16.gmra.mxu1 %v5484_v7 }
 0x231   : > { %2612 = vmatmul.bf16.gmra.mxu2 %v5486_v15 }
 0x232   : > { %2636 = vmatmul.bf16.gmra.mxu3 %v5488_v25  ;;  %v2284_v53 = vpop.f32.mrf.mxu0 }
 0x234   : > { %v2330_v4 = vpop.f32.mrf.mxu2 }
 0x235   : > { %v2331_v60 = vadd.f32 %v2330_v4, %v2307_v9  ;;  %v2354_v19 = vpop.f32.mrf.mxu3  ;;  %v2308_v43 = vpop.f32.mrf.mxu1 }
 0x236   : > { %v2309_v21 = vadd.f32 %v2308_v43, %v2284_v53 }
 0x237   : > { %v2355_v0 = vadd.f32 %v2354_v19, %v2331_v60 }
 0x23a   : > { %v2368_v61 = vpop.f32.mrf.mxu0 }
 0x23b   : > { %v2369_v34 = vadd.f32 %v2368_v61, %v2345_v6 }
 0x23c   : > { %v2332_v55 = vpop.f32.mrf.mxu2 }
 0x23d   : > { %v2333_v41 = vadd.f32 %v2332_v55, %v2309_v21  ;;  %v2356_v17 = vpop.f32.mrf.mxu3  ;;  %v2392_v11 = vpop.f32.mrf.mxu1  ;;  %2569 = vmatmul.bf16.gmra.mxu0 %v5521_v42 }
 0x23e   : > { %v2393_v47 = vadd.f32 %v2392_v11, %v2369_v34 }
 0x23f   : > { %v2357_v13 = vadd.f32 %v2356_v17, %v2333_v41 }
 0x240   : > { %2593 = vmatmul.bf16.gmra.mxu1 %v5524_v24 }
 0x241   : > { %2617 = vmatmul.bf16.gmra.mxu2 %v5526_v36 }
 0x242   : > { %2641 = vmatmul.bf16.gmra.mxu3 %v5529_v28  ;;  %v2370_v30 = vpop.f32.mrf.mxu0 }
 0x243   : > { %v2371_v45 = vadd.f32 %v2370_v30, %v2347_v51 }
 0x244   : > { %v2416_v7 = vpop.f32.mrf.mxu2 }
 0x245   : > { %v2417_v15 = vadd.f32 %v2416_v7, %v2393_v47  ;;  %v2440_v25 = vpop.f32.mrf.mxu3  ;;  %v2394_v23 = vpop.f32.mrf.mxu1 }
 0x246   : > { %v2395_v49 = vadd.f32 %v2394_v23, %v2371_v45 }
 0x247   : > { %v5594_v3 = vadd.f32 %v2440_v25, %v2417_v15 }
 0x24a   : > { %v2373_v8 = vpop.f32.mrf.mxu0 }
 0x24b   : > { %v2374_v42 = vadd.f32 %v2373_v8, %v2350_v37  ;;  %v5615_v8 = vmax.f32 %v5544_v27, 1e-08 }
 0x24c   : > { %v2418_v5 = vpop.f32.mrf.mxu2 }
 0x24d   : > { %v2419_v48 = vadd.f32 %v2418_v5, %v2395_v49  ;;  %v2442_v29 = vpop.f32.mrf.mxu3  ;;  %v2397_v22 = vpop.f32.mrf.mxu1  ;;  %3997 = vrsqrt.f32 %v5615_v8  ;;  %vm2678_vm0 = vcmp.eq.f32.partialorder %v5615_v8, inf  ;;  %vm2680_vm1 = vcmp.eq.f32.partialorder %v5615_v8, 0.0 }
 0x24e   : > { %v2398_v36 = vadd.f32 %v2397_v22, %v2374_v42  ;;  %v5618_v42 = vmax.f32 %v5553_v26, 1e-08 }
 0x24f   : > { %v5596_v24 = vadd.f32 %v2442_v29, %v2419_v48 }
 0x250   : > { %3999 = vrsqrt.f32 %v5618_v42  ;;  %vm2690_vm2 = vcmp.eq.f32.partialorder %v5618_v42, inf  ;;  %vm2692_vm3 = vcmp.eq.f32.partialorder %v5618_v42, 0.0 }
 0x252   : > { %v2375_v12 = vpop.f32.mrf.mxu0 }
 0x253   : > { %v2376_v6 = vadd.f32 %v2375_v12, %v2352_v32  ;;  %v3998_v27 = vpop.eup %3997 }
 0x254   : > { %v2421_v35 = vpop.f32.mrf.mxu2 }
 0x255   : > { %v2422_v28 = vadd.f32 %v2421_v35, %v2398_v36  ;;  %v2445_v57 = vpop.f32.mrf.mxu3  ;;  %v2399_v31 = vpop.f32.mrf.mxu1 }
 0x256   : > { %v2400_v44 = vadd.f32 %v2399_v31, %v2376_v6  ;;  %v4000_v26 = vpop.eup %3999 }
 0x257   : > { %v5598_v18 = vadd.f32 %v2445_v57, %v2422_v28  ;;  %v5631_v57 = vmax.f32 %v5558_v1, 1e-08 }
 0x259   : > { %4001 = vrsqrt.f32 %v5631_v57  ;;  %vm2702_vm4 = vcmp.eq.f32.partialorder %v5631_v57, inf  ;;  %vm2704_vm5 = vcmp.eq.f32.partialorder %v5631_v57, 0.0 }
 0x25a   : > { %v2378_v51 = vpop.f32.mrf.mxu0 }
 0x25b   : > { %v2379_v59 = vadd.f32 %v2378_v51, %v2355_v0 }
 0x25c   : > { %v2423_v50 = vpop.f32.mrf.mxu2 }
 0x25d   : > { %v2424_v39 = vadd.f32 %v2423_v50, %v2400_v44  ;;  %v2447_v46 = vpop.f32.mrf.mxu3  ;;  %v2402_v58 = vpop.f32.mrf.mxu1  ;;  %v2672_v44 = vmul.f32 %v3998_v27, %v5615_v8 }
 0x25e   : > { %v2403_v40 = vadd.f32 %v2402_v58, %v2379_v59  ;;  %v5641_v59 = vmax.f32 %v5567_v16, 1e-08  ;;  %v2743_v16 = vmul.f32 %v5594_v3, %v5594_v3  ;;  %v5652_v3 = vmax.f32 %v5572_v54, 1e-08 }
 0x25f   : > { %v5600_v10 = vadd.f32 %v2447_v46, %v2424_v39  ;;  %v2684_v46 = vmul.f32 %v4000_v26, %v5618_v42  ;;  %v2673_v51 = vmul.f32 %v3998_v27, %v2672_v44  ;;  %v4002_v1 = vpop.eup %4001 }
 0x260   : > { %4003 = vrsqrt.f32 %v5641_v59  ;;  %vm2714_vm6 = vcmp.eq.f32.partialorder %v5641_v59, inf  ;;  %vm2716_vm9 = vcmp.eq.f32.partialorder %v5641_v59, 0.0  ;;  %vm2726_vm14 = vcmp.eq.f32.partialorder %v5652_v3, inf }
 0x262   : > { %v2380_v20 = vpop.f32.mrf.mxu0 }
 0x263   : > { %v2381_v62 = vadd.f32 %v2380_v20, %v2357_v13 }
 0x264   : > { %v2426_v63 = vpop.f32.mrf.mxu2 }
 0x265   : > { %v2427_v33 = vadd.f32 %v2426_v63, %v2403_v40  ;;  %v2450_v37 = vpop.f32.mrf.mxu3  ;;  %v2404_v38 = vpop.f32.mrf.mxu1  ;;  %v2685_v40 = vmul.f32 %v4000_v26, %v2684_v46 }
 0x266   : > { %v2405_v56 = vadd.f32 %v2404_v38, %v2381_v62  ;;  %v2674_v62 = vmul.f32 0.5, %v2673_v51  ;;  %v2696_v38 = vmul.f32 %v4002_v1, %v5631_v57 }
 0x267   : > { %v5602_v52 = vadd.f32 %v2450_v37, %v2427_v33 }
 0x26a   : > { %v2464_v4 = vpop.f32.mrf.mxu0 }
 0x26c   : > { %v2428_v14 = vpop.f32.mrf.mxu2 }
 0x26d   : > { %v2429_v32 = vadd.f32 %v2428_v14, %v2405_v56  ;;  %v2452_v9 = vpop.f32.mrf.mxu3  ;;  %v2488_v60 = vpop.f32.mrf.mxu1 }
 0x26e   : > { %v2489_v53 = vadd.f32 %v2488_v60, %v2464_v4  ;;  %v2686_v4 = vmul.f32 0.5, %v2685_v40 }
 0x26f   : > { %v5604_v19 = vadd.f32 %v2452_v9, %v2429_v32 }
 0x272   : > { %v2466_v55 = vpop.f32.mrf.mxu0 }
 0x274   : > { %v2512_v43 = vpop.f32.mrf.mxu2 }
 0x275   : > { %v2513_v0 = vadd.f32 %v2512_v43, %v2489_v53  ;;  %v2536_v21 = vpop.f32.mrf.mxu3  ;;  %v2490_v41 = vpop.f32.mrf.mxu1  ;;  %v2675_v43 = vsub.f32 1.5, %v2674_v62 }
 0x276   : > { %v2491_v61 = vadd.f32 %v2490_v41, %v2466_v55  ;;  %v5647_v41 = vpop.eup %4003 }
 0x277   : > { %v2537_v17 = vadd.f32 %v2536_v21, %v2513_v0  ;;  %v2697_v0 = vmul.f32 %v4002_v1, %v2696_v38  ;;  %v2708_v44 = vmul.f32 %v5647_v41, %v5641_v59 }
 0x27a   : > { %v2469_v47 = vpop.f32.mrf.mxu0 }
 0x27c   : > { %v2514_v34 = vpop.f32.mrf.mxu2 }
 0x27d   : > { %v2515_v11 = vadd.f32 %v2514_v34, %v2491_v61  ;;  %v2538_v13 = vpop.f32.mrf.mxu3  ;;  %v2493_v7 = vpop.f32.mrf.mxu1 }
 0x27e   : > { %v2494_v14 = vadd.f32 %v2493_v7, %v2469_v47 }
 0x27f   : > { %v2539_v15 = vadd.f32 %v2538_v13, %v2515_v11 }
 0x282   : > { %v2471_v45 = vpop.f32.mrf.mxu0 }
 0x284   : > { %v2517_v25 = vpop.f32.mrf.mxu2 }
 0x285   : > { %v2541_v30 = vpop.f32.mrf.mxu3  ;;  %v2495_v23 = vpop.f32.mrf.mxu1  ;;  %v2518_v60 = vadd.f32 %v2517_v25, %v2494_v14 }
 0x287   : > { %v2542_v34 = vadd.f32 %v2541_v30, %v2518_v60 }
 0x28a   : > { %v5610_v48 = vpop.f32.mrf.mxu0 }
 0x28c   : > { %v5606_v49 = vpop.f32.mrf.mxu2 }
 0x28d   : > { %v5608_v5 = vpop.f32.mrf.mxu3  ;;  %v5612_v29 = vpop.f32.mrf.mxu1 }
 0x292   : > { %v5625_v35 = vpop.f32.mrf.mxu0 }
 0x294   : > { %v5620_v22 = vpop.f32.mrf.mxu2 }
 0x295   : > { %v5623_v36 = vpop.f32.mrf.mxu3  ;;  %v5627_v28 = vpop.f32.mrf.mxu1 }
 0x29a   : > { %v2560_v31 = vpop.f32.mrf.mxu0 }
 0x29b   : > { %v2561_v39 = vadd.f32 %v2560_v31, %v2537_v17  ;;  %v2687_v17 = vsub.f32 1.5, %v2686_v4  ;;  %v2698_v31 = vmul.f32 0.5, %v2697_v0 }
 0x29c   : > { %v5633_v12 = vpop.f32.mrf.mxu2 }
 0x29d   : > { %v5636_v6 = vpop.f32.mrf.mxu3  ;;  %v2584_v50 = vpop.f32.mrf.mxu1  ;;  %v2688_v46 = vmul.f32 %v4000_v26, %v2687_v17  ;;  %v2699_v40 = vsub.f32 1.5, %v2698_v31 }
 0x29e   : > { %v2585_v58 = vadd.f32 %v2584_v50, %v2561_v39  ;;  %v2496_v50 = vadd.f32 %v2495_v23, %v2471_v45 }
 0x29f   : > { %v2689_v45 = vmul.f32 %v2688_v46, %v5618_v42  ;;  %v2700_v14 = vmul.f32 %v4002_v1, %v2699_v40  ;;  %v2693_v1 = vand.u32 2147483648, %v5618_v42 }
 0x2a0   : > { %v2520_v51 = vadd.f32 %v5606_v49, %v2496_v50 }
 0x2a1   : > { %v2691_v0 = vsel %vm2690_vm2, %v5618_v42, %v2689_v45 }
 0x2a2   : > { %v2562_v20 = vpop.f32.mrf.mxu0 }
 0x2a3   : > { %v2563_v9 = vadd.f32 %v2562_v20, %v2539_v15  ;;  %v2676_v15 = vmul.f32 %v3998_v27, %v2675_v43  ;;  %v2744_v27 = vmul.f32 %v5596_v24, %v5596_v24  ;;  %v2544_v24 = vadd.f32 %v5608_v5, %v2520_v51 }
 0x2a4   : > { %v2608_v63 = vpop.f32.mrf.mxu2  ;;  %v5702_v51 = vmax.f32 %v5580_v2, 1e-08  ;;  %v2746_v2 = vmul.f32 %v5600_v10, %v5600_v10 }
 0x2a5   : > { %v2609_v33 = vadd.f32 %v2608_v63, %v2585_v58  ;;  %v2632_v37 = vpop.f32.mrf.mxu3  ;;  %v2586_v56 = vpop.f32.mrf.mxu1  ;;  %v2677_v58 = vmul.f32 %v2676_v15, %v5615_v8  ;;  %v2709_v63 = vmul.f32 %v5647_v41, %v2708_v44 }
 0x2a6   : > { %v2587_v55 = vadd.f32 %v2586_v56, %v2563_v9 }
 0x2a7   : > { %v2633_v32 = vadd.f32 %v2632_v37, %v2609_v33  ;;  %v2681_v37 = vand.u32 2147483648, %v5615_v8  ;;  %v2679_v56 = vsel %vm2678_vm0, %v5615_v8, %v2677_v58  ;;  %v2710_v4 = vmul.f32 0.5, %v2709_v63 }
 0x2a8   : > { %v2501_v63 = vadd.f32 %v5627_v28, %v5625_v35  ;;  %v2717_v28 = vand.u32 2147483648, %v5641_v59 }
 0x2a9   : > { %v2749_v53 = vmul.f32 %v2633_v32, %v2633_v32 }
 0x2aa   : > { %v2565_v7 = vpop.f32.mrf.mxu0 }
 0x2ab   : > { %v2755_v21 = vadd.f32 %v2749_v53, %v2743_v16  ;;  %v2566_v39 = vadd.f32 %v2565_v7, %v2542_v34  ;;  %v2499_v16 = vadd.f32 %v5612_v29, %v5610_v48  ;;  %v2682_v29 = vsel %vm2680_vm1, %v2681_v37, %v2679_v56 }
 0x2ac   : > { %v2610_v61 = vpop.f32.mrf.mxu2  ;;  %vm2728_vm1 = vcmp.eq.f32.partialorder %v5652_v3, 0.0 }
 0x2ad   : > { %v5649_v11 = vmax.f32 %v2755_v21, 1e-08  ;;  %v2611_v13 = vadd.f32 %v2610_v61, %v2587_v55  ;;  %v2634_v47 = vpop.f32.mrf.mxu3  ;;  %v2589_v25 = vpop.f32.mrf.mxu1  ;;  %v2745_v55 = vmul.f32 %v5598_v18, %v5598_v18  ;;  %v2523_v17 = vadd.f32 %v5620_v22, %v2499_v16 }
 0x2ae   : > { %v2590_v33 = vadd.f32 %v2589_v25, %v2566_v39  ;;  %v2701_v61 = vmul.f32 %v2700_v14, %v5631_v57  ;;  %v2705_v18 = vand.u32 2147483648, %v5631_v57 }
 0x2af   : > { %4005 = vrsqrt.f32 %v5649_v11  ;;  %v2635_v30 = vadd.f32 %v2634_v47, %v2611_v13  ;;  %v5688_v13 = vsel %vm2692_vm3, %v2693_v1, %v2691_v0  ;;  %v2711_v47 = vsub.f32 1.5, %v2710_v4 }
 0x2b0   : > { %4007 = vrsqrt.f32 %v5652_v3  ;;  %v2547_v31 = vadd.f32 %v5623_v36, %v2523_v17  ;;  %vm2774_vm7 = vcmp.eq.f32.partialorder %v5649_v11, inf  ;;  %vm2776_vm8 = vcmp.eq.f32.partialorder %v5649_v11, 0.0 }
 0x2b1   : > { %v2750_v54 = vmul.f32 %v2635_v30, %v2635_v30  ;;  %v2703_v30 = vsel %vm2702_vm4, %v5631_v57, %v2701_v61  ;;  %v2712_v40 = vmul.f32 %v5647_v41, %v2711_v47  ;;  %v2777_v41 = vand.u32 2147483648, %v5649_v11 }
 0x2b2   : > { %v2567_v38 = vpop.f32.mrf.mxu0  ;;  %v5722_v56 = vsel %vm2704_vm5, %v2705_v18, %v2703_v30  ;;  %v2747_v47 = vmul.f32 %v5602_v52, %v5602_v52  ;;  %vm2738_vm4 = vcmp.eq.f32.partialorder %v5702_v51, inf  ;;  %vm2740_vm5 = vcmp.eq.f32.partialorder %v5702_v51, 0.0 }
 0x2b3   : > { %v2756_v23 = vadd.f32 %v2750_v54, %v2744_v27  ;;  %v2568_v53 = vadd.f32 %v2567_v38, %v2544_v24  ;;  %v2713_v16 = vmul.f32 %v2712_v40, %v5641_v59 }
 0x2b4   : > { %v2613_v49 = vpop.f32.mrf.mxu2 }
 0x2b5   : > { %v4006_v26 = vpop.eup %4005  ;;  %v2614_v20 = vadd.f32 %v2613_v49, %v2590_v33  ;;  %v2637_v62 = vpop.f32.mrf.mxu3  ;;  %v5671_v9 = vmax.f32 %v2756_v23, 1e-08 }
 0x2b6   : > { %v2768_v32 = vmul.f32 %v4006_v26, %v5649_v11  ;;  %v2591_v43 = vpop.f32.mrf.mxu1  ;;  %v5678_v21 = vpop.eup %4007 }
 0x2b7   : > { %v2638_v60 = vadd.f32 %v2637_v62, %v2614_v20  ;;  %4009 = vrsqrt.f32 %v5671_v9  ;;  %v2592_v15 = vadd.f32 %v2591_v43, %v2568_v53  ;;  %v2720_v42 = vmul.f32 %v5678_v21, %v5652_v3 }
 0x2b8   : > { %v2769_v5 = vmul.f32 %v4006_v26, %v2768_v32  ;;  %4011 = vlog2.f32 %v2682_v29  ;;  %vm2786_vm10 = vcmp.eq.f32.partialorder %v5671_v9, inf  ;;  %vm2788_vm11 = vcmp.eq.f32.partialorder %v5671_v9, 0.0 }
 0x2b9   : > { %v2751_v48 = vmul.f32 %v2638_v60, %v2638_v60  ;;  %4013 = vlog2.f32 %v5688_v13  ;;  %v2721_v54 = vmul.f32 %v5678_v21, %v2720_v42 }
 0x2ba   : > { %v2770_v34 = vmul.f32 0.5, %v2769_v5  ;;  %v2570_v39 = vpop.f32.mrf.mxu0 }
 0x2bb   : > { %v2757_v7 = vadd.f32 %v2751_v48, %v2745_v55  ;;  %v2571_v27 = vadd.f32 %v2570_v39, %v2547_v31  ;;  %v2722_v43 = vmul.f32 0.5, %v2721_v54 }
 0x2bc   : > { %v2771_v22 = vsub.f32 1.5, %v2770_v34  ;;  %v2615_v8 = vpop.f32.mrf.mxu2 }
 0x2bd   : > { %v5695_v25 = vmax.f32 %v2757_v7, 1e-08  ;;  %v2616_v44 = vadd.f32 %v2615_v8, %v2592_v15  ;;  %v2639_v50 = vpop.f32.mrf.mxu3  ;;  %v4010_v46 = vpop.eup %4009  ;;  %v2723_v42 = vsub.f32 1.5, %v2722_v43 }
 0x2be   : > { %v2772_v58 = vmul.f32 %v4006_v26, %v2771_v22  ;;  %v2780_v36 = vmul.f32 %v4010_v46, %v5671_v9  ;;  %v2594_v49 = vpop.f32.mrf.mxu1  ;;  %v2525_v26 = vadd.f32 %v5633_v12, %v2501_v63  ;;  %v4012_v35 = vpop.eup %4011  ;;  %v2789_v22 = vand.u32 2147483648, %v5671_v9 }
 0x2bf   : > { %4015 = vrsqrt.f32 %v5695_v25  ;;  %v2640_v45 = vadd.f32 %v2639_v50, %v2616_v44  ;;  %v2595_v38 = vadd.f32 %v2594_v49, %v2571_v27  ;;  %v4014_v10 = vpop.eup %4013  ;;  %v5730_v55 = vmul.f32 0.6931472, %v4012_v35 }
 0x2c0   : > { %v2773_v33 = vmul.f32 %v2772_v58, %v5649_v11  ;;  %v2781_v23 = vmul.f32 %v4010_v46, %v2780_v36  ;;  %v2549_v0 = vadd.f32 %v5636_v6, %v2525_v26  ;;  %v2715_v6 = vsel %vm2714_vm6, %v5641_v59, %v2713_v16 }
 0x2c1   : > { %v2752_v24 = vmul.f32 %v2640_v45, %v2640_v45  ;;  %vm2798_vm12 = vcmp.eq.f32.partialorder %v5695_v25, inf  ;;  %vm2800_vm13 = vcmp.eq.f32.partialorder %v5695_v25, 0.0 }
 0x2c2   : > { %v2775_v37 = vsel %vm2774_vm7, %v5649_v11, %v2773_v33  ;;  %v2782_v62 = vmul.f32 0.5, %v2781_v23  ;;  %v2572_v53 = vpop.f32.mrf.mxu0 }
 0x2c3   : > { %v2778_v20 = vsel %vm2776_vm8, %v2777_v41, %v2775_v37  ;;  %v2758_v32 = vadd.f32 %v2752_v24, %v2746_v2  ;;  %v2573_v34 = vadd.f32 %v2572_v53, %v2549_v0 }
 0x2c4   : > { %v2839_v14 = vsub.f32 %v2778_v20, %v2682_v29  ;;  %4017 = vlog2.f32 %v2778_v20  ;;  %v2618_v12 = vpop.f32.mrf.mxu2  ;;  %v2783_v11 = vsub.f32 1.5, %v2782_v62  ;;  %v5734_v29 = vmul.f32 0.6931472, %v4014_v10 }
 0x2c5   : > { %v4016_v4 = vpop.eup %4015  ;;  %4019 = vrsqrt.f32 %v5702_v51  ;;  %v2619_v60 = vadd.f32 %v2618_v12, %v2595_v38  ;;  %v5728_v57 = vmax.f32 %v2758_v32, 1e-08  ;;  %v2642_v1 = vpop.f32.mrf.mxu3  ;;  %v2856_v52 = vmul.f32 %v2778_v20, %v2778_v20 }
 0x2c6   : > { %v2792_v5 = vmul.f32 %v4016_v4, %v5695_v25  ;;  %4021 = vlog2.f32 %v5722_v56  ;;  %v2784_v17 = vmul.f32 %v4010_v46, %v2783_v11  ;;  %v2596_v46 = vpop.f32.mrf.mxu1  ;;  %v2845_v49 = vmul.f32 %v2839_v14, %v2839_v14 }
 0x2c7   : > { %v2643_v48 = vadd.f32 %v2642_v1, %v2619_v60  ;;  %4023 = vrsqrt.f32 %v5728_v57  ;;  %v2597_v40 = vadd.f32 %v2596_v46, %v2573_v34  ;;  %v2801_v38 = vand.u32 2147483648, %v5695_v25 }
 0x2c8   : > { %v2793_v61 = vmul.f32 %v4016_v4, %v2792_v5  ;;  %v2785_v7 = vmul.f32 %v2784_v17, %v5671_v9  ;;  %v2724_v32 = vmul.f32 %v5678_v21, %v2723_v42  ;;  %vm2810_vm15 = vcmp.eq.f32.partialorder %v5728_v57, inf }
 0x2c9   : > { %v2753_v15 = vmul.f32 %v2643_v48, %v2643_v48  ;;  %vm2812_vm0 = vcmp.eq.f32.partialorder %v5728_v57, 0.0 }
 0x2ca   : > { %v4018_v18 = vpop.eup %4017  ;;  %v2794_v8 = vmul.f32 0.5, %v2793_v61  ;;  %v2787_v50 = vsel %vm2786_vm10, %v5671_v9, %v2785_v7 }
 0x2cb   : > { %v5745_v31 = vpop.eup %4019  ;;  %v2880_v44 = vmul.f32 0.6931472, %v4018_v18  ;;  %v2759_v39 = vadd.f32 %v2753_v15, %v2747_v47  ;;  %v2790_v30 = vsel %vm2788_vm11, %v2789_v22, %v2787_v50 }
 0x2cc   : > { %v2795_v58 = vsub.f32 1.5, %v2794_v8  ;;  %v2620_v36 = vpop.f32.mrf.mxu2  ;;  %v4022_v27 = vpop.eup %4021  ;;  %v2840_v63 = vsub.f32 %v2790_v30, %v5688_v13  ;;  %v2857_v33 = vmul.f32 %v2790_v30, %v2790_v30  ;;  %4025 = vlog2.f32 %v2790_v30 }
 0x2cd   : > { %v2891_v54 = vsub.f32 %v5730_v55, %v2880_v44  ;;  %v4024_v45 = vpop.eup %4023  ;;  %v2732_v2 = vmul.f32 %v5745_v31, %v5702_v51  ;;  %v5753_v9 = vmax.f32 %v2759_v39, 1e-08  ;;  %v2621_v23 = vadd.f32 %v2620_v36, %v2597_v40  ;;  %v2644_v20 = vpop.f32.mrf.mxu3 }
 0x2ce   : > { %v2796_v41 = vmul.f32 %v4016_v4, %v2795_v58  ;;  %v2846_v26 = vmul.f32 %v2840_v63, %v2840_v63  ;;  %v2862_v37 = vadd.f32 %v2857_v33, %v2856_v52  ;;  %v2804_v24 = vmul.f32 %v4024_v45, %v5728_v57 }
 0x2cf   : > { %v2718_v13 = vsel %vm2716_vm9, %v2717_v28, %v2715_v6  ;;  %4027 = vrsqrt.f32 %v5753_v9  ;;  %v2645_v14 = vadd.f32 %v2644_v20, %v2621_v23  ;;  %v2733_v12 = vmul.f32 %v5745_v31, %v2732_v2 }
 0x2d0   : > { %v2797_v35 = vmul.f32 %v2796_v41, %v5695_v25  ;;  %v2851_v62 = vadd.f32 %v2846_v26, %v2845_v49  ;;  %v2805_v10 = vmul.f32 %v4024_v45, %v2804_v24  ;;  %v2748_v28 = vmul.f32 %v5604_v19, %v5604_v19 }
 0x2d1   : > { %v2754_v60 = vmul.f32 %v2645_v14, %v2645_v14  ;;  %v2734_v55 = vmul.f32 0.5, %v2733_v12  ;;  %v2897_v6 = vand.u32 2147483647, %v2891_v54  ;;  %v2872_v15 = vmul.f32 0.6931472, %v4022_v27 }
 0x2d2   : > { %v2799_v4 = vsel %vm2798_vm12, %v5695_v25, %v2797_v35  ;;  %v4026_v59 = vpop.eup %4025  ;;  %v2806_v11 = vmul.f32 0.5, %v2805_v10  ;;  %v2813_v44 = vand.u32 2147483648, %v5728_v57  ;;  %v2729_v54 = vand.u32 2147483648, %v5652_v3 }
 0x2d3   : > { %v2802_v16 = vsel %vm2800_vm13, %v2801_v38, %v2799_v4  ;;  %v2882_v53 = vmul.f32 0.6931472, %v4026_v59  ;;  %v2760_v5 = vadd.f32 %v2754_v60, %v2748_v28  ;;  %v2735_v22 = vsub.f32 1.5, %v2734_v55 }
 0x2d4   : > { %v2841_v43 = vsub.f32 %v2802_v16, %v5722_v56  ;;  %v2858_v0 = vmul.f32 %v2802_v16, %v2802_v16  ;;  %4029 = vlog2.f32 %v2802_v16  ;;  %v2807_v21 = vsub.f32 1.5, %v2806_v11 }
 0x2d5   : > { %v4028_v1 = vpop.eup %4027  ;;  %v2892_v25 = vsub.f32 %v5734_v29, %v2882_v53  ;;  %4031 = vlog2.f32 %v2718_v13  ;;  %v5774_v34 = vmax.f32 %v2760_v5, 1e-08  ;;  %v2725_v56 = vmul.f32 %v2724_v32, %v5652_v3 }
 0x2d6   : > { %v2847_v17 = vmul.f32 %v2841_v43, %v2841_v43  ;;  %v2863_v48 = vadd.f32 %v2862_v37, %v2858_v0  ;;  %v2808_v19 = vmul.f32 %v4024_v45, %v2807_v21  ;;  %v2816_v61 = vmul.f32 %v4028_v1, %v5753_v9 }
 0x2d7   : > { %v2898_v47 = vand.u32 2147483647, %v2892_v25  ;;  %4033 = vrsqrt.f32 %v5774_v34  ;;  %v2727_v52 = vsel %vm2726_vm14, %v5652_v3, %v2725_v56  ;;  %v2736_v45 = vmul.f32 %v5745_v31, %v2735_v22 }
 0x2d8   : > { %v2852_v7 = vadd.f32 %v2851_v62, %v2847_v17  ;;  %v2809_v18 = vmul.f32 %v2808_v19, %v5728_v57  ;;  %v2817_v42 = vmul.f32 %v4028_v1, %v2816_v61  ;;  %v2730_v23 = vsel %vm2728_vm1, %v2729_v54, %v2727_v52 }
 0x2d9   : > { %v2903_v8 = vadd.f32 %v2898_v47, %v2897_v6  ;;  %v2737_v3 = vmul.f32 %v2736_v45, %v5702_v51  ;;  %vm2822_vm2 = vcmp.eq.f32.partialorder %v5753_v9, inf  ;;  %v2825_v31 = vand.u32 2147483648, %v5753_v9 }
 0x2da   : > { %v4030_v29 = vpop.eup %4029  ;;  %v2811_v39 = vsel %vm2810_vm15, %v5728_v57, %v2809_v18  ;;  %v2818_v46 = vmul.f32 0.5, %v2817_v42  ;;  %vm2824_vm3 = vcmp.eq.f32.partialorder %v5753_v9, 0.0  ;;  %v2741_v11 = vand.u32 2147483648, %v5702_v51  ;;  %v2908_v42 = vld [vmem:[%s4459_s26] sm:$0xff] }
 0x2db   : > { %v2884_v50 = vmul.f32 0.6931472, %v4030_v29  ;;  %v2814_v30 = vsel %vm2812_vm0, %v2813_v44, %v2811_v39  ;;  %v4032_v58 = vpop.eup %4031  ;;  %v2739_v28 = vsel %vm2738_vm4, %v5702_v51, %v2737_v3  ;;  %vm2834_vm6 = vcmp.eq.f32.partialorder %v5774_v34, inf }
 0x2dc   : > { %v2842_v36 = vsub.f32 %v2814_v30, %v2718_v13  ;;  %v2859_v27 = vmul.f32 %v2814_v30, %v2814_v30  ;;  %4035 = vlog2.f32 %v2814_v30  ;;  %v2819_v63 = vsub.f32 1.5, %v2818_v46 }
 0x2dd   : > { %v2893_v40 = vsub.f32 %v2872_v15, %v2884_v50  ;;  %v4034_v33 = vpop.eup %4033  ;;  %v2874_v13 = vmul.f32 0.6931472, %v4032_v58  ;;  %4037 = vlog2.f32 %v2730_v23  ;;  %v2742_v21 = vsel %vm2740_vm5, %v2741_v11, %v2739_v28  ;;  %v3755_v58 = vld [vmem:[%s4459_s26 + $0x8] sm:$0xff] }
 0x2de   : > { %v2848_v2 = vmul.f32 %v2842_v36, %v2842_v36  ;;  %v2864_v41 = vadd.f32 %v2863_v48, %v2859_v27  ;;  %v2820_v49 = vmul.f32 %v4028_v1, %v2819_v63  ;;  %v2828_v26 = vmul.f32 %v4034_v33, %v5774_v34  ;;  %v3757_v36 = vld [vmem:[%s4459_s26 + $0x10] sm:$0xff] }
 0x2df   : > { %v2899_v57 = vand.u32 2147483647, %v2893_v40  ;;  %v2837_v48 = vand.u32 2147483648, %v5774_v34  ;;  %vm2836_vm7 = vcmp.eq.f32.partialorder %v5774_v34, 0.0 }
 0x2e0   : > { %v2853_v24 = vadd.f32 %v2852_v7, %v2848_v2  ;;  %v2821_v35 = vmul.f32 %v2820_v49, %v5753_v9  ;;  %v2829_v20 = vmul.f32 %v4034_v33, %v2828_v26 }
 0x2e1   : > { %v2904_v37 = vadd.f32 %v2903_v8, %v2899_v57 }
 0x2e2   : > { %v4036_v62 = vpop.eup %4035  ;;  %v2823_v10 = vsel %vm2822_vm2, %v5753_v9, %v2821_v35  ;;  %v2830_v14 = vmul.f32 0.5, %v2829_v20 }
 0x2e3   : > { %v2886_v38 = vmul.f32 0.6931472, %v4036_v62  ;;  %v2826_v32 = vsel %vm2824_vm3, %v2825_v31, %v2823_v10  ;;  %v4038_v0 = vpop.eup %4037 }
 0x2e4   : > { %v2843_v4 = vsub.f32 %v2826_v32, %v2730_v23  ;;  %v2860_v59 = vmul.f32 %v2826_v32, %v2826_v32  ;;  %4039 = vlog2.f32 %v2826_v32  ;;  %v2831_v16 = vsub.f32 1.5, %v2830_v14 }
 0x2e5   : > { %v2894_v12 = vsub.f32 %v2874_v13, %v2886_v38  ;;  %v2876_v17 = vmul.f32 0.6931472, %v4038_v0  ;;  %4041 = vlog2.f32 %v2742_v21 }
 0x2e6   : > { %v2849_v53 = vmul.f32 %v2843_v4, %v2843_v4  ;;  %v2865_v43 = vadd.f32 %v2864_v41, %v2860_v59  ;;  %v2832_v9 = vmul.f32 %v4034_v33, %v2831_v16 }
 0x2e7   : > { %v2900_v60 = vand.u32 2147483647, %v2894_v12 }
 0x2e8   : > { %v2854_v1 = vadd.f32 %v2853_v24, %v2849_v53  ;;  %v2833_v55 = vmul.f32 %v2832_v9, %v5774_v34 }
 0x2e9   : > { %v2905_v5 = vadd.f32 %v2904_v37, %v2900_v60 }
 0x2ea   : > { %v4040_v25 = vpop.eup %4039  ;;  %v2835_v61 = vsel %vm2834_vm6, %v5774_v34, %v2833_v55 }
 0x2eb   : > { %v2888_v19 = vmul.f32 0.6931472, %v4040_v25  ;;  %v2838_v51 = vsel %vm2836_vm7, %v2837_v48, %v2835_v61  ;;  %v4042_v29 = vpop.eup %4041 }
 0x2ec   : > { %v2844_v6 = vsub.f32 %v2838_v51, %v2742_v21  ;;  %v2861_v47 = vmul.f32 %v2838_v51, %v2838_v51  ;;  %4043 = vlog2.f32 %v2838_v51  ;;  %v2878_v34 = vmul.f32 0.6931472, %v4042_v29 }
 0x2ed   : > { %v2895_v56 = vsub.f32 %v2876_v17, %v2888_v19 }
 0x2ee   : > { %v2850_v15 = vmul.f32 %v2844_v6, %v2844_v6  ;;  %v2866_v18 = vadd.f32 %v2865_v43, %v2861_v47 }
 0x2ef   : > { %v2901_v7 = vand.u32 2147483647, %v2895_v56 }
 0x2f0   : > { %v2855_v8 = vadd.f32 %v2854_v1, %v2850_v15  ;;  %v2913_v40 = vadd.f32 %v3755_v58, %v2866_v18 }
 0x2f1   : > { %v2906_v22 = vadd.f32 %v2905_v5, %v2901_v7 }
 0x2f2   : > { %v4044_v44 = vpop.eup %4043  ;;  %v2909_v50 = vadd.f32 %v2908_v42, %v2855_v8  ;;  %3756 = vst [vmem:[%s4459_s26 + $0x8] sm:$0xff] %v2913_v40 }
 0x2f3   : > { %v2890_v39 = vmul.f32 0.6931472, %v4044_v44 }
 0x2f4   : > { %2910 = vst [vmem:[%s4459_s26] sm:$0xff] %v2909_v50 }
 0x2f5   : > { %v2896_v46 = vsub.f32 %v2878_v34, %v2890_v39 }
 0x2f7   : > { %v2902_v52 = vand.u32 2147483647, %v2896_v46 }
 0x2f9   : > { %v2907_v30 = vadd.f32 %v2906_v22, %v2902_v52 }
 0x2fb   : > { %v2917_v27 = vadd.f32 %v3757_v36, %v2907_v30 }
 0x2fd   : > { %3758 = vst [vmem:[%s4459_s26 + $0x10] sm:$0xff] %v2917_v27 }
 0x2fe PF: > { %s13_s18 = sadd.s32 1, %s4099_s18   ;;  %s6112_s12 = smov %s4079_s13 }
 0x2ff   : > { %p10_p13 = scmp.ge.s32.totalorder %s13_s18, 12   ;;  %s6113_s13 = smov %s4171_s23 }
 0x300   : > { %s6114_s14 = smov %s4091_s16  ;;  %s6115_s15 = smov %s4095_s17 }
 0x301   : > { %s6116_s16 = smov %s6119_s19  ;;  %s6117_s17 = smov %s6123_s20 }
 0x302   :  { %12 = sbr.rel (!%p10_p13) target bundleno = 4 (0x4), region = 117 }

// kernel: loss_function.4
= control target key start
LH: loop header
LB: loop body
LE: loop exit
PB: predicated region body
PF: predicated region fallthrough
CT: control target
= control target key end

     0   :  { %s353_s0 = inlined_call_operand.vmem [shape: f32[64,128], index: 0, kind: input, shape index: {}]   ;;  %s354_s1 = inlined_call_operand.vmem [shape: f32[64,128], index: 1, kind: input, shape index: {}]   ;;  %s355_s2 = inlined_call_operand.vmem [shape: f32[1,8,128], index: 2, kind: output, shape index: {}]  }
   0x1   :  { %v11_v0 = vld [vmem:[%s353_s0] sm:$0xff]  ;;  %v12_v1 = vld [vmem:[%s353_s0 + $0x8] sm:$0xff]  ;;  %v13_v2 = vld [vmem:[%s353_s0 + $0x10] sm:$0xff] }
   0x2   :  { %v14_v3 = vld [vmem:[%s353_s0 + $0x18] sm:$0xff]  ;;  %v15_v4 = vld [vmem:[%s353_s0 + $0x20] sm:$0xff]  ;;  %v16_v5 = vld [vmem:[%s353_s0 + $0x28] sm:$0xff] }
   0x3   :  { %v17_v6 = vld [vmem:[%s353_s0 + $0x30] sm:$0xff]  ;;  %v18_v7 = vld [vmem:[%s353_s0 + $0x38] sm:$0xff]  ;;  %v19_v8 = vld [vmem:[%s354_s1] sm:$0xff] }
   0x4   :  { %v20_v9 = vld [vmem:[%s354_s1 + $0x8] sm:$0xff]  ;;  %v21_v10 = vld [vmem:[%s354_s1 + $0x10] sm:$0xff]  ;;  %v22_v11 = vld [vmem:[%s354_s1 + $0x18] sm:$0xff]  ;;  %v27_v12 = vsub.f32 %v11_v0, %v19_v8 }
   0x5   :  { %v23_v13 = vld [vmem:[%s354_s1 + $0x20] sm:$0xff]  ;;  %v24_v14 = vld [vmem:[%s354_s1 + $0x28] sm:$0xff]  ;;  %v25_v15 = vld [vmem:[%s354_s1 + $0x30] sm:$0xff]  ;;  %v28_v16 = vsub.f32 %v12_v1, %v20_v9  ;;  %v29_v17 = vsub.f32 %v13_v2, %v21_v10  ;;  %v30_v18 = vsub.f32 %v14_v3, %v22_v11 }
   0x6   :  { %v26_v19 = vld [vmem:[%s354_s1 + $0x38] sm:$0xff]  ;;  %v31_v20 = vsub.f32 %v15_v4, %v23_v13  ;;  %v32_v21 = vsub.f32 %v16_v5, %v24_v14  ;;  %v33_v22 = vsub.f32 %v17_v6, %v25_v15  ;;  %v270_v23 = vand.u32 2147483647, %v27_v12 }
   0x7   :  { %v34_v24 = vsub.f32 %v18_v7, %v26_v19  ;;  %v272_v25 = vand.u32 2147483647, %v28_v16  ;;  %v274_v26 = vand.u32 2147483647, %v29_v17  ;;  %v276_v27 = vand.u32 2147483647, %v30_v18 }
   0x8   :  { %v278_v28 = vand.u32 2147483647, %v31_v20  ;;  %v280_v29 = vand.u32 2147483647, %v32_v21  ;;  %v282_v30 = vand.u32 2147483647, %v33_v22 }
   0x9   :  { %v284_v31 = vand.u32 2147483647, %v34_v24  ;;  %v43_v32 = vmul.f32 -2.0, %v270_v23  ;;  %v44_v33 = vmul.f32 -2.0, %v272_v25  ;;  %v45_v34 = vmul.f32 -2.0, %v274_v26 }
   0xa   :  { %v46_v35 = vmul.f32 -2.0, %v276_v27  ;;  %v47_v36 = vmul.f32 -2.0, %v278_v28  ;;  %v48_v37 = vmul.f32 -2.0, %v280_v29  ;;  %v49_v40 = vmul.f32 -2.0, %v282_v30 }
   0xb   :  { %v51_v38 = vmul.f32 1.442695, %v43_v32  ;;  %v53_v39 = vmul.f32 1.442695, %v44_v33  ;;  %v55_v41 = vmul.f32 1.442695, %v45_v34 }
   0xc   :  { %v57_v42 = vmul.f32 1.442695, %v46_v35  ;;  %v50_v43 = vmul.f32 -2.0, %v284_v31  ;;  %v59_v44 = vmul.f32 1.442695, %v47_v36 }
   0xd   :  { %175 = vpow2.f32 %v51_v38  ;;  %v61_v45 = vmul.f32 1.442695, %v48_v37  ;;  %v63_v46 = vmul.f32 1.442695, %v49_v40 }
   0xe   :  { %177 = vpow2.f32 %v53_v39  ;;  %v65_v47 = vmul.f32 1.442695, %v50_v43 }
   0xf   :  { %179 = vpow2.f32 %v55_v41 }
  0x10   :  { %181 = vpow2.f32 %v57_v42 }
  0x11   :  { %183 = vpow2.f32 %v59_v44 }
  0x12   :  { %185 = vpow2.f32 %v61_v45 }
  0x13   :  { %v176_v48 = vpop.eup %175  ;;  %187 = vpow2.f32 %v63_v46 }
  0x14   :  { %v178_v49 = vpop.eup %177  ;;  %v67_v50 = vadd.f32 1.0, %v176_v48  ;;  %v70_v51 = vmul.f32 -0.5, %v176_v48  ;;  %v73_v52 = vand.u32 2147483647, %v176_v48  ;;  %189 = vpow2.f32 %v65_v47 }
  0x15   :  { %v180_v53 = vpop.eup %179  ;;  %v76_v54 = vadd.f32 1.0, %v178_v49  ;;  %v79_v55 = vmul.f32 -0.5, %v178_v49  ;;  %v82_v57 = vand.u32 2147483647, %v178_v49 }
  0x16   :  { %v182_v56 = vpop.eup %181  ;;  %191 = vlog2.f32 %v67_v50  ;;  %v85_v58 = vadd.f32 1.0, %v180_v53  ;;  %v71_v60 = vadd.f32 1.0, %v70_v51  ;;  %v88_v62 = vmul.f32 -0.5, %v180_v53 }
  0x17   :  { %v184_v59 = vpop.eup %183  ;;  %193 = vlog2.f32 %v76_v54  ;;  %v80_v61 = vadd.f32 1.0, %v79_v55  ;;  %vm294_vm0 = vcmp.lt.f32.partialorder %v73_v52, 0.0004427343  ;;  %v94_v0 = vadd.f32 1.0, %v182_v56 }
  0x18   :  { %195 = vlog2.f32 %v85_v58  ;;  %v186_v1 = vpop.eup %185  ;;  %v89_v2 = vadd.f32 1.0, %v88_v62  ;;  %v91_v3 = vand.u32 2147483647, %v180_v53  ;;  %v97_v4 = vmul.f32 -0.5, %v182_v56 }
  0x19   :  { %v100_v5 = vand.u32 2147483647, %v182_v56  ;;  %v298_v6 = vpop.eup %187  ;;  %vm300_vm1 = vcmp.lt.f32.partialorder %v82_v57, 0.0004427343  ;;  %197 = vlog2.f32 %v94_v0  ;;  %v103_v8 = vadd.f32 1.0, %v184_v59 }
  0x1a   :  { %v106_v9 = vmul.f32 -0.5, %v184_v59  ;;  %v304_v10 = vpop.eup %189  ;;  %v72_v11 = vmul.f32 %v176_v48, %v71_v60  ;;  %v81_v12 = vmul.f32 %v178_v49, %v80_v61  ;;  %v98_v13 = vadd.f32 1.0, %v97_v4 }
  0x1b   :  { %v109_v14 = vand.u32 2147483647, %v184_v59  ;;  %199 = vlog2.f32 %v103_v8  ;;  %v112_v17 = vadd.f32 1.0, %v186_v1  ;;  %v115_v18 = vmul.f32 -0.5, %v186_v1 }
  0x1c   :  { %v192_v15 = vpop.eup %191  ;;  %v107_v16 = vadd.f32 1.0, %v106_v9  ;;  %v90_v21 = vmul.f32 %v180_v53, %v89_v2  ;;  %vm306_vm2 = vcmp.lt.f32.partialorder %v91_v3, 0.0004427343  ;;  %vm310_vm3 = vcmp.lt.f32.partialorder %v100_v5, 0.0004427343 }
  0x1d   :  { %v194_v19 = vpop.eup %193  ;;  %v69_v20 = vmul.f32 0.6931472, %v192_v15  ;;  %vm314_vm4 = vcmp.lt.f32.partialorder %v109_v14, 0.0004427343  ;;  %201 = vlog2.f32 %v112_v17  ;;  %v116_v35 = vadd.f32 1.0, %v115_v18 }
  0x1e   :  { %v196_v32 = vpop.eup %195  ;;  %v78_v33 = vmul.f32 0.6931472, %v194_v19  ;;  %v99_v37 = vmul.f32 %v182_v56, %v98_v13  ;;  %v118_v38 = vand.u32 2147483647, %v186_v1  ;;  %v121_v39 = vadd.f32 1.0, %v298_v6 }
  0x1f   :  { %v87_v36 = vmul.f32 0.6931472, %v196_v32  ;;  %v198_v40 = vpop.eup %197  ;;  %v75_v41 = vsel %vm294_vm0, %v72_v11, %v69_v20  ;;  %v108_v43 = vmul.f32 %v184_v59, %v107_v16  ;;  %v124_v44 = vmul.f32 -0.5, %v298_v6 }
  0x20   :  { %v84_v42 = vsel %vm300_vm1, %v81_v12, %v78_v33  ;;  %v96_v45 = vmul.f32 0.6931472, %v198_v40  ;;  %v117_v46 = vmul.f32 %v186_v1, %v116_v35  ;;  %203 = vlog2.f32 %v121_v39 }
  0x21   :  { %v130_v47 = vadd.f32 1.0, %v304_v10  ;;  %v200_v48 = vpop.eup %199  ;;  %v93_v49 = vsel %vm306_vm2, %v90_v21, %v87_v36  ;;  %v125_v50 = vadd.f32 1.0, %v124_v44  ;;  %v127_v51 = vand.u32 2147483647, %v298_v6 }
  0x22   :  { %v133_v52 = vmul.f32 -0.5, %v304_v10  ;;  %v102_v53 = vsel %vm310_vm3, %v99_v37, %v96_v45  ;;  %v105_v54 = vmul.f32 0.6931472, %v200_v48  ;;  %v139_v55 = vadd.f32 %v75_v41, %v270_v23 }
  0x23   :  { %205 = vlog2.f32 %v130_v47  ;;  %v202_v56 = vpop.eup %201  ;;  %vm332_vm5 = vcmp.lt.f32.partialorder %v118_v38, 0.0004427343  ;;  %v136_v59 = vand.u32 2147483647, %v304_v10  ;;  %v140_v60 = vadd.f32 %v84_v42, %v272_v25 }
  0x24   :  { %v134_v58 = vadd.f32 1.0, %v133_v52  ;;  %v111_v61 = vsel %vm314_vm4, %v108_v43, %v105_v54  ;;  %v114_v62 = vmul.f32 0.6931472, %v202_v56  ;;  %v141_v63 = vadd.f32 %v93_v49, %v274_v26 }
  0x25   :  { %v142_v0 = vadd.f32 %v102_v53, %v276_v27  ;;  %v126_v23 = vmul.f32 %v298_v6, %v125_v50  ;;  %v143_v1 = vadd.f32 %v111_v61, %v278_v28  ;;  %v167_v2 = vadd.f32 -0.6931472, %v139_v55 }
  0x26   :  { %v168_v3 = vadd.f32 -0.6931472, %v140_v60  ;;  %v204_v4 = vpop.eup %203  ;;  %v120_v5 = vsel %vm332_vm5, %v117_v46, %v114_v62  ;;  %vm128_vm6 = vcmp.lt.f32.partialorder %v127_v51, 0.0004427343  ;;  %v135_v25 = vmul.f32 %v304_v10, %v134_v58 }
  0x27   :  { %v169_v7 = vadd.f32 -0.6931472, %v141_v63  ;;  %v123_v8 = vmul.f32 0.6931472, %v204_v4  ;;  %v144_v9 = vadd.f32 %v120_v5, %v280_v29  ;;  %v170_v26 = vadd.f32 -0.6931472, %v142_v0 }
  0x28   :  { %v155_v11 = vadd.f32 %v168_v3, %v167_v2  ;;  %vm137_vm7 = vcmp.lt.f32.partialorder %v136_v59, 0.0004427343  ;;  %v171_v28 = vadd.f32 -0.6931472, %v143_v1 }
  0x29   :  { %v206_v27 = vpop.eup %205  ;;  %v129_v6 = vsel %vm128_vm6, %v126_v23, %v123_v8  ;;  %v172_v16 = vadd.f32 -0.6931472, %v144_v9 }
  0x2a   :  { %v132_v12 = vmul.f32 0.6931472, %v206_v27  ;;  %v156_v13 = vadd.f32 %v169_v7, %v155_v11  ;;  %v145_v14 = vadd.f32 %v129_v6, %v282_v30 }
  0x2c   :  { %v138_v15 = vsel %vm137_vm7, %v135_v25, %v132_v12  ;;  %v157_v17 = vadd.f32 %v170_v26, %v156_v13  ;;  %v173_v10 = vadd.f32 -0.6931472, %v145_v14 }
  0x2d   :  { %v146_v18 = vadd.f32 %v138_v15, %v284_v31 }
  0x2e   :  { %v158_v19 = vadd.f32 %v171_v28, %v157_v17 }
  0x2f   :  { %v174_v20 = vadd.f32 -0.6931472, %v146_v18 }
  0x30   :  { %v159_v21 = vadd.f32 %v172_v16, %v158_v19 }
  0x32   :  { %v160_v29 = vadd.f32 %v173_v10, %v159_v21 }
  0x34   :  { %v161_v22 = vadd.f32 %v174_v20, %v160_v29 }
  0x36   :  { %162 = vst [vmem:[%s355_s2] sm:$0xff] %v161_v22 }

// kernel: loss_function.7
= control target key start
LH: loop header
LB: loop body
LE: loop exit
PB: predicated region body
PF: predicated region fallthrough
CT: control target
= control target key end

     0   :  { %s3330_s12 = smov 0   ;;  %s3332_s13 = smov 0   ;;  %s4728_s0 = inlined_call_operand.vmem [shape: bf16[2,96,512], index: 0, kind: input, shape index: {}]   ;;  %s4729_s1 = inlined_call_operand.vmem [shape: bf16[2,96,512], index: 1, kind: input, shape index: {}]   ;;  %s4730_s2 = inlined_call_operand.vmem [shape: bf16[512,768], index: 2, kind: input, shape index: {}]   ;;  %s4731_s3 = inlined_call_operand.vmem [shape: f32[6,8,128], index: 3, kind: output, shape index: {}]  }
   0x1   :  { %s3334_s14 = smov 0   ;;  %s3336_s15 = smov 0  }
   0x2   :  { %s3338_s16 = smov 0   ;;  %s3340_s17 = smov 0  }
   0x3   :  { %s3342_s18 = smov 0  }
   0x4 LB: > { %s25_s19 = sadd.s32 1, %s3299_s16  ;;  %s32_s20 = sadd.s32 1, %s3303_s17  ;;  %s3307_s18 = sphi %s3342_s18, %s13_s18   ;;  %s3303_s17 = sphi %s3340_s17, %s4812_s17   ;;  %s3299_s16 = sphi %s3338_s16, %s4811_s16   ;;  %s3295_s15 = sphi %s3336_s15, %s4810_s15   ;;  %s3291_s14 = sphi %s3334_s14, %s4809_s14   ;;  %s3287_s13 = sphi %s3332_s13, %s4808_s13   ;;  %s3283_s12 = sphi %s3330_s12, %s4807_s12  }
   0x5   : > { %p26_p0 = scmp.ge.s32.totalorder %s25_s19, 3  ;;  %s95_s21 = sadd.s32 1, %s3287_s13 }
   0x6   : > { %p102_p1 = scmp.ne.s32.totalorder %s3287_s13, %s3283_s12  ;;  %p103_p2 = scmp.eq.s32.totalorder %s3307_s18, 0 }
   0x7   : > { %s4814_s19 = smov (%p26_p0, %s25_s19), 0  ;;  %s4816_s20 = smov (!%p26_p0, %s32_s20), %s3303_s17 }
   0x8   : > { %s92_s22 = ssub.s32 %s3299_s16, %s4814_s19  ;;  %p104_p3 = por %p103_p2, %p102_p1 }
   0x9   : > { %p34_p4 = scmp.ge.s32.totalorder %s4816_s20, 2  ;;  %p93_p5 = scmp.eq.s32.totalorder %s92_s22, 0 }
   0xa   : > { %p2521_p6 = scmp.ge.s32.totalorder %s3307_s18, 6 }
   0xb   : > { %s4818_s20 = smov (%p34_p4, %s4816_s20), 0 }
   0xc   : > { %s3379_s23 = scalar_select %p93_p5, %s3287_s13, %s95_s21  }
   0xd   : > { %154 = sbr.rel (%p2521_p6) target bundleno = 86 (0x56), region = 16 }
  0x12   : > { %185 = sbr.rel (!%p104_p3) target bundleno = 86 (0x56), region = 28  ;;  %s187_s24 = sand.u32 (%p104_p3), 1, %s3287_s13  }
  0x13   : > { %s2985_s25 = sshll.u32 (%p104_p3), %s3299_s16, 3  ;;  %s2522_s26 = sshll.u32 (%p104_p3), %s187_s24, 9 }
  0x14   : > { %s3387_s29 = scalar_lea.vmem (%p104_p3), %s4730_s2, %s2985_s25  ;;  %s3392_s30 = scalar_lea.vmem (%p104_p3), [#allocation2], %s2522_s26 }
  0x15   : > { %v347_v0 = vld [vmem:[%s3387_s29] sm:$0xff] (%p104_p3)  ;;  %v349_v1 = vld [vmem:[%s3387_s29 + $0x18] sm:$0xff] (%p104_p3)  ;;  %v351_v2 = vld [vmem:[%s3387_s29 + $0x30] sm:$0xff] (%p104_p3) }
  0x16   : > { %348 = vst [vmem:[%s3392_s30] sm:$0xff] (%p104_p3), %v347_v0  ;;  %v353_v3 = vld [vmem:[%s3387_s29 + $0x48] sm:$0xff] (%p104_p3)  ;;  %v355_v4 = vld [vmem:[%s3387_s29 + $0x60] sm:$0xff] (%p104_p3)  ;;  %v357_v5 = vld [vmem:[%s3387_s29 + $0x78] sm:$0xff] (%p104_p3) }
  0x17   : > { %350 = vst [vmem:[%s3392_s30 + $0x8] sm:$0xff] %v349_v1  ;;  %v359_v6 = vld [vmem:[%s3387_s29 + $0x90] sm:$0xff]  ;;  %v361_v7 = vld [vmem:[%s3387_s29 + $0xa8] sm:$0xff]  ;;  %v363_v8 = vld [vmem:[%s3387_s29 + $0xc0] sm:$0xff] }
  0x18   : > { %352 = vst [vmem:[%s3392_s30 + $0x10] sm:$0xff] %v351_v2  ;;  %v365_v9 = vld [vmem:[%s3387_s29 + $0xd8] sm:$0xff]  ;;  %v367_v10 = vld [vmem:[%s3387_s29 + $0xf0] sm:$0xff]  ;;  %v369_v11 = vld [vmem:[%s3387_s29 + $0x108] sm:$0xff] }
  0x19   : > { %354 = vst [vmem:[%s3392_s30 + $0x18] sm:$0xff] %v353_v3  ;;  %v371_v12 = vld [vmem:[%s3387_s29 + $0x120] sm:$0xff]  ;;  %v373_v13 = vld [vmem:[%s3387_s29 + $0x138] sm:$0xff]  ;;  %v375_v14 = vld [vmem:[%s3387_s29 + $0x150] sm:$0xff] }
  0x1a   : > { %356 = vst [vmem:[%s3392_s30 + $0x20] sm:$0xff] %v355_v4  ;;  %v377_v15 = vld [vmem:[%s3387_s29 + $0x168] sm:$0xff]  ;;  %v379_v16 = vld [vmem:[%s3387_s29 + $0x180] sm:$0xff]  ;;  %v381_v17 = vld [vmem:[%s3387_s29 + $0x198] sm:$0xff] }
  0x1b   : > { %358 = vst [vmem:[%s3392_s30 + $0x28] sm:$0xff] %v357_v5  ;;  %v383_v18 = vld [vmem:[%s3387_s29 + $0x1b0] sm:$0xff]  ;;  %v385_v19 = vld [vmem:[%s3387_s29 + $0x1c8] sm:$0xff]  ;;  %v387_v20 = vld [vmem:[%s3387_s29 + $0x1e0] sm:$0xff] }
  0x1c   : > { %360 = vst [vmem:[%s3392_s30 + $0x30] sm:$0xff] %v359_v6  ;;  %v389_v21 = vld [vmem:[%s3387_s29 + $0x1f8] sm:$0xff]  ;;  %v391_v22 = vld [vmem:[%s3387_s29 + $0x210] sm:$0xff]  ;;  %v393_v23 = vld [vmem:[%s3387_s29 + $0x228] sm:$0xff] }
  0x1d   : > { %362 = vst [vmem:[%s3392_s30 + $0x38] sm:$0xff] %v361_v7  ;;  %v395_v24 = vld [vmem:[%s3387_s29 + $0x240] sm:$0xff]  ;;  %v397_v25 = vld [vmem:[%s3387_s29 + $0x258] sm:$0xff]  ;;  %v399_v26 = vld [vmem:[%s3387_s29 + $0x270] sm:$0xff] }
  0x1e   : > { %364 = vst [vmem:[%s3392_s30 + $0x40] sm:$0xff] %v363_v8  ;;  %v401_v27 = vld [vmem:[%s3387_s29 + $0x288] sm:$0xff]  ;;  %v403_v28 = vld [vmem:[%s3387_s29 + $0x2a0] sm:$0xff]  ;;  %v405_v29 = vld [vmem:[%s3387_s29 + $0x2b8] sm:$0xff] }
  0x1f   : > { %366 = vst [vmem:[%s3392_s30 + $0x48] sm:$0xff] %v365_v9  ;;  %v407_v30 = vld [vmem:[%s3387_s29 + $0x2d0] sm:$0xff]  ;;  %v409_v31 = vld [vmem:[%s3387_s29 + $0x2e8] sm:$0xff]  ;;  %v411_v32 = vld [vmem:[%s3387_s29 + $0x300] sm:$0xff] }
  0x20   : > { %368 = vst [vmem:[%s3392_s30 + $0x50] sm:$0xff] %v367_v10  ;;  %v413_v33 = vld [vmem:[%s3387_s29 + $0x318] sm:$0xff]  ;;  %v415_v34 = vld [vmem:[%s3387_s29 + $0x330] sm:$0xff]  ;;  %v417_v35 = vld [vmem:[%s3387_s29 + $0x348] sm:$0xff] }
  0x21   : > { %370 = vst [vmem:[%s3392_s30 + $0x58] sm:$0xff] %v369_v11  ;;  %v419_v36 = vld [vmem:[%s3387_s29 + $0x360] sm:$0xff]  ;;  %v421_v37 = vld [vmem:[%s3387_s29 + $0x378] sm:$0xff]  ;;  %v423_v38 = vld [vmem:[%s3387_s29 + $0x390] sm:$0xff] }
  0x22   : > { %372 = vst [vmem:[%s3392_s30 + $0x60] sm:$0xff] %v371_v12  ;;  %v425_v39 = vld [vmem:[%s3387_s29 + $0x3a8] sm:$0xff]  ;;  %v427_v40 = vld [vmem:[%s3387_s29 + $0x3c0] sm:$0xff]  ;;  %v429_v41 = vld [vmem:[%s3387_s29 + $0x3d8] sm:$0xff] }
  0x23   : > { %374 = vst [vmem:[%s3392_s30 + $0x68] sm:$0xff] %v373_v13  ;;  %v431_v42 = vld [vmem:[%s3387_s29 + $0x3f0] sm:$0xff]  ;;  %v433_v43 = vld [vmem:[%s3387_s29 + $0x408] sm:$0xff]  ;;  %v435_v44 = vld [vmem:[%s3387_s29 + $0x420] sm:$0xff] }
  0x24   : > { %376 = vst [vmem:[%s3392_s30 + $0x70] sm:$0xff] %v375_v14  ;;  %v437_v45 = vld [vmem:[%s3387_s29 + $0x438] sm:$0xff]  ;;  %v439_v46 = vld [vmem:[%s3387_s29 + $0x450] sm:$0xff]  ;;  %v441_v47 = vld [vmem:[%s3387_s29 + $0x468] sm:$0xff] }
  0x25   : > { %378 = vst [vmem:[%s3392_s30 + $0x78] sm:$0xff] %v377_v15  ;;  %v443_v48 = vld [vmem:[%s3387_s29 + $0x480] sm:$0xff]  ;;  %v445_v49 = vld [vmem:[%s3387_s29 + $0x498] sm:$0xff]  ;;  %v447_v50 = vld [vmem:[%s3387_s29 + $0x4b0] sm:$0xff] }
  0x26   : > { %380 = vst [vmem:[%s3392_s30 + $0x80] sm:$0xff] %v379_v16  ;;  %v449_v51 = vld [vmem:[%s3387_s29 + $0x4c8] sm:$0xff]  ;;  %v451_v52 = vld [vmem:[%s3387_s29 + $0x4e0] sm:$0xff]  ;;  %v453_v53 = vld [vmem:[%s3387_s29 + $0x4f8] sm:$0xff] }
  0x27   : > { %382 = vst [vmem:[%s3392_s30 + $0x88] sm:$0xff] %v381_v17  ;;  %v455_v54 = vld [vmem:[%s3387_s29 + $0x510] sm:$0xff]  ;;  %v457_v55 = vld [vmem:[%s3387_s29 + $0x528] sm:$0xff]  ;;  %v459_v56 = vld [vmem:[%s3387_s29 + $0x540] sm:$0xff] }
  0x28   : > { %384 = vst [vmem:[%s3392_s30 + $0x90] sm:$0xff] %v383_v18  ;;  %v461_v57 = vld [vmem:[%s3387_s29 + $0x558] sm:$0xff]  ;;  %v463_v58 = vld [vmem:[%s3387_s29 + $0x570] sm:$0xff]  ;;  %v465_v59 = vld [vmem:[%s3387_s29 + $0x588] sm:$0xff] }
  0x29   : > { %386 = vst [vmem:[%s3392_s30 + $0x98] sm:$0xff] %v385_v19  ;;  %v467_v60 = vld [vmem:[%s3387_s29 + $0x5a0] sm:$0xff]  ;;  %v469_v61 = vld [vmem:[%s3387_s29 + $0x5b8] sm:$0xff]  ;;  %v471_v62 = vld [vmem:[%s3387_s29 + $0x5d0] sm:$0xff] }
  0x2a   : > { %388 = vst [vmem:[%s3392_s30 + $0xa0] sm:$0xff] %v387_v20  ;;  %v473_v63 = vld [vmem:[%s3387_s29 + $0x5e8] sm:$0xff] }
  0x2b   : > { %390 = vst [vmem:[%s3392_s30 + $0xa8] sm:$0xff] %v389_v21 }
  0x2c   : > { %392 = vst [vmem:[%s3392_s30 + $0xb0] sm:$0xff] %v391_v22 }
  0x2d   : > { %394 = vst [vmem:[%s3392_s30 + $0xb8] sm:$0xff] %v393_v23 }
  0x2e   : > { %396 = vst [vmem:[%s3392_s30 + $0xc0] sm:$0xff] %v395_v24 }
  0x2f   : > { %398 = vst [vmem:[%s3392_s30 + $0xc8] sm:$0xff] %v397_v25 }
  0x30   : > { %400 = vst [vmem:[%s3392_s30 + $0xd0] sm:$0xff] %v399_v26 }
  0x31   : > { %402 = vst [vmem:[%s3392_s30 + $0xd8] sm:$0xff] %v401_v27 }
  0x32   : > { %404 = vst [vmem:[%s3392_s30 + $0xe0] sm:$0xff] %v403_v28 }
  0x33   : > { %406 = vst [vmem:[%s3392_s30 + $0xe8] sm:$0xff] %v405_v29 }
  0x34   : > { %408 = vst [vmem:[%s3392_s30 + $0xf0] sm:$0xff] %v407_v30 }
  0x35   : > { %410 = vst [vmem:[%s3392_s30 + $0xf8] sm:$0xff] %v409_v31 }
  0x36   : > { %412 = vst [vmem:[%s3392_s30 + $0x100] sm:$0xff] %v411_v32 }
  0x37   : > { %414 = vst [vmem:[%s3392_s30 + $0x108] sm:$0xff] %v413_v33 }
  0x38   : > { %416 = vst [vmem:[%s3392_s30 + $0x110] sm:$0xff] %v415_v34 }
  0x39   : > { %418 = vst [vmem:[%s3392_s30 + $0x118] sm:$0xff] %v417_v35 }
  0x3a   : > { %420 = vst [vmem:[%s3392_s30 + $0x120] sm:$0xff] %v419_v36 }
  0x3b   : > { %422 = vst [vmem:[%s3392_s30 + $0x128] sm:$0xff] %v421_v37 }
  0x3c   : > { %424 = vst [vmem:[%s3392_s30 + $0x130] sm:$0xff] %v423_v38 }
  0x3d   : > { %426 = vst [vmem:[%s3392_s30 + $0x138] sm:$0xff] %v425_v39 }
  0x3e   : > { %428 = vst [vmem:[%s3392_s30 + $0x140] sm:$0xff] %v427_v40 }
  0x3f   : > { %430 = vst [vmem:[%s3392_s30 + $0x148] sm:$0xff] %v429_v41 }
  0x40   : > { %432 = vst [vmem:[%s3392_s30 + $0x150] sm:$0xff] %v431_v42 }
  0x41   : > { %434 = vst [vmem:[%s3392_s30 + $0x158] sm:$0xff] %v433_v43 }
  0x42   : > { %436 = vst [vmem:[%s3392_s30 + $0x160] sm:$0xff] %v435_v44 }
  0x43   : > { %438 = vst [vmem:[%s3392_s30 + $0x168] sm:$0xff] %v437_v45 }
  0x44   : > { %440 = vst [vmem:[%s3392_s30 + $0x170] sm:$0xff] %v439_v46 }
  0x45   : > { %442 = vst [vmem:[%s3392_s30 + $0x178] sm:$0xff] %v441_v47 }
  0x46   : > { %444 = vst [vmem:[%s3392_s30 + $0x180] sm:$0xff] %v443_v48 }
  0x47   : > { %446 = vst [vmem:[%s3392_s30 + $0x188] sm:$0xff] %v445_v49 }
  0x48   : > { %448 = vst [vmem:[%s3392_s30 + $0x190] sm:$0xff] %v447_v50 }
  0x49   : > { %450 = vst [vmem:[%s3392_s30 + $0x198] sm:$0xff] %v449_v51 }
  0x4a   : > { %452 = vst [vmem:[%s3392_s30 + $0x1a0] sm:$0xff] %v451_v52 }
  0x4b   : > { %454 = vst [vmem:[%s3392_s30 + $0x1a8] sm:$0xff] %v453_v53 }
  0x4c   : > { %456 = vst [vmem:[%s3392_s30 + $0x1b0] sm:$0xff] %v455_v54 }
  0x4d   : > { %458 = vst [vmem:[%s3392_s30 + $0x1b8] sm:$0xff] %v457_v55 }
  0x4e   : > { %460 = vst [vmem:[%s3392_s30 + $0x1c0] sm:$0xff] %v459_v56 }
  0x4f   : > { %462 = vst [vmem:[%s3392_s30 + $0x1c8] sm:$0xff] %v461_v57 }
  0x50   : > { %464 = vst [vmem:[%s3392_s30 + $0x1d0] sm:$0xff] %v463_v58 }
  0x51   : > { %466 = vst [vmem:[%s3392_s30 + $0x1d8] sm:$0xff] %v465_v59 }
  0x52   : > { %468 = vst [vmem:[%s3392_s30 + $0x1e0] sm:$0xff] %v467_v60 }
  0x53   : > { %470 = vst [vmem:[%s3392_s30 + $0x1e8] sm:$0xff] %v469_v61 }
  0x54   : > { %472 = vst [vmem:[%s3392_s30 + $0x1f0] sm:$0xff] %v471_v62 }
  0x55   : > { %474 = vst [vmem:[%s3392_s30 + $0x1f8] sm:$0xff] %v473_v63 }
  0x56 PF: > { %p2525_p7 = scmp.ge.s32.totalorder %s3307_s18, 1  ;;  %p479_p8 = scmp.lt.s32.totalorder %s3307_s18, 7 }
  0x58   : > { %p480_p9 = pnand %p2525_p7, %p479_p8 }
  0x5a   : > { %483 = sbr.rel (%p480_p9) target bundleno = 700 (0x2bc), region = 66 }
  0x5f   : > { %s486_s4 = sand.u32 1, %s3283_s12   ;;  %p530_p10 = scmp.lt.s32.totalorder %s3295_s15, 1 }
  0x60   : > { %s2526_s5 = sshll.u32 %s486_s4, 9  ;;  %s552_s6 = smul.u32 3, %s3295_s15 }
  0x61   : > { %p559_p11 = scmp.eq.s32.totalorder %s3291_s14, 0  ;;  %s4820_s15 = smov (!%p530_p10, %s3295_s15), 1 }
  0x62   : > { %p553_p12 = scmp.lt.s32.totalorder %s552_s6, 5  ;;  %s3099_s7 = smul.u32 192, %s4820_s15  ;;  %v3309_v0 = vmov (%p559_p11), 0.0  }
  0x63   : > { %s3541_s14 = scalar_lea.vmem [#allocation2], %s2526_s5  ;;  %563 = sbr.rel (!%p559_p11) target bundleno = 106 (0x6a), region = 74 }
  0x64   : > { %s4822_s6 = smov (!%p553_p12, %s552_s6), 5  ;;  %s3529_s10 = scalar_lea.vmem %s4728_s0, %s3099_s7 }
  0x65   : > { %s3534_s22 = scalar_lea.vmem %s4729_s1, %s3099_s7  ;;  %s2529_s24 = sshll.u32 %s4822_s6, 3 }
  0x66   : > { %s3539_s26 = scalar_lea.vmem %s4731_s3, %s2529_s24 }
  0x67   : > { %564 = vst [vmem:[%s3539_s26] sm:$0xff] (%p559_p11), %v3309_v0 }
  0x68   : > { %565 = vst [vmem:[%s3539_s26 + $0x8] sm:$0xff] %v3309_v0 }
  0x69   : > { %566 = vst [vmem:[%s3539_s26 + $0x10] sm:$0xff] %v3309_v0 }
  0x6a PF: > { %v2685_v1 = vld [vmem:[%s3541_s14 + $0x70] sm:$0xf]  ;;  %v3050_v2 = vld [vmem:[%s3541_s14 + $0x74] sm:$0xf0]  ;;  %v2677_v12 = vld [vmem:[%s3541_s14 + $0x60] sm:$0xf] }
  0x6b   : > { %v2749_v3 = vld [vmem:[%s3541_s14 + $0xf0] sm:$0xf]  ;;  %v3549_v4 = vor.u32 %v3050_v2, %v2685_v1  ;;  %v3066_v5 = vld [vmem:[%s3541_s14 + $0xf4] sm:$0xf0]  ;;  %v3048_v14 = vld [vmem:[%s3541_s14 + $0x64] sm:$0xf0] }
  0x6c   : > { %v2813_v6 = vld [vmem:[%s3541_s14 + $0x170] sm:$0xf]  ;;  %v3082_v7 = vld [vmem:[%s3541_s14 + $0x174] sm:$0xf0]  ;;  %v3554_v8 = vor.u32 %v3066_v5, %v2749_v3  ;;  %v2741_v15 = vld [vmem:[%s3541_s14 + $0xe0] sm:$0xf]  ;;  %v3569_v17 = vor.u32 %v3048_v14, %v2677_v12 }
  0x6d   : > { %v3556_v9 = vor.u32 %v3082_v7, %v2813_v6  ;;  %v2877_v10 = vld [vmem:[%s3541_s14 + $0x1f0] sm:$0xf]  ;;  %v3098_v11 = vld [vmem:[%s3541_s14 + $0x1f4] sm:$0xf0]  ;;  %1119 = vmatpush.bf16.msra.mxu0 %v3549_v4  ;;  %v3064_v16 = vld [vmem:[%s3541_s14 + $0xe4] sm:$0xf0] }
  0x6e   : > { %v3562_v13 = vor.u32 %v3098_v11, %v2877_v10  ;;  %1158 = vmatpush.bf16.msra.mxu1 %v3554_v8  ;;  %v3571_v18 = vor.u32 %v3064_v16, %v2741_v15  ;;  %v2805_v19 = vld [vmem:[%s3541_s14 + $0x160] sm:$0xf]  ;;  %v3080_v20 = vld [vmem:[%s3541_s14 + $0x164] sm:$0xf0]  ;;  %v2669_v24 = vld [vmem:[%s3541_s14 + $0x50] sm:$0xf] }
  0x6f   : > { %1197 = vmatpush.bf16.msra.mxu2 %v3556_v9  ;;  %v2869_v21 = vld [vmem:[%s3541_s14 + $0x1e0] sm:$0xf]  ;;  %v3577_v22 = vor.u32 %v3080_v20, %v2805_v19  ;;  %v3096_v23 = vld [vmem:[%s3541_s14 + $0x1e4] sm:$0xf0]  ;;  %v3046_v25 = vld [vmem:[%s3541_s14 + $0x54] sm:$0xf0] }
  0x70   : > { %1236 = vmatpush.bf16.msra.mxu3 %v3562_v13  ;;  %v3582_v26 = vor.u32 %v3096_v23, %v2869_v21  ;;  %v2733_v27 = vld [vmem:[%s3541_s14 + $0xd0] sm:$0xf]  ;;  %v3062_v28 = vld [vmem:[%s3541_s14 + $0xd4] sm:$0xf0]  ;;  %v3588_v30 = vor.u32 %v3046_v25, %v2669_v24  ;;  %v2661_v36 = vld [vmem:[%s3541_s14 + $0x40] sm:$0xf] }
  0x71   : > { %v2797_v29 = vld [vmem:[%s3541_s14 + $0x150] sm:$0xf]  ;;  %1120 = vmatpush.bf16.msra.mxu0 %v3569_v17  ;;  %v3078_v31 = vld [vmem:[%s3541_s14 + $0x154] sm:$0xf0]  ;;  %v3595_v34 = vor.u32 %v3062_v28, %v2733_v27  ;;  %v3044_v37 = vld [vmem:[%s3541_s14 + $0x44] sm:$0xf0] }
  0x72   : > { %v2861_v32 = vld [vmem:[%s3541_s14 + $0x1d0] sm:$0xf]  ;;  %v3094_v33 = vld [vmem:[%s3541_s14 + $0x1d4] sm:$0xf0]  ;;  %1159 = vmatpush.bf16.msra.mxu1 %v3571_v18  ;;  %v3597_v35 = vor.u32 %v3078_v31, %v2797_v29  ;;  %v2725_v38 = vld [vmem:[%s3541_s14 + $0xc0] sm:$0xf]  ;;  %v3611_v45 = vor.u32 %v3044_v37, %v2661_v36 }
  0x73   : > { %1198 = vmatpush.bf16.msra.mxu2 %v3577_v22  ;;  %v3603_v39 = vor.u32 %v3094_v33, %v2861_v32  ;;  %v3060_v40 = vld [vmem:[%s3541_s14 + $0xc4] sm:$0xf0]  ;;  %v2789_v41 = vld [vmem:[%s3541_s14 + $0x140] sm:$0xf]  ;;  %v2653_v48 = vld [vmem:[%s3541_s14 + $0x30] sm:$0xf] }
  0x74   : > { %1237 = vmatpush.bf16.msra.mxu3 %v3582_v26  ;;  %v3076_v42 = vld [vmem:[%s3541_s14 + $0x144] sm:$0xf0]  ;;  %v2853_v43 = vld [vmem:[%s3541_s14 + $0x1c0] sm:$0xf]  ;;  %v3615_v46 = vor.u32 %v3060_v40, %v2725_v38  ;;  %v3042_v49 = vld [vmem:[%s3541_s14 + $0x34] sm:$0xf0] }
  0x75   : > { %v3092_v44 = vld [vmem:[%s3541_s14 + $0x1c4] sm:$0xf0]  ;;  %1121 = vmatpush.bf16.msra.mxu0 %v3588_v30  ;;  %v3617_v47 = vor.u32 %v3076_v42, %v2789_v41  ;;  %v2717_v50 = vld [vmem:[%s3541_s14 + $0xb0] sm:$0xf]  ;;  %v3058_v52 = vld [vmem:[%s3541_s14 + $0xb4] sm:$0xf0]  ;;  %v3631_v57 = vor.u32 %v3042_v49, %v2653_v48 }
  0x76   : > { %1160 = vmatpush.bf16.msra.mxu1 %v3595_v34  ;;  %v3623_v51 = vor.u32 %v3092_v44, %v2853_v43  ;;  %v2781_v53 = vld [vmem:[%s3541_s14 + $0x130] sm:$0xf]  ;;  %v3074_v54 = vld [vmem:[%s3541_s14 + $0x134] sm:$0xf0]  ;;  %v3635_v58 = vor.u32 %v3058_v52, %v2717_v50  ;;  %v2645_v60 = vld [vmem:[%s3541_s14 + $0x20] sm:$0xf] }
  0x77   : > { %1199 = vmatpush.bf16.msra.mxu2 %v3597_v35  ;;  %v2845_v55 = vld [vmem:[%s3541_s14 + $0x1b0] sm:$0xf]  ;;  %v3090_v56 = vld [vmem:[%s3541_s14 + $0x1b4] sm:$0xf0]  ;;  %v3637_v59 = vor.u32 %v3074_v54, %v2781_v53  ;;  %v3040_v61 = vld [vmem:[%s3541_s14 + $0x24] sm:$0xf0] }
  0x78   : > { %1238 = vmatpush.bf16.msra.mxu3 %v3603_v39  ;;  %v2709_v62 = vld [vmem:[%s3541_s14 + $0xa0] sm:$0xf]  ;;  %v3643_v63 = vor.u32 %v3090_v56, %v2845_v55  ;;  %v3056_v0 = vld [vmem:[%s3541_s14 + $0xa4] sm:$0xf0]  ;;  %v3651_v6 = vor.u32 %v3040_v61, %v2645_v60  ;;  %v2637_v11 = vld [vmem:[%s3541_s14 + $0x10] sm:$0xf] }
  0x79   : > { %1122 = vmatpush.bf16.msra.mxu0 %v3611_v45  ;;  %v2773_v1 = vld [vmem:[%s3541_s14 + $0x120] sm:$0xf]  ;;  %v3072_v2 = vld [vmem:[%s3541_s14 + $0x124] sm:$0xf0]  ;;  %v3655_v7 = vor.u32 %v3056_v0, %v2709_v62  ;;  %v3038_v12 = vld [vmem:[%s3541_s14 + $0x14] sm:$0xf0] }
  0x7a   : > { %1161 = vmatpush.bf16.msra.mxu1 %v3615_v46  ;;  %v2837_v3 = vld [vmem:[%s3541_s14 + $0x1a0] sm:$0xf]  ;;  %v3088_v5 = vld [vmem:[%s3541_s14 + $0x1a4] sm:$0xf0]  ;;  %v3657_v10 = vor.u32 %v3072_v2, %v2773_v1  ;;  %v2701_v14 = vld [vmem:[%s3541_s14 + $0x90] sm:$0xf]  ;;  %v3672_v25 = vor.u32 %v3038_v12, %v2637_v11 }
  0x7b   : > { %1200 = vmatpush.bf16.msra.mxu2 %v3617_v47  ;;  %v3663_v15 = vor.u32 %v3088_v5, %v2837_v3  ;;  %v3054_v16 = vld [vmem:[%s3541_s14 + $0x94] sm:$0xf0]  ;;  %v2765_v19 = vld [vmem:[%s3541_s14 + $0x110] sm:$0xf]  ;;  %v2629_v24 = vld [vmem:[%s3541_s14] sm:$0xf] }
  0x7c   : > { %1239 = vmatpush.bf16.msra.mxu3 %v3623_v51  ;;  %v3070_v20 = vld [vmem:[%s3541_s14 + $0x114] sm:$0xf0]  ;;  %v2829_v21 = vld [vmem:[%s3541_s14 + $0x190] sm:$0xf]  ;;  %v3036_v27 = vld [vmem:[%s3541_s14 + $0x4] sm:$0xf0]  ;;  %v3679_v31 = vor.u32 %v3054_v16, %v2701_v14 }
  0x7d   : > { %1123 = vmatpush.bf16.msra.mxu0 %v3631_v57  ;;  %v3086_v23 = vld [vmem:[%s3541_s14 + $0x194] sm:$0xf0]  ;;  %v2693_v28 = vld [vmem:[%s3541_s14 + $0x80] sm:$0xf]  ;;  %v3052_v29 = vld [vmem:[%s3541_s14 + $0x84] sm:$0xf0]  ;;  %v3681_v32 = vor.u32 %v3070_v20, %v2765_v19  ;;  %v3697_v50 = vor.u32 %v3036_v27, %v2629_v24 }
  0x7e   : > { %1162 = vmatpush.bf16.msra.mxu1 %v3635_v58  ;;  %v2757_v33 = vld [vmem:[%s3541_s14 + $0x100] sm:$0xf]  ;;  %v3068_v36 = vld [vmem:[%s3541_s14 + $0x104] sm:$0xf0]  ;;  %v3687_v38 = vor.u32 %v3086_v23, %v2829_v21  ;;  %v2989_v42 = vld [vmem:[%s3529_s10 + $0xc] sm:$0xf0]  ;;  %v3704_v55 = vor.u32 %v3052_v29, %v2693_v28 }
  0x7f   : > { %1201 = vmatpush.bf16.msra.mxu2 %v3637_v59  ;;  %v2821_v37 = vld [vmem:[%s3541_s14 + $0x180] sm:$0xf]  ;;  %v3084_v40 = vld [vmem:[%s3541_s14 + $0x184] sm:$0xf0]  ;;  %v2987_v43 = vld [vmem:[%s3529_s10 + $0x4] sm:$0xf]  ;;  %v3706_v56 = vor.u32 %v3068_v36, %v2757_v33 }
  0x80   : > { %1240 = vmatpush.bf16.msra.mxu3 %v3643_v63  ;;  %v2533_v41 = vld [vmem:[%s3529_s10] sm:$0xf]  ;;  %v2535_v44 = vld [vmem:[%s3529_s10 + $0x10] sm:$0xf0]  ;;  %v2815_v49 = vld [vmem:[%s3541_s14 + $0x178] sm:$0xf0]  ;;  %v3712_v0 = vor.u32 %v3084_v40, %v2821_v37 }
  0x81   : > { %1124 = vmatpush.bf16.msra.mxu0 %v3651_v6  ;;  %v3081_v48 = vld [vmem:[%s3541_s14 + $0x174] sm:$0xf]  ;;  %v2541_v52 = vld [vmem:[%s3529_s10 + $0x8] sm:$0xf]  ;;  %v2879_v54 = vld [vmem:[%s3541_s14 + $0x1f8] sm:$0xf0]  ;;  %v3719_v11 = vor.u32 %v2989_v42, %v2533_v41  ;;  %v3727_v20 = vor.u32 %v2987_v43, %v2535_v44 }
  0x82   : > { %1163 = vmatpush.bf16.msra.mxu1 %v3655_v7  ;;  %v3097_v53 = vld [vmem:[%s3541_s14 + $0x1f4] sm:$0xf]  ;;  %v2990_v60 = vld [vmem:[%s3529_s10 + $0x14] sm:$0xf0]  ;;  %v2988_v61 = vld [vmem:[%s3529_s10 + $0xc] sm:$0xf]  ;;  %v3714_v1 = vor.u32 %v3081_v48, %v2815_v49 }
  0x83   : > { %1202 = vmatpush.bf16.msra.mxu2 %v3657_v10  ;;  %v2543_v62 = vld [vmem:[%s3529_s10 + $0x18] sm:$0xf0]  ;;  %v3049_v2 = vld [vmem:[%s3541_s14 + $0x74] sm:$0xf]  ;;  %v3721_v12 = vor.u32 %v3097_v53, %v2879_v54  ;;  %v3079_v16 = vld [vmem:[%s3541_s14 + $0x164] sm:$0xf]  ;;  %v3729_v21 = vor.u32 %v2990_v60, %v2541_v52 }
  0x84   : > { %1241 = vmatpush.bf16.msra.mxu3 %v3663_v15  ;;  %v2687_v3 = vld [vmem:[%s3541_s14 + $0x78] sm:$0xf0]  ;;  %v3065_v5 = vld [vmem:[%s3541_s14 + $0xf4] sm:$0xf]  ;;  %v2807_v19 = vld [vmem:[%s3541_s14 + $0x168] sm:$0xf0]  ;;  %v3735_v27 = vor.u32 %v2988_v61, %v2543_v62 }
  0x85   : > { %1125 = vmatpush.bf16.msra.mxu0 %v3672_v25  ;;  %v2751_v14 = vld [vmem:[%s3541_s14 + $0xf8] sm:$0xf0]  ;;  %v3095_v23 = vld [vmem:[%s3541_s14 + $0x1e4] sm:$0xf]  ;;  %v2871_v24 = vld [vmem:[%s3541_s14 + $0x1e8] sm:$0xf0]  ;;  %v3737_v28 = vor.u32 %v3049_v2, %v2687_v3  ;;  %v3743_v33 = vor.u32 %v3079_v16, %v2807_v19 }
  0x86   : > { %1164 = vmatpush.bf16.msra.mxu1 %v3679_v31  ;;  %v3741_v29 = vor.u32 %v3065_v5, %v2751_v14  ;;  %v3047_v36 = vld [vmem:[%s3541_s14 + $0x64] sm:$0xf]  ;;  %v2679_v37 = vld [vmem:[%s3541_s14 + $0x68] sm:$0xf0]  ;;  %v3750_v41 = vor.u32 %v3095_v23, %v2871_v24  ;;  %v3077_v43 = vld [vmem:[%s3541_s14 + $0x154] sm:$0xf] }
  0x87   : > { %1203 = vmatpush.bf16.msra.mxu2 %v3681_v32  ;;  %v3063_v40 = vld [vmem:[%s3541_s14 + $0xe4] sm:$0xf]  ;;  %v2743_v42 = vld [vmem:[%s3541_s14 + $0xe8] sm:$0xf0]  ;;  %v2799_v44 = vld [vmem:[%s3541_s14 + $0x158] sm:$0xf0]  ;;  %v3761_v52 = vor.u32 %v3047_v36, %v2679_v37 }
  0x88   : > { %1242 = vmatpush.bf16.msra.mxu3 %v3687_v38  ;;  %v3093_v48 = vld [vmem:[%s3541_s14 + $0x1d4] sm:$0xf]  ;;  %v2863_v49 = vld [vmem:[%s3541_s14 + $0x1d8] sm:$0xf0]  ;;  %v3765_v53 = vor.u32 %v3063_v40, %v2743_v42  ;;  %v3767_v54 = vor.u32 %v3077_v43, %v2799_v44  ;;  %v3075_v5 = vld [vmem:[%s3541_s14 + $0x144] sm:$0xf] }
  0x89   : > { %1126 = vmatpush.bf16.msra.mxu0 %v3697_v50  ;;  %v3045_v60 = vld [vmem:[%s3541_s14 + $0x54] sm:$0xf]  ;;  %v2671_v61 = vld [vmem:[%s3541_s14 + $0x58] sm:$0xf0]  ;;  %v3773_v2 = vor.u32 %v3093_v48, %v2863_v49  ;;  %v2791_v14 = vld [vmem:[%s3541_s14 + $0x148] sm:$0xf0] }
  0x8a   : > { %1165 = vmatpush.bf16.msra.mxu1 %v3704_v55  ;;  %4757 = vst [vmem:[#allocation3_spill] sm:$0xff] %v3765_v53  ;;  %v3061_v62 = vld [vmem:[%s3541_s14 + $0xd4] sm:$0xf]  ;;  %v2735_v3 = vld [vmem:[%s3541_s14 + $0xd8] sm:$0xf0]  ;;  %v3781_v23 = vor.u32 %v3045_v60, %v2671_v61  ;;  %v3787_v36 = vor.u32 %v3075_v5, %v2791_v14 }
  0x8b   : > { %1204 = vmatpush.bf16.msra.mxu2 %v3706_v56  ;;  %4758 = vst [vmem:[#allocation4_spill] sm:$0xff] %v3767_v54  ;;  %v3091_v16 = vld [vmem:[%s3541_s14 + $0x1c4] sm:$0xf]  ;;  %v2855_v19 = vld [vmem:[%s3541_s14 + $0x1c8] sm:$0xf0]  ;;  %v3785_v24 = vor.u32 %v3061_v62, %v2735_v3 }
  0x8c   : > { %1243 = vmatpush.bf16.msra.mxu3 %v3712_v0  ;;  %1127 = vmatmul.bf16.vlgmr.msra.gmra.mxu0 %v3719_v11  ;;  %v3043_v37 = vld [vmem:[%s3541_s14 + $0x44] sm:$0xf]  ;;  %v2663_v40 = vld [vmem:[%s3541_s14 + $0x48] sm:$0xf0]  ;;  %v3792_v42 = vor.u32 %v3091_v16, %v2855_v19  ;;  %v2549_v48 = vld [vmem:[%s3529_s10 + $0x20] sm:$0xf] }
  0x8d   : > { %1166 = vmatmul.bf16.vlgmr.msra.gmra.mxu1 %v3727_v20  ;;  %1275 = vmatpush.bf16.msrb.mxu0 %v3737_v28  ;;  %v3059_v43 = vld [vmem:[%s3541_s14 + $0xc4] sm:$0xf]  ;;  %v2727_v44 = vld [vmem:[%s3541_s14 + $0xc8] sm:$0xf0]  ;;  %v2993_v49 = vld [vmem:[%s3529_s10 + $0x2c] sm:$0xf0]  ;;  %v3803_v62 = vor.u32 %v3043_v37, %v2663_v40 }
  0x8e   : > { %1205 = vmatmul.bf16.vlgmr.msra.gmra.mxu2 %v3729_v21  ;;  %1314 = vmatpush.bf16.msrb.mxu1 %v3741_v29  ;;  %v2991_v60 = vld [vmem:[%s3529_s10 + $0x24] sm:$0xf]  ;;  %v2551_v61 = vld [vmem:[%s3529_s10 + $0x30] sm:$0xf0]  ;;  %v2992_v3 = vld [vmem:[%s3529_s10 + $0x2c] sm:$0xf]  ;;  %v3809_v14 = vor.u32 %v3059_v43, %v2727_v44  ;;  %v3811_v16 = vor.u32 %v2993_v49, %v2549_v48 }
  0x8f   : > { %1353 = vmatpush.bf16.msrb.mxu2 %v3714_v1  ;;  %1244 = vmatmul.bf16.vlgmr.msra.gmra.mxu3 %v3735_v27  ;;  %v2559_v5 = vld [vmem:[%s3529_s10 + $0x38] sm:$0xf0]  ;;  %v3814_v19 = vor.u32 %v2991_v60, %v2551_v61  ;;  %v3089_v43 = vld [vmem:[%s3541_s14 + $0x1b4] sm:$0xf] }
  0x90   : > { %1392 = vmatpush.bf16.msrb.mxu3 %v3721_v12  ;;  %4759 = vst [vmem:[#allocation5_spill] sm:$0xff] %v3809_v14  ;;  %v3818_v40 = vor.u32 %v2992_v3, %v2559_v5  ;;  %v2847_v48 = vld [vmem:[%s3541_s14 + $0x1b8] sm:$0xf0]  ;;  %v3041_v49 = vld [vmem:[%s3541_s14 + $0x34] sm:$0xf] }
  0x91   : > { %1276 = vmatpush.bf16.msrb.mxu0 %v3761_v52  ;;  %4760 = vst [vmem:[#allocation6_spill] sm:$0xff] %v3811_v16  ;;  %v2655_v60 = vld [vmem:[%s3541_s14 + $0x38] sm:$0xf0]  ;;  %v3834_v61 = vor.u32 %v3089_v43, %v2847_v48  ;;  %v3057_v5 = vld [vmem:[%s3541_s14 + $0xb4] sm:$0xf] }
  0x92   : > { %1315 = vmatpush.bf16.msrb.mxu1 %v3765_v53  ;;  %v2557_v53 = vld [vmem:[%s3529_s10 + $0x28] sm:$0xf]  ;;  %4761 = vst [vmem:[#allocation7_spill] sm:$0xff] %v3814_v19  ;;  %v3836_v3 = vor.u32 %v3041_v49, %v2655_v60  ;;  %v2839_v43 = vld [vmem:[%s3541_s14 + $0x1a8] sm:$0xf0] }
  0x93   : > { %1354 = vmatpush.bf16.msrb.mxu2 %v3743_v33  ;;  %4763 = vst [vmem:[#allocation9_spill] sm:$0xff] %v3818_v40  ;;  %v2565_v60 = vld [vmem:[%s3529_s10 + $0x40] sm:$0xf] }
  0x94   : > { %1393 = vmatpush.bf16.msrb.mxu3 %v3750_v41  ;;  %4765 = vst [vmem:[#allocation11_spill] sm:$0xff] %v3834_v61 }
  0x95   : > { %1277 = vmatpush.bf16.msrb.mxu0 %v3781_v23  ;;  %4766 = vst [vmem:[#allocation12_spill] sm:$0xff] %v3836_v3 }
  0x96   : > { %1316 = vmatpush.bf16.msrb.mxu1 %v3785_v24 }
  0x97   : > { %1355 = vmatpush.bf16.msrb.mxu2 %v3767_v54  ;;  %v2994_v54 = vld [vmem:[%s3529_s10 + $0x34] sm:$0xf0] }
  0x98   : > { %1394 = vmatpush.bf16.msrb.mxu3 %v3773_v2  ;;  %v3816_v37 = vor.u32 %v2994_v54, %v2557_v53  ;;  %v3073_v53 = vld [vmem:[%s3541_s14 + $0x134] sm:$0xf]  ;;  %v2783_v54 = vld [vmem:[%s3541_s14 + $0x138] sm:$0xf0] }
  0x99   : > { %1278 = vmatpush.bf16.msrb.mxu0 %v3803_v62  ;;  %v3829_v44 = vor.u32 %v3073_v53, %v2783_v54  ;;  %v2775_v54 = vld [vmem:[%s3541_s14 + $0x128] sm:$0xf0] }
  0x9a   : > { %4762 = vst [vmem:[#allocation8_spill] sm:$0xff] %v3816_v37  ;;  %1317 = vmatpush.bf16.msrb.mxu1 %v3809_v14  ;;  %v2995_v14 = vld [vmem:[%s3529_s10 + $0x44] sm:$0xf] }
  0x9b   : > { %1356 = vmatpush.bf16.msrb.mxu2 %v3787_v36  ;;  %4764 = vst [vmem:[#allocation10_spill] sm:$0xff] %v3829_v44 }
  0x9c   : > { %1395 = vmatpush.bf16.msrb.mxu3 %v3792_v42  ;;  %1132 = vmatmul.bf16.gmra.mxu0 %v3811_v16  ;;  %v2998_v16 = vld [vmem:[%s3529_s10 + $0x54] sm:$0xf0] }
  0x9d   : > { %1171 = vmatmul.bf16.gmra.mxu1 %v3814_v19  ;;  %v3087_v19 = vld [vmem:[%s3541_s14 + $0x1a4] sm:$0xf]  ;;  %1279 = vmatpush.bf16.msrb.mxu0 %v3836_v3 }
  0x9e   : > { %1210 = vmatmul.bf16.gmra.mxu2 %v3816_v37  ;;  %v2719_v37 = vld [vmem:[%s3541_s14 + $0xb8] sm:$0xf0]  ;;  %v3851_v49 = vor.u32 %v3087_v19, %v2839_v43  ;;  %v2999_v3 = vld [vmem:[%s3529_s10 + $0x64] sm:$0xf] }
  0x9f   : > { %1249 = vmatmul.bf16.gmra.mxu3 %v3818_v40  ;;  %v3071_v40 = vld [vmem:[%s3541_s14 + $0x124] sm:$0xf]  ;;  %1357 = vmatpush.bf16.msrb.mxu2 %v3829_v44  ;;  %v3842_v53 = vor.u32 %v3057_v5, %v2719_v37  ;;  %v2997_v44 = vld [vmem:[%s3529_s10 + $0x4c] sm:$0xf0]  ;;  %v2567_v37 = vld [vmem:[%s3529_s10 + $0x50] sm:$0xf0] }
  0xa0   : > { %1396 = vmatpush.bf16.msrb.mxu3 %v3834_v61  ;;  %v3849_v48 = vor.u32 %v3071_v40, %v2775_v54  ;;  %4769 = vst [vmem:[#allocation15_spill] sm:$0xff] %v3851_v49  ;;  %v2573_v5 = vld [vmem:[%s3529_s10 + $0x48] sm:$0xf]  ;;  %v2996_v40 = vld [vmem:[%s3529_s10 + $0x4c] sm:$0xf]  ;;  %v3864_v54 = vor.u32 %v2997_v44, %v2565_v60  ;;  %v3866_v43 = vor.u32 %v2995_v14, %v2567_v37 }
  0xa1   : > { %4767 = vst [vmem:[#allocation13_spill] sm:$0xff] %v3842_v53  ;;  %1318 = vmatpush.bf16.msrb.mxu1 %v3842_v53  ;;  %v2575_v19 = vld [vmem:[%s3529_s10 + $0x58] sm:$0xf0]  ;;  %v3868_v53 = vor.u32 %v2998_v16, %v2573_v5  ;;  %v3039_v44 = vld [vmem:[%s3541_s14 + $0x24] sm:$0xf] }
  0xa2   : > { %4768 = vst [vmem:[#allocation14_spill] sm:$0xff] %v3849_v48  ;;  %v2647_v14 = vld [vmem:[%s3541_s14 + $0x28] sm:$0xf0]  ;;  %v3055_v60 = vld [vmem:[%s3541_s14 + $0xa4] sm:$0xf] }
  0xa3   : > { %1358 = vmatpush.bf16.msrb.mxu2 %v3849_v48  ;;  %4770 = vst [vmem:[#allocation16_spill] sm:$0xff] %v3864_v54  ;;  %v3870_v48 = vor.u32 %v2996_v40, %v2575_v19  ;;  %v3879_v16 = vor.u32 %v3039_v44, %v2647_v14  ;;  %v2711_v37 = vld [vmem:[%s3541_s14 + $0xa8] sm:$0xf0]  ;;  %v3069_v5 = vld [vmem:[%s3541_s14 + $0x114] sm:$0xf] }
  0xa4   : > { %1397 = vmatpush.bf16.msrb.mxu3 %v3851_v49  ;;  %4771 = vst [vmem:[#allocation17_spill] sm:$0xff] %v3866_v43  ;;  %v2767_v40 = vld [vmem:[%s3541_s14 + $0x118] sm:$0xf0]  ;;  %v3884_v19 = vor.u32 %v3055_v60, %v2711_v37  ;;  %v3053_v49 = vld [vmem:[%s3541_s14 + $0x94] sm:$0xf] }
  0xa5   : > { %4772 = vst [vmem:[#allocation18_spill] sm:$0xff] %v3868_v53  ;;  %1280 = vmatpush.bf16.msrb.mxu0 %v3879_v16  ;;  %v2639_v14 = vld [vmem:[%s3541_s14 + $0x18] sm:$0xf0]  ;;  %v3002_v61 = vld [vmem:[%s3529_s10 + $0x74] sm:$0xf0] }
  0xa6   : > { %4773 = vst [vmem:[#allocation19_spill] sm:$0xff] %v3870_v48  ;;  %v2703_v60 = vld [vmem:[%s3541_s14 + $0x98] sm:$0xf0]  ;;  %1319 = vmatpush.bf16.msrb.mxu1 %v3884_v19 }
  0xa7   : > { %4774 = vst [vmem:[#allocation20_spill] sm:$0xff] %v3879_v16  ;;  %v3001_v16 = vld [vmem:[%s3529_s10 + $0x6c] sm:$0xf0] }
  0xac   : > { %1137 = vmatmul.bf16.gmra.mxu0 %v3864_v54  ;;  %v2831_v54 = vld [vmem:[%s3541_s14 + $0x198] sm:$0xf0] }
  0xad   : > { %1176 = vmatmul.bf16.gmra.mxu1 %v3866_v43  ;;  %v3886_v43 = vor.u32 %v3069_v5, %v2767_v40  ;;  %v3901_v5 = vor.u32 %v3053_v49, %v2703_v60  ;;  %v2581_v40 = vld [vmem:[%s3529_s10 + $0x60] sm:$0xf]  ;;  %v2591_v49 = vld [vmem:[%s3529_s10 + $0x78] sm:$0xf0] }
  0xae   : > { %1215 = vmatmul.bf16.gmra.mxu2 %v3868_v53  ;;  %v3085_v53 = vld [vmem:[%s3541_s14 + $0x194] sm:$0xf] }
  0xaf   : > { %1254 = vmatmul.bf16.gmra.mxu3 %v3870_v48  ;;  %4775 = vst [vmem:[#allocation21_spill] sm:$0xff] %v3886_v43  ;;  %v3037_v48 = vld [vmem:[%s3541_s14 + $0x14] sm:$0xf]  ;;  %v3892_v44 = vor.u32 %v3085_v53, %v2831_v54  ;;  %1359 = vmatpush.bf16.msrb.mxu2 %v3886_v43  ;;  %v2589_v54 = vld [vmem:[%s3529_s10 + $0x68] sm:$0xf] }
  0xb0   : > { %v3899_v37 = vor.u32 %v3037_v48, %v2639_v14  ;;  %4778 = vst [vmem:[#allocation24_spill] sm:$0xff] %v3901_v5  ;;  %v2583_v53 = vld [vmem:[%s3529_s10 + $0x70] sm:$0xf0]  ;;  %1320 = vmatpush.bf16.msrb.mxu1 %v3901_v5  ;;  %v3000_v48 = vld [vmem:[%s3529_s10 + $0x6c] sm:$0xf]  ;;  %v3914_v14 = vor.u32 %v3001_v16, %v2581_v40 }
  0xb1   : > { %4776 = vst [vmem:[#allocation22_spill] sm:$0xff] %v3892_v44  ;;  %1398 = vmatpush.bf16.msrb.mxu3 %v3892_v44  ;;  %v3916_v60 = vor.u32 %v2999_v3, %v2583_v53  ;;  %v3918_v44 = vor.u32 %v3002_v61, %v2589_v54  ;;  %v3067_v5 = vld [vmem:[%s3541_s14 + $0x104] sm:$0xf]  ;;  %v2759_v43 = vld [vmem:[%s3541_s14 + $0x108] sm:$0xf0] }
  0xb2   : > { %4777 = vst [vmem:[#allocation23_spill] sm:$0xff] %v3899_v37  ;;  %1281 = vmatpush.bf16.msrb.mxu0 %v3899_v37  ;;  %v3920_v37 = vor.u32 %v3000_v48, %v2591_v49  ;;  %v3083_v16 = vld [vmem:[%s3541_s14 + $0x184] sm:$0xf]  ;;  %v3929_v40 = vor.u32 %v3067_v5, %v2759_v43  ;;  %v2823_v3 = vld [vmem:[%s3541_s14 + $0x188] sm:$0xf0] }
  0xb3   : > { %4779 = vst [vmem:[#allocation25_spill] sm:$0xff] %v3916_v60  ;;  %v3035_v61 = vld [vmem:[%s3541_s14 + $0x4] sm:$0xf]  ;;  %v2631_v53 = vld [vmem:[%s3541_s14 + $0x8] sm:$0xf0]  ;;  %v3934_v54 = vor.u32 %v3083_v16, %v2823_v3 }
  0xb4   : > { %4780 = vst [vmem:[#allocation26_spill] sm:$0xff] %v3918_v44  ;;  %v3936_v48 = vor.u32 %v3035_v61, %v2631_v53  ;;  %v3051_v49 = vld [vmem:[%s3541_s14 + $0x84] sm:$0xf]  ;;  %1360 = vmatpush.bf16.msrb.mxu2 %v3929_v40  ;;  %v2597_v5 = vld [vmem:[%s3529_s10 + $0x80] sm:$0xf] }
  0xb5   : > { %4781 = vst [vmem:[#allocation27_spill] sm:$0xff] %v3920_v37  ;;  %1399 = vmatpush.bf16.msrb.mxu3 %v3934_v54  ;;  %v3005_v16 = vld [vmem:[%s3529_s10 + $0x8c] sm:$0xf0]  ;;  %v3003_v3 = vld [vmem:[%s3529_s10 + $0x84] sm:$0xf] }
  0xb6   : > { %1282 = vmatpush.bf16.msrb.mxu0 %v3936_v48  ;;  %v2599_v61 = vld [vmem:[%s3529_s10 + $0x90] sm:$0xf0]  ;;  %v3006_v53 = vld [vmem:[%s3529_s10 + $0x94] sm:$0xf0] }
  0xb8   : > { %1629 = vmatpush.bf16.msra.mxu2 %v3556_v9  ;;  %v3963_v9 = vor.u32 %v3003_v3, %v2599_v61 }
  0xb9   : > { %1668 = vmatpush.bf16.msra.mxu3 %v3562_v13  ;;  %v2613_v13 = vld [vmem:[%s3529_s10 + $0xa0] sm:$0xf] }
  0xba   : > { %1551 = vmatpush.bf16.msra.mxu0 %v3549_v4 }
  0xbc   : > { %1142 = vmatmul.bf16.gmra.mxu0 %v3914_v14  ;;  %1630 = vmatpush.bf16.msra.mxu2 %v3577_v22  ;;  %v2615_v22 = vld [vmem:[%s3529_s10 + $0xb0] sm:$0xf0] }
  0xbd   : > { %1181 = vmatmul.bf16.gmra.mxu1 %v3916_v60  ;;  %v3959_v60 = vor.u32 %v3005_v16, %v2597_v5  ;;  %1669 = vmatpush.bf16.msra.mxu3 %v3582_v26  ;;  %v2621_v26 = vld [vmem:[%s3529_s10 + $0xa8] sm:$0xf]  ;;  %v4805_v5 = vld [vmem:[#allocation26_spill] sm:$0xff]  ;;  %v4806_v16 = vld [vmem:[#allocation27_spill] sm:$0xff] }
  0xbe   : > { %1220 = vmatmul.bf16.gmra.mxu2 %v3918_v44  ;;  %v2607_v44 = vld [vmem:[%s3529_s10 + $0x98] sm:$0xf0]  ;;  %1552 = vmatpush.bf16.msra.mxu0 %v3569_v17  ;;  %v3009_v17 = vld [vmem:[%s3529_s10 + $0xac] sm:$0xf0] }
  0xbf   : > { %1259 = vmatmul.bf16.gmra.mxu3 %v3920_v37  ;;  %v2695_v37 = vld [vmem:[%s3541_s14 + $0x88] sm:$0xf0] }
  0xc0   : > { %v3941_v43 = vor.u32 %v3051_v49, %v2695_v37  ;;  %v2605_v37 = vld [vmem:[%s3529_s10 + $0x88] sm:$0xf]  ;;  %v3004_v49 = vld [vmem:[%s3529_s10 + $0x8c] sm:$0xf]  ;;  %1631 = vmatpush.bf16.msra.mxu2 %v3597_v35  ;;  %v2623_v35 = vld [vmem:[%s3529_s10 + $0xb8] sm:$0xf0] }
  0xc1   : > { %v3965_v4 = vor.u32 %v3006_v53, %v2605_v37  ;;  %1670 = vmatpush.bf16.msra.mxu3 %v3603_v39  ;;  %v3995_v39 = vor.u32 %v3009_v17, %v2613_v13 }
  0xc2   : > { %1321 = vmatpush.bf16.msrb.mxu1 %v3941_v43  ;;  %1553 = vmatpush.bf16.msra.mxu0 %v3588_v30  ;;  %v3010_v30 = vld [vmem:[%s3529_s10 + $0xb4] sm:$0xf0] }
  0xc4   : > { %1632 = vmatpush.bf16.msra.mxu2 %v3617_v47 }
  0xc5   : > { %1671 = vmatpush.bf16.msra.mxu3 %v3623_v51  ;;  %v4782_v51 = vld [vmem:[#allocation3_spill] sm:$0xff] }
  0xc6   : > { %1590 = vmatpush.bf16.msra.mxu1 %v3554_v8  ;;  %v3968_v8 = vor.u32 %v3004_v49, %v2607_v44  ;;  %1554 = vmatpush.bf16.msra.mxu0 %v3611_v45 }
  0xc8   : > { %1633 = vmatpush.bf16.msra.mxu2 %v3637_v59  ;;  %v4785_v59 = vld [vmem:[#allocation5_spill] sm:$0xff] }
  0xc9   : > { %1672 = vmatpush.bf16.msra.mxu3 %v3643_v63  ;;  %v4786_v63 = vld [vmem:[#allocation7_spill] sm:$0xff] }
  0xca   : > { %1591 = vmatpush.bf16.msra.mxu1 %v3571_v18  ;;  %v3007_v18 = vld [vmem:[%s3529_s10 + $0xa4] sm:$0xf]  ;;  %1555 = vmatpush.bf16.msra.mxu0 %v3631_v57  ;;  %v4783_v57 = vld [vmem:[#allocation4_spill] sm:$0xff] }
  0xcb   : > { %v3998_v45 = vor.u32 %v3007_v18, %v2615_v22 }
  0xcc   : > { %1147 = vmatmul.bf16.gmra.mxu0 %v3959_v60  ;;  %1634 = vmatpush.bf16.msra.mxu2 %v3657_v10  ;;  %v4789_v10 = vld [vmem:[#allocation10_spill] sm:$0xff] }
  0xcd   : > { %1186 = vmatmul.bf16.gmra.mxu1 %v3963_v9  ;;  %1673 = vmatpush.bf16.msra.mxu3 %v3663_v15  ;;  %v4790_v15 = vld [vmem:[#allocation11_spill] sm:$0xff] }
  0xce   : > { %1225 = vmatmul.bf16.gmra.mxu2 %v3965_v4  ;;  %1592 = vmatpush.bf16.msra.mxu1 %v3595_v34  ;;  %v3008_v34 = vld [vmem:[%s3529_s10 + $0xac] sm:$0xf] }
  0xcf   : > { %1264 = vmatmul.bf16.gmra.mxu3 %v3968_v8  ;;  %v4002_v47 = vor.u32 %v3008_v34, %v2623_v35  ;;  %1556 = vmatpush.bf16.msra.mxu0 %v3651_v6  ;;  %v4787_v6 = vld [vmem:[#allocation8_spill] sm:$0xff] }
  0xd0   : > { %1635 = vmatpush.bf16.msra.mxu2 %v3681_v32  ;;  %v4793_v32 = vld [vmem:[#allocation14_spill] sm:$0xff] }
  0xd1   : > { %1674 = vmatpush.bf16.msra.mxu3 %v3687_v38  ;;  %v4794_v38 = vld [vmem:[#allocation15_spill] sm:$0xff] }
  0xd2   : > { %1593 = vmatpush.bf16.msra.mxu1 %v3615_v46  ;;  %v4000_v46 = vor.u32 %v3010_v30, %v2621_v26 }
  0xd3   : > { %1557 = vmatpush.bf16.msra.mxu0 %v3672_v25  ;;  %v4791_v25 = vld [vmem:[#allocation12_spill] sm:$0xff] }
  0xd4   : > { %1636 = vmatpush.bf16.msra.mxu2 %v3706_v56  ;;  %v4797_v56 = vld [vmem:[#allocation22_spill] sm:$0xff] }
  0xd5   : > { %1675 = vmatpush.bf16.msra.mxu3 %v3712_v0  ;;  %v4798_v0 = vld [vmem:[#allocation23_spill] sm:$0xff] }
  0xd6   : > { %1594 = vmatpush.bf16.msra.mxu1 %v3635_v58  ;;  %v4784_v58 = vld [vmem:[#allocation6_spill] sm:$0xff] }
  0xd7   : > { %1558 = vmatpush.bf16.msra.mxu0 %v3697_v50  ;;  %v4795_v50 = vld [vmem:[#allocation20_spill] sm:$0xff] }
  0xda   : > { %1595 = vmatpush.bf16.msra.mxu1 %v3655_v7  ;;  %v4788_v7 = vld [vmem:[#allocation9_spill] sm:$0xff] }
  0xdc   : > { %1152 = vmatmul.bf16.gmra.mxu0 %v3995_v39 }
  0xdd   : > { %1191 = vmatmul.bf16.gmra.mxu1 %v3998_v45 }
  0xde   : > { %1230 = vmatmul.bf16.gmra.mxu2 %v4000_v46  ;;  %1596 = vmatpush.bf16.msra.mxu1 %v3679_v31  ;;  %v4792_v31 = vld [vmem:[#allocation13_spill] sm:$0xff] }
  0xdf   : > { %1269 = vmatmul.bf16.gmra.mxu3 %v4002_v47 }
  0xe2   : > { %1597 = vmatpush.bf16.msra.mxu1 %v3704_v55  ;;  %v4796_v55 = vld [vmem:[#allocation21_spill] sm:$0xff] }
  0xec   : > { %1283 = vmatmul.bf16.vlgmr.msrb.gmra.mxu0 %v3719_v11 }
  0xed   : > { %1322 = vmatmul.bf16.vlgmr.msrb.gmra.mxu1 %v3727_v20  ;;  %1707 = vmatpush.bf16.msrb.mxu0 %v3737_v28  ;;  %v4802_v28 = vld [vmem:[#allocation18_spill] sm:$0xff] }
  0xee   : > { %1361 = vmatmul.bf16.vlgmr.msrb.gmra.mxu2 %v3729_v21  ;;  %1746 = vmatpush.bf16.msrb.mxu1 %v3741_v29  ;;  %v4800_v21 = vld [vmem:[#allocation16_spill] sm:$0xff]  ;;  %v4803_v29 = vld [vmem:[#allocation19_spill] sm:$0xff] }
  0xef   : > { %1400 = vmatmul.bf16.vlgmr.msrb.gmra.mxu3 %v3735_v27  ;;  %1785 = vmatpush.bf16.msrb.mxu2 %v3714_v1  ;;  %v4799_v1 = vld [vmem:[#allocation24_spill] sm:$0xff]  ;;  %v4801_v27 = vld [vmem:[#allocation17_spill] sm:$0xff] }
  0xf0   : > { %1824 = vmatpush.bf16.msrb.mxu3 %v3721_v12 }
  0xf1   : > { %1708 = vmatpush.bf16.msrb.mxu0 %v3761_v52 }
  0xf2   : > { %1747 = vmatpush.bf16.msrb.mxu1 %v4782_v51 }
  0xf3   : > { %1786 = vmatpush.bf16.msrb.mxu2 %v3743_v33 }
  0xf4   : > { %1825 = vmatpush.bf16.msrb.mxu3 %v3750_v41 }
  0xf5   : > { %1709 = vmatpush.bf16.msrb.mxu0 %v3781_v23 }
  0xf6   : > { %1748 = vmatpush.bf16.msrb.mxu1 %v3785_v24 }
  0xf7   : > { %1787 = vmatpush.bf16.msrb.mxu2 %v4783_v57 }
  0xf8   : > { %1826 = vmatpush.bf16.msrb.mxu3 %v3773_v2 }
  0xf9   : > { %1710 = vmatpush.bf16.msrb.mxu0 %v3803_v62 }
  0xfa   : > { %1749 = vmatpush.bf16.msrb.mxu1 %v4785_v59 }
  0xfb   : > { %1788 = vmatpush.bf16.msrb.mxu2 %v3787_v36 }
  0xfc   : > { %1827 = vmatpush.bf16.msrb.mxu3 %v3792_v42  ;;  %1288 = vmatmul.bf16.gmra.mxu0 %v4784_v58 }
  0xfd   : > { %1327 = vmatmul.bf16.gmra.mxu1 %v4786_v63  ;;  %1711 = vmatpush.bf16.msrb.mxu0 %v4791_v25 }
  0xfe   : > { %1366 = vmatmul.bf16.gmra.mxu2 %v4787_v6  ;;  %1750 = vmatpush.bf16.msrb.mxu1 %v4792_v31 }
  0xff   : > { %1405 = vmatmul.bf16.gmra.mxu3 %v4788_v7  ;;  %1789 = vmatpush.bf16.msrb.mxu2 %v4789_v10 }
 0x100   : > { %1828 = vmatpush.bf16.msrb.mxu3 %v4790_v15 }
 0x101   : > { %1712 = vmatpush.bf16.msrb.mxu0 %v4795_v50 }
 0x102   : > { %1751 = vmatpush.bf16.msrb.mxu1 %v3884_v19 }
 0x103   : > { %1790 = vmatpush.bf16.msrb.mxu2 %v4793_v32 }
 0x104   : > { %1829 = vmatpush.bf16.msrb.mxu3 %v4794_v38 }
 0x105   : > { %1713 = vmatpush.bf16.msrb.mxu0 %v4798_v0 }
 0x106   : > { %1752 = vmatpush.bf16.msrb.mxu1 %v4799_v1  ;;  %v2885_v1 = vld [vmem:[%s3534_s22] sm:$0xf] }
 0x107   : > { %1791 = vmatpush.bf16.msrb.mxu2 %v4796_v55 }
 0x108   : > { %1830 = vmatpush.bf16.msrb.mxu3 %v4797_v56 }
 0x109   : > { %v1128_v11 = vpop.f32.mrf.mxu0  ;;  %1714 = vmatpush.bf16.msrb.mxu0 %v3936_v48 }
 0x10a   : > { %v1167_v12 = vpop.f32.mrf.mxu1  ;;  %1753 = vmatpush.bf16.msrb.mxu1 %v3941_v43  ;;  %v4804_v43 = vld [vmem:[#allocation25_spill] sm:$0xff] }
 0x10b   : > { %1792 = vmatpush.bf16.msrb.mxu2 %v3929_v40  ;;  %v1168_v20 = vadd.f32 %v1167_v12, %v1128_v11  ;;  %v3013_v11 = vld [vmem:[%s3534_s22 + $0xc] sm:$0xf0]  ;;  %v2887_v12 = vld [vmem:[%s3534_s22 + $0x10] sm:$0xf0] }
 0x10c   : > { %1831 = vmatpush.bf16.msrb.mxu3 %v3934_v54  ;;  %1293 = vmatmul.bf16.gmra.mxu0 %v4800_v21  ;;  %v3012_v21 = vld [vmem:[%s3534_s22 + $0xc] sm:$0xf] }
 0x10d   : > { %1332 = vmatmul.bf16.gmra.mxu1 %v4801_v27  ;;  %v2895_v27 = vld [vmem:[%s3534_s22 + $0x18] sm:$0xf0] }
 0x10e   : > { %1371 = vmatmul.bf16.gmra.mxu2 %v4802_v28  ;;  %v4096_v28 = vor.u32 %v3013_v11, %v2885_v1  ;;  %v3022_v1 = vld [vmem:[%s3534_s22 + $0x54] sm:$0xf0]  ;;  %v3020_v11 = vld [vmem:[%s3534_s22 + $0x4c] sm:$0xf] }
 0x10f   : > { %1410 = vmatmul.bf16.gmra.mxu3 %v4803_v29 }
 0x111   : > { %v1206_v33 = vpop.f32.mrf.mxu2  ;;  %v1130_v2 = vpop.f32.mrf.mxu0 }
 0x112   : > { %v1207_v41 = vadd.f32 %v1206_v33, %v1168_v20  ;;  %v1245_v52 = vpop.f32.mrf.mxu3  ;;  %v1169_v23 = vpop.f32.mrf.mxu1  ;;  %v2893_v20 = vld [vmem:[%s3534_s22 + $0x8] sm:$0xf] }
 0x113   : > { %v1170_v36 = vadd.f32 %v1169_v23, %v1130_v2  ;;  %v4102_v23 = vor.u32 %v3012_v21, %v2895_v27 }
 0x114   : > { %v4062_v24 = vadd.f32 %v1245_v52, %v1207_v41 }
 0x119   : > { %v1208_v42 = vpop.f32.mrf.mxu2  ;;  %v1133_v44 = vpop.f32.mrf.mxu0 }
 0x11a   : > { %v1209_v62 = vadd.f32 %v1208_v42, %v1170_v36  ;;  %v1247_v19 = vpop.f32.mrf.mxu3  ;;  %v1172_v40 = vpop.f32.mrf.mxu1 }
 0x11b   : > { %v1173_v48 = vadd.f32 %v1172_v40, %v1133_v44 }
 0x11c   : > { %v4064_v54 = vadd.f32 %v1247_v19, %v1209_v62  ;;  %1298 = vmatmul.bf16.gmra.mxu0 %v3914_v14 }
 0x11d   : > { %1337 = vmatmul.bf16.gmra.mxu1 %v4804_v43 }
 0x11e   : > { %1376 = vmatmul.bf16.gmra.mxu2 %v4805_v5 }
 0x11f   : > { %1415 = vmatmul.bf16.gmra.mxu3 %v4806_v16  ;;  %v2901_v16 = vld [vmem:[%s3534_s22 + $0x20] sm:$0xf] }
 0x121   : > { %v1211_v3 = vpop.f32.mrf.mxu2  ;;  %v1135_v53 = vpop.f32.mrf.mxu0 }
 0x122   : > { %v1212_v61 = vadd.f32 %v1211_v3, %v1173_v48  ;;  %v1250_v37 = vpop.f32.mrf.mxu3  ;;  %v1174_v49 = vpop.f32.mrf.mxu1  ;;  %v3017_v3 = vld [vmem:[%s3534_s22 + $0x2c] sm:$0xf0] }
 0x123   : > { %v1175_v17 = vadd.f32 %v1174_v49, %v1135_v53  ;;  %v2909_v53 = vld [vmem:[%s3534_s22 + $0x28] sm:$0xf]  ;;  %v3018_v49 = vld [vmem:[%s3534_s22 + $0x34] sm:$0xf0] }
 0x124   : > { %v4070_v13 = vadd.f32 %v1250_v37, %v1212_v61  ;;  %v3015_v61 = vld [vmem:[%s3534_s22 + $0x24] sm:$0xf]  ;;  %v2903_v37 = vld [vmem:[%s3534_s22 + $0x30] sm:$0xf0] }
 0x129   : > { %v1213_v18 = vpop.f32.mrf.mxu2  ;;  %v1138_v30 = vpop.f32.mrf.mxu0 }
 0x12a   : > { %v1214_v22 = vadd.f32 %v1213_v18, %v1175_v17  ;;  %v1252_v26 = vpop.f32.mrf.mxu3  ;;  %v1177_v34 = vpop.f32.mrf.mxu1  ;;  %v3016_v17 = vld [vmem:[%s3534_s22 + $0x2c] sm:$0xf]  ;;  %v2911_v18 = vld [vmem:[%s3534_s22 + $0x38] sm:$0xf0] }
 0x12b   : > { %v1178_v35 = vadd.f32 %v1177_v34, %v1138_v30 }
 0x12c   : > { %v4072_v14 = vadd.f32 %v1252_v26, %v1214_v22  ;;  %1303 = vmatmul.bf16.gmra.mxu0 %v3959_v60  ;;  %v4120_v26 = vor.u32 %v3017_v3, %v2901_v16  ;;  %v1863_v3 = vmul.f32 %v4062_v24, %v4062_v24 }
 0x12d   : > { %1342 = vmatmul.bf16.gmra.mxu1 %v3963_v9 }
 0x12e   : > { %1381 = vmatmul.bf16.gmra.mxu2 %v3965_v4 }
 0x12f   : > { %1420 = vmatmul.bf16.gmra.mxu3 %v3968_v8 }
 0x131   : > { %v1216_v51 = vpop.f32.mrf.mxu2  ;;  %v1140_v59 = vpop.f32.mrf.mxu0 }
 0x132   : > { %v1217_v57 = vadd.f32 %v1216_v51, %v1178_v35  ;;  %v1255_v58 = vpop.f32.mrf.mxu3  ;;  %v1179_v63 = vpop.f32.mrf.mxu1  ;;  %v4122_v51 = vor.u32 %v3015_v61, %v2903_v37  ;;  %v2933_v37 = vld [vmem:[%s3534_s22 + $0x60] sm:$0xf] }
 0x133   : > { %v1180_v7 = vadd.f32 %v1179_v63, %v1140_v59  ;;  %v4126_v59 = vor.u32 %v3016_v17, %v2911_v18  ;;  %v2935_v17 = vld [vmem:[%s3534_s22 + $0x70] sm:$0xf0]  ;;  %v2941_v18 = vld [vmem:[%s3534_s22 + $0x68] sm:$0xf] }
 0x134   : > { %v4078_v6 = vadd.f32 %v1255_v58, %v1217_v57  ;;  %v4124_v57 = vor.u32 %v3018_v49, %v2909_v53  ;;  %v3025_v53 = vld [vmem:[%s3534_s22 + $0x6c] sm:$0xf0]  ;;  %v3023_v49 = vld [vmem:[%s3534_s22 + $0x64] sm:$0xf] }
 0x139   : > { %v1218_v10 = vpop.f32.mrf.mxu2  ;;  %v1143_v31 = vpop.f32.mrf.mxu0 }
 0x13a   : > { %v1219_v15 = vadd.f32 %v1218_v10, %v1180_v7  ;;  %v1257_v25 = vpop.f32.mrf.mxu3  ;;  %v1182_v60 = vpop.f32.mrf.mxu1 }
 0x13b   : > { %v1183_v4 = vadd.f32 %v1182_v60, %v1143_v31 }
 0x13c   : > { %v4080_v9 = vadd.f32 %v1257_v25, %v1219_v15  ;;  %1308 = vmatmul.bf16.gmra.mxu0 %v3995_v39  ;;  %v3011_v39 = vld [vmem:[%s3534_s22 + $0x4] sm:$0xf] }
 0x13d   : > { %1347 = vmatmul.bf16.gmra.mxu1 %v3998_v45  ;;  %v3014_v45 = vld [vmem:[%s3534_s22 + $0x14] sm:$0xf0]  ;;  %v4098_v41 = vor.u32 %v3011_v39, %v2887_v12  ;;  %v2927_v39 = vld [vmem:[%s3534_s22 + $0x58] sm:$0xf0] }
 0x13e   : > { %1386 = vmatmul.bf16.gmra.mxu2 %v4000_v46  ;;  %v4100_v52 = vor.u32 %v3014_v45, %v2893_v20 }
 0x13f   : > { %1425 = vmatmul.bf16.gmra.mxu3 %v4002_v47 }
 0x141   : > { %v1221_v8 = vpop.f32.mrf.mxu2  ;;  %v1145_v50 = vpop.f32.mrf.mxu0 }
 0x142   : > { %v1222_v32 = vadd.f32 %v1221_v8, %v1183_v4  ;;  %v1260_v38 = vpop.f32.mrf.mxu3  ;;  %v1184_v55 = vpop.f32.mrf.mxu1 }
 0x143   : > { %v1185_v0 = vadd.f32 %v1184_v55, %v1145_v50  ;;  %v3019_v50 = vld [vmem:[%s3534_s22 + $0x44] sm:$0xf]  ;;  %v2919_v55 = vld [vmem:[%s3534_s22 + $0x50] sm:$0xf0] }
 0x144   : > { %v4086_v56 = vadd.f32 %v1260_v38, %v1222_v32  ;;  %v2917_v32 = vld [vmem:[%s3534_s22 + $0x40] sm:$0xf]  ;;  %v3021_v38 = vld [vmem:[%s3534_s22 + $0x4c] sm:$0xf0] }
 0x145   : > { %v4144_v20 = vor.u32 %v3021_v38, %v2917_v32 }
 0x149   : > { %v1223_v46 = vpop.f32.mrf.mxu2  ;;  %v1148_v33 = vpop.f32.mrf.mxu0 }
 0x14a   : > { %v1224_v47 = vadd.f32 %v1223_v46, %v1185_v0  ;;  %v1262_v29 = vpop.f32.mrf.mxu3  ;;  %v1187_v2 = vpop.f32.mrf.mxu1  ;;  %v2925_v0 = vld [vmem:[%s3534_s22 + $0x48] sm:$0xf]  ;;  %v4146_v46 = vor.u32 %v3019_v50, %v2919_v55  ;;  %v1864_v50 = vmul.f32 %v4064_v54, %v4064_v54  ;;  %v1865_v54 = vmul.f32 %v4070_v13, %v4070_v13 }
 0x14b   : > { %v1188_v42 = vadd.f32 %v1187_v2, %v1148_v33  ;;  %v4150_v33 = vor.u32 %v3020_v11, %v2927_v39 }
 0x14c   : > { %v4104_v36 = vadd.f32 %v1262_v29, %v1224_v47  ;;  %1559 = vmatmul.bf16.vlgmr.msra.gmra.mxu0 %v4096_v28  ;;  %v4148_v47 = vor.u32 %v3022_v1, %v2925_v0 }
 0x14d   : > { %1598 = vmatmul.bf16.vlgmr.msra.gmra.mxu1 %v4098_v41 }
 0x14e   : > { %1637 = vmatmul.bf16.vlgmr.msra.gmra.mxu2 %v4100_v52 }
 0x14f   : > { %1676 = vmatmul.bf16.vlgmr.msra.gmra.mxu3 %v4102_v23 }
 0x151   : > { %v1226_v62 = vpop.f32.mrf.mxu2  ;;  %v1150_v40 = vpop.f32.mrf.mxu0 }
 0x152   : > { %v1227_v19 = vadd.f32 %v1226_v62, %v1188_v42  ;;  %v1265_v44 = vpop.f32.mrf.mxu3  ;;  %v1189_v48 = vpop.f32.mrf.mxu1 }
 0x153   : > { %v1190_v5 = vadd.f32 %v1189_v48, %v1150_v40 }
 0x154   : > { %v4110_v43 = vadd.f32 %v1265_v44, %v1227_v19 }
 0x159   : > { %v1228_v22 = vpop.f32.mrf.mxu2  ;;  %v1153_v35 = vpop.f32.mrf.mxu0 }
 0x15a   : > { %v1229_v30 = vadd.f32 %v1228_v22, %v1190_v5  ;;  %v1267_v34 = vpop.f32.mrf.mxu3  ;;  %v1192_v58 = vpop.f32.mrf.mxu1  ;;  %v3026_v22 = vld [vmem:[%s3534_s22 + $0x74] sm:$0xf0] }
 0x15b   : > { %v1193_v7 = vadd.f32 %v1192_v58, %v1153_v35  ;;  %v2943_v35 = vld [vmem:[%s3534_s22 + $0x78] sm:$0xf0]  ;;  %v4174_v24 = vor.u32 %v3026_v22, %v2941_v18 }
 0x15c   : > { %v4128_v63 = vadd.f32 %v1267_v34, %v1229_v30  ;;  %1564 = vmatmul.bf16.gmra.mxu0 %v4120_v26  ;;  %v3024_v34 = vld [vmem:[%s3534_s22 + $0x6c] sm:$0xf] }
 0x15d   : > { %1603 = vmatmul.bf16.gmra.mxu1 %v4122_v51 }
 0x15e   : > { %1642 = vmatmul.bf16.gmra.mxu2 %v4124_v57 }
 0x15f   : > { %1681 = vmatmul.bf16.gmra.mxu3 %v4126_v59 }
 0x161   : > { %v1231_v10 = vpop.f32.mrf.mxu2  ;;  %v1155_v31 = vpop.f32.mrf.mxu0 }
 0x162   : > { %v1232_v15 = vadd.f32 %v1231_v10, %v1193_v7  ;;  %v1270_v25 = vpop.f32.mrf.mxu3  ;;  %v1194_v60 = vpop.f32.mrf.mxu1  ;;  %v4170_v7 = vor.u32 %v3025_v53, %v2933_v37 }
 0x163   : > { %v1195_v8 = vadd.f32 %v1194_v60, %v1155_v31  ;;  %v4172_v31 = vor.u32 %v3023_v49, %v2935_v17 }
 0x164   : > { %v4134_v4 = vadd.f32 %v1270_v25, %v1232_v15 }
 0x169   : > { %v1233_v12 = vpop.f32.mrf.mxu2  ;;  %v1284_v27 = vpop.f32.mrf.mxu0 }
 0x16a   : > { %v1234_v45 = vadd.f32 %v1233_v12, %v1195_v8  ;;  %v1272_v21 = vpop.f32.mrf.mxu3  ;;  %v1323_v29 = vpop.f32.mrf.mxu1  ;;  %v4176_v8 = vor.u32 %v3024_v34, %v2943_v35 }
 0x16b   : > { %v1324_v42 = vadd.f32 %v1323_v29, %v1284_v27 }
 0x16c   : > { %v4152_v2 = vadd.f32 %v1272_v21, %v1234_v45  ;;  %1569 = vmatmul.bf16.gmra.mxu0 %v4144_v20 }
 0x16d   : > { %1608 = vmatmul.bf16.gmra.mxu1 %v4146_v46 }
 0x16e   : > { %1647 = vmatmul.bf16.gmra.mxu2 %v4148_v47 }
 0x16f   : > { %1686 = vmatmul.bf16.gmra.mxu3 %v4150_v33 }
 0x171   : > { %v1362_v62 = vpop.f32.mrf.mxu2  ;;  %v1286_v40 = vpop.f32.mrf.mxu0 }
 0x172   : > { %v1363_v19 = vadd.f32 %v1362_v62, %v1324_v42  ;;  %v1401_v44 = vpop.f32.mrf.mxu3  ;;  %v1325_v48 = vpop.f32.mrf.mxu1  ;;  %v2949_v42 = vld [vmem:[%s3534_s22 + $0x80] sm:$0xf]  ;;  %v3029_v62 = vld [vmem:[%s3534_s22 + $0x8c] sm:$0xf0] }
 0x173   : > { %v1326_v16 = vadd.f32 %v1325_v48, %v1286_v40  ;;  %v2957_v40 = vld [vmem:[%s3534_s22 + $0x88] sm:$0xf]  ;;  %v3030_v48 = vld [vmem:[%s3534_s22 + $0x94] sm:$0xf0]  ;;  %v4198_v37 = vor.u32 %v3029_v62, %v2949_v42  ;;  %v3032_v62 = vld [vmem:[%s3534_s22 + $0xac] sm:$0xf] }
 0x174   : > { %v1402_v5 = vadd.f32 %v1401_v44, %v1363_v19  ;;  %v3027_v19 = vld [vmem:[%s3534_s22 + $0x84] sm:$0xf]  ;;  %v2951_v44 = vld [vmem:[%s3534_s22 + $0x90] sm:$0xf0]  ;;  %v4202_v13 = vor.u32 %v3030_v48, %v2957_v40 }
 0x175   : > { %v4200_v18 = vor.u32 %v3027_v19, %v2951_v44  ;;  %v2975_v19 = vld [vmem:[%s3534_s22 + $0xb8] sm:$0xf0] }
 0x176   : > { %v1875_v61 = vmul.f32 %v1402_v5, %v1402_v5 }
 0x178   : > { %v4166_v30 = vadd.f32 %v1875_v61, %v1863_v3  ;;  %v2959_v3 = vld [vmem:[%s3534_s22 + $0x98] sm:$0xf0] }
 0x179   : > { %v1364_v58 = vpop.f32.mrf.mxu2  ;;  %v1289_v25 = vpop.f32.mrf.mxu0 }
 0x17a   : > { %v1365_v10 = vadd.f32 %v1364_v58, %v1326_v16  ;;  %v1403_v15 = vpop.f32.mrf.mxu3  ;;  %v1328_v60 = vpop.f32.mrf.mxu1  ;;  %v3028_v16 = vld [vmem:[%s3534_s22 + $0x8c] sm:$0xf] }
 0x17b   : > { %v1329_v38 = vadd.f32 %v1328_v60, %v1289_v25  ;;  %v4204_v34 = vor.u32 %v3028_v16, %v2959_v3 }
 0x17c   : > { %v1404_v32 = vadd.f32 %v1403_v15, %v1365_v10  ;;  %1574 = vmatmul.bf16.gmra.mxu0 %v4170_v7  ;;  %v1866_v10 = vmul.f32 %v4072_v14, %v4072_v14  ;;  %v1867_v14 = vmul.f32 %v4078_v6, %v4078_v6 }
 0x17d   : > { %1613 = vmatmul.bf16.gmra.mxu1 %v4172_v31 }
 0x17e   : > { %1652 = vmatmul.bf16.gmra.mxu2 %v4174_v24  ;;  %v1876_v55 = vmul.f32 %v1404_v32, %v1404_v32 }
 0x17f   : > { %1691 = vmatmul.bf16.gmra.mxu3 %v4176_v8 }
 0x180   : > { %v4184_v0 = vadd.f32 %v1876_v55, %v1864_v50 }
 0x181   : > { %v1367_v1 = vpop.f32.mrf.mxu2  ;;  %v1291_v12 = vpop.f32.mrf.mxu0 }
 0x182   : > { %v1368_v11 = vadd.f32 %v1367_v1, %v1329_v38  ;;  %v1406_v39 = vpop.f32.mrf.mxu3  ;;  %v1330_v45 = vpop.f32.mrf.mxu1 }
 0x183   : > { %v1331_v27 = vadd.f32 %v1330_v45, %v1291_v12  ;;  %v2965_v12 = vld [vmem:[%s3534_s22 + $0xa0] sm:$0xf]  ;;  %v3033_v45 = vld [vmem:[%s3534_s22 + $0xac] sm:$0xf0] }
 0x184   : > { %v1407_v21 = vadd.f32 %v1406_v39, %v1368_v11  ;;  %v4226_v40 = vor.u32 %v3033_v45, %v2965_v12 }
 0x186   : > { %v1877_v29 = vmul.f32 %v1407_v21, %v1407_v21  ;;  %v3031_v21 = vld [vmem:[%s3534_s22 + $0xa4] sm:$0xf] }
 0x188   : > { %v4194_v5 = vadd.f32 %v1877_v29, %v1865_v54  ;;  %v2973_v54 = vld [vmem:[%s3534_s22 + $0xa8] sm:$0xf]  ;;  %v3034_v29 = vld [vmem:[%s3534_s22 + $0xb4] sm:$0xf0] }
 0x189   : > { %v1369_v61 = vpop.f32.mrf.mxu2  ;;  %v1294_v17 = vpop.f32.mrf.mxu0  ;;  %v4230_v6 = vor.u32 %v3034_v29, %v2973_v54 }
 0x18a   : > { %v1370_v53 = vadd.f32 %v1369_v61, %v1331_v27  ;;  %v1408_v49 = vpop.f32.mrf.mxu3  ;;  %v1333_v22 = vpop.f32.mrf.mxu1  ;;  %v2967_v27 = vld [vmem:[%s3534_s22 + $0xb0] sm:$0xf0] }
 0x18b   : > { %v1334_v58 = vadd.f32 %v1333_v22, %v1294_v17  ;;  %v4228_v61 = vor.u32 %v3031_v21, %v2967_v27 }
 0x18c   : > { %v1409_v35 = vadd.f32 %v1408_v49, %v1370_v53  ;;  %1579 = vmatmul.bf16.gmra.mxu0 %v4198_v37  ;;  %v4232_v49 = vor.u32 %v3032_v62, %v2975_v19  ;;  %v1870_v62 = vmul.f32 %v4104_v36, %v4104_v36 }
 0x18d   : > { %1618 = vmatmul.bf16.gmra.mxu1 %v4200_v18 }
 0x18e   : > { %1657 = vmatmul.bf16.gmra.mxu2 %v4202_v13  ;;  %v1878_v15 = vmul.f32 %v1409_v35, %v1409_v35  ;;  %v1868_v35 = vmul.f32 %v4080_v9, %v4080_v9 }
 0x18f   : > { %1696 = vmatmul.bf16.gmra.mxu3 %v4204_v34 }
 0x190   : > { %v4212_v25 = vadd.f32 %v1878_v15, %v1866_v10 }
 0x191   : > { %v1372_v60 = vpop.f32.mrf.mxu2  ;;  %v1296_v50 = vpop.f32.mrf.mxu0 }
 0x192   : > { %v1373_v32 = vadd.f32 %v1372_v60, %v1334_v58  ;;  %v1411_v38 = vpop.f32.mrf.mxu3  ;;  %v1335_v55 = vpop.f32.mrf.mxu1 }
 0x193   : > { %v1336_v11 = vadd.f32 %v1335_v55, %v1296_v50 }
 0x194   : > { %v1412_v1 = vadd.f32 %v1411_v38, %v1373_v32 }
 0x196   : > { %v1879_v39 = vmul.f32 %v1412_v1, %v1412_v1 }
 0x198   : > { %v4222_v42 = vadd.f32 %v1879_v39, %v1867_v14 }
 0x199   : > { %v1374_v44 = vpop.f32.mrf.mxu2  ;;  %v1299_v3 = vpop.f32.mrf.mxu0 }
 0x19a   : > { %v1375_v48 = vadd.f32 %v1374_v44, %v1336_v11  ;;  %v1413_v16 = vpop.f32.mrf.mxu3  ;;  %v1338_v53 = vpop.f32.mrf.mxu1  ;;  %v1869_v11 = vmul.f32 %v4086_v56, %v4086_v56 }
 0x19b   : > { %v1339_v22 = vadd.f32 %v1338_v53, %v1299_v3 }
 0x19c   : > { %v1414_v17 = vadd.f32 %v1413_v16, %v1375_v48  ;;  %1584 = vmatmul.bf16.gmra.mxu0 %v4226_v40 }
 0x19d   : > { %1623 = vmatmul.bf16.gmra.mxu1 %v4228_v61 }
 0x19e   : > { %1662 = vmatmul.bf16.gmra.mxu2 %v4230_v6  ;;  %v1880_v58 = vmul.f32 %v1414_v17, %v1414_v17 }
 0x19f   : > { %1701 = vmatmul.bf16.gmra.mxu3 %v4232_v49 }
 0x1a0   : > { %v4240_v10 = vadd.f32 %v1880_v58, %v1868_v35 }
 0x1a1   : > { %v1377_v15 = vpop.f32.mrf.mxu2  ;;  %v1301_v38 = vpop.f32.mrf.mxu0 }
 0x1a2   : > { %v1378_v60 = vadd.f32 %v1377_v15, %v1339_v22  ;;  %v1416_v32 = vpop.f32.mrf.mxu3  ;;  %v1340_v50 = vpop.f32.mrf.mxu1 }
 0x1a3   : > { %v1341_v1 = vadd.f32 %v1340_v50, %v1301_v38  ;;  %v1872_v38 = vmul.f32 %v4128_v63, %v4128_v63 }
 0x1a4   : > { %v1417_v55 = vadd.f32 %v1416_v32, %v1378_v60 }
 0x1a6   : > { %v1881_v14 = vmul.f32 %v1417_v55, %v1417_v55 }
 0x1a8   : > { %v4244_v39 = vadd.f32 %v1881_v14, %v1869_v11 }
 0x1a9   : > { %v1379_v12 = vpop.f32.mrf.mxu2  ;;  %v1304_v21 = vpop.f32.mrf.mxu0 }
 0x1aa   : > { %v1380_v9 = vadd.f32 %v1379_v12, %v1341_v1  ;;  %v1418_v45 = vpop.f32.mrf.mxu3  ;;  %v1343_v27 = vpop.f32.mrf.mxu1 }
 0x1ab   : > { %v1344_v29 = vadd.f32 %v1343_v27, %v1304_v21 }
 0x1ac   : > { %v1419_v54 = vadd.f32 %v1418_v45, %v1380_v9  ;;  %1715 = vmatmul.bf16.vlgmr.msrb.gmra.mxu0 %v4096_v28  ;;  %v1871_v28 = vmul.f32 %v4110_v43, %v4110_v43 }
 0x1ad   : > { %1754 = vmatmul.bf16.vlgmr.msrb.gmra.mxu1 %v4098_v41 }
 0x1ae   : > { %1793 = vmatmul.bf16.vlgmr.msrb.gmra.mxu2 %v4100_v52  ;;  %v1882_v56 = vmul.f32 %v1419_v54, %v1419_v54 }
 0x1af   : > { %1832 = vmatmul.bf16.vlgmr.msrb.gmra.mxu3 %v4102_v23 }
 0x1b0   : > { %v4252_v19 = vadd.f32 %v1882_v56, %v1870_v62  ;;  %v1874_v56 = vmul.f32 %v4152_v2, %v4152_v2 }
 0x1b1   : > { %v1382_v44 = vpop.f32.mrf.mxu2  ;;  %v1306_v3 = vpop.f32.mrf.mxu0 }
 0x1b2   : > { %v1383_v48 = vadd.f32 %v1382_v44, %v1344_v29  ;;  %v1421_v16 = vpop.f32.mrf.mxu3  ;;  %v1345_v53 = vpop.f32.mrf.mxu1 }
 0x1b3   : > { %v1346_v22 = vadd.f32 %v1345_v53, %v1306_v3 }
 0x1b4   : > { %v1422_v17 = vadd.f32 %v1421_v16, %v1383_v48 }
 0x1b6   : > { %v1883_v41 = vmul.f32 %v1422_v17, %v1422_v17 }
 0x1b8   : > { %v4256_v52 = vadd.f32 %v1883_v41, %v1871_v28 }
 0x1b9   : > { %v1384_v35 = vpop.f32.mrf.mxu2  ;;  %v1309_v15 = vpop.f32.mrf.mxu0 }
 0x1ba   : > { %v1385_v36 = vadd.f32 %v1384_v35, %v1346_v22  ;;  %v1423_v58 = vpop.f32.mrf.mxu3  ;;  %v1348_v23 = vpop.f32.mrf.mxu1 }
 0x1bb   : > { %v1349_v32 = vadd.f32 %v1348_v23, %v1309_v15 }
 0x1bc   : > { %v1424_v60 = vadd.f32 %v1423_v58, %v1385_v36  ;;  %1720 = vmatmul.bf16.gmra.mxu0 %v4120_v26  ;;  %v1873_v26 = vmul.f32 %v4134_v4, %v4134_v4 }
 0x1bd   : > { %1759 = vmatmul.bf16.gmra.mxu1 %v4122_v51 }
 0x1be   : > { %1798 = vmatmul.bf16.gmra.mxu2 %v4124_v57  ;;  %v1884_v43 = vmul.f32 %v1424_v60, %v1424_v60 }
 0x1bf   : > { %1837 = vmatmul.bf16.gmra.mxu3 %v4126_v59 }
 0x1c0   : > { %v4264_v50 = vadd.f32 %v1884_v43, %v1872_v38 }
 0x1c1   : > { %v1387_v55 = vpop.f32.mrf.mxu2  ;;  %v1311_v14 = vpop.f32.mrf.mxu0 }
 0x1c2   : > { %v1388_v1 = vadd.f32 %v1387_v55, %v1349_v32  ;;  %v1426_v11 = vpop.f32.mrf.mxu3  ;;  %v1350_v12 = vpop.f32.mrf.mxu1 }
 0x1c3   : > { %v1351_v45 = vadd.f32 %v1350_v12, %v1311_v14 }
 0x1c4   : > { %v1427_v9 = vadd.f32 %v1426_v11, %v1388_v1 }
 0x1c6   : > { %v1885_v51 = vmul.f32 %v1427_v9, %v1427_v9 }
 0x1c8   : > { %v4268_v57 = vadd.f32 %v1885_v51, %v1873_v26 }
 0x1c9   : > { %v1389_v21 = vpop.f32.mrf.mxu2  ;;  %v1560_v54 = vpop.f32.mrf.mxu0 }
 0x1ca   : > { %v1390_v63 = vadd.f32 %v1389_v21, %v1351_v45  ;;  %v1428_v27 = vpop.f32.mrf.mxu3  ;;  %v1599_v59 = vpop.f32.mrf.mxu1 }
 0x1cb   : > { %v1600_v62 = vadd.f32 %v1599_v59, %v1560_v54 }
 0x1cc   : > { %v1429_v29 = vadd.f32 %v1428_v27, %v1390_v63  ;;  %1725 = vmatmul.bf16.gmra.mxu0 %v4144_v20 }
 0x1cd   : > { %1764 = vmatmul.bf16.gmra.mxu1 %v4146_v46 }
 0x1ce   : > { %1803 = vmatmul.bf16.gmra.mxu2 %v4148_v47  ;;  %v1886_v4 = vmul.f32 %v1429_v29, %v1429_v29 }
 0x1cf   : > { %1842 = vmatmul.bf16.gmra.mxu3 %v4150_v33 }
 0x1d0   : > { %v4276_v44 = vadd.f32 %v1886_v4, %v1874_v56 }
 0x1d1   : > { %v1638_v48 = vpop.f32.mrf.mxu2  ;;  %v1562_v53 = vpop.f32.mrf.mxu0 }
 0x1d2   : > { %v1639_v16 = vadd.f32 %v1638_v48, %v1600_v62  ;;  %v1677_v3 = vpop.f32.mrf.mxu3  ;;  %v1601_v17 = vpop.f32.mrf.mxu1 }
 0x1d3   : > { %v1602_v20 = vadd.f32 %v1601_v17, %v1562_v53 }
 0x1d4   : > { %v4278_v22 = vadd.f32 %v1677_v3, %v1639_v16 }
 0x1d9   : > { %v1640_v28 = vpop.f32.mrf.mxu2  ;;  %v1565_v47 = vpop.f32.mrf.mxu0 }
 0x1da   : > { %v1641_v46 = vadd.f32 %v1640_v28, %v1602_v20  ;;  %v1679_v41 = vpop.f32.mrf.mxu3  ;;  %v1604_v35 = vpop.f32.mrf.mxu1  ;;  %v4310_v28 = vmax.f32 %v4184_v0, 1e-08 }
 0x1db   : > { %v1605_v2 = vadd.f32 %v1604_v35, %v1565_v47 }
 0x1dc   : > { %v4280_v36 = vadd.f32 %v1679_v41, %v1641_v46  ;;  %1730 = vmatmul.bf16.gmra.mxu0 %v4170_v7  ;;  %vm1930_vm2 = vcmp.eq.f32.partialorder %v4310_v28, inf  ;;  %vm1932_vm3 = vcmp.eq.f32.partialorder %v4310_v28, 0.0 }
 0x1dd   : > { %1769 = vmatmul.bf16.gmra.mxu1 %v4172_v31 }
 0x1de   : > { %1808 = vmatmul.bf16.gmra.mxu2 %v4174_v24 }
 0x1df   : > { %1847 = vmatmul.bf16.gmra.mxu3 %v4176_v8 }
 0x1e1   : > { %v1643_v33 = vpop.f32.mrf.mxu2  ;;  %v1567_v23 = vpop.f32.mrf.mxu0 }
 0x1e2   : > { %v1644_v58 = vadd.f32 %v1643_v33, %v1605_v2  ;;  %v1682_v15 = vpop.f32.mrf.mxu3  ;;  %v1606_v60 = vpop.f32.mrf.mxu1 }
 0x1e3   : > { %v1607_v38 = vadd.f32 %v1606_v60, %v1567_v23 }
 0x1e4   : > { %v4286_v32 = vadd.f32 %v1682_v15, %v1644_v58  ;;  %v4316_v58 = vmax.f32 %v4194_v5, 1e-08 }
 0x1e6   : > { %vm1942_vm4 = vcmp.eq.f32.partialorder %v4316_v58, inf  ;;  %vm1944_vm5 = vcmp.eq.f32.partialorder %v4316_v58, 0.0 }
 0x1e9   : > { %v1645_v43 = vpop.f32.mrf.mxu2  ;;  %v1570_v11 = vpop.f32.mrf.mxu0 }
 0x1ea   : > { %v1646_v55 = vadd.f32 %v1645_v43, %v1607_v38  ;;  %v1684_v1 = vpop.f32.mrf.mxu3  ;;  %v1609_v14 = vpop.f32.mrf.mxu1 }
 0x1eb   : > { %v1610_v31 = vadd.f32 %v1609_v14, %v1570_v11 }
 0x1ec   : > { %v4288_v7 = vadd.f32 %v1684_v1, %v1646_v55  ;;  %1735 = vmatmul.bf16.gmra.mxu0 %v4198_v37 }
 0x1ed   : > { %1774 = vmatmul.bf16.gmra.mxu1 %v4200_v18 }
 0x1ee   : > { %1813 = vmatmul.bf16.gmra.mxu2 %v4202_v13 }
 0x1ef   : > { %1852 = vmatmul.bf16.gmra.mxu3 %v4204_v34 }
 0x1f1   : > { %v1648_v24 = vpop.f32.mrf.mxu2  ;;  %v1572_v9 = vpop.f32.mrf.mxu0 }
 0x1f2   : > { %v1649_v8 = vadd.f32 %v1648_v24, %v1610_v31  ;;  %v1687_v12 = vpop.f32.mrf.mxu3  ;;  %v1611_v45 = vpop.f32.mrf.mxu1  ;;  %v4329_v31 = vmax.f32 %v4222_v42, 1e-08 }
 0x1f3   : > { %v1612_v51 = vadd.f32 %v1611_v45, %v1572_v9 }
 0x1f4   : > { %v4294_v26 = vadd.f32 %v1687_v12, %v1649_v8  ;;  %v4332_v8 = vmax.f32 %v4240_v10, 1e-08  ;;  %vm1966_vm8 = vcmp.eq.f32.partialorder %v4329_v31, inf  ;;  %vm1968_vm10 = vcmp.eq.f32.partialorder %v4329_v31, 0.0 }
 0x1f6   : > { %vm1978_vm9 = vcmp.eq.f32.partialorder %v4332_v8, inf  ;;  %vm1980_vm11 = vcmp.eq.f32.partialorder %v4332_v8, 0.0 }
 0x1f9   : > { %v1650_v21 = vpop.f32.mrf.mxu2  ;;  %v1575_v54 = vpop.f32.mrf.mxu0 }
 0x1fa   : > { %v1651_v63 = vadd.f32 %v1650_v21, %v1612_v51  ;;  %v1689_v27 = vpop.f32.mrf.mxu3  ;;  %v1614_v59 = vpop.f32.mrf.mxu1 }
 0x1fb   : > { %v1615_v18 = vadd.f32 %v1614_v59, %v1575_v54 }
 0x1fc   : > { %v4296_v37 = vadd.f32 %v1689_v27, %v1651_v63  ;;  %1740 = vmatmul.bf16.gmra.mxu0 %v4226_v40 }
 0x1fd   : > { %1779 = vmatmul.bf16.gmra.mxu1 %v4228_v61 }
 0x1fe   : > { %1818 = vmatmul.bf16.gmra.mxu2 %v4230_v6  ;;  %v4307_v6 = vmax.f32 %v4166_v30, 1e-08  ;;  %v4320_v30 = vmax.f32 %v4212_v25, 1e-08 }
 0x1ff   : > { %1857 = vmatmul.bf16.gmra.mxu3 %v4232_v49 }
 0x200   : > { %3157 = vrsqrt.f32 %v4307_v6  ;;  %vm1918_vm0 = vcmp.eq.f32.partialorder %v4307_v6, inf  ;;  %vm1920_vm1 = vcmp.eq.f32.partialorder %v4307_v6, 0.0  ;;  %vm1954_vm6 = vcmp.eq.f32.partialorder %v4320_v30, inf }
 0x201   : > { %v1653_v13 = vpop.f32.mrf.mxu2  ;;  %v1577_v62 = vpop.f32.mrf.mxu0  ;;  %3159 = vrsqrt.f32 %v4310_v28  ;;  %vm1956_vm7 = vcmp.eq.f32.partialorder %v4320_v30, 0.0 }
 0x202   : > { %v1654_v34 = vadd.f32 %v1653_v13, %v1615_v18  ;;  %v1692_v29 = vpop.f32.mrf.mxu3  ;;  %v1616_v56 = vpop.f32.mrf.mxu1  ;;  %3161 = vrsqrt.f32 %v4316_v58 }
 0x203   : > { %v1617_v48 = vadd.f32 %v1616_v56, %v1577_v62  ;;  %3163 = vrsqrt.f32 %v4320_v30 }
 0x204   : > { %v4302_v4 = vadd.f32 %v1692_v29, %v1654_v34  ;;  %3165 = vrsqrt.f32 %v4329_v31 }
 0x205   : > { %3167 = vrsqrt.f32 %v4332_v8 }
 0x206   : > { %v3158_v38 = vpop.eup %3157 }
 0x207   : > { %v3160_v55 = vpop.eup %3159  ;;  %v1912_v14 = vmul.f32 %v3158_v38, %v4307_v6 }
 0x208   : > { %v3162_v11 = vpop.eup %3161  ;;  %v1924_v25 = vmul.f32 %v3160_v55, %v4310_v28 }
 0x209   : > { %v1655_v16 = vpop.f32.mrf.mxu2  ;;  %v1580_v17 = vpop.f32.mrf.mxu0  ;;  %v1936_v9 = vmul.f32 %v3162_v11, %v4316_v58  ;;  %v1913_v63 = vmul.f32 %v3158_v38, %v1912_v14 }
 0x20a   : > { %v1656_v3 = vadd.f32 %v1655_v16, %v1617_v48  ;;  %v1694_v53 = vpop.f32.mrf.mxu3  ;;  %v1619_v20 = vpop.f32.mrf.mxu1  ;;  %v1925_v27 = vmul.f32 %v3160_v55, %v1924_v25 }
 0x20b   : > { %v1620_v61 = vadd.f32 %v1619_v20, %v1580_v17  ;;  %v3164_v24 = vpop.eup %3163  ;;  %v1937_v10 = vmul.f32 %v3162_v11, %v1936_v9  ;;  %v1914_v13 = vmul.f32 0.5, %v1913_v63 }
 0x20c   : > { %v4304_v40 = vadd.f32 %v1694_v53, %v1656_v3  ;;  %v1948_v54 = vmul.f32 %v3164_v24, %v4320_v30  ;;  %v1926_v34 = vmul.f32 0.5, %v1925_v27  ;;  %v4340_v62 = vpop.eup %3165 }
 0x20d   : > { %v4342_v48 = vpop.eup %3167  ;;  %v1938_v16 = vmul.f32 0.5, %v1937_v10  ;;  %v1915_v20 = vsub.f32 1.5, %v1914_v13  ;;  %v2055_v10 = vmul.f32 %v4278_v22, %v4278_v22 }
 0x20e   : > { %v1949_v29 = vmul.f32 %v3164_v24, %v1948_v54  ;;  %v1921_v54 = vand.u32 2147483648, %v4307_v6 }
 0x211   : > { %v1658_v49 = vpop.f32.mrf.mxu2  ;;  %v1582_v47 = vpop.f32.mrf.mxu0 }
 0x212   : > { %v1659_v46 = vadd.f32 %v1658_v49, %v1620_v61  ;;  %v1697_v41 = vpop.f32.mrf.mxu3  ;;  %v1621_v35 = vpop.f32.mrf.mxu1  ;;  %v1927_v61 = vsub.f32 1.5, %v1926_v34  ;;  %v1950_v49 = vmul.f32 0.5, %v1949_v29  ;;  %v1933_v29 = vand.u32 2147483648, %v4310_v28 }
 0x213   : > { %v1622_v33 = vadd.f32 %v1621_v35, %v1582_v47  ;;  %v4347_v47 = vmax.f32 %v4244_v39, 1e-08 }
 0x214   : > { %v4312_v2 = vadd.f32 %v1697_v41, %v1659_v46  ;;  %v1960_v41 = vmul.f32 %v4340_v62, %v4329_v31 }
 0x215   : > { %3169 = vrsqrt.f32 %v4347_v47  ;;  %vm1990_vm12 = vcmp.eq.f32.partialorder %v4347_v47, inf  ;;  %vm1992_vm13 = vcmp.eq.f32.partialorder %v4347_v47, 0.0 }
 0x216   : > { %v1961_v14 = vmul.f32 %v4340_v62, %v1960_v41 }
 0x218   : > { %v1962_v63 = vmul.f32 0.5, %v1961_v14 }
 0x219   : > { %v1660_v0 = vpop.f32.mrf.mxu2  ;;  %v1585_v60 = vpop.f32.mrf.mxu0 }
 0x21a   : > { %v1661_v15 = vadd.f32 %v1660_v0, %v1622_v33  ;;  %v1699_v23 = vpop.f32.mrf.mxu3  ;;  %v1624_v43 = vpop.f32.mrf.mxu1  ;;  %v1972_v0 = vmul.f32 %v4342_v48, %v4332_v8 }
 0x21b   : > { %v1625_v5 = vadd.f32 %v1624_v43, %v1585_v60  ;;  %v1928_v60 = vmul.f32 %v3160_v55, %v1927_v61  ;;  %v4354_v43 = vmax.f32 %v4252_v19, 1e-08 }
 0x21c   : > { %v4324_v1 = vadd.f32 %v1699_v23, %v1661_v15  ;;  %v1939_v15 = vsub.f32 1.5, %v1938_v16  ;;  %v1916_v23 = vmul.f32 %v3158_v38, %v1915_v20  ;;  %v1973_v39 = vmul.f32 %v4342_v48, %v1972_v0 }
 0x21d   : > { %v1929_v38 = vmul.f32 %v1928_v60, %v4310_v28  ;;  %3171 = vrsqrt.f32 %v4354_v43  ;;  %v1963_v16 = vsub.f32 1.5, %v1962_v63  ;;  %vm2002_vm14 = vcmp.eq.f32.partialorder %v4354_v43, inf }
 0x21e   : > { %vm2004_vm15 = vcmp.eq.f32.partialorder %v4354_v43, 0.0 }
 0x21f   : > { %v1931_v34 = vsel %vm1930_vm2, %v4310_v28, %v1929_v38 }
 0x220   : > { %v4392_v60 = vsel %vm1932_vm3, %v1933_v29, %v1931_v34 }
 0x221   : > { %v1663_v12 = vpop.f32.mrf.mxu2  ;;  %v1587_v21 = vpop.f32.mrf.mxu0 }
 0x222   : > { %v1664_v45 = vadd.f32 %v1663_v12, %v1625_v5  ;;  %v1702_v51 = vpop.f32.mrf.mxu3  ;;  %v1626_v59 = vpop.f32.mrf.mxu1  ;;  %v1951_v5 = vsub.f32 1.5, %v1950_v49  ;;  %v1940_v12 = vmul.f32 %v3162_v11, %v1939_v15  ;;  %v1974_v11 = vmul.f32 0.5, %v1973_v39 }
 0x223   : > { %v1627_v18 = vadd.f32 %v1626_v59, %v1587_v21  ;;  %v1917_v21 = vmul.f32 %v1916_v23, %v4307_v6  ;;  %v4365_v59 = vpop.eup %3169 }
 0x224   : > { %v4338_v42 = vadd.f32 %v1702_v51, %v1664_v45  ;;  %v1952_v55 = vmul.f32 %v3164_v24, %v1951_v5  ;;  %v1975_v22 = vsub.f32 1.5, %v1974_v11  ;;  %v1984_v20 = vmul.f32 %v4365_v59, %v4347_v47 }
 0x225   : > { %v1919_v24 = vsel %vm1918_vm0, %v4307_v6, %v1917_v21  ;;  %v1957_v5 = vand.u32 2147483648, %v4320_v30  ;;  %v2056_v21 = vmul.f32 %v4280_v36, %v4280_v36 }
 0x226   : > { %v4388_v23 = vsel %vm1920_vm1, %v1921_v54, %v1919_v24  ;;  %v1976_v28 = vmul.f32 %v4342_v48, %v1975_v22 }
 0x229   : > { %v1665_v56 = vpop.f32.mrf.mxu2  ;;  %v1716_v17 = vpop.f32.mrf.mxu0 }
 0x22a   : > { %v1666_v3 = vadd.f32 %v1665_v56, %v1627_v18  ;;  %v1704_v53 = vpop.f32.mrf.mxu3  ;;  %v1755_v46 = vpop.f32.mrf.mxu1  ;;  %v1941_v18 = vmul.f32 %v1940_v12, %v4316_v58  ;;  %v1953_v56 = vmul.f32 %v1952_v55, %v4320_v30 }
 0x22b   : > { %v1756_v33 = vadd.f32 %v1755_v46, %v1716_v17  ;;  %v4376_v17 = vpop.eup %3171  ;;  %v1945_v46 = vand.u32 2147483648, %v4316_v58 }
 0x22c   : > { %v4349_v35 = vadd.f32 %v1704_v53, %v1666_v3  ;;  %v1943_v49 = vsel %vm1942_vm4, %v4316_v58, %v1941_v18  ;;  %v1955_v39 = vsel %vm1954_vm6, %v4320_v30, %v1953_v56  ;;  %v1996_v12 = vmul.f32 %v4376_v17, %v4354_v43 }
 0x22d   : > { %v4403_v6 = vsel %vm1944_vm5, %v1945_v46, %v1943_v49  ;;  %v1977_v30 = vmul.f32 %v1976_v28, %v4332_v8  ;;  %v1981_v49 = vand.u32 2147483648, %v4332_v8  ;;  %v2057_v46 = vmul.f32 %v4286_v32, %v4286_v32 }
 0x22e   : > { %v1997_v38 = vmul.f32 %v4376_v17, %v1996_v12 }
 0x230   : > { %v1998_v56 = vmul.f32 0.5, %v1997_v38 }
 0x231   : > { %v1794_v25 = vpop.f32.mrf.mxu2  ;;  %v1718_v51 = vpop.f32.mrf.mxu0 }
 0x232   : > { %v1795_v9 = vadd.f32 %v1794_v25, %v1756_v33  ;;  %v1833_v45 = vpop.f32.mrf.mxu3  ;;  %v1757_v19 = vpop.f32.mrf.mxu1  ;;  %v1964_v25 = vmul.f32 %v4340_v62, %v1963_v16  ;;  %v4410_v62 = vsel %vm1956_vm7, %v1957_v5, %v1955_v39 }
 0x233   : > { %v1758_v53 = vadd.f32 %v1757_v19, %v1718_v51  ;;  %v4418_v19 = vmax.f32 %v4256_v52, 1e-08 }
 0x234   : > { %v1834_v27 = vadd.f32 %v1833_v45, %v1795_v9  ;;  %v1985_v9 = vmul.f32 %v4365_v59, %v1984_v20  ;;  %v1965_v48 = vmul.f32 %v1964_v25, %v4329_v31  ;;  %v1999_v25 = vsub.f32 1.5, %v1998_v56 }
 0x235   : > { %vm2014_vm6 = vcmp.eq.f32.partialorder %v4418_v19, inf  ;;  %vm2016_vm7 = vcmp.eq.f32.partialorder %v4418_v19, 0.0 }
 0x236   : > { %v2067_v13 = vmul.f32 %v1834_v27, %v1834_v27  ;;  %v1986_v55 = vmul.f32 0.5, %v1985_v9  ;;  %v1967_v29 = vsel %vm1966_vm8, %v4329_v31, %v1965_v48 }
 0x238   : > { %v2079_v3 = vadd.f32 %v2067_v13, %v2055_v10  ;;  %v1969_v10 = vand.u32 2147483648, %v4329_v31  ;;  %v1987_v22 = vsub.f32 1.5, %v1986_v55 }
 0x239   : > { %v1796_v61 = vpop.f32.mrf.mxu2  ;;  %v1721_v15 = vpop.f32.mrf.mxu0 }
 0x23a   : > { %v4384_v41 = vmax.f32 %v2079_v3, 1e-08  ;;  %v1797_v33 = vadd.f32 %v1796_v61, %v1758_v53  ;;  %v1835_v0 = vpop.f32.mrf.mxu3  ;;  %v1760_v14 = vpop.f32.mrf.mxu1  ;;  %v1979_v53 = vsel %vm1978_vm9, %v4332_v8, %v1977_v30  ;;  %v1988_v32 = vmul.f32 %v4365_v59, %v1987_v22 }
 0x23b   : > { %v1761_v51 = vadd.f32 %v1760_v14, %v1721_v15  ;;  %v4438_v15 = vsel %vm1968_vm10, %v1969_v10, %v1967_v29  ;;  %v4441_v39 = vsel %vm1980_vm11, %v1981_v49, %v1979_v53  ;;  %v1993_v59 = vand.u32 2147483648, %v4347_v47 }
 0x23c   : > { %3173 = vrsqrt.f32 %v4384_v41  ;;  %v1836_v45 = vadd.f32 %v1835_v0, %v1797_v33  ;;  %vm2110_vm0 = vcmp.eq.f32.partialorder %v4384_v41, inf  ;;  %v2058_v29 = vmul.f32 %v4288_v7, %v4288_v7 }
 0x23d   : > { %3175 = vlog2.f32 %v4388_v23  ;;  %vm2112_vm1 = vcmp.eq.f32.partialorder %v4384_v41, 0.0  ;;  %v4476_v22 = vmax.f32 %v4264_v50, 1e-08 }
 0x23e   : > { %3177 = vlog2.f32 %v4392_v60  ;;  %v2068_v58 = vmul.f32 %v1836_v45, %v1836_v45 }
 0x23f   : > { %3179 = vlog2.f32 %v4403_v6 }
 0x240   : > { %v2080_v63 = vadd.f32 %v2068_v58, %v2056_v21  ;;  %3181 = vlog2.f32 %v4410_v62 }
 0x241   : > { %v1799_v27 = vpop.f32.mrf.mxu2  ;;  %v1723_v18 = vpop.f32.mrf.mxu0  ;;  %3183 = vrsqrt.f32 %v4418_v19 }
 0x242   : > { %v3174_v54 = vpop.eup %3173  ;;  %v1800_v36 = vadd.f32 %v1799_v27, %v1761_v51  ;;  %v1838_v11 = vpop.f32.mrf.mxu3  ;;  %v4426_v13 = vmax.f32 %v2080_v63, 1e-08 }
 0x243   : > { %v2104_v52 = vmul.f32 %v3174_v54, %v4384_v41  ;;  %v1762_v24 = vpop.f32.mrf.mxu1  ;;  %v3176_v34 = vpop.eup %3175 }
 0x244   : > { %v1839_v16 = vadd.f32 %v1838_v11, %v1800_v36  ;;  %v3178_v3 = vpop.eup %3177  ;;  %3185 = vrsqrt.f32 %v4426_v13  ;;  %v4436_v0 = vmul.f32 0.6931472, %v3176_v34  ;;  %v1763_v28 = vadd.f32 %v1762_v24, %v1723_v18 }
 0x245   : > { %v2105_v20 = vmul.f32 %v3174_v54, %v2104_v52  ;;  %v3180_v61 = vpop.eup %3179  ;;  %v4443_v31 = vmul.f32 0.6931472, %v3178_v3  ;;  %3187 = vlog2.f32 %v4438_v15  ;;  %v2000_v36 = vmul.f32 %v4376_v17, %v1999_v25 }
 0x246   : > { %v2069_v33 = vmul.f32 %v1839_v16, %v1839_v16  ;;  %v3182_v14 = vpop.eup %3181  ;;  %v4445_v9 = vmul.f32 0.6931472, %v3180_v61  ;;  %3189 = vlog2.f32 %v4441_v39  ;;  %v1989_v18 = vmul.f32 %v1988_v32, %v4347_v47 }
 0x247   : > { %v2106_v5 = vmul.f32 0.5, %v2105_v20  ;;  %v4448_v21 = vpop.eup %3183  ;;  %v4454_v55 = vmul.f32 0.6931472, %v3182_v14  ;;  %v2113_v17 = vand.u32 2147483648, %v4384_v41  ;;  %v2001_v53 = vmul.f32 %v2000_v36, %v4354_v43 }
 0x248   : > { %v2081_v12 = vadd.f32 %v2069_v33, %v2057_v46  ;;  %v2008_v10 = vmul.f32 %v4448_v21, %v4418_v19  ;;  %v2005_v46 = vand.u32 2147483648, %v4354_v43  ;;  %vm2122_vm2 = vcmp.eq.f32.partialorder %v4426_v13, inf }
 0x249   : > { %v2107_v45 = vsub.f32 1.5, %v2106_v5  ;;  %v1801_v51 = vpop.f32.mrf.mxu2  ;;  %v1726_v38 = vpop.f32.mrf.mxu0  ;;  %vm2124_vm3 = vcmp.eq.f32.partialorder %v4426_v13, 0.0 }
 0x24a   : > { %v4452_v8 = vmax.f32 %v2081_v12, 1e-08  ;;  %v1802_v58 = vadd.f32 %v1801_v51, %v1763_v28  ;;  %v1840_v48 = vpop.f32.mrf.mxu3  ;;  %v3186_v30 = vpop.eup %3185  ;;  %v2009_v25 = vmul.f32 %v4448_v21, %v2008_v10  ;;  %v2017_v51 = vand.u32 2147483648, %v4418_v19 }
 0x24b   : > { %v2108_v63 = vmul.f32 %v3174_v54, %v2107_v45  ;;  %v1765_v27 = vpop.f32.mrf.mxu1  ;;  %v2116_v11 = vmul.f32 %v3186_v30, %v4426_v13  ;;  %v3188_v3 = vpop.eup %3187 }
 0x24c   : > { %3191 = vrsqrt.f32 %v4452_v8  ;;  %v1841_v24 = vadd.f32 %v1840_v48, %v1802_v58  ;;  %v1766_v34 = vadd.f32 %v1765_v27, %v1726_v38  ;;  %v3190_v49 = vpop.eup %3189  ;;  %v4484_v45 = vmul.f32 0.6931472, %v3188_v3 }
 0x24d   : > { %v2109_v52 = vmul.f32 %v2108_v63, %v4384_v41  ;;  %v2117_v54 = vmul.f32 %v3186_v30, %v2116_v11  ;;  %v2003_v38 = vsel %vm2002_vm14, %v4354_v43, %v2001_v53  ;;  %v4494_v36 = vmul.f32 0.6931472, %v3190_v49 }
 0x24e   : > { %v2070_v16 = vmul.f32 %v1841_v24, %v1841_v24  ;;  %v2010_v10 = vmul.f32 0.5, %v2009_v25  ;;  %vm2134_vm4 = vcmp.eq.f32.partialorder %v4452_v8, inf  ;;  %vm2136_vm5 = vcmp.eq.f32.partialorder %v4452_v8, 0.0 }
 0x24f   : > { %v2111_v56 = vsel %vm2110_vm0, %v4384_v41, %v2109_v52  ;;  %v2118_v61 = vmul.f32 0.5, %v2117_v54  ;;  %v1991_v41 = vsel %vm1990_vm12, %v4347_v47, %v1989_v18  ;;  %v2059_v52 = vmul.f32 %v4294_v26, %v4294_v26 }
 0x250   : > { %v2114_v20 = vsel %vm2112_vm1, %v2113_v17, %v2111_v56  ;;  %v2082_v7 = vadd.f32 %v2070_v16, %v2058_v29  ;;  %v4498_v11 = vsel %vm1992_vm13, %v1993_v59, %v1991_v41  ;;  %v2125_v47 = vand.u32 2147483648, %v4426_v13 }
 0x251   : > { %v2247_v33 = vsub.f32 %v2114_v20, %v4388_v23  ;;  %3193 = vlog2.f32 %v2114_v20  ;;  %v1804_v5 = vpop.f32.mrf.mxu2  ;;  %v2119_v12 = vsub.f32 1.5, %v2118_v61  ;;  %v1728_v32 = vpop.f32.mrf.mxu0  ;;  %v2282_v56 = vmul.f32 %v2114_v20, %v2114_v20 }
 0x252   : > { %v3192_v14 = vpop.eup %3191  ;;  %v1805_v50 = vadd.f32 %v1804_v5, %v1766_v34  ;;  %v1843_v28 = vpop.f32.mrf.mxu3  ;;  %v4488_v58 = vmax.f32 %v2082_v7, 1e-08  ;;  %3195 = vrsqrt.f32 %v4476_v22  ;;  %vm2026_vm0 = vcmp.eq.f32.partialorder %v4476_v22, inf }
 0x253   : > { %v2128_v23 = vmul.f32 %v3192_v14, %v4452_v8  ;;  %v1767_v48 = vpop.f32.mrf.mxu1  ;;  %v2120_v63 = vmul.f32 %v3186_v30, %v2119_v12  ;;  %v4506_v30 = vsel %vm2004_vm15, %v2005_v46, %v2003_v38  ;;  %v2011_v12 = vsub.f32 1.5, %v2010_v10 }
 0x254   : > { %v1844_v27 = vadd.f32 %v1843_v28, %v1805_v50  ;;  %3197 = vrsqrt.f32 %v4488_v58  ;;  %v1768_v53 = vadd.f32 %v1767_v48, %v1728_v32  ;;  %v2259_v32 = vmul.f32 %v2247_v33, %v2247_v33 }
 0x255   : > { %v2129_v18 = vmul.f32 %v3192_v14, %v2128_v23  ;;  %v2121_v24 = vmul.f32 %v2120_v63, %v4426_v13  ;;  %v2012_v33 = vmul.f32 %v4448_v21, %v2011_v12  ;;  %vm2146_vm8 = vcmp.eq.f32.partialorder %v4488_v58, inf }
 0x256   : > { %v2071_v17 = vmul.f32 %v1844_v27, %v1844_v27  ;;  %vm2148_vm9 = vcmp.eq.f32.partialorder %v4488_v58, 0.0 }
 0x257   : > { %v3194_v54 = vpop.eup %3193  ;;  %v2130_v59 = vmul.f32 0.5, %v2129_v18  ;;  %v2123_v29 = vsel %vm2122_vm2, %v4426_v13, %v2121_v24  ;;  %v2060_v24 = vmul.f32 %v4296_v37, %v4296_v37 }
 0x258   : > { %v4510_v34 = vmul.f32 0.6931472, %v3194_v54  ;;  %v2083_v26 = vadd.f32 %v2071_v17, %v2059_v52  ;;  %v2126_v16 = vsel %vm2124_vm3, %v2125_v47, %v2123_v29  ;;  %v4514_v43 = vpop.eup %3195 }
 0x259   : > { %v2131_v3 = vsub.f32 1.5, %v2130_v59  ;;  %v1806_v61 = vpop.f32.mrf.mxu2  ;;  %v2248_v46 = vsub.f32 %v2126_v16, %v4392_v60  ;;  %v2283_v7 = vmul.f32 %v2126_v16, %v2126_v16  ;;  %3199 = vlog2.f32 %v2126_v16  ;;  %v1731_v41 = vpop.f32.mrf.mxu0 }
 0x25a   : > { %v2353_v49 = vsub.f32 %v4436_v0, %v4510_v34  ;;  %v1845_v5 = vpop.f32.mrf.mxu3  ;;  %v3198_v25 = vpop.eup %3197  ;;  %v4519_v50 = vmax.f32 %v2083_v26, 1e-08  ;;  %v1807_v20 = vadd.f32 %v1806_v61, %v1768_v53  ;;  %v4523_v0 = vmax.f32 %v4268_v57, 1e-08 }
 0x25b   : > { %v2132_v13 = vmul.f32 %v3192_v14, %v2131_v3  ;;  %v1770_v28 = vpop.f32.mrf.mxu1  ;;  %v2260_v23 = vmul.f32 %v2248_v46, %v2248_v46  ;;  %v2294_v48 = vadd.f32 %v2283_v7, %v2282_v56  ;;  %v2140_v38 = vmul.f32 %v3198_v25, %v4488_v58 }
 0x25c   : > { %3201 = vrsqrt.f32 %v4519_v50  ;;  %v2137_v14 = vand.u32 2147483648, %v4452_v8  ;;  %v1846_v18 = vadd.f32 %v1845_v5, %v1807_v20  ;;  %v1771_v52 = vadd.f32 %v1770_v28, %v1731_v41 }
 0x25d   : > { %v2133_v60 = vmul.f32 %v2132_v13, %v4452_v8  ;;  %v2271_v63 = vadd.f32 %v2260_v23, %v2259_v32  ;;  %v2141_v27 = vmul.f32 %v3198_v25, %v2140_v38  ;;  %v2020_v26 = vmul.f32 %v4514_v43, %v4476_v22 }
 0x25e   : > { %v2072_v47 = vmul.f32 %v1846_v18, %v1846_v18  ;;  %v2013_v20 = vmul.f32 %v2012_v33, %v4418_v19  ;;  %v2365_v28 = vand.u32 2147483647, %v2353_v49  ;;  %v2061_v38 = vmul.f32 %v4302_v4, %v4302_v4 }
 0x25f   : > { %v2135_v10 = vsel %vm2134_vm4, %v4452_v8, %v2133_v60  ;;  %v3200_v57 = vpop.eup %3199  ;;  %v2142_v54 = vmul.f32 0.5, %v2141_v27  ;;  %vm2158_vm10 = vcmp.eq.f32.partialorder %v4519_v50, inf  ;;  %vm2160_vm11 = vcmp.eq.f32.partialorder %v4519_v50, 0.0 }
 0x260   : > { %v2138_v17 = vsel %vm2136_vm5, %v2137_v14, %v2135_v10  ;;  %v2332_v59 = vmul.f32 0.6931472, %v3200_v57  ;;  %v2084_v56 = vadd.f32 %v2072_v47, %v2060_v24  ;;  %v2149_v14 = vand.u32 2147483648, %v4488_v58 }
 0x261   : > { %v2249_v34 = vsub.f32 %v2138_v17, %v4403_v6  ;;  %v2284_v29 = vmul.f32 %v2138_v17, %v2138_v17  ;;  %3203 = vlog2.f32 %v2138_v17  ;;  %v1809_v21 = vpop.f32.mrf.mxu2  ;;  %v2143_v8 = vsub.f32 1.5, %v2142_v54  ;;  %v1733_v53 = vpop.f32.mrf.mxu0 }
 0x262   : > { %v1810_v16 = vadd.f32 %v1809_v21, %v1771_v52  ;;  %v1848_v3 = vpop.f32.mrf.mxu3  ;;  %v3202_v61 = vpop.eup %3201  ;;  %3205 = vrsqrt.f32 %v4523_v0  ;;  %v2354_v37 = vsub.f32 %v4443_v31, %v2332_v59  ;;  %v4542_v12 = vmax.f32 %v2084_v56, 1e-08 }
 0x263   : > { %v2261_v46 = vmul.f32 %v2249_v34, %v2249_v34  ;;  %v2295_v7 = vadd.f32 %v2294_v48, %v2284_v29  ;;  %v1772_v5 = vpop.f32.mrf.mxu1  ;;  %v2144_v6 = vmul.f32 %v3198_v25, %v2143_v8  ;;  %v2152_v41 = vmul.f32 %v3202_v61, %v4519_v50 }
 0x264   : > { %v1849_v13 = vadd.f32 %v1848_v3, %v1810_v16  ;;  %v2366_v32 = vand.u32 2147483647, %v2354_v37  ;;  %3207 = vrsqrt.f32 %v4542_v12  ;;  %v2015_v4 = vsel %vm2014_vm6, %v4418_v19, %v2013_v20 }
 0x265   : > { %v2272_v23 = vadd.f32 %v2271_v63, %v2261_v46  ;;  %v2145_v31 = vmul.f32 %v2144_v6, %v4488_v58  ;;  %v2153_v48 = vmul.f32 %v3202_v61, %v2152_v41  ;;  %v1773_v57 = vadd.f32 %v1772_v5, %v1733_v53 }
 0x266   : > { %v2377_v25 = vadd.f32 %v2366_v32, %v2365_v28  ;;  %v2073_v27 = vmul.f32 %v1849_v13, %v1849_v13  ;;  %v2161_v19 = vand.u32 2147483648, %v4519_v50  ;;  %vm2170_vm12 = vcmp.eq.f32.partialorder %v4542_v12, inf }
 0x267   : > { %v3204_v60 = vpop.eup %3203  ;;  %v2147_v49 = vsel %vm2146_vm8, %v4488_v58, %v2145_v31  ;;  %v2154_v63 = vmul.f32 0.5, %v2153_v48  ;;  %v2021_v58 = vmul.f32 %v4514_v43, %v2020_v26  ;;  %vm2172_vm13 = vcmp.eq.f32.partialorder %v4542_v12, 0.0 }
 0x268   : > { %v2334_v18 = vmul.f32 0.6931472, %v3204_v60  ;;  %v4553_v33 = vpop.eup %3205  ;;  %v2150_v10 = vsel %vm2148_vm9, %v2149_v14, %v2147_v49  ;;  %v2085_v52 = vadd.f32 %v2073_v27, %v2061_v38  ;;  %v2062_v60 = vmul.f32 %v4304_v40, %v4304_v40 }
 0x269   : > { %v1811_v24 = vpop.f32.mrf.mxu2  ;;  %v2250_v54 = vsub.f32 %v2150_v10, %v4410_v62  ;;  %v2285_v47 = vmul.f32 %v2150_v10, %v2150_v10  ;;  %3209 = vlog2.f32 %v2150_v10  ;;  %v1736_v34 = vpop.f32.mrf.mxu0  ;;  %v2155_v29 = vsub.f32 1.5, %v2154_v63 }
 0x26a   : > { %v2355_v17 = vsub.f32 %v4445_v9, %v2334_v18  ;;  %v1850_v59 = vpop.f32.mrf.mxu3  ;;  %v4561_v21 = vmax.f32 %v2085_v52, 1e-08  ;;  %v1812_v8 = vadd.f32 %v1811_v24, %v1773_v57  ;;  %v3208_v16 = vpop.eup %3207  ;;  %3211 = vlog2.f32 %v4498_v11 }
 0x26b   : > { %v1775_v56 = vpop.f32.mrf.mxu1  ;;  %v2262_v53 = vmul.f32 %v2250_v54, %v2250_v54  ;;  %v2296_v37 = vadd.f32 %v2295_v7, %v2285_v47  ;;  %v4568_v62 = vsel %vm2016_vm7, %v2017_v51, %v2015_v4  ;;  %v2156_v9 = vmul.f32 %v3202_v61, %v2155_v29 }
 0x26c   : > { %v2367_v3 = vand.u32 2147483647, %v2355_v17  ;;  %v2164_v26 = vmul.f32 %v3208_v16, %v4542_v12  ;;  %3213 = vrsqrt.f32 %v4561_v21  ;;  %v1776_v6 = vadd.f32 %v1775_v56, %v1736_v34 }
 0x26d   : > { %3215 = vlog2.f32 %v4506_v30  ;;  %v2273_v5 = vadd.f32 %v2272_v23, %v2262_v53  ;;  %v4573_v41 = vmul.f32 0.5, %v2021_v58  ;;  %v2157_v7 = vmul.f32 %v2156_v9, %v4519_v50 }
 0x26e   : > { %v2378_v46 = vadd.f32 %v2377_v25, %v2367_v3  ;;  %v2165_v13 = vmul.f32 %v3208_v16, %v2164_v26  ;;  %v1851_v20 = vadd.f32 %v1850_v59, %v1812_v8  ;;  %3217 = vlog2.f32 %v4568_v62 }
 0x26f   : > { %v3210_v28 = vpop.eup %3209  ;;  %v2159_v61 = vsel %vm2158_vm10, %v4519_v50, %v2157_v7  ;;  %v2032_v48 = vmul.f32 %v4553_v33, %v4523_v0  ;;  %v2023_v40 = vsub.f32 1.5, %v4573_v41  ;;  %v4596_v56 = vmax.f32 %v4276_v44, 1e-08 }
 0x270   : > { %v2336_v51 = vmul.f32 0.6931472, %v3210_v28  ;;  %v2166_v32 = vmul.f32 0.5, %v2165_v13  ;;  %v2074_v23 = vmul.f32 %v1851_v20, %v1851_v20  ;;  %v3212_v31 = vpop.eup %3211  ;;  %v2162_v25 = vsel %vm2160_vm11, %v2161_v19, %v2159_v61 }
 0x271   : > { %v1814_v38 = vpop.f32.mrf.mxu2  ;;  %v1738_v18 = vpop.f32.mrf.mxu0  ;;  %v2251_v4 = vsub.f32 %v2162_v25, %v4438_v15  ;;  %v2286_v50 = vmul.f32 %v2162_v25, %v2162_v25  ;;  %3219 = vlog2.f32 %v2162_v25  ;;  %v2063_v3 = vmul.f32 %v4312_v2, %v4312_v2 }
 0x272   : > { %v1815_v14 = vadd.f32 %v1814_v38, %v1776_v6  ;;  %v1853_v27 = vpop.f32.mrf.mxu3  ;;  %v3214_v49 = vpop.eup %3213  ;;  %v2356_v63 = vsub.f32 %v4454_v55, %v2336_v51  ;;  %v2167_v57 = vsub.f32 1.5, %v2166_v32  ;;  %v2086_v17 = vadd.f32 %v2074_v23, %v2062_v60 }
 0x273   : > { %v1777_v10 = vpop.f32.mrf.mxu1  ;;  %v4587_v52 = vpop.eup %3215  ;;  %v2176_v24 = vmul.f32 %v3214_v49, %v4561_v21  ;;  %v2263_v59 = vmul.f32 %v2251_v4, %v2251_v4  ;;  %v2297_v34 = vadd.f32 %v2296_v37, %v2286_v50  ;;  %v2033_v26 = vmul.f32 %v4553_v33, %v2032_v48 }
 0x274   : > { %v1854_v54 = vadd.f32 %v1853_v27, %v1815_v14  ;;  %v2368_v47 = vand.u32 2147483647, %v2356_v63  ;;  %v4591_v58 = vpop.eup %3217  ;;  %v2168_v55 = vmul.f32 %v3208_v16, %v2167_v57  ;;  %v4593_v15 = vmax.f32 %v2086_v17, 1e-08 }
 0x275   : > { %v2177_v29 = vmul.f32 %v3214_v49, %v2176_v24  ;;  %v2274_v9 = vadd.f32 %v2273_v5, %v2263_v59  ;;  %v2173_v41 = vand.u32 2147483648, %v4542_v12  ;;  %v1778_v44 = vadd.f32 %v1777_v10, %v1738_v18 }
 0x276   : > { %v2075_v8 = vmul.f32 %v1854_v54, %v1854_v54  ;;  %v2379_v53 = vadd.f32 %v2378_v46, %v2368_v47  ;;  %v2169_v6 = vmul.f32 %v2168_v55, %v4542_v12  ;;  %3221 = vrsqrt.f32 %v4593_v15 }
 0x277   : > { %v2178_v37 = vmul.f32 0.5, %v2177_v29  ;;  %v3220_v16 = vpop.eup %3219  ;;  %3223 = vrsqrt.f32 %v4596_v56  ;;  %v4612_v60 = vmul.f32 0.6931472, %v3212_v31  ;;  %v2034_v27 = vmul.f32 0.5, %v2033_v26 }
 0x278   : > { %v2087_v7 = vadd.f32 %v2075_v8, %v2063_v3  ;;  %v2338_v20 = vmul.f32 0.6931472, %v3220_v16  ;;  %v2171_v2 = vsel %vm2170_vm12, %v4542_v12, %v2169_v6  ;;  %v2024_v12 = vmul.f32 %v4514_v43, %v2023_v40 }
 0x279   : > { %v1816_v13 = vpop.f32.mrf.mxu2  ;;  %v2179_v46 = vsub.f32 1.5, %v2178_v37  ;;  %v2174_v28 = vsel %vm2172_vm13, %v2173_v41, %v2171_v2  ;;  %v1741_v61 = vpop.f32.mrf.mxu0  ;;  %vm2182_vm14 = vcmp.eq.f32.partialorder %v4561_v21, inf  ;;  %v2185_v43 = vand.u32 2147483648, %v4561_v21 }
 0x27a   : > { %v1855_v5 = vpop.f32.mrf.mxu3  ;;  %v4608_v19 = vmax.f32 %v2087_v7, 1e-08  ;;  %v1817_v51 = vadd.f32 %v1816_v13, %v1778_v44  ;;  %v2357_v23 = vsub.f32 %v4484_v45, %v2338_v20  ;;  %v2252_v38 = vsub.f32 %v2174_v28, %v4441_v39 }
 0x27b   : > { %v1780_v32 = vpop.f32.mrf.mxu1  ;;  %v2287_v48 = vmul.f32 %v2174_v28, %v2174_v28  ;;  %3225 = vlog2.f32 %v2174_v28  ;;  %v2180_v25 = vmul.f32 %v3214_v49, %v2179_v46  ;;  %vm2184_vm15 = vcmp.eq.f32.partialorder %v4561_v21, 0.0 }
 0x27c   : > { %3227 = vrsqrt.f32 %v4608_v19  ;;  %v3222_v14 = vpop.eup %3221  ;;  %v2369_v18 = vand.u32 2147483647, %v2357_v23  ;;  %v2264_v63 = vmul.f32 %v2252_v38, %v2252_v38  ;;  %v1856_v10 = vadd.f32 %v1855_v5, %v1817_v51 }
 0x27d   : > { %v2298_v4 = vadd.f32 %v2297_v34, %v2287_v48  ;;  %v2181_v50 = vmul.f32 %v2180_v25, %v4561_v21  ;;  %v2188_v45 = vmul.f32 %v3222_v14, %v4593_v15  ;;  %v1781_v39 = vadd.f32 %v1780_v32, %v1741_v61  ;;  %v4620_v31 = vpop.eup %3223 }
 0x27e   : > { %v2380_v57 = vadd.f32 %v2379_v53, %v2369_v18  ;;  %v2275_v24 = vadd.f32 %v2274_v9, %v2264_v63  ;;  %v2076_v54 = vmul.f32 %v1856_v10, %v1856_v10  ;;  %v2035_v59 = vsub.f32 1.5, %v2034_v27 }
 0x27f   : > { %v2183_v49 = vsel %vm2182_vm14, %v4561_v21, %v2181_v50  ;;  %v2189_v17 = vmul.f32 %v3222_v14, %v2188_v45  ;;  %v2064_v34 = vmul.f32 %v4324_v1, %v4324_v1  ;;  %v2044_v41 = vmul.f32 %v4620_v31, %v4596_v56 }
 0x280   : > { %v2186_v55 = vsel %vm2184_vm15, %v2185_v43, %v2183_v49  ;;  %v2025_v28 = vmul.f32 %v2024_v12, %v4476_v22  ;;  %v2065_v51 = vmul.f32 %v4338_v42, %v4338_v42  ;;  %v2036_v25 = vmul.f32 %v4553_v33, %v2035_v59 }
 0x281   : > { %v1819_v40 = vpop.f32.mrf.mxu2  ;;  %v3226_v47 = vpop.eup %3225  ;;  %v2253_v9 = vsub.f32 %v2186_v55, %v4498_v11  ;;  %v2288_v26 = vmul.f32 %v2186_v55, %v2186_v55  ;;  %3229 = vlog2.f32 %v2186_v55  ;;  %v2190_v6 = vmul.f32 0.5, %v2189_v17 }
 0x282   : > { %v1820_v29 = vadd.f32 %v1819_v40, %v1781_v39  ;;  %v1858_v8 = vpop.f32.mrf.mxu3  ;;  %v3228_v3 = vpop.eup %3227  ;;  %v2340_v53 = vmul.f32 0.6931472, %v3226_v47  ;;  %v2088_v37 = vadd.f32 %v2076_v54, %v2064_v34  ;;  %v2045_v27 = vmul.f32 %v4620_v31, %v2044_v41 }
 0x283   : > { %v2200_v21 = vmul.f32 %v3228_v3, %v4608_v19  ;;  %v2265_v1 = vmul.f32 %v2253_v9, %v2253_v9  ;;  %v2299_v44 = vadd.f32 %v2298_v4, %v2288_v26  ;;  %v1743_v13 = vpop.f32.mrf.mxu0  ;;  %v1782_v20 = vpop.f32.mrf.mxu1  ;;  %v2191_v2 = vsub.f32 1.5, %v2190_v6 }
 0x284   : > { %v1859_v16 = vadd.f32 %v1858_v8, %v1820_v29  ;;  %v2358_v7 = vsub.f32 %v4494_v36, %v2340_v53  ;;  %v4631_v5 = vmax.f32 %v2088_v37, 1e-08  ;;  %v1783_v36 = vadd.f32 %v1782_v20, %v1743_v13 }
 0x285   : > { %v2201_v46 = vmul.f32 %v3228_v3, %v2200_v21  ;;  %v2276_v32 = vadd.f32 %v2275_v24, %v2265_v1  ;;  %v2192_v23 = vmul.f32 %v3222_v14, %v2191_v2  ;;  %vm2194_vm1 = vcmp.eq.f32.partialorder %v4593_v15, inf }
 0x286   : > { %v2077_v11 = vmul.f32 %v1859_v16, %v1859_v16  ;;  %v2370_v61 = vand.u32 2147483647, %v2358_v7  ;;  %3231 = vrsqrt.f32 %v4631_v5  ;;  %vm2196_vm2 = vcmp.eq.f32.partialorder %v4593_v15, 0.0 }
 0x287   : > { %v2202_v38 = vmul.f32 0.5, %v2201_v46  ;;  %v3230_v48 = vpop.eup %3229  ;;  %v2193_v12 = vmul.f32 %v2192_v23, %v4593_v15  ;;  %v2197_v14 = vand.u32 2147483648, %v4593_v15  ;;  %vm2038_vm3 = vcmp.eq.f32.partialorder %v4523_v0, inf }
 0x288   : > { %v2381_v18 = vadd.f32 %v2380_v57, %v2370_v61  ;;  %v2089_v63 = vadd.f32 %v2077_v11, %v2065_v51  ;;  %v2342_v50 = vmul.f32 0.6931472, %v3230_v48  ;;  %v2046_v49 = vmul.f32 0.5, %v2045_v27 }
 0x289   : > { %v1821_v4 = vpop.f32.mrf.mxu2  ;;  %v2203_v45 = vsub.f32 1.5, %v2202_v38  ;;  %v2195_v57 = vsel %vm2194_vm1, %v4593_v15, %v2193_v12  ;;  %v2066_v17 = vmul.f32 %v4349_v35, %v4349_v35  ;;  %vm2028_vm4 = vcmp.eq.f32.partialorder %v4476_v22, 0.0 }
 0x28a   : > { %v1822_v42 = vadd.f32 %v1821_v4, %v1783_v36  ;;  %v4644_v10 = vmax.f32 %v2089_v63, 1e-08  ;;  %v1860_v33 = vpop.f32.mrf.mxu3  ;;  %v2359_v39 = vsub.f32 %v4612_v60, %v2342_v50  ;;  %v2198_v54 = vsel %vm2196_vm2, %v2197_v14, %v2195_v57 }
 0x28b   : > { %v2204_v24 = vmul.f32 %v3228_v3, %v2203_v45  ;;  %v2254_v59 = vsub.f32 %v2198_v54, %v4506_v30  ;;  %v2289_v34 = vmul.f32 %v2198_v54, %v2198_v54  ;;  %vm2206_vm5 = vcmp.eq.f32.partialorder %v4608_v19, inf }
 0x28c   : > { %v1861_v43 = vadd.f32 %v1860_v33, %v1822_v42  ;;  %3233 = vrsqrt.f32 %v4644_v10  ;;  %v3232_v40 = vpop.eup %3231  ;;  %v2371_v47 = vand.u32 2147483647, %v2359_v39  ;;  %v2209_v3 = vand.u32 2147483648, %v4608_v19 }
 0x28d   : > { %3235 = vlog2.f32 %v2198_v54  ;;  %v2205_v15 = vmul.f32 %v2204_v24, %v4608_v19  ;;  %v2212_v60 = vmul.f32 %v3232_v40, %v4631_v5  ;;  %v2266_v35 = vmul.f32 %v2254_v59, %v2254_v59 }
 0x28e   : > { %v2078_v55 = vmul.f32 %v1861_v43, %v1861_v43  ;;  %v2382_v29 = vadd.f32 %v2381_v18, %v2371_v47  ;;  %v2300_v8 = vadd.f32 %v2299_v44, %v2289_v34  ;;  %vm2208_vm6 = vcmp.eq.f32.partialorder %v4608_v19, 0.0 }
 0x28f   : > { %v2207_v53 = vsel %vm2206_vm5, %v4608_v19, %v2205_v15  ;;  %v2213_v30 = vmul.f32 %v3232_v40, %v2212_v60  ;;  %v2320_v26 = vmul.f32 0.6931472, %v4587_v52  ;;  %v2037_v6 = vmul.f32 %v2036_v25, %v4523_v0 }
 0x290   : > { %v2090_v9 = vadd.f32 %v2078_v55, %v2066_v17  ;;  %v2277_v21 = vadd.f32 %v2276_v32, %v2266_v35  ;;  %v2210_v37 = vsel %vm2208_vm6, %v2209_v3, %v2207_v53  ;;  %v2027_v13 = vsel %vm2026_vm0, %v4476_v22, %v2025_v28 }
 0x291   : > { %v2255_v41 = vsub.f32 %v2210_v37, %v4568_v62  ;;  %v2290_v7 = vmul.f32 %v2210_v37, %v2210_v37  ;;  %3237 = vlog2.f32 %v2210_v37  ;;  %v2214_v1 = vmul.f32 0.5, %v2213_v30 }
 0x292   : > { %v3234_v16 = vpop.eup %3233  ;;  %v2047_v19 = vsub.f32 1.5, %v2046_v49  ;;  %v4667_v2 = vmax.f32 %v2090_v9, 1e-08  ;;  %v2029_v61 = vand.u32 2147483648, %v4476_v22  ;;  %v2039_v62 = vsel %vm2038_vm3, %v4523_v0, %v2037_v6 }
 0x293   : > { %v3236_v44 = vpop.eup %3235  ;;  %v2224_v20 = vmul.f32 %v3234_v16, %v4644_v10  ;;  %v2267_v46 = vmul.f32 %v2255_v41, %v2255_v41  ;;  %v2301_v11 = vadd.f32 %v2300_v8, %v2290_v7  ;;  %v2215_v51 = vsub.f32 1.5, %v2214_v1 }
 0x294   : > { %v2344_v52 = vmul.f32 0.6931472, %v3236_v44  ;;  %3239 = vrsqrt.f32 %v4667_v2  ;;  %v2041_v28 = vand.u32 2147483648, %v4523_v0  ;;  %v2322_v48 = vmul.f32 0.6931472, %v4591_v58 }
 0x295   : > { %v2225_v32 = vmul.f32 %v3234_v16, %v2224_v20  ;;  %v2278_v38 = vadd.f32 %v2277_v21, %v2267_v46  ;;  %v2216_v36 = vmul.f32 %v3232_v40, %v2215_v51  ;;  %v2030_v25 = vsel %vm2028_vm4, %v2029_v61, %v2027_v13 }
 0x296   : > { %v2360_v23 = vsub.f32 %v2320_v26, %v2344_v52  ;;  %vm2040_vm7 = vcmp.eq.f32.partialorder %v4523_v0, 0.0  ;;  %v2048_v4 = vmul.f32 %v4620_v31, %v2047_v19  ;;  %vm2218_vm8 = vcmp.eq.f32.partialorder %v4631_v5, inf }
 0x297   : > { %v2226_v27 = vmul.f32 0.5, %v2225_v32  ;;  %v3238_v18 = vpop.eup %3237  ;;  %v2042_v63 = vsel %vm2040_vm7, %v2041_v28, %v2039_v62  ;;  %v2217_v12 = vmul.f32 %v2216_v36, %v4631_v5  ;;  %v2221_v42 = vand.u32 2147483648, %v4631_v5 }
 0x298   : > { %v2372_v50 = vand.u32 2147483647, %v2360_v23  ;;  %v2346_v45 = vmul.f32 0.6931472, %v3238_v18  ;;  %3241 = vlog2.f32 %v2030_v25  ;;  %vm2220_vm9 = vcmp.eq.f32.partialorder %v4631_v5, 0.0 }
 0x299   : > { %v2227_v14 = vsub.f32 1.5, %v2226_v27  ;;  %v2219_v22 = vsel %vm2218_vm8, %v4631_v5, %v2217_v12  ;;  %3243 = vlog2.f32 %v2042_v63  ;;  %v2049_v49 = vmul.f32 %v2048_v4, %v4596_v56 }
 0x29a   : > { %v2383_v58 = vadd.f32 %v2382_v29, %v2372_v50  ;;  %v3240_v0 = vpop.eup %3239  ;;  %v2361_v33 = vsub.f32 %v2322_v48, %v2346_v45  ;;  %v2222_v39 = vsel %vm2220_vm9, %v2221_v42, %v2219_v22  ;;  %vm2230_vm10 = vcmp.eq.f32.partialorder %v4644_v10, inf  ;;  %v2388_v48 = vld [vmem:[%s3539_s26] sm:$0xff]  ;;  %v2981_v22 = vld [vmem:[%s3539_s26 + $0x10] sm:$0xff] }
 0x29b   : > { %v2228_v31 = vmul.f32 %v3234_v16, %v2227_v14  ;;  %v2256_v57 = vsub.f32 %v2222_v39, %v2030_v25  ;;  %v2291_v24 = vmul.f32 %v2222_v39, %v2222_v39  ;;  %3245 = vlog2.f32 %v2222_v39  ;;  %v2979_v14 = vld [vmem:[%s3539_s26 + $0x8] sm:$0xff] }
 0x29c   : > { %v2236_v43 = vmul.f32 %v3240_v0, %v4667_v2  ;;  %v2373_v17 = vand.u32 2147483647, %v2361_v33  ;;  %v2233_v5 = vand.u32 2147483648, %v4644_v10  ;;  %vm2232_vm11 = vcmp.eq.f32.partialorder %v4644_v10, 0.0 }
 0x29d   : > { %v2229_v54 = vmul.f32 %v2228_v31, %v4644_v10  ;;  %v2268_v40 = vmul.f32 %v2256_v57, %v2256_v57  ;;  %v2302_v47 = vadd.f32 %v2301_v11, %v2291_v24  ;;  %vm2050_vm12 = vcmp.eq.f32.partialorder %v4596_v56, inf }
 0x29e   : > { %v2237_v59 = vmul.f32 %v3240_v0, %v2236_v43  ;;  %v2384_v34 = vadd.f32 %v2383_v58, %v2373_v17  ;;  %v3242_v60 = vpop.eup %3241  ;;  %v2051_v9 = vsel %vm2050_vm12, %v4596_v56, %v2049_v49  ;;  %v2053_v26 = vand.u32 2147483648, %v4596_v56 }
 0x29f   : > { %v2231_v15 = vsel %vm2230_vm10, %v4644_v10, %v2229_v54  ;;  %v2279_v55 = vadd.f32 %v2278_v38, %v2268_v40  ;;  %v3244_v8 = vpop.eup %3243  ;;  %v2324_v21 = vmul.f32 0.6931472, %v3242_v60  ;;  %vm2052_vm13 = vcmp.eq.f32.partialorder %v4596_v56, 0.0 }
 0x2a0   : > { %v2234_v29 = vsel %vm2232_vm11, %v2233_v5, %v2231_v15  ;;  %v2238_v35 = vmul.f32 0.5, %v2237_v59  ;;  %v2054_v7 = vsel %vm2052_vm13, %v2053_v26, %v2051_v9  ;;  %v2326_v20 = vmul.f32 0.6931472, %v3244_v8 }
 0x2a1   : > { %v2257_v3 = vsub.f32 %v2234_v29, %v2042_v63  ;;  %v2292_v53 = vmul.f32 %v2234_v29, %v2234_v29  ;;  %3247 = vlog2.f32 %v2234_v29  ;;  %v3246_v30 = vpop.eup %3245  ;;  %vm2242_vm14 = vcmp.eq.f32.partialorder %v4667_v2, inf }
 0x2a2   : > { %v2239_v6 = vsub.f32 1.5, %v2238_v35  ;;  %v2348_v37 = vmul.f32 0.6931472, %v3246_v30  ;;  %v2245_v46 = vand.u32 2147483648, %v4667_v2  ;;  %3249 = vlog2.f32 %v2054_v7 }
 0x2a3   : > { %v2269_v16 = vmul.f32 %v2257_v3, %v2257_v3  ;;  %v2303_v10 = vadd.f32 %v2302_v47, %v2292_v53  ;;  %vm2244_vm15 = vcmp.eq.f32.partialorder %v4667_v2, 0.0 }
 0x2a4   : > { %v2240_v41 = vmul.f32 %v3240_v0, %v2239_v6  ;;  %v2362_v1 = vsub.f32 %v2324_v21, %v2348_v37 }
 0x2a5   : > { %v2280_v44 = vadd.f32 %v2279_v55, %v2269_v16 }
 0x2a6   : > { %v2241_v13 = vmul.f32 %v2240_v41, %v4667_v2  ;;  %v2374_v52 = vand.u32 2147483647, %v2362_v1 }
 0x2a7   : > { %v3248_v19 = vpop.eup %3247 }
 0x2a8   : > { %v2350_v11 = vmul.f32 0.6931472, %v3248_v19  ;;  %v2243_v51 = vsel %vm2242_vm14, %v4667_v2, %v2241_v13  ;;  %v2385_v56 = vadd.f32 %v2384_v34, %v2374_v52  ;;  %v3250_v25 = vpop.eup %3249 }
 0x2a9   : > { %v2246_v61 = vsel %vm2244_vm15, %v2245_v46, %v2243_v51  ;;  %v2328_v4 = vmul.f32 0.6931472, %v3250_v25 }
 0x2aa   : > { %v2363_v62 = vsub.f32 %v2326_v20, %v2350_v11  ;;  %v2258_v32 = vsub.f32 %v2246_v61, %v2054_v7  ;;  %v2293_v28 = vmul.f32 %v2246_v61, %v2246_v61  ;;  %3251 = vlog2.f32 %v2246_v61 }
 0x2ac   : > { %v2375_v23 = vand.u32 2147483647, %v2363_v62  ;;  %v2270_v38 = vmul.f32 %v2258_v32, %v2258_v32  ;;  %v2304_v36 = vadd.f32 %v2303_v10, %v2293_v28 }
 0x2ae   : > { %v2386_v27 = vadd.f32 %v2385_v56, %v2375_v23  ;;  %v2281_v18 = vadd.f32 %v2280_v44, %v2270_v38  ;;  %v2393_v58 = vadd.f32 %v2979_v14, %v2304_v36 }
 0x2b0   : > { %v3252_v63 = vpop.eup %3251  ;;  %v2389_v2 = vadd.f32 %v2388_v48, %v2281_v18  ;;  %2980 = vst [vmem:[%s3539_s26 + $0x8] sm:$0xff] %v2393_v58 }
 0x2b1   : > { %v2352_v50 = vmul.f32 0.6931472, %v3252_v63 }
 0x2b2   : > { %2390 = vst [vmem:[%s3539_s26] sm:$0xff] %v2389_v2 }
 0x2b3   : > { %v2364_v12 = vsub.f32 %v2328_v4, %v2352_v50 }
 0x2b5   : > { %v2376_v45 = vand.u32 2147483647, %v2364_v12 }
 0x2b7   : > { %v2387_v42 = vadd.f32 %v2386_v27, %v2376_v45 }
 0x2b9   : > { %v2397_v0 = vadd.f32 %v2981_v22, %v2387_v42 }
 0x2bb   : > { %2982 = vst [vmem:[%s3539_s26 + $0x10] sm:$0xff] %v2397_v0 }
 0x2bc PF: > { %s13_s18 = sadd.s32 1, %s3307_s18   ;;  %s4807_s12 = smov %s3287_s13 }
 0x2bd   : > { %p10_p13 = scmp.ge.s32.totalorder %s13_s18, 8   ;;  %s4808_s13 = smov %s3379_s23 }
 0x2be   : > { %s4809_s14 = smov %s3299_s16  ;;  %s4810_s15 = smov %s3303_s17 }
 0x2bf   : > { %s4811_s16 = smov %s4814_s19  ;;  %s4812_s17 = smov %s4818_s20 }
 0x2c0   :  { %12 = sbr.rel (!%p10_p13) target bundleno = 4 (0x4), region = 117 }

</bundles_post_ra>
